<compile_context>
chip_gen: v7x
topology: tpu7x:2x2x1
jax: 0.10.0
libtpu: 0.0.40
codegen_flags: <defaults>
</compile_context>

<pallas_src>
import jax
import jax.numpy as jnp
from jax import lax
from jax.experimental import pallas as pl
from jax.experimental.pallas import tpu as pltpu

N_EMBD = 64       # n_embd in the PyTorch module
BLOCK_SIZE = 32   # block_size in the PyTorch module (max sequence length)


def _mha_kernel(x_ref, wq_ref, wk_ref, wv_ref, wproj_ref, bproj_ref, o_ref):
    """One grid step = BB batch elements.

    x_ref    : (BB, T, C)    input activations
    wq_ref   : (nh, C, H)    per-head query weights (softmax scale pre-folded)
    wk_ref   : (nh, C, H)    per-head key weights
    wv_ref   : (nh, C, H)    per-head value weights
    wproj_ref: (nh, H, C)    output projection, split per head along the lead axis
    bproj_ref: (1, C)        output projection bias
    o_ref    : (BB, T, C)    output
    """
    BB, T, C = x_ref.shape
    nh, _, H = wq_ref.shape
    N = BB * T

    x = x_ref[...]                      # keep input dtype (bf16 stays on fast MXU path)
    x2 = x.reshape(N, C)                # leading-dim regroup only (free)

    # Additive causal mask, built ONCE per grid step (hoisted out of the head loop).
    # Large finite negative instead of -inf: exp underflows to exactly 0, no NaNs.
    row = lax.broadcasted_iota(jnp.int32, (T, T), 0)
    col = lax.broadcasted_iota(jnp.int32, (T, T), 1)
    mask_bias = jnp.where(col <= row, 0.0, -1e30).astype(jnp.float32)[None, :, :]

    # Accumulator for the output projection; starts at the bias and broadcasts to
    # (N, C) on the first head's accumulate.  Only this value carries across heads.
    out = bproj_ref[...].astype(jnp.float32)                          # (1, C)

    for h in range(nh):                 # 4 iterations; per-head temporaries die each iter
        # Per-head QKV projections: weights indexed on the LEADING axis (free),
        # (N, C) @ (C, H) on the MXU with f32 accumulation.  The softmax scale is
        # already folded into wq by the wrapper.
        q = jnp.dot(x2, wq_ref[h], preferred_element_type=jnp.float32).astype(x.dtype)
        k = jnp.dot(x2, wk_ref[h], preferred_element_type=jnp.float32).astype(x.dtype)
        v = jnp.dot(x2, wv_ref[h], preferred_element_type=jnp.float32).astype(x.dtype)
        q3 = q.reshape(BB, T, H)        # leading-dim split (T % 8 == 0) -> free
        k3 = k.reshape(BB, T, H)
        v3 = v.reshape(BB, T, H)

        # Scores: contract on the last axis of both operands (no explicit k.T).
        s = jnp.einsum("bqd,bkd->bqk", q3, k3,
                       preferred_element_type=jnp.float32)            # (BB, T, T) f32
        s = s + mask_bias

        # Softmax over the key axis (f32 math; exp/recip use the EUP slot).
        s = s - jnp.max(s, axis=-1, keepdims=True)
        p = jnp.exp(s)
        p = p * pl.reciprocal(jnp.sum(p, axis=-1, keepdims=True))     # exact reciprocal

        # TODO(synk): training-mode dropout on `p` would need pltpu.prng_seed +
        #             pltpu.prng_random_bits here; eval mode -> identity.

        o_h = jnp.einsum("bqk,bkd->bqd", p.astype(v3.dtype), v3,
                         preferred_element_type=jnp.float32)          # (BB, T, H) f32

        # Accumulate this head straight into the output projection: no concat,
        # no lane-axis reshuffle; W_proj row-block selected on the leading axis.
        out = out + jnp.dot(o_h.reshape(N, H).astype(x.dtype), wproj_ref[h],
                            preferred_element_type=jnp.float32)       # (N, C) f32

    # TODO(synk): training-mode dropout on the projected output; eval mode -> identity.
    o_ref[...] = out.reshape(BB, T, C).astype(o_ref.dtype)


def mha_forward(x, w_q, w_k, w_v, w_proj, b_proj):
    """x: (B, T, C); w_q/w_k/w_v: (num_heads, C, head_size) (transpose of the torch
    Linear weights, stacked per head); w_proj: (C, C); b_proj: (C,).
    Returns (B, T, C) — eval-mode MultiHeadAttention forward."""
    B, T, C = x.shape
    nh, Cw, H = w_q.shape
    assert Cw == C and nh * H == C, "proj expects concat(heads) width == n_embd"

    # Fold the softmax scale (C ** -0.5 with C = n_embd, exactly as in the PyTorch
    # Head.forward) into the Q weights.  Parameter transform — in real use do this
    # once at parameter-prep time, not per call.
    scale = float(C) ** (-0.5)
    w_q = (w_q * scale).astype(w_q.dtype)

    # Output projection split per head along the leading axis so the kernel never
    # slices lanes: w_proj_h[h, d, c] == w_proj[h*H + d, c].
    w_proj_h = w_proj.reshape(nh, H, C)
    b_proj2 = b_proj.reshape(1, C)

    # ---- batch-block / grid selection ----------------------------------------
    # Per-grid-step overhead is ~0.35us, so target >= ~1024 matmul rows per step,
    # but keep the grid a multiple of 2 when B >= 2 so v7x's two TensorCores both
    # get work.  Pad B up to a multiple of the block instead of shrinking the
    # block to whatever divides B (prime B would otherwise degrade to BB=1).
    target_rows = 1024
    if B <= 1:
        n_blocks = 1
    else:
        n_blocks = max(2, pl.cdiv(B, max(1, target_rows // T)))
        n_blocks += n_blocks % 2              # even -> balanced across 2 TCs
    BB = pl.cdiv(B, n_blocks)
    B_pad = BB * n_blocks
    if B_pad != B:
        x = jnp.pad(x, ((0, B_pad - B), (0, 0), (0, 0)))

    out = pl.pallas_call(
        _mha_kernel,
        out_shape=jax.ShapeDtypeStruct((B_pad, T, C), x.dtype),
        grid_spec=pltpu.PrefetchScalarGridSpec(
            num_scalar_prefetch=0,
            grid=(n_blocks,),
            in_specs=[
                pl.BlockSpec((BB, T, C), lambda b: (b, 0, 0)),      # x slab
                pl.BlockSpec((nh, C, H), lambda b: (0, 0, 0)),      # W_q (scaled)
                pl.BlockSpec((nh, C, H), lambda b: (0, 0, 0)),      # W_k
                pl.BlockSpec((nh, C, H), lambda b: (0, 0, 0)),      # W_v
                pl.BlockSpec((nh, H, C), lambda b: (0, 0, 0)),      # W_proj per head
                pl.BlockSpec((1, C), lambda b: (0, 0)),             # b_proj
            ],
            out_specs=pl.BlockSpec((BB, T, C), lambda b: (b, 0, 0)),
        ),
        compiler_params=pltpu.CompilerParams(
            dimension_semantics=("parallel",),   # shard batch blocks across v7x's 2 TCs
        ),
    )(x, w_q, w_k, w_v, w_proj_h, b_proj2)

    return out[:B] if B_pad != B else out


def mha_reference(x, w_q, w_k, w_v, w_proj, b_proj):
    """Pure-JAX reference matching the PyTorch MultiHeadAttention forward (eval mode)."""
    B, T, C = x.shape
    scale = C ** (-0.5)
    q = jnp.einsum("btc,hcd->bhtd", x, w_q)
    k = jnp.einsum("btc,hcd->bhtd", x, w_k)
    v = jnp.einsum("btc,hcd->bhtd", x, w_v)
    wei = jnp.einsum("bhtd,bhsd->bhts", q, k) * scale
    causal = jnp.tril(jnp.ones((T, T), dtype=bool))
    wei = jnp.where(causal, wei, -jnp.inf)
    wei = jax.nn.softmax(wei, axis=-1)
    o = jnp.einsum("bhts,bhsd->bhtd", wei, v)                 # (B, nh, T, H)
    o = jnp.transpose(o, (0, 2, 1, 3)).reshape(B, T, C)       # concat(heads, dim=-1)
    return o @ w_proj + b_proj


if __name__ == "__main__":
    B, T, C = 16, BLOCK_SIZE, N_EMBD
    num_heads, head_size = 4, 16            # num_heads * head_size == n_embd

    key = jax.random.PRNGKey(0)
    kx, kq, kk, kv, kp, kb = jax.random.split(key, 6)

    x = jax.random.normal(kx, (B, T, C), dtype=jnp.float32)

    # Per-head weights stored as (C, H) = transpose of torch Linear.weight,
    # U(-1/sqrt(fan_in), 1/sqrt(fan_in)) like the nn.Linear default init.
    bound = 1.0 / (C ** 0.5)
    w_q = jax.random.uniform(kq, (num_heads, C, head_size), jnp.float32, -bound, bound)
    w_k = jax.random.uniform(kk, (num_heads, C, head_size), jnp.float32, -bound, bound)
    w_v = jax.random.uniform(kv, (num_heads, C, head_size), jnp.float32, -bound, bound)
    w_proj = jax.random.uniform(kp, (C, C), jnp.float32, -bound, bound)
    b_proj = jax.random.uniform(kb, (C,), jnp.float32, -bound, bound)

    out = mha_forward(x, w_q, w_k, w_v, w_proj, b_proj)
    out = jax.block_until_ready(out)

    ref = mha_reference(x, w_q, w_k, w_v, w_proj, b_proj)
    assert out.shape == (B, T, C)
    # Exact softmax reciprocal is used; remaining tolerance covers MXU f32
    # (bf16-pass) matmul accumulation-order differences vs the XLA reference.
    assert jnp.allclose(out, ref, atol=5e-3, rtol=5e-3), "mismatch vs reference"

    print("KERNEL_OK")
</pallas_src>

<mosaic_0001>
module attributes {stable_mosaic.version = 11 : i64} {
  func.func @_mha_kernel(%arg0: i32, %arg1: memref<8x32x64xf32, #tpu.memory_space<vmem>>, %arg2: memref<4x64x16xf32, #tpu.memory_space<vmem>>, %arg3: memref<4x64x16xf32, #tpu.memory_space<vmem>>, %arg4: memref<4x64x16xf32, #tpu.memory_space<vmem>>, %arg5: memref<4x16x64xf32, #tpu.memory_space<vmem>>, %arg6: memref<1x64xf32, #tpu.memory_space<vmem>>, %arg7: memref<8x32x64xf32, #tpu.memory_space<vmem>>) attributes {dimension_semantics = [#tpu.dimension_semantics<parallel>], iteration_bounds = array<i64: 2>, scalar_prefetch = 0 : i64, scratch_operands = 0 : i64, tpu.core_type = #tpu.core_type<tc>, window_params = [{transform_indices = @transform_0, window_bounds = array<i64: 8, 32, 64>}, {pipeline_mode = #tpu.pipeline_mode<synchronous>, transform_indices = @transform_1, window_bounds = array<i64: 4, 64, 16>}, {pipeline_mode = #tpu.pipeline_mode<synchronous>, transform_indices = @transform_2, window_bounds = array<i64: 4, 64, 16>}, {pipeline_mode = #tpu.pipeline_mode<synchronous>, transform_indices = @transform_3, window_bounds = array<i64: 4, 64, 16>}, {pipeline_mode = #tpu.pipeline_mode<synchronous>, transform_indices = @transform_4, window_bounds = array<i64: 4, 16, 64>}, {pipeline_mode = #tpu.pipeline_mode<synchronous>, transform_indices = @transform_5, window_bounds = array<i64: 1, 64>}, {transform_indices = @transform_6, window_bounds = array<i64: 8, 32, 64>}]} {
    %c0 = arith.constant 0 : index
    %c0_0 = arith.constant 0 : index
    %c0_1 = arith.constant 0 : index
    %0 = vector.load %arg1[%c0, %c0_0, %c0_1] : memref<8x32x64xf32, #tpu.memory_space<vmem>>, vector<8x32x64xf32>
    %1 = vector.shape_cast %0 : vector<8x32x64xf32> to vector<256x64xf32>
    %2 = tpu.iota {dimensions = array<i32: 0>} : vector<32x32xi32>
    %3 = tpu.iota {dimensions = array<i32: 1>} : vector<32x32xi32>
    %4 = arith.cmpi sle, %3, %2 : vector<32x32xi32>
    %cst = arith.constant 0.000000e+00 : f32
    %cst_2 = arith.constant -1.000000e+30 : f32
    %5 = vector.broadcast %cst : f32 to vector<32x32xf32>
    %6 = vector.broadcast %cst_2 : f32 to vector<32x32xf32>
    %7 = arith.select %4, %5, %6 : vector<32x32xi1>, vector<32x32xf32>
    %8 = vector.shape_cast %7 : vector<32x32xf32> to vector<1x32x32xf32>
    %c0_3 = arith.constant 0 : index
    %c0_4 = arith.constant 0 : index
    %9 = vector.load %arg6[%c0_3, %c0_4] : memref<1x64xf32, #tpu.memory_space<vmem>>, vector<1x64xf32>
    %c0_5 = arith.constant 0 : index
    %c0_6 = arith.constant 0 : index
    %c0_7 = arith.constant 0 : index
    %10 = vector.load %arg2[%c0_5, %c0_6, %c0_7] : memref<4x64x16xf32, #tpu.memory_space<vmem>>, vector<1x64x16xf32>
    %11 = vector.shape_cast %10 : vector<1x64x16xf32> to vector<64x16xf32>
    %cst_8 = arith.constant dense<0.000000e+00> : vector<256x16xf32>
    %12 = tpu.matmul %1, %11, %cst_8 {dimension_numbers = #tpu.dot_dimension_numbers<[1], [0], [0], [1], [0, 0, 1, 1], [], []>} : vector<256x64xf32>, vector<64x16xf32>, vector<256x16xf32> -> vector<256x16xf32>
    %c0_9 = arith.constant 0 : index
    %c0_10 = arith.constant 0 : index
    %c0_11 = arith.constant 0 : index
    %13 = vector.load %arg3[%c0_9, %c0_10, %c0_11] : memref<4x64x16xf32, #tpu.memory_space<vmem>>, vector<1x64x16xf32>
    %14 = vector.shape_cast %13 : vector<1x64x16xf32> to vector<64x16xf32>
    %cst_12 = arith.constant dense<0.000000e+00> : vector<256x16xf32>
    %15 = tpu.matmul %1, %14, %cst_12 {dimension_numbers = #tpu.dot_dimension_numbers<[1], [0], [0], [1], [0, 0, 1, 1], [], []>} : vector<256x64xf32>, vector<64x16xf32>, vector<256x16xf32> -> vector<256x16xf32>
    %c0_13 = arith.constant 0 : index
    %c0_14 = arith.constant 0 : index
    %c0_15 = arith.constant 0 : index
    %16 = vector.load %arg4[%c0_13, %c0_14, %c0_15] : memref<4x64x16xf32, #tpu.memory_space<vmem>>, vector<1x64x16xf32>
    %17 = vector.shape_cast %16 : vector<1x64x16xf32> to vector<64x16xf32>
    %cst_16 = arith.constant dense<0.000000e+00> : vector<256x16xf32>
    %18 = tpu.matmul %1, %17, %cst_16 {dimension_numbers = #tpu.dot_dimension_numbers<[1], [0], [0], [1], [0, 0, 1, 1], [], []>} : vector<256x64xf32>, vector<64x16xf32>, vector<256x16xf32> -> vector<256x16xf32>
    %19 = vector.shape_cast %12 : vector<256x16xf32> to vector<8x32x16xf32>
    %20 = vector.shape_cast %15 : vector<256x16xf32> to vector<8x32x16xf32>
    %21 = vector.shape_cast %18 : vector<256x16xf32> to vector<8x32x16xf32>
    "tpu.trace_start"() <{level = 10 : i32, message = "bqd,bkd->bqk"}> : () -> ()
    %cst_17 = arith.constant dense<0.000000e+00> : vector<8x32x32xf32>
    %22 = tpu.matmul %19, %20, %cst_17 {dimension_numbers = #tpu.dot_dimension_numbers<[2], [2], [1], [1], [0, 0, 0, 1, 1, 1], [0], [0]>} : vector<8x32x16xf32>, vector<8x32x16xf32>, vector<8x32x32xf32> -> vector<8x32x32xf32>
    "tpu.trace_stop"() : () -> ()
    %23 = vector.broadcast %8 : vector<1x32x32xf32> to vector<8x32x32xf32>
    %24 = arith.addf %22, %23 : vector<8x32x32xf32>
    %cst_18 = arith.constant dense<0xFF800000> : vector<8x32xf32>
    %25 = vector.multi_reduction <maximumf>, %24, %cst_18 [2] : vector<8x32x32xf32> to vector<8x32xf32>
    %26 = vector.shape_cast %25 : vector<8x32xf32> to vector<8x32x1xf32>
    %27 = vector.broadcast %26 : vector<8x32x1xf32> to vector<8x32x32xf32>
    %28 = arith.subf %24, %27 : vector<8x32x32xf32>
    %29 = math.exp %28 : vector<8x32x32xf32>
    %cst_19 = arith.constant dense<0.000000e+00> : vector<8x32xf32>
    %30 = vector.multi_reduction <add>, %29, %cst_19 [2] : vector<8x32x32xf32> to vector<8x32xf32>
    %31 = vector.shape_cast %30 : vector<8x32xf32> to vector<8x32x1xf32>
    %32 = tpu.reciprocal %31 : vector<8x32x1xf32> -> vector<8x32x1xf32>
    %33 = vector.broadcast %32 : vector<8x32x1xf32> to vector<8x32x32xf32>
    %34 = arith.mulf %29, %33 : vector<8x32x32xf32>
    "tpu.trace_start"() <{level = 10 : i32, message = "bqk,bkd->bqd"}> : () -> ()
    %cst_20 = arith.constant dense<0.000000e+00> : vector<8x32x16xf32>
    %35 = tpu.matmul %34, %21, %cst_20 {dimension_numbers = #tpu.dot_dimension_numbers<[2], [1], [1], [2], [0, 0, 0, 1, 1, 2], [0], [0]>} : vector<8x32x32xf32>, vector<8x32x16xf32>, vector<8x32x16xf32> -> vector<8x32x16xf32>
    "tpu.trace_stop"() : () -> ()
    %36 = vector.shape_cast %35 : vector<8x32x16xf32> to vector<256x16xf32>
    %c0_21 = arith.constant 0 : index
    %c0_22 = arith.constant 0 : index
    %c0_23 = arith.constant 0 : index
    %37 = vector.load %arg5[%c0_21, %c0_22, %c0_23] : memref<4x16x64xf32, #tpu.memory_space<vmem>>, vector<1x16x64xf32>
    %38 = vector.shape_cast %37 : vector<1x16x64xf32> to vector<16x64xf32>
    %cst_24 = arith.constant dense<0.000000e+00> : vector<256x64xf32>
    %39 = tpu.matmul %36, %38, %cst_24 {dimension_numbers = #tpu.dot_dimension_numbers<[1], [0], [0], [1], [0, 0, 1, 1], [], []>} : vector<256x16xf32>, vector<16x64xf32>, vector<256x64xf32> -> vector<256x64xf32>
    %40 = vector.broadcast %9 : vector<1x64xf32> to vector<256x64xf32>
    %41 = arith.addf %40, %39 : vector<256x64xf32>
    %c1 = arith.constant 1 : index
    %c0_25 = arith.constant 0 : index
    %c0_26 = arith.constant 0 : index
    %42 = vector.load %arg2[%c1, %c0_25, %c0_26] : memref<4x64x16xf32, #tpu.memory_space<vmem>>, vector<1x64x16xf32>
    %43 = vector.shape_cast %42 : vector<1x64x16xf32> to vector<64x16xf32>
    %cst_27 = arith.constant dense<0.000000e+00> : vector<256x16xf32>
    %44 = tpu.matmul %1, %43, %cst_27 {dimension_numbers = #tpu.dot_dimension_numbers<[1], [0], [0], [1], [0, 0, 1, 1], [], []>} : vector<256x64xf32>, vector<64x16xf32>, vector<256x16xf32> -> vector<256x16xf32>
    %c1_28 = arith.constant 1 : index
    %c0_29 = arith.constant 0 : index
    %c0_30 = arith.constant 0 : index
    %45 = vector.load %arg3[%c1_28, %c0_29, %c0_30] : memref<4x64x16xf32, #tpu.memory_space<vmem>>, vector<1x64x16xf32>
    %46 = vector.shape_cast %45 : vector<1x64x16xf32> to vector<64x16xf32>
    %cst_31 = arith.constant dense<0.000000e+00> : vector<256x16xf32>
    %47 = tpu.matmul %1, %46, %cst_31 {dimension_numbers = #tpu.dot_dimension_numbers<[1], [0], [0], [1], [0, 0, 1, 1], [], []>} : vector<256x64xf32>, vector<64x16xf32>, vector<256x16xf32> -> vector<256x16xf32>
    %c1_32 = arith.constant 1 : index
    %c0_33 = arith.constant 0 : index
    %c0_34 = arith.constant 0 : index
    %48 = vector.load %arg4[%c1_32, %c0_33, %c0_34] : memref<4x64x16xf32, #tpu.memory_space<vmem>>, vector<1x64x16xf32>
    %49 = vector.shape_cast %48 : vector<1x64x16xf32> to vector<64x16xf32>
    %cst_35 = arith.constant dense<0.000000e+00> : vector<256x16xf32>
    %50 = tpu.matmul %1, %49, %cst_35 {dimension_numbers = #tpu.dot_dimension_numbers<[1], [0], [0], [1], [0, 0, 1, 1], [], []>} : vector<256x64xf32>, vector<64x16xf32>, vector<256x16xf32> -> vector<256x16xf32>
    %51 = vector.shape_cast %44 : vector<256x16xf32> to vector<8x32x16xf32>
    %52 = vector.shape_cast %47 : vector<256x16xf32> to vector<8x32x16xf32>
    %53 = vector.shape_cast %50 : vector<256x16xf32> to vector<8x32x16xf32>
    "tpu.trace_start"() <{level = 10 : i32, message = "bqd,bkd->bqk"}> : () -> ()
    %cst_36 = arith.constant dense<0.000000e+00> : vector<8x32x32xf32>
    %54 = tpu.matmul %51, %52, %cst_36 {dimension_numbers = #tpu.dot_dimension_numbers<[2], [2], [1], [1], [0, 0, 0, 1, 1, 1], [0], [0]>} : vector<8x32x16xf32>, vector<8x32x16xf32>, vector<8x32x32xf32> -> vector<8x32x32xf32>
    "tpu.trace_stop"() : () -> ()
    %55 = vector.broadcast %8 : vector<1x32x32xf32> to vector<8x32x32xf32>
    %56 = arith.addf %54, %55 : vector<8x32x32xf32>
    %cst_37 = arith.constant dense<0xFF800000> : vector<8x32xf32>
    %57 = vector.multi_reduction <maximumf>, %56, %cst_37 [2] : vector<8x32x32xf32> to vector<8x32xf32>
    %58 = vector.shape_cast %57 : vector<8x32xf32> to vector<8x32x1xf32>
    %59 = vector.broadcast %58 : vector<8x32x1xf32> to vector<8x32x32xf32>
    %60 = arith.subf %56, %59 : vector<8x32x32xf32>
    %61 = math.exp %60 : vector<8x32x32xf32>
    %cst_38 = arith.constant dense<0.000000e+00> : vector<8x32xf32>
    %62 = vector.multi_reduction <add>, %61, %cst_38 [2] : vector<8x32x32xf32> to vector<8x32xf32>
    %63 = vector.shape_cast %62 : vector<8x32xf32> to vector<8x32x1xf32>
    %64 = tpu.reciprocal %63 : vector<8x32x1xf32> -> vector<8x32x1xf32>
    %65 = vector.broadcast %64 : vector<8x32x1xf32> to vector<8x32x32xf32>
    %66 = arith.mulf %61, %65 : vector<8x32x32xf32>
    "tpu.trace_start"() <{level = 10 : i32, message = "bqk,bkd->bqd"}> : () -> ()
    %cst_39 = arith.constant dense<0.000000e+00> : vector<8x32x16xf32>
    %67 = tpu.matmul %66, %53, %cst_39 {dimension_numbers = #tpu.dot_dimension_numbers<[2], [1], [1], [2], [0, 0, 0, 1, 1, 2], [0], [0]>} : vector<8x32x32xf32>, vector<8x32x16xf32>, vector<8x32x16xf32> -> vector<8x32x16xf32>
    "tpu.trace_stop"() : () -> ()
    %68 = vector.shape_cast %67 : vector<8x32x16xf32> to vector<256x16xf32>
    %c1_40 = arith.constant 1 : index
    %c0_41 = arith.constant 0 : index
    %c0_42 = arith.constant 0 : index
    %69 = vector.load %arg5[%c1_40, %c0_41, %c0_42] : memref<4x16x64xf32, #tpu.memory_space<vmem>>, vector<1x16x64xf32>
    %70 = vector.shape_cast %69 : vector<1x16x64xf32> to vector<16x64xf32>
    %cst_43 = arith.constant dense<0.000000e+00> : vector<256x64xf32>
    %71 = tpu.matmul %68, %70, %cst_43 {dimension_numbers = #tpu.dot_dimension_numbers<[1], [0], [0], [1], [0, 0, 1, 1], [], []>} : vector<256x16xf32>, vector<16x64xf32>, vector<256x64xf32> -> vector<256x64xf32>
    %72 = arith.addf %41, %71 : vector<256x64xf32>
    %c2 = arith.constant 2 : index
    %c0_44 = arith.constant 0 : index
    %c0_45 = arith.constant 0 : index
    %73 = vector.load %arg2[%c2, %c0_44, %c0_45] : memref<4x64x16xf32, #tpu.memory_space<vmem>>, vector<1x64x16xf32>
    %74 = vector.shape_cast %73 : vector<1x64x16xf32> to vector<64x16xf32>
    %cst_46 = arith.constant dense<0.000000e+00> : vector<256x16xf32>
    %75 = tpu.matmul %1, %74, %cst_46 {dimension_numbers = #tpu.dot_dimension_numbers<[1], [0], [0], [1], [0, 0, 1, 1], [], []>} : vector<256x64xf32>, vector<64x16xf32>, vector<256x16xf32> -> vector<256x16xf32>
    %c2_47 = arith.constant 2 : index
    %c0_48 = arith.constant 0 : index
    %c0_49 = arith.constant 0 : index
    %76 = vector.load %arg3[%c2_47, %c0_48, %c0_49] : memref<4x64x16xf32, #tpu.memory_space<vmem>>, vector<1x64x16xf32>
    %77 = vector.shape_cast %76 : vector<1x64x16xf32> to vector<64x16xf32>
    %cst_50 = arith.constant dense<0.000000e+00> : vector<256x16xf32>
    %78 = tpu.matmul %1, %77, %cst_50 {dimension_numbers = #tpu.dot_dimension_numbers<[1], [0], [0], [1], [0, 0, 1, 1], [], []>} : vector<256x64xf32>, vector<64x16xf32>, vector<256x16xf32> -> vector<256x16xf32>
    %c2_51 = arith.constant 2 : index
    %c0_52 = arith.constant 0 : index
    %c0_53 = arith.constant 0 : index
    %79 = vector.load %arg4[%c2_51, %c0_52, %c0_53] : memref<4x64x16xf32, #tpu.memory_space<vmem>>, vector<1x64x16xf32>
    %80 = vector.shape_cast %79 : vector<1x64x16xf32> to vector<64x16xf32>
    %cst_54 = arith.constant dense<0.000000e+00> : vector<256x16xf32>
    %81 = tpu.matmul %1, %80, %cst_54 {dimension_numbers = #tpu.dot_dimension_numbers<[1], [0], [0], [1], [0, 0, 1, 1], [], []>} : vector<256x64xf32>, vector<64x16xf32>, vector<256x16xf32> -> vector<256x16xf32>
    %82 = vector.shape_cast %75 : vector<256x16xf32> to vector<8x32x16xf32>
    %83 = vector.shape_cast %78 : vector<256x16xf32> to vector<8x32x16xf32>
    %84 = vector.shape_cast %81 : vector<256x16xf32> to vector<8x32x16xf32>
    "tpu.trace_start"() <{level = 10 : i32, message = "bqd,bkd->bqk"}> : () -> ()
    %cst_55 = arith.constant dense<0.000000e+00> : vector<8x32x32xf32>
    %85 = tpu.matmul %82, %83, %cst_55 {dimension_numbers = #tpu.dot_dimension_numbers<[2], [2], [1], [1], [0, 0, 0, 1, 1, 1], [0], [0]>} : vector<8x32x16xf32>, vector<8x32x16xf32>, vector<8x32x32xf32> -> vector<8x32x32xf32>
    "tpu.trace_stop"() : () -> ()
    %86 = vector.broadcast %8 : vector<1x32x32xf32> to vector<8x32x32xf32>
    %87 = arith.addf %85, %86 : vector<8x32x32xf32>
    %cst_56 = arith.constant dense<0xFF800000> : vector<8x32xf32>
    %88 = vector.multi_reduction <maximumf>, %87, %cst_56 [2] : vector<8x32x32xf32> to vector<8x32xf32>
    %89 = vector.shape_cast %88 : vector<8x32xf32> to vector<8x32x1xf32>
    %90 = vector.broadcast %89 : vector<8x32x1xf32> to vector<8x32x32xf32>
    %91 = arith.subf %87, %90 : vector<8x32x32xf32>
    %92 = math.exp %91 : vector<8x32x32xf32>
    %cst_57 = arith.constant dense<0.000000e+00> : vector<8x32xf32>
    %93 = vector.multi_reduction <add>, %92, %cst_57 [2] : vector<8x32x32xf32> to vector<8x32xf32>
    %94 = vector.shape_cast %93 : vector<8x32xf32> to vector<8x32x1xf32>
    %95 = tpu.reciprocal %94 : vector<8x32x1xf32> -> vector<8x32x1xf32>
    %96 = vector.broadcast %95 : vector<8x32x1xf32> to vector<8x32x32xf32>
    %97 = arith.mulf %92, %96 : vector<8x32x32xf32>
    "tpu.trace_start"() <{level = 10 : i32, message = "bqk,bkd->bqd"}> : () -> ()
    %cst_58 = arith.constant dense<0.000000e+00> : vector<8x32x16xf32>
    %98 = tpu.matmul %97, %84, %cst_58 {dimension_numbers = #tpu.dot_dimension_numbers<[2], [1], [1], [2], [0, 0, 0, 1, 1, 2], [0], [0]>} : vector<8x32x32xf32>, vector<8x32x16xf32>, vector<8x32x16xf32> -> vector<8x32x16xf32>
    "tpu.trace_stop"() : () -> ()
    %99 = vector.shape_cast %98 : vector<8x32x16xf32> to vector<256x16xf32>
    %c2_59 = arith.constant 2 : index
    %c0_60 = arith.constant 0 : index
    %c0_61 = arith.constant 0 : index
    %100 = vector.load %arg5[%c2_59, %c0_60, %c0_61] : memref<4x16x64xf32, #tpu.memory_space<vmem>>, vector<1x16x64xf32>
    %101 = vector.shape_cast %100 : vector<1x16x64xf32> to vector<16x64xf32>
    %cst_62 = arith.constant dense<0.000000e+00> : vector<256x64xf32>
    %102 = tpu.matmul %99, %101, %cst_62 {dimension_numbers = #tpu.dot_dimension_numbers<[1], [0], [0], [1], [0, 0, 1, 1], [], []>} : vector<256x16xf32>, vector<16x64xf32>, vector<256x64xf32> -> vector<256x64xf32>
    %103 = arith.addf %72, %102 : vector<256x64xf32>
    %c3 = arith.constant 3 : index
    %c0_63 = arith.constant 0 : index
    %c0_64 = arith.constant 0 : index
    %104 = vector.load %arg2[%c3, %c0_63, %c0_64] : memref<4x64x16xf32, #tpu.memory_space<vmem>>, vector<1x64x16xf32>
    %105 = vector.shape_cast %104 : vector<1x64x16xf32> to vector<64x16xf32>
    %cst_65 = arith.constant dense<0.000000e+00> : vector<256x16xf32>
    %106 = tpu.matmul %1, %105, %cst_65 {dimension_numbers = #tpu.dot_dimension_numbers<[1], [0], [0], [1], [0, 0, 1, 1], [], []>} : vector<256x64xf32>, vector<64x16xf32>, vector<256x16xf32> -> vector<256x16xf32>
    %c3_66 = arith.constant 3 : index
    %c0_67 = arith.constant 0 : index
    %c0_68 = arith.constant 0 : index
    %107 = vector.load %arg3[%c3_66, %c0_67, %c0_68] : memref<4x64x16xf32, #tpu.memory_space<vmem>>, vector<1x64x16xf32>
    %108 = vector.shape_cast %107 : vector<1x64x16xf32> to vector<64x16xf32>
    %cst_69 = arith.constant dense<0.000000e+00> : vector<256x16xf32>
    %109 = tpu.matmul %1, %108, %cst_69 {dimension_numbers = #tpu.dot_dimension_numbers<[1], [0], [0], [1], [0, 0, 1, 1], [], []>} : vector<256x64xf32>, vector<64x16xf32>, vector<256x16xf32> -> vector<256x16xf32>
    %c3_70 = arith.constant 3 : index
    %c0_71 = arith.constant 0 : index
    %c0_72 = arith.constant 0 : index
    %110 = vector.load %arg4[%c3_70, %c0_71, %c0_72] : memref<4x64x16xf32, #tpu.memory_space<vmem>>, vector<1x64x16xf32>
    %111 = vector.shape_cast %110 : vector<1x64x16xf32> to vector<64x16xf32>
    %cst_73 = arith.constant dense<0.000000e+00> : vector<256x16xf32>
    %112 = tpu.matmul %1, %111, %cst_73 {dimension_numbers = #tpu.dot_dimension_numbers<[1], [0], [0], [1], [0, 0, 1, 1], [], []>} : vector<256x64xf32>, vector<64x16xf32>, vector<256x16xf32> -> vector<256x16xf32>
    %113 = vector.shape_cast %106 : vector<256x16xf32> to vector<8x32x16xf32>
    %114 = vector.shape_cast %109 : vector<256x16xf32> to vector<8x32x16xf32>
    %115 = vector.shape_cast %112 : vector<256x16xf32> to vector<8x32x16xf32>
    "tpu.trace_start"() <{level = 10 : i32, message = "bqd,bkd->bqk"}> : () -> ()
    %cst_74 = arith.constant dense<0.000000e+00> : vector<8x32x32xf32>
    %116 = tpu.matmul %113, %114, %cst_74 {dimension_numbers = #tpu.dot_dimension_numbers<[2], [2], [1], [1], [0, 0, 0, 1, 1, 1], [0], [0]>} : vector<8x32x16xf32>, vector<8x32x16xf32>, vector<8x32x32xf32> -> vector<8x32x32xf32>
    "tpu.trace_stop"() : () -> ()
    %117 = vector.broadcast %8 : vector<1x32x32xf32> to vector<8x32x32xf32>
    %118 = arith.addf %116, %117 : vector<8x32x32xf32>
    %cst_75 = arith.constant dense<0xFF800000> : vector<8x32xf32>
    %119 = vector.multi_reduction <maximumf>, %118, %cst_75 [2] : vector<8x32x32xf32> to vector<8x32xf32>
    %120 = vector.shape_cast %119 : vector<8x32xf32> to vector<8x32x1xf32>
    %121 = vector.broadcast %120 : vector<8x32x1xf32> to vector<8x32x32xf32>
    %122 = arith.subf %118, %121 : vector<8x32x32xf32>
    %123 = math.exp %122 : vector<8x32x32xf32>
    %cst_76 = arith.constant dense<0.000000e+00> : vector<8x32xf32>
    %124 = vector.multi_reduction <add>, %123, %cst_76 [2] : vector<8x32x32xf32> to vector<8x32xf32>
    %125 = vector.shape_cast %124 : vector<8x32xf32> to vector<8x32x1xf32>
    %126 = tpu.reciprocal %125 : vector<8x32x1xf32> -> vector<8x32x1xf32>
    %127 = vector.broadcast %126 : vector<8x32x1xf32> to vector<8x32x32xf32>
    %128 = arith.mulf %123, %127 : vector<8x32x32xf32>
    "tpu.trace_start"() <{level = 10 : i32, message = "bqk,bkd->bqd"}> : () -> ()
    %cst_77 = arith.constant dense<0.000000e+00> : vector<8x32x16xf32>
    %129 = tpu.matmul %128, %115, %cst_77 {dimension_numbers = #tpu.dot_dimension_numbers<[2], [1], [1], [2], [0, 0, 0, 1, 1, 2], [0], [0]>} : vector<8x32x32xf32>, vector<8x32x16xf32>, vector<8x32x16xf32> -> vector<8x32x16xf32>
    "tpu.trace_stop"() : () -> ()
    %130 = vector.shape_cast %129 : vector<8x32x16xf32> to vector<256x16xf32>
    %c3_78 = arith.constant 3 : index
    %c0_79 = arith.constant 0 : index
    %c0_80 = arith.constant 0 : index
    %131 = vector.load %arg5[%c3_78, %c0_79, %c0_80] : memref<4x16x64xf32, #tpu.memory_space<vmem>>, vector<1x16x64xf32>
    %132 = vector.shape_cast %131 : vector<1x16x64xf32> to vector<16x64xf32>
    %cst_81 = arith.constant dense<0.000000e+00> : vector<256x64xf32>
    %133 = tpu.matmul %130, %132, %cst_81 {dimension_numbers = #tpu.dot_dimension_numbers<[1], [0], [0], [1], [0, 0, 1, 1], [], []>} : vector<256x16xf32>, vector<16x64xf32>, vector<256x64xf32> -> vector<256x64xf32>
    %134 = arith.addf %103, %133 : vector<256x64xf32>
    %135 = vector.shape_cast %134 : vector<256x64xf32> to vector<8x32x64xf32>
    %c0_82 = arith.constant 0 : index
    %c0_83 = arith.constant 0 : index
    %c0_84 = arith.constant 0 : index
    %136 = vector.load %arg7[%c0_82, %c0_83, %c0_84] : memref<8x32x64xf32, #tpu.memory_space<vmem>>, vector<8x32x64xf32>
    tpu.vector_store %arg7[%c0_82, %c0_83, %c0_84], %135 {strides = array<i32>} : memref<8x32x64xf32, #tpu.memory_space<vmem>>, vector<8x32x64xf32>,
    return
  }
  func.func @transform_0(%arg0: i32) -> (i32, i32, i32) {
    %c0_i32 = arith.constant 0 : i32
    %c0_i32_0 = arith.constant 0 : i32
    %c0_i32_1 = arith.constant 0 : i32
    return %arg0, %c0_i32, %c0_i32_0 : i32, i32, i32
  }
  func.func @transform_1(%arg0: i32) -> (i32, i32, i32) {
    %c0_i32 = arith.constant 0 : i32
    %c0_i32_0 = arith.constant 0 : i32
    %c0_i32_1 = arith.constant 0 : i32
    %c0_i32_2 = arith.constant 0 : i32
    return %c0_i32, %c0_i32_0, %c0_i32_1 : i32, i32, i32
  }
  func.func @transform_2(%arg0: i32) -> (i32, i32, i32) {
    %c0_i32 = arith.constant 0 : i32
    %c0_i32_0 = arith.constant 0 : i32
    %c0_i32_1 = arith.constant 0 : i32
    %c0_i32_2 = arith.constant 0 : i32
    return %c0_i32, %c0_i32_0, %c0_i32_1 : i32, i32, i32
  }
  func.func @transform_3(%arg0: i32) -> (i32, i32, i32) {
    %c0_i32 = arith.constant 0 : i32
    %c0_i32_0 = arith.constant 0 : i32
    %c0_i32_1 = arith.constant 0 : i32
    %c0_i32_2 = arith.constant 0 : i32
    return %c0_i32, %c0_i32_0, %c0_i32_1 : i32, i32, i32
  }
  func.func @transform_4(%arg0: i32) -> (i32, i32, i32) {
    %c0_i32 = arith.constant 0 : i32
    %c0_i32_0 = arith.constant 0 : i32
    %c0_i32_1 = arith.constant 0 : i32
    %c0_i32_2 = arith.constant 0 : i32
    return %c0_i32, %c0_i32_0, %c0_i32_1 : i32, i32, i32
  }
  func.func @transform_5(%arg0: i32) -> (i32, i32) {
    %c0_i32 = arith.constant 0 : i32
    %c0_i32_0 = arith.constant 0 : i32
    %c0_i32_1 = arith.constant 0 : i32
    return %c0_i32, %c0_i32_0 : i32, i32
  }
  func.func @transform_6(%arg0: i32) -> (i32, i32, i32) {
    %c0_i32 = arith.constant 0 : i32
    %c0_i32_0 = arith.constant 0 : i32
    %c0_i32_1 = arith.constant 0 : i32
    return %arg0, %c0_i32, %c0_i32_0 : i32, i32, i32
  }
}

</mosaic_0001>

<bundles_post_ra>
// kernel: tpu_custom_call.1
= control target key start
LH: loop header
LB: loop body
LE: loop exit
PB: predicated region body
PF: predicated region fallthrough
CT: control target
= control target key end

     0   :  { %11 = vsyncpa [#allocation3], 0  ;;  %s22634_s0 = inlined_call_operand.vmem [shape: f32[16,32,64], index: 0, kind: input, shape index: {}]   ;;  %s22635_s1 = inlined_call_operand.vmem [shape: f32[4,64,16], index: 1, kind: input, shape index: {}]   ;;  %s22636_s2 = inlined_call_operand.vmem [shape: f32[4,64,16], index: 2, kind: input, shape index: {}]   ;;  %s22637_s3 = inlined_call_operand.vmem [shape: f32[4,64,16], index: 3, kind: input, shape index: {}]   ;;  %s22638_s4 = inlined_call_operand.vmem [shape: f32[4,16,64], index: 4, kind: input, shape index: {}]   ;;  %s22639_s5 = inlined_call_operand.vmem [shape: f32[1,64], index: 5, kind: input, shape index: {}]   ;;  %s22640_s6 = inlined_call_operand.hbm [shape: f32[16,32,64], index: 6, kind: output, shape index: {}]  }
   0x1   :  { %13 = vsyncpa [#allocation3 + $0x1], 0  ;;  %s18469_s21 = smov 0   ;;  %s18471_s22 = smov 0  }
   0x2   :  { %s18473_s23 = smov 0   ;;  %s18475_s24 = smov 0  }
   0x3 LB: > { %s18490_s25 = sadd.s32 4294967295, %s18428_s24   ;;  %s12746_s26 = sadd.s32 4294967294, %s18428_s24   ;;  %s18428_s24 = sphi %s18475_s24, %s22686_s24   ;;  %s18424_s23 = sphi %s18473_s23, %s22685_s23   ;;  %s18420_s22 = sphi %s18471_s22, %s22684_s22   ;;  %s18416_s21 = sphi %s18469_s21, %s22683_s21  }
   0x4   : > { %s18494_s27 = sadd.s32 1, %s18428_s24   ;;  %s157_s28 = sadd.s32 1, %s18424_s23 }
   0x5   : > { %s154_s29 = ssub.s32 %s18428_s24, %s18494_s27  ;;  %p167_p0 = scmp.ne.s32.totalorder %s18424_s23, %s18420_s22 }
   0x6   : > { %p155_p1 = scmp.eq.s32.totalorder %s154_s29, 0  ;;  %p168_p2 = scmp.eq.s32.totalorder %s18490_s25, 1 }
   0x7   : > { %p173_p3 = scmp.ne.s32.totalorder %s18420_s22, %s18416_s21  ;;  %p174_p4 = scmp.eq.s32.totalorder %s12746_s26, 1 }
   0x8   : > { %s18505_s30 = scalar_select %p155_p1, %s18424_s23, %s157_s28  }
   0x9   : > { %p18507_p5 = por %p168_p2, %p167_p0  ;;  %p18511_p6 = por %p174_p4, %p173_p3 }
   0xa   : > { %p12749_p7 = scmp.ge.s32.totalorder %s18428_s24, 1  ;;  %p217_p8 = scmp.lt.s32.totalorder %s18428_s24, 3 }
   0xc   : > { %p218_p9 = pnand %p12749_p7, %p217_p8 }
   0xe   : > { %221 = sbr.rel (%p218_p9) target bundleno = 4435 (0x1153), region = 44 }
  0x15   : > { %v634_v0 = vld [vmem:[%s22636_s2] sm:$0xff]  ;;  %v635_v1 = vld [vmem:[%s22636_s2 + $0x8] sm:$0xff]  ;;  %v636_v2 = vld [vmem:[%s22636_s2 + $0x10] sm:$0xff]  ;;  %s12751_s15 = sshll.u32 %s18490_s25, 3  ;;  %vm312_vm0 = vcmask 523264   ;;  %vm1100_vm1 = vcmask 130048  }
  0x16   : > { %v16754_v3 = vpack.c.bf16 %v635_v1, %v634_v0  ;;  %v637_v4 = vld [vmem:[%s22636_s2 + $0x18] sm:$0xff]  ;;  %p249_p10 = scmp.lt.s32.totalorder %s12751_s15, 15  ;;  %v638_v6 = vld [vmem:[%s22636_s2 + $0x20] sm:$0xff]  ;;  %v639_v7 = vld [vmem:[%s22636_s2 + $0x28] sm:$0xff]  ;;  %vm1973_vm6 = vcmask 261120   ;;  %s245_s9 = sand.u32 1, %s18420_s22  }
  0x17   : > { %v16758_v5 = vpack.c.bf16 %v637_v4, %v636_v2  ;;  %v304_v8 = vld [vmem:[%s22635_s1] sm:$0xff]  ;;  %v305_v9 = vld [vmem:[%s22635_s1 + $0x8] sm:$0xff]  ;;  %v306_v10 = vld [vmem:[%s22635_s1 + $0x10] sm:$0xff]  ;;  %v16762_v13 = vpack.c.bf16 %v639_v7, %v638_v6  ;;  %s12750_s10 = sshll.u32 %s245_s9, 8  ;;  %s13737_s14 = sshll.u32 %s18490_s25, 12 }
  0x18   : > { %16755 = vmatprep.subr.bf16.mxu1 %v16754_v3  ;;  %s22688_s15 = smov (!%p249_p10, %s12751_s15), 15  ;;  %v307_v11 = vld [vmem:[%s22635_s1 + $0x18] sm:$0xff]  ;;  %v16738_v12 = vpack.c.bf16 %v305_v9, %v304_v8  ;;  %v308_v15 = vld [vmem:[%s22635_s1 + $0x20] sm:$0xff]  ;;  %v309_v16 = vld [vmem:[%s22635_s1 + $0x28] sm:$0xff]  ;;  %s22466_s13 = scalar_lea.vmem [#allocation2], %s12750_s10 }
  0x19   : > { %16757 = vmatpush3.bf16.msra.mxu1 %v16754_v3  ;;  %s13735_s16 = sshll.u32 %s22688_s15, 5  ;;  %v16742_v14 = vpack.c.bf16 %v307_v11, %v306_v10  ;;  %v640_v17 = vld [vmem:[%s22636_s2 + $0x30] sm:$0xff]  ;;  %v641_v18 = vld [vmem:[%s22636_s2 + $0x38] sm:$0xff]  ;;  %v16746_v20 = vpack.c.bf16 %v309_v16, %v308_v15  ;;  %v867_v25 = vld [vmem:[%s22637_s3] sm:$0xff]  ;;  %s22583_s19 = scalar_lea.hbm %s22640_s6, %s13737_s14 }
  0x1a   : > { %16759 = vmatprep.subr.bf16.mxu1 %v16758_v5  ;;  %s18563_s11 = scalar_lea.vmem %s22634_s0, %s13735_s16  ;;  %16739 = vmatprep.subr.bf16.mxu0 %v16738_v12  ;;  %v16766_v21 = vpack.c.bf16 %v641_v18, %v640_v17  ;;  %v310_v22 = vld [vmem:[%s22635_s1 + $0x30] sm:$0xff]  ;;  %v311_v23 = vld [vmem:[%s22635_s1 + $0x38] sm:$0xff]  ;;  %v868_v26 = vld [vmem:[%s22637_s3 + $0x8] sm:$0xff]  ;;  %s12684_s16 = sshll.u32 %s22466_s13, 4  ;;  %s22585_s16 = int_to_ptr.vmem [resolvable:$true] %s12684_s16 }
  0x1b   : > { %v18566_v19 = vld [vmem:[%s18563_s11] sm:$0xff]  ;;  %16741 = vmatpush3.bf16.msra.mxu0 %v16738_v12  ;;  %v16750_v24 = vpack.c.bf16 %v311_v23, %v310_v22  ;;  %v18585_v27 = vld [vmem:[%s18563_s11 + $0x8] sm:$0xff]  ;;  %v16770_v28 = vpack.c.bf16 %v868_v26, %v867_v25  ;;  %v18588_v29 = vld [vmem:[%s18563_s11 + $0x10] sm:$0xff]  ;;  %s22593_s25 = scalar_lea.sflag [#allocation3], %s245_s9  ;;  %s18366_s20 = scalar_lea.vmem %s22585_s16, 4096 }
  0x1c   : > { %14946 = vmatprep.mubr.msk.f32.mxu1 %vm312_vm0, %v18566_v19  ;;  %16743 = vmatprep.subr.bf16.mxu0 %v16742_v14  ;;  %v869_v30 = vld [vmem:[%s22637_s3 + $0x10] sm:$0xff]  ;;  %v870_v31 = vld [vmem:[%s22637_s3 + $0x18] sm:$0xff]  ;;  %v18604_v33 = vld [vmem:[%s18563_s11 + $0x20] sm:$0xff]  ;;  %p18367_p11 = scmp.ne.s32.totalorder %s22585_s16, %s18366_s20 }
  0x1d   : > { %16761 = vmatpush3.bf16.msra.mxu1 %v16758_v5  ;;  %14882 = vmatprep.mubr.msk.f32.mxu0 %vm312_vm0, %v18566_v19  ;;  %v18601_v32 = vld [vmem:[%s18563_s11 + $0x18] sm:$0xff]  ;;  %v16774_v34 = vpack.c.bf16 %v870_v31, %v869_v30  ;;  %v871_v35 = vld [vmem:[%s22637_s3 + $0x20] sm:$0xff]  ;;  %v872_v36 = vld [vmem:[%s22637_s3 + $0x28] sm:$0xff] }
  0x1e   : > { %16763 = vmatprep.subr.bf16.mxu1 %v16762_v13  ;;  %v18621_v37 = vld [vmem:[%s18563_s11 + $0x28] sm:$0xff]  ;;  %v18624_v38 = vld [vmem:[%s18563_s11 + $0x30] sm:$0xff]  ;;  %v16778_v39 = vpack.c.bf16 %v872_v36, %v871_v35  ;;  %v874_v41 = vld [vmem:[%s22637_s3 + $0x38] sm:$0xff]  ;;  %p18368_p12 = pnand %p18367_p11, %p18507_p5 }
  0x1f   : > { %16745 = vmatpush3.bf16.msra.mxu0 %v16742_v14  ;;  %v873_v40 = vld [vmem:[%s22637_s3 + $0x30] sm:$0xff]  ;;  %v18641_v42 = vld [vmem:[%s18563_s11 + $0x38] sm:$0xff]  ;;  %v18644_v43 = vld [vmem:[%s18563_s11 + $0x40] sm:$0xff] }
  0x20   : > { %16747 = vmatprep.subr.bf16.mxu0 %v16746_v20  ;;  %v16782_v44 = vpack.c.bf16 %v874_v41, %v873_v40  ;;  %v18655_v45 = vld [vmem:[%s18563_s11 + $0x48] sm:$0xff]  ;;  %v18658_v46 = vld [vmem:[%s18563_s11 + $0x50] sm:$0xff]  ;;  %v18669_v47 = vld [vmem:[%s18563_s11 + $0x58] sm:$0xff]  ;;  %p18369_p13 = pneg %p18368_p12 }
  0x21   : > { %16765 = vmatpush3.bf16.msra.mxu1 %v16762_v13  ;;  %v18672_v48 = vld [vmem:[%s18563_s11 + $0x60] sm:$0xff]  ;;  %v18683_v49 = vld [vmem:[%s18563_s11 + $0x68] sm:$0xff]  ;;  %v18686_v50 = vld [vmem:[%s18563_s11 + $0x70] sm:$0xff] }
  0x22   : > { %16767 = vmatprep.subr.bf16.mxu1 %v16766_v21  ;;  %v18697_v51 = vld [vmem:[%s18563_s11 + $0x78] sm:$0xff]  ;;  %v18700_v52 = vld [vmem:[%s18563_s11 + $0x80] sm:$0xff]  ;;  %v18711_v53 = vld [vmem:[%s18563_s11 + $0x88] sm:$0xff] }
  0x23   : > { %16749 = vmatpush3.bf16.msra.mxu0 %v16746_v20  ;;  %v18714_v54 = vld [vmem:[%s18563_s11 + $0x90] sm:$0xff]  ;;  %v275_v55 = vld [vmem:[%s18563_s11 + $0x98] sm:$0xff]  ;;  %v276_v56 = vld [vmem:[%s18563_s11 + $0xa0] sm:$0xff] }
  0x24   : > { %16751 = vmatprep.subr.bf16.mxu0 %v16750_v24  ;;  %v277_v57 = vld [vmem:[%s18563_s11 + $0xa8] sm:$0xff]  ;;  %v278_v58 = vld [vmem:[%s18563_s11 + $0xb0] sm:$0xff]  ;;  %v279_v59 = vld [vmem:[%s18563_s11 + $0xb8] sm:$0xff] }
  0x25   : > { %16769 = vmatpush3.bf16.msra.mxu1 %v16766_v21  ;;  %v280_v60 = vld [vmem:[%s18563_s11 + $0xc0] sm:$0xff]  ;;  %v281_v61 = vld [vmem:[%s18563_s11 + $0xc8] sm:$0xff]  ;;  %v282_v62 = vld [vmem:[%s18563_s11 + $0xd0] sm:$0xff] }
  0x26   : > { %v283_v63 = vld [vmem:[%s18563_s11 + $0xd8] sm:$0xff]  ;;  %v284_v0 = vld [vmem:[%s18563_s11 + $0xe0] sm:$0xff]  ;;  %v285_v1 = vld [vmem:[%s18563_s11 + $0xe8] sm:$0xff] }
  0x27   : > { %16753 = vmatpush3.bf16.msra.mxu0 %v16750_v24  ;;  %v286_v2 = vld [vmem:[%s18563_s11 + $0xf0] sm:$0xff]  ;;  %v287_v3 = vld [vmem:[%s18563_s11 + $0xf8] sm:$0xff]  ;;  %vm18820_vm2 = vmpackc.low %vm1100_vm1, %vm1100_vm1 }
  0x28   : > { %14947 = vmatmul.mubr.msk.f32.vlgmr.msra.gmra.mrb[0].mxu1 %vm312_vm0, %v18585_v27  ;;  %16771 = vmatprep.subr.bf16.mxu0 %v16770_v28 }
  0x29   : > { %14949 = vmatprep.mubr.msk.f32.mxu1 %vm312_vm0, %v18588_v29 }
  0x2a   : > { %14883 = vmatmul.mubr.msk.f32.vlgmr.msra.gmra.mrb[0].mxu0 %vm312_vm0, %v18585_v27 }
  0x2b   : > { %14885 = vmatprep.mubr.msk.f32.mxu0 %vm312_vm0, %v18588_v29  ;;  %16773 = vmatpush3.bf16.msra.mxu0 %v16770_v28 }
  0x2c   : > { %14950 = vmatmul.mubr.msk.f32.gmra.mrb[2].mxu1 %vm312_vm0, %v18601_v32  ;;  %16775 = vmatprep.subr.bf16.mxu0 %v16774_v34 }
  0x2d   : > { %14952 = vmatprep.mubr.msk.f32.mxu1 %vm312_vm0, %v18604_v33 }
  0x2e   : > { %14886 = vmatmul.mubr.msk.f32.gmra.mrb[2].mxu0 %vm312_vm0, %v18601_v32 }
  0x2f   : > { %14888 = vmatprep.mubr.msk.f32.mxu0 %vm312_vm0, %v18604_v33  ;;  %16777 = vmatpush3.bf16.msra.mxu0 %v16774_v34 }
  0x30   : > { %14953 = vmatmul.mubr.msk.f32.gmra.mrb[4].mxu1 %vm312_vm0, %v18621_v37  ;;  %16779 = vmatprep.subr.bf16.mxu0 %v16778_v39 }
  0x31   : > { %14955 = vmatprep.mubr.msk.f32.mxu1 %vm312_vm0, %v18624_v38 }
  0x32   : > { %14889 = vmatmul.mubr.msk.f32.gmra.mrb[4].mxu0 %vm312_vm0, %v18621_v37 }
  0x33   : > { %14891 = vmatprep.mubr.msk.f32.mxu0 %vm312_vm0, %v18624_v38  ;;  %16781 = vmatpush3.bf16.msra.mxu0 %v16778_v39 }
  0x34   : > { %14956 = vmatmul.mubr.msk.f32.gmra.mrb[6].mxu1 %vm312_vm0, %v18641_v42  ;;  %16783 = vmatprep.subr.bf16.mxu0 %v16782_v44 }
  0x35   : > { %14958 = vmatprep.mubr.msk.f32.mxu1 %vm312_vm0, %v18644_v43 }
  0x36   : > { %14892 = vmatmul.mubr.msk.f32.gmra.mrb[6].mxu0 %vm312_vm0, %v18641_v42 }
  0x37   : > { %14894 = vmatprep.mubr.msk.f32.mxu0 %vm312_vm0, %v18644_v43  ;;  %16785 = vmatpush3.bf16.msra.mxu0 %v16782_v44 }
  0x38   : > { %14959 = vmatmul.mubr.msk.f32.gmra.mrb[8].mxu1 %vm312_vm0, %v18655_v45 }
  0x39   : > { %14961 = vmatprep.mubr.msk.f32.mxu1 %vm312_vm0, %v18658_v46 }
  0x3a   : > { %14895 = vmatmul.mubr.msk.f32.gmra.mrb[8].mxu0 %vm312_vm0, %v18655_v45 }
  0x3b   : > { %14897 = vmatprep.mubr.msk.f32.mxu0 %vm312_vm0, %v18658_v46 }
  0x3c   : > { %14962 = vmatmul.mubr.msk.f32.gmra.mrb[10].mxu1 %vm312_vm0, %v18669_v47 }
  0x3d   : > { %14964 = vmatprep.mubr.msk.f32.mxu1 %vm312_vm0, %v18672_v48 }
  0x3e   : > { %14898 = vmatmul.mubr.msk.f32.gmra.mrb[10].mxu0 %vm312_vm0, %v18669_v47 }
  0x3f   : > { %14900 = vmatprep.mubr.msk.f32.mxu0 %vm312_vm0, %v18672_v48 }
  0x40   : > { %14965 = vmatmul.mubr.msk.f32.gmra.mrb[12].mxu1 %vm312_vm0, %v18683_v49 }
  0x41   : > { %14967 = vmatprep.mubr.msk.f32.mxu1 %vm312_vm0, %v18686_v50 }
  0x42   : > { %14901 = vmatmul.mubr.msk.f32.gmra.mrb[12].mxu0 %vm312_vm0, %v18683_v49 }
  0x43   : > { %14903 = vmatprep.mubr.msk.f32.mxu0 %vm312_vm0, %v18686_v50 }
  0x44   : > { %14968 = vmatmul.mubr.msk.f32.gmra.mrb[14].mxu1 %vm312_vm0, %v18697_v51 }
  0x45   : > { %14970 = vmatprep.mubr.msk.f32.mxu1 %vm312_vm0, %v18700_v52 }
  0x46   : > { %14904 = vmatmul.mubr.msk.f32.gmra.mrb[14].mxu0 %vm312_vm0, %v18697_v51 }
  0x47   : > { %14906 = vmatprep.mubr.msk.f32.mxu0 %vm312_vm0, %v18700_v52 }
  0x48   : > { %14971 = vmatmul.mubr.msk.f32.gmra.mrb[16].mxu1 %vm312_vm0, %v18711_v53 }
  0x49   : > { %14973 = vmatprep.mubr.msk.f32.mxu1 %vm312_vm0, %v18714_v54 }
  0x4a   : > { %14907 = vmatmul.mubr.msk.f32.gmra.mrb[16].mxu0 %vm312_vm0, %v18711_v53 }
  0x4b   : > { %14909 = vmatprep.mubr.msk.f32.mxu0 %vm312_vm0, %v18714_v54 }
  0x4c   : > { %14974 = vmatmul.mubr.msk.f32.gmra.mrb[18].mxu1 %vm312_vm0, %v275_v55 }
  0x4d   : > { %14976 = vmatprep.mubr.msk.f32.mxu1 %vm312_vm0, %v276_v56 }
  0x4e   : > { %14910 = vmatmul.mubr.msk.f32.gmra.mrb[18].mxu0 %vm312_vm0, %v275_v55 }
  0x4f   : > { %14912 = vmatprep.mubr.msk.f32.mxu0 %vm312_vm0, %v276_v56 }
  0x50   : > { %14977 = vmatmul.mubr.msk.f32.gmra.mrb[20].mxu1 %vm312_vm0, %v277_v57 }
  0x51   : > { %14979 = vmatprep.mubr.msk.f32.mxu1 %vm312_vm0, %v278_v58 }
  0x52   : > { %14913 = vmatmul.mubr.msk.f32.gmra.mrb[20].mxu0 %vm312_vm0, %v277_v57 }
  0x53   : > { %14915 = vmatprep.mubr.msk.f32.mxu0 %vm312_vm0, %v278_v58 }
  0x54   : > { %14980 = vmatmul.mubr.msk.f32.gmra.mrb[22].mxu1 %vm312_vm0, %v279_v59 }
  0x55   : > { %14982 = vmatprep.mubr.msk.f32.mxu1 %vm312_vm0, %v280_v60 }
  0x56   : > { %14916 = vmatmul.mubr.msk.f32.gmra.mrb[22].mxu0 %vm312_vm0, %v279_v59 }
  0x57   : > { %14918 = vmatprep.mubr.msk.f32.mxu0 %vm312_vm0, %v280_v60 }
  0x58   : > { %14983 = vmatmul.mubr.msk.f32.gmra.mrb[24].mxu1 %vm312_vm0, %v281_v61 }
  0x59   : > { %14985 = vmatprep.mubr.msk.f32.mxu1 %vm312_vm0, %v282_v62 }
  0x5a   : > { %14919 = vmatmul.mubr.msk.f32.gmra.mrb[24].mxu0 %vm312_vm0, %v281_v61 }
  0x5b   : > { %14921 = vmatprep.mubr.msk.f32.mxu0 %vm312_vm0, %v282_v62 }
  0x5c   : > { %14986 = vmatmul.mubr.msk.f32.gmra.mrb[26].mxu1 %vm312_vm0, %v283_v63 }
  0x5d   : > { %14988 = vmatprep.mubr.msk.f32.mxu1 %vm312_vm0, %v284_v0 }
  0x5e   : > { %14922 = vmatmul.mubr.msk.f32.gmra.mrb[26].mxu0 %vm312_vm0, %v283_v63 }
  0x5f   : > { %14924 = vmatprep.mubr.msk.f32.mxu0 %vm312_vm0, %v284_v0 }
  0x60   : > { %14989 = vmatmul.mubr.msk.f32.gmra.mrb[28].mxu1 %vm312_vm0, %v285_v1 }
  0x61   : > { %14991 = vmatprep.mubr.msk.f32.mxu1 %vm312_vm0, %v286_v2 }
  0x62   : > { %14925 = vmatmul.mubr.msk.f32.gmra.mrb[28].mxu0 %vm312_vm0, %v285_v1 }
  0x63   : > { %14927 = vmatprep.mubr.msk.f32.mxu0 %vm312_vm0, %v286_v2 }
  0x64   : > { %14992 = vmatmul.mubr.msk.f32.gmra.mrb[30].mxu1 %vm312_vm0, %v287_v3 }
  0x66   : > { %14928 = vmatmul.mubr.msk.f32.gmra.mrb[30].mxu0 %vm312_vm0, %v287_v3 }
  0x67   : > { %15010 = vmatprep.mubr.msk.f32.mxu0 %vm312_vm0, %v18566_v19 }
  0x6a   : > { %15011 = vmatmul.mubr.msk.f32.vlgmr.msra.gmra.mrb[32].mxu0 %vm312_vm0, %v18585_v27 }
  0x6b   : > { %15013 = vmatprep.mubr.msk.f32.mxu0 %vm312_vm0, %v18588_v29 }
  0x6e   : > { %15014 = vmatmul.mubr.msk.f32.gmra.mrb[34].mxu0 %vm312_vm0, %v18601_v32 }
  0x6f   : > { %15016 = vmatprep.mubr.msk.f32.mxu0 %vm312_vm0, %v18604_v33 }
  0x72   : > { %15017 = vmatmul.mubr.msk.f32.gmra.mrb[36].mxu0 %vm312_vm0, %v18621_v37 }
  0x73   : > { %15019 = vmatprep.mubr.msk.f32.mxu0 %vm312_vm0, %v18624_v38 }
  0x76   : > { %15020 = vmatmul.mubr.msk.f32.gmra.mrb[38].mxu0 %vm312_vm0, %v18641_v42 }
  0x77   : > { %15022 = vmatprep.mubr.msk.f32.mxu0 %vm312_vm0, %v18644_v43 }
  0x7a   : > { %15023 = vmatmul.mubr.msk.f32.gmra.mrb[40].mxu0 %vm312_vm0, %v18655_v45 }
  0x7b   : > { %15025 = vmatprep.mubr.msk.f32.mxu0 %vm312_vm0, %v18658_v46 }
  0x7e   : > { %15026 = vmatmul.mubr.msk.f32.gmra.mrb[42].mxu0 %vm312_vm0, %v18669_v47 }
  0x7f   : > { %15028 = vmatprep.mubr.msk.f32.mxu0 %vm312_vm0, %v18672_v48 }
  0x82   : > { %15029 = vmatmul.mubr.msk.f32.gmra.mrb[44].mxu0 %vm312_vm0, %v18683_v49 }
  0x83   : > { %15031 = vmatprep.mubr.msk.f32.mxu0 %vm312_vm0, %v18686_v50 }
  0x86   : > { %15032 = vmatmul.mubr.msk.f32.gmra.mrb[46].mxu0 %vm312_vm0, %v18697_v51 }
  0x87   : > { %15034 = vmatprep.mubr.msk.f32.mxu0 %vm312_vm0, %v18700_v52 }
  0x8a   : > { %15035 = vmatmul.mubr.msk.f32.gmra.mrb[48].mxu0 %vm312_vm0, %v18711_v53 }
  0x8b   : > { %15037 = vmatprep.mubr.msk.f32.mxu0 %vm312_vm0, %v18714_v54 }
  0x8e   : > { %15038 = vmatmul.mubr.msk.f32.gmra.mrb[50].mxu0 %vm312_vm0, %v275_v55 }
  0x8f   : > { %15040 = vmatprep.mubr.msk.f32.mxu0 %vm312_vm0, %v276_v56 }
  0x92   : > { %15041 = vmatmul.mubr.msk.f32.gmra.mrb[52].mxu0 %vm312_vm0, %v277_v57 }
  0x93   : > { %15043 = vmatprep.mubr.msk.f32.mxu0 %vm312_vm0, %v278_v58 }
  0x96   : > { %15044 = vmatmul.mubr.msk.f32.gmra.mrb[54].mxu0 %vm312_vm0, %v279_v59 }
  0x97   : > { %15046 = vmatprep.mubr.msk.f32.mxu0 %vm312_vm0, %v280_v60 }
  0x9a   : > { %15047 = vmatmul.mubr.msk.f32.gmra.mrb[56].mxu0 %vm312_vm0, %v281_v61 }
  0x9b   : > { %15049 = vmatprep.mubr.msk.f32.mxu0 %vm312_vm0, %v282_v62 }
  0x9e   : > { %15050 = vmatmul.mubr.msk.f32.gmra.mrb[58].mxu0 %vm312_vm0, %v283_v63 }
  0x9f   : > { %15052 = vmatprep.mubr.msk.f32.mxu0 %vm312_vm0, %v284_v0 }
  0xa2   : > { %15053 = vmatmul.mubr.msk.f32.gmra.mrb[60].mxu0 %vm312_vm0, %v285_v1 }
  0xa3   : > { %15055 = vmatprep.mubr.msk.f32.mxu0 %vm312_vm0, %v286_v2 }
  0xa6   : > { %15056 = vmatmul.mubr.msk.f32.gmra.mrb[62].mxu0 %vm312_vm0, %v287_v3 }
  0xfb   : > { %v14948_v4 = vpop.f32.mrb[0].mxu1 }
  0xfc   : > { %v708_v5 = vpop.f32.mrb[1].mxu1 }
  0xfd   : > { %v16786_v7 = vpack.c.bf16 %v14948_v4, %v708_v5  ;;  %v14884_v8 = vpop.f32.mrb[0].mxu0 }
  0xfe   : > { %v475_v10 = vpop.f32.mrb[1].mxu0 }
  0xff   : > { %16788 = vmatprep.subr.msk.bf16.mxu1 %vm18820_vm2, %v16786_v7  ;;  %v14951_v9 = vpop.f32.mrb[2].mxu1  ;;  %15066 = vmatprep.mubr.msk.f32.mxu1 %vm1100_vm1, %v475_v10 }
 0x100   : > { %16791 = vmatpush3.bf16.xpose.msk.msra.mxu1 %vm18820_vm2, %v16786_v7  ;;  %v718_v11 = vpop.f32.mrb[3].mxu1 }
 0x101   : > { %v16792_v12 = vpack.c.bf16 %v14951_v9, %v718_v11  ;;  %v14887_v13 = vpop.f32.mrb[2].mxu0 }
 0x102   : > { %v485_v15 = vpop.f32.mrb[3].mxu0 }
 0x103   : > { %16794 = vmatprep.subr.msk.bf16.mxu1 %vm18820_vm2, %v16792_v12  ;;  %v14954_v14 = vpop.f32.mrb[4].mxu1 }
 0x104   : > { %v728_v16 = vpop.f32.mrb[5].mxu1 }
 0x105   : > { %v16798_v17 = vpack.c.bf16 %v14954_v14, %v728_v16  ;;  %v14890_v18 = vpop.f32.mrb[4].mxu0 }
 0x106   : > { %v495_v20 = vpop.f32.mrb[5].mxu0 }
 0x107   : > { %v14957_v19 = vpop.f32.mrb[6].mxu1 }
 0x108   : > { %16797 = vmatpush3.bf16.xpose.msk.msra.mxu1 %vm18820_vm2, %v16792_v12  ;;  %v738_v21 = vpop.f32.mrb[7].mxu1 }
 0x109   : > { %16800 = vmatprep.subr.msk.bf16.mxu1 %vm18820_vm2, %v16798_v17  ;;  %v16804_v22 = vpack.c.bf16 %v14957_v19, %v738_v21  ;;  %v14893_v23 = vpop.f32.mrb[6].mxu0 }
 0x10a   : > { %v505_v25 = vpop.f32.mrb[7].mxu0 }
 0x10b   : > { %v14960_v24 = vpop.f32.mrb[8].mxu1 }
 0x10c   : > { %v748_v26 = vpop.f32.mrb[9].mxu1 }
 0x10d   : > { %v16810_v27 = vpack.c.bf16 %v14960_v24, %v748_v26  ;;  %v14896_v28 = vpop.f32.mrb[8].mxu0 }
 0x10e   : > { %v515_v30 = vpop.f32.mrb[9].mxu0 }
 0x10f   : > { %15067 = vmatmul.mubr.msk.f32.vlgmr.msra.gmra.mrb[32].mxu1 %vm1100_vm1, %v14884_v8  ;;  %v14963_v29 = vpop.f32.mrb[10].mxu1 }
 0x110   : > { %16803 = vmatpush3.bf16.xpose.msk.msra.mxu1 %vm18820_vm2, %v16798_v17  ;;  %15069 = vmatprep.mubr.msk.f32.mxu1 %vm1100_vm1, %v485_v15  ;;  %v758_v31 = vpop.f32.mrb[11].mxu1 }
 0x111   : > { %16806 = vmatprep.subr.msk.bf16.mxu1 %vm18820_vm2, %v16804_v22  ;;  %v16816_v32 = vpack.c.bf16 %v14963_v29, %v758_v31  ;;  %v18841_v33 = vpop.f32.mrb[10].mxu0 }
 0x112   : > { %v525_v35 = vpop.f32.mrb[11].mxu0 }
 0x113   : > { %15070 = vmatmul.mubr.msk.f32.gmra.mrb[34].mxu1 %vm1100_vm1, %v14887_v13  ;;  %v14966_v34 = vpop.f32.mrb[12].mxu1 }
 0x114   : > { %15080 = vmatprep.mubr.msk.f32.mxu1 %vm1100_vm1, %v495_v20  ;;  %v768_v36 = vpop.f32.mrb[13].mxu1 }
 0x115   : > { %v16822_v37 = vpack.c.bf16 %v14966_v34, %v768_v36  ;;  %v18845_v38 = vpop.f32.mrb[12].mxu0 }
 0x116   : > { %v535_v40 = vpop.f32.mrb[13].mxu0 }
 0x117   : > { %v14969_v39 = vpop.f32.mrb[14].mxu1 }
 0x118   : > { %16809 = vmatpush3.bf16.xpose.msk.msra.mxu1 %vm18820_vm2, %v16804_v22  ;;  %v778_v41 = vpop.f32.mrb[15].mxu1 }
 0x119   : > { %16812 = vmatprep.subr.msk.bf16.mxu1 %vm18820_vm2, %v16810_v27  ;;  %v18851_v42 = vpack.c.bf16 %v14969_v39, %v778_v41  ;;  %v18853_v43 = vpop.f32.mrb[14].mxu0 }
 0x11a   : > { %v18855_v45 = vpop.f32.mrb[15].mxu0 }
 0x11b   : > { %v14972_v44 = vpop.f32.mrb[16].mxu1 }
 0x11c   : > { %v788_v46 = vpop.f32.mrb[17].mxu1 }
 0x11d   : > { %v16834_v47 = vpack.c.bf16 %v14972_v44, %v788_v46  ;;  %v14908_v48 = vpop.f32.mrb[16].mxu0 }
 0x11e   : > { %v555_v50 = vpop.f32.mrb[17].mxu0 }
 0x11f   : > { %15081 = vmatmul.mubr.msk.f32.vlgmr.msra.gmra.mrb[36].mxu1 %vm1100_vm1, %v14890_v18  ;;  %16836 = vmatprep.subr.msk.bf16.mxu0 %vm18820_vm2, %v16834_v47  ;;  %v14975_v49 = vpop.f32.mrb[18].mxu1 }
 0x120   : > { %16815 = vmatpush3.bf16.xpose.msk.msra.mxu1 %vm18820_vm2, %v16810_v27  ;;  %15083 = vmatprep.mubr.msk.f32.mxu1 %vm1100_vm1, %v505_v25  ;;  %v798_v51 = vpop.f32.mrb[19].mxu1 }
 0x121   : > { %16818 = vmatprep.subr.msk.bf16.mxu1 %vm18820_vm2, %v16816_v32  ;;  %16839 = vmatpush3.bf16.xpose.msk.msra.mxu0 %vm18820_vm2, %v16834_v47  ;;  %v16840_v52 = vpack.c.bf16 %v14975_v49, %v798_v51  ;;  %v14911_v53 = vpop.f32.mrb[18].mxu0 }
 0x122   : > { %15122 = vmatprep.mubr.msk.f32.mxu0 %vm1100_vm1, %v555_v50  ;;  %v565_v55 = vpop.f32.mrb[19].mxu0 }
 0x123   : > { %15084 = vmatmul.mubr.msk.f32.gmra.mrb[38].mxu1 %vm1100_vm1, %v14893_v23  ;;  %16842 = vmatprep.subr.msk.bf16.mxu0 %vm18820_vm2, %v16840_v52  ;;  %v14978_v54 = vpop.f32.mrb[20].mxu1 }
 0x124   : > { %15094 = vmatprep.mubr.msk.f32.mxu1 %vm1100_vm1, %v515_v30  ;;  %v808_v56 = vpop.f32.mrb[21].mxu1 }
 0x125   : > { %v16846_v57 = vpack.c.bf16 %v14978_v54, %v808_v56  ;;  %v18872_v58 = vpop.f32.mrb[20].mxu0 }
 0x126   : > { %v575_v60 = vpop.f32.mrb[21].mxu0 }
 0x127   : > { %v14981_v59 = vpop.f32.mrb[22].mxu1 }
 0x128   : > { %16821 = vmatpush3.bf16.xpose.msk.msra.mxu1 %vm18820_vm2, %v16816_v32  ;;  %v818_v61 = vpop.f32.mrb[23].mxu1 }
 0x129   : > { %16824 = vmatprep.subr.msk.bf16.mxu1 %vm18820_vm2, %v16822_v37  ;;  %16845 = vmatpush3.bf16.xpose.msk.msra.mxu0 %vm18820_vm2, %v16840_v52  ;;  %v16852_v62 = vpack.c.bf16 %v14981_v59, %v818_v61  ;;  %v14917_v63 = vpop.f32.mrb[22].mxu0 }
 0x12a   : > { %v585_v1 = vpop.f32.mrb[23].mxu0 }
 0x12b   : > { %v14984_v0 = vpop.f32.mrb[24].mxu1 }
 0x12c   : > { %v828_v2 = vpop.f32.mrb[25].mxu1 }
 0x12d   : > { %v16858_v3 = vpack.c.bf16 %v14984_v0, %v828_v2  ;;  %v14920_v4 = vpop.f32.mrb[24].mxu0 }
 0x12e   : > { %v595_v7 = vpop.f32.mrb[25].mxu0 }
 0x12f   : > { %15095 = vmatmul.mubr.msk.f32.vlgmr.msra.gmra.mrb[40].mxu1 %vm1100_vm1, %v14896_v28  ;;  %16860 = vmatprep.subr.msk.bf16.mxu0 %vm18820_vm2, %v16858_v3  ;;  %v14987_v5 = vpop.f32.mrb[26].mxu1 }
 0x130   : > { %16827 = vmatpush3.bf16.xpose.msk.msra.mxu1 %vm18820_vm2, %v16822_v37  ;;  %15097 = vmatprep.mubr.msk.f32.mxu1 %vm1100_vm1, %v525_v35  ;;  %v838_v8 = vpop.f32.mrb[27].mxu1 }
 0x131   : > { %16830 = vmatprep.subr.msk.bf16.mxu1 %vm18820_vm2, %v18851_v42  ;;  %15123 = vmatmul.mubr.msk.f32.vlgmr.msra.gmra.mrb[64].mxu0 %vm1100_vm1, %v14908_v48  ;;  %v16864_v9 = vpack.c.bf16 %v14987_v5, %v838_v8  ;;  %v14923_v10 = vpop.f32.mrb[26].mxu0 }
 0x132   : > { %15125 = vmatprep.mubr.msk.f32.mxu0 %vm1100_vm1, %v565_v55  ;;  %16863 = vmatpush3.bf16.xpose.msk.msra.mxu0 %vm18820_vm2, %v16858_v3  ;;  %v605_v12 = vpop.f32.mrb[27].mxu0 }
 0x133   : > { %15098 = vmatmul.mubr.msk.f32.gmra.mrb[42].mxu1 %vm1100_vm1, %v18841_v33  ;;  %v14990_v11 = vpop.f32.mrb[28].mxu1  ;;  %16866 = vmatprep.subr.msk.bf16.mxu0 %vm18820_vm2, %v16864_v9 }
 0x134   : > { %15108 = vmatprep.mubr.msk.f32.mxu1 %vm1100_vm1, %v535_v40  ;;  %v848_v13 = vpop.f32.mrb[29].mxu1 }
 0x135   : > { %15126 = vmatmul.mubr.msk.f32.gmra.mrb[66].mxu0 %vm1100_vm1, %v14911_v53  ;;  %v16870_v14 = vpack.c.bf16 %v14990_v11, %v848_v13  ;;  %v14926_v15 = vpop.f32.mrb[28].mxu0  ;;  %v18430_v13 = vmov -1e+30  }
 0x136   : > { %15150 = vmatprep.mubr.msk.f32.mxu0 %vm1100_vm1, %v595_v7  ;;  %v615_v17 = vpop.f32.mrb[29].mxu0  ;;  %v288_v7 = vlaneseq }
 0x137   : > { %v14993_v16 = vpop.f32.mrb[30].mxu1 }
 0x138   : > { %16833 = vmatpush3.bf16.xpose.msk.msra.mxu1 %vm18820_vm2, %v18851_v42  ;;  %v858_v18 = vpop.f32.mrb[31].mxu1  ;;  %v289_v8 = vshrl.u32 %v288_v7, 7 }
 0x139   : > { %16848 = vmatprep.subr.msk.bf16.mxu1 %vm18820_vm2, %v16846_v57  ;;  %v16876_v19 = vpack.c.bf16 %v14993_v16, %v858_v18  ;;  %v14929_v20 = vpop.f32.mrb[30].mxu0 }
 0x13a   : > { %16869 = vmatpush3.bf16.xpose.msk.msra.mxu0 %vm18820_vm2, %v16864_v9  ;;  %v625_v21 = vpop.f32.mrb[31].mxu0  ;;  %v290_v9 = vadd.s32 8, %v289_v8  ;;  %v292_v11 = vadd.s32 24, %v289_v8 }
 0x13d   : > { %v15012_v22 = vpop.f32.mrb[32].mxu0 }
 0x13e   : > { %v941_v23 = vpop.f32.mrb[33].mxu0 }
 0x13f   : > { %15109 = vmatmul.mubr.msk.f32.vlgmr.msra.gmra.mrb[44].mxu1 %vm1100_vm1, %v18845_v38  ;;  %v16882_v24 = vpack.c.bf16 %v15012_v22, %v941_v23 }
 0x140   : > { %16851 = vmatpush3.bf16.xpose.msk.msra.mxu1 %vm18820_vm2, %v16846_v57  ;;  %15111 = vmatprep.mubr.msk.f32.mxu1 %vm1100_vm1, %v18855_v45 }
 0x141   : > { %16854 = vmatprep.subr.msk.bf16.mxu1 %vm18820_vm2, %v16852_v62  ;;  %15151 = vmatmul.mubr.msk.f32.vlgmr.msra.gmra.mrb[68].mxu0 %vm1100_vm1, %v14920_v4  ;;  %v15015_v25 = vpop.f32.mrb[34].mxu0 }
 0x142   : > { %15153 = vmatprep.mubr.msk.f32.mxu0 %vm1100_vm1, %v605_v12  ;;  %16883 = vmatprep.subr.bf16.mxu0 %v16882_v24  ;;  %v951_v26 = vpop.f32.mrb[35].mxu0  ;;  %v291_v12 = vadd.s32 16, %v289_v8 }
 0x143   : > { %15112 = vmatmul.mubr.msk.f32.gmra.mrb[46].mxu1 %vm1100_vm1, %v18853_v43  ;;  %16885 = vmatpush3.bf16.msra.mxu0 %v16882_v24  ;;  %v16886_v27 = vpack.c.bf16 %v15015_v25, %v951_v26 }
 0x144   : > { %15136 = vmatprep.mubr.msk.f32.mxu1 %vm1100_vm1, %v575_v60 }
 0x145   : > { %15154 = vmatmul.mubr.msk.f32.gmra.mrb[70].mxu0 %vm1100_vm1, %v14923_v10  ;;  %16887 = vmatprep.subr.bf16.mxu0 %v16886_v27  ;;  %v15018_v28 = vpop.f32.mrb[36].mxu0  ;;  %v294_v10 = vand.u32 127, %v288_v7 }
 0x146   : > { %v961_v29 = vpop.f32.mrb[37].mxu0 }
 0x147   : > { %16889 = vmatpush3.bf16.msra.mxu0 %v16886_v27  ;;  %v16890_v30 = vpack.c.bf16 %v15018_v28, %v961_v29  ;;  %vm296_vm3 = vcmp.le.s32.totalorder %v294_v10, %v290_v9  ;;  %vm295_vm4 = vcmp.le.s32.totalorder %v294_v10, %v289_v8  ;;  %vm298_vm5 = vcmp.le.s32.totalorder %v294_v10, %v292_v11 }
 0x148   : > { %16857 = vmatpush3.bf16.xpose.msk.msra.mxu1 %vm18820_vm2, %v16852_v62  ;;  %vm297_vm7 = vcmp.le.s32.totalorder %v294_v10, %v291_v12 }
 0x149   : > { %16872 = vmatprep.subr.msk.bf16.mxu1 %vm18820_vm2, %v16870_v14  ;;  %v15021_v31 = vpop.f32.mrb[38].mxu0  ;;  %v18979_v22 = vsel %vm297_vm7, 0.0, %v18430_v13 }
 0x14a   : > { %v971_v32 = vpop.f32.mrb[39].mxu0 }
 0x14b   : > { %v16894_v33 = vpack.c.bf16 %v15021_v31, %v971_v32 }
 0x14d   : > { %v15024_v34 = vpop.f32.mrb[40].mxu0 }
 0x14e   : > { %v981_v35 = vpop.f32.mrb[41].mxu0 }
 0x14f   : > { %15137 = vmatmul.mubr.msk.f32.vlgmr.msra.gmra.mrb[48].mxu1 %vm1100_vm1, %v18872_v58  ;;  %v18939_v36 = vpack.c.bf16 %v15024_v34, %v981_v35 }
 0x150   : > { %16875 = vmatpush3.bf16.xpose.msk.msra.mxu1 %vm18820_vm2, %v16870_v14  ;;  %15139 = vmatprep.mubr.msk.f32.mxu1 %vm1100_vm1, %v585_v1  ;;  %v18965_v14 = vsel %vm296_vm3, 0.0, %v18430_v13 }
 0x151   : > { %16878 = vmatprep.subr.msk.bf16.mxu1 %vm18820_vm2, %v16876_v19  ;;  %v15027_v37 = vpop.f32.mrb[42].mxu0  ;;  %16899 = vmatprep.subr.bf16.mxu0 %v18939_v36 }
 0x152   : > { %v991_v38 = vpop.f32.mrb[43].mxu0 }
 0x153   : > { %15140 = vmatmul.mubr.msk.f32.gmra.mrb[50].mxu1 %vm1100_vm1, %v14917_v63  ;;  %v18942_v39 = vpack.c.bf16 %v15027_v37, %v991_v38 }
 0x154   : > { %15164 = vmatprep.mubr.msk.f32.mxu1 %vm1100_vm1, %v615_v17 }
 0x155   : > { %v15030_v40 = vpop.f32.mrb[44].mxu0 }
 0x156   : > { %v1001_v41 = vpop.f32.mrb[45].mxu0 }
 0x157   : > { %v18944_v42 = vpack.c.bf16 %v15030_v40, %v1001_v41 }
 0x158   : > { %16881 = vmatpush3.bf16.xpose.msk.msra.mxu1 %vm18820_vm2, %v16876_v19 }
 0x159   : > { %16891 = vmatprep.subr.bf16.mxu1 %v16890_v30  ;;  %v15033_v43 = vpop.f32.mrb[46].mxu0 }
 0x15a   : > { %v1011_v44 = vpop.f32.mrb[47].mxu0 }
 0x15b   : > { %v18947_v45 = vpack.c.bf16 %v15033_v43, %v1011_v44 }
 0x15d   : > { %v15036_v46 = vpop.f32.mrb[48].mxu0 }
 0x15e   : > { %v1021_v47 = vpop.f32.mrb[49].mxu0 }
 0x15f   : > { %15165 = vmatmul.mubr.msk.f32.vlgmr.msra.gmra.mrb[52].mxu1 %vm1100_vm1, %v14926_v15  ;;  %v18949_v48 = vpack.c.bf16 %v15036_v46, %v1021_v47  ;;  %v18967_v15 = vsel %vm295_vm4, 0.0, %v18430_v13 }
 0x160   : > { %15167 = vmatprep.mubr.msk.f32.mxu1 %vm1100_vm1, %v625_v21  ;;  %16893 = vmatpush3.bf16.msra.mxu1 %v16890_v30 }
 0x161   : > { %16895 = vmatprep.subr.bf16.mxu1 %v16894_v33  ;;  %v15039_v49 = vpop.f32.mrb[50].mxu0 }
 0x162   : > { %v1031_v50 = vpop.f32.mrb[51].mxu0 }
 0x163   : > { %15168 = vmatmul.mubr.msk.f32.gmra.mrb[54].mxu1 %vm1100_vm1, %v14929_v20  ;;  %v18951_v51 = vpack.c.bf16 %v15039_v49, %v1031_v50  ;;  %v18975_v20 = vsel %vm298_vm5, 0.0, %v18430_v13 }
 0x164   : > { %16897 = vmatpush3.bf16.msra.mxu1 %v16894_v33 }
 0x165   : > { %16907 = vmatprep.subr.bf16.mxu1 %v18944_v42  ;;  %v15042_v52 = vpop.f32.mrb[52].mxu0 }
 0x166   : > { %v1041_v53 = vpop.f32.mrb[53].mxu0 }
 0x167   : > { %v18953_v54 = vpack.c.bf16 %v15042_v52, %v1041_v53 }
 0x169   : > { %v15045_v55 = vpop.f32.mrb[54].mxu0 }
 0x16a   : > { %v1051_v56 = vpop.f32.mrb[55].mxu0 }
 0x16b   : > { %v18955_v57 = vpack.c.bf16 %v15045_v55, %v1051_v56 }
 0x16d   : > { %v15048_v58 = vpop.f32.mrb[56].mxu0 }
 0x16e   : > { %v1061_v59 = vpop.f32.mrb[57].mxu0 }
 0x16f   : > { %v18957_v60 = vpack.c.bf16 %v15048_v58, %v1061_v59 }
 0x171   : > { %v15051_v61 = vpop.f32.mrb[58].mxu0 }
 0x172   : > { %v1071_v62 = vpop.f32.mrb[59].mxu0 }
 0x173   : > { %v18959_v63 = vpack.c.bf16 %v15051_v61, %v1071_v62 }
 0x175   : > { %v15054_v0 = vpop.f32.mrb[60].mxu0 }
 0x176   : > { %v1081_v1 = vpop.f32.mrb[61].mxu0 }
 0x177   : > { %v18961_v2 = vpack.c.bf16 %v15054_v0, %v1081_v1 }
 0x179   : > { %v15057_v3 = vpop.f32.mrb[62].mxu0 }
 0x17a   : > { %v1091_v4 = vpop.f32.mrb[63].mxu0 }
 0x17b   : > { %v18963_v5 = vpack.c.bf16 %v15057_v3, %v1091_v4 }
 0x1e2   : > { %v15068_v16 = vpop.f32.mrb[32].mxu1 }
 0x1e3   : > { %v1191_v17 = vpop.f32.mrb[33].mxu1  ;;  %v18970_v18 = vadd.f32 %v15068_v16, %v18965_v14 }
 0x1e4   : > { %v18973_v19 = vadd.f32 %v1191_v17, %v18967_v15 }
 0x1e5   : > { %v1977_v21 = vsel %vm1973_vm6, %v18970_v18, -inf }
 0x1e6   : > { %1978 = vmax.xlane.f32.xlu1 %v1977_v21  ;;  %v1974_v23 = vsel %vm1973_vm6, %v18973_v19, -inf  ;;  %v15071_v24 = vpop.f32.mrb[34].mxu1 }
 0x1e7   : > { %1975 = vmax.xlane.f32.xlu0 %v1974_v23  ;;  %v18984_v25 = vadd.f32 %v15071_v24, %v18975_v20  ;;  %v1201_v26 = vpop.f32.mrb[35].mxu1 }
 0x1e8   : > { %v18987_v27 = vadd.f32 %v1201_v26, %v18979_v22 }
 0x1e9   : > { %v1983_v28 = vsel %vm1973_vm6, %v18984_v25, -inf }
 0x1ea   : > { %v1980_v29 = vsel %vm1973_vm6, %v18987_v27, -inf }
 0x1eb   : > { %1984 = vmax.xlane.f32.xlu0 %v1983_v28 }
 0x1ef   : > { %1981 = vmax.xlane.f32.xlu0 %v1980_v29 }
 0x1f2   : > { %v15082_v30 = vpop.f32.mrb[36].mxu1 }
 0x1f3   : > { %v1300_v31 = vpop.f32.mrb[37].mxu1  ;;  %v18994_v32 = vadd.f32 %v15082_v30, %v18965_v14 }
 0x1f4   : > { %v18997_v33 = vadd.f32 %v1300_v31, %v18967_v15 }
 0x1f5   : > { %v1989_v34 = vsel %vm1973_vm6, %v18994_v32, -inf }
 0x1f6   : > { %1990 = vmax.xlane.f32.xlu1 %v1989_v34  ;;  %v15085_v35 = vpop.f32.mrb[38].mxu1  ;;  %v1986_v37 = vsel %vm1973_vm6, %v18997_v33, -inf }
 0x1f7   : > { %1987 = vmax.xlane.f32.xlu0 %v1986_v37  ;;  %v19004_v38 = vadd.f32 %v15085_v35, %v18975_v20  ;;  %v1310_v40 = vpop.f32.mrb[39].mxu1 }
 0x1f8   : > { %v19007_v41 = vadd.f32 %v1310_v40, %v18979_v22 }
 0x1f9   : > { %v1995_v43 = vsel %vm1973_vm6, %v19004_v38, -inf }
 0x1fa   : > { %1996 = vmax.xlane.f32.xlu1 %v1995_v43  ;;  %v1992_v44 = vsel %vm1973_vm6, %v19007_v41, -inf }
 0x1fe   : > { %1993 = vmax.xlane.f32.xlu1 %v1992_v44 }
 0x202   : > { %v15096_v46 = vpop.f32.mrb[40].mxu1 }
 0x203   : > { %v1409_v47 = vpop.f32.mrb[41].mxu1  ;;  %v19014_v49 = vadd.f32 %v15096_v46, %v18965_v14 }
 0x204   : > { %v15124_v50 = vpop.f32.mrb[64].mxu0  ;;  %v19019_v53 = vadd.f32 %v1409_v47, %v18967_v15 }
 0x205   : > { %v2001_v52 = vsel %vm1973_vm6, %v19014_v49, -inf  ;;  %v1627_v55 = vpop.f32.mrb[65].mxu0  ;;  %v19062_v37 = vadd.f32 %v15124_v50, %v18965_v14 }
 0x206   : > { %2002 = vmax.xlane.f32.xlu0 %v2001_v52  ;;  %v15099_v56 = vpop.f32.mrb[42].mxu1  ;;  %v1998_v62 = vsel %vm1973_vm6, %v19019_v53, -inf  ;;  %v19032_v4 = vadd.f32 %v1627_v55, %v18967_v15 }
 0x207   : > { %v1419_v58 = vpop.f32.mrb[43].mxu1  ;;  %v19022_v59 = vadd.f32 %v15099_v56, %v18975_v20  ;;  %v2025_v52 = vsel %vm1973_vm6, %v19062_v37, -inf }
 0x208   : > { %v15127_v61 = vpop.f32.mrb[66].mxu0  ;;  %v19029_v3 = vadd.f32 %v1419_v58, %v18979_v22  ;;  %v2022_v12 = vsel %vm1973_vm6, %v19032_v4, -inf }
 0x209   : > { %v1637_v0 = vpop.f32.mrb[67].mxu0  ;;  %v2007_v1 = vsel %vm1973_vm6, %v19022_v59, -inf  ;;  %v19070_v47 = vadd.f32 %v15127_v61, %v18975_v20 }
 0x20a   : > { %1999 = vmax.xlane.f32.xlu0 %v1998_v62  ;;  %v2004_v7 = vsel %vm1973_vm6, %v19029_v3, -inf  ;;  %v19040_v11 = vadd.f32 %v1637_v0, %v18979_v22 }
 0x20b   : > { %v2031_v61 = vsel %vm1973_vm6, %v19070_v47, -inf }
 0x20c   : > { %v2028_v26 = vsel %vm1973_vm6, %v19040_v11, -inf }
 0x20e   : > { %2008 = vmax.xlane.f32.xlu0 %v2007_v1 }
 0x212   : > { %2005 = vmax.xlane.f32.xlu0 %v2004_v7  ;;  %v15110_v8 = vpop.f32.mrb[44].mxu1 }
 0x213   : > { %v1518_v9 = vpop.f32.mrb[45].mxu1  ;;  %v19037_v10 = vadd.f32 %v15110_v8, %v18965_v14 }
 0x214   : > { %v15152_v13 = vpop.f32.mrb[68].mxu0  ;;  %v19047_v17 = vadd.f32 %v1518_v9, %v18967_v15 }
 0x215   : > { %v2013_v16 = vsel %vm1973_vm6, %v19037_v10, -inf  ;;  %v1845_v21 = vpop.f32.mrb[69].mxu0 }
 0x216   : > { %2014 = vmax.xlane.f32.xlu1 %v2013_v16  ;;  %v15113_v23 = vpop.f32.mrb[46].mxu1  ;;  %2023 = vmax.xlane.f32.xlu0 %v2022_v12  ;;  %v2010_v29 = vsel %vm1973_vm6, %v19047_v17, -inf  ;;  %v19077_v58 = vadd.f32 %v1845_v21, %v18967_v15  ;;  %v19102_v21 = vadd.f32 %v15152_v13, %v18965_v14 }
 0x217   : > { %v1528_v24 = vpop.f32.mrb[47].mxu1  ;;  %v19059_v35 = vadd.f32 %v15113_v23, %v18975_v20 }
 0x218   : > { %v15155_v28 = vpop.f32.mrb[70].mxu0  ;;  %v19054_v30 = vadd.f32 %v1528_v24, %v18979_v22  ;;  %v2046_v8 = vsel %vm1973_vm6, %v19077_v58, -inf }
 0x219   : > { %v1855_v31 = vpop.f32.mrb[71].mxu0  ;;  %v2019_v40 = vsel %vm1973_vm6, %v19059_v35, -inf }
 0x21a   : > { %2011 = vmax.xlane.f32.xlu1 %v2010_v29  ;;  %2029 = vmax.xlane.f32.xlu0 %v2028_v26  ;;  %v2016_v34 = vsel %vm1973_vm6, %v19054_v30, -inf  ;;  %v19090_v7 = vadd.f32 %v1855_v31, %v18979_v22  ;;  %v19110_v31 = vadd.f32 %v15155_v28, %v18975_v20 }
 0x21c   : > { %v2052_v16 = vsel %vm1973_vm6, %v19090_v7, -inf }
 0x21e   : > { %2017 = vmax.xlane.f32.xlu1 %v2016_v34  ;;  %v2049_v34 = vsel %vm1973_vm6, %v19102_v21, -inf }
 0x222   : > { %2020 = vmax.xlane.f32.xlu1 %v2019_v40  ;;  %v15138_v43 = vpop.f32.mrb[48].mxu1 }
 0x223   : > { %v1736_v44 = vpop.f32.mrb[49].mxu1  ;;  %v19085_v0 = vadd.f32 %v15138_v43, %v18965_v14 }
 0x224   : > { %v19067_v46 = vadd.f32 %v1736_v44, %v18967_v15 }
 0x225   : > { %v2037_v9 = vsel %vm1973_vm6, %v19085_v0, -inf }
 0x226   : > { %v15141_v55 = vpop.f32.mrb[50].mxu1  ;;  %2026 = vmax.xlane.f32.xlu1 %v2025_v52  ;;  %v2034_v50 = vsel %vm1973_vm6, %v19067_v46, -inf  ;;  %v2055_v52 = vsel %vm1973_vm6, %v19110_v31, -inf }
 0x227   : > { %v1746_v56 = vpop.f32.mrb[51].mxu1  ;;  %2035 = vmax.xlane.f32.xlu0 %v2034_v50  ;;  %v19097_v12 = vadd.f32 %v15141_v55, %v18975_v20 }
 0x228   : > { %v19080_v62 = vadd.f32 %v1746_v56, %v18979_v22 }
 0x229   : > { %v2043_v23 = vsel %vm1973_vm6, %v19097_v12, -inf }
 0x22a   : > { %2032 = vmax.xlane.f32.xlu1 %v2031_v61  ;;  %v2040_v1 = vsel %vm1973_vm6, %v19080_v62, -inf }
 0x22b   : > { %2041 = vmax.xlane.f32.xlu0 %v2040_v1 }
 0x22e   : > { %2038 = vmax.xlane.f32.xlu1 %v2037_v9 }
 0x22f   : > { %2047 = vmax.xlane.f32.xlu0 %v2046_v8 }
 0x232   : > { %v15166_v24 = vpop.f32.mrb[52].mxu1  ;;  %2044 = vmax.xlane.f32.xlu1 %v2043_v23 }
 0x233   : > { %v1954_v26 = vpop.f32.mrb[53].mxu1  ;;  %2053 = vmax.xlane.f32.xlu0 %v2052_v16  ;;  %v19122_v55 = vadd.f32 %v15166_v24, %v18965_v14 }
 0x234   : > { %v19107_v29 = vadd.f32 %v1954_v26, %v18967_v15 }
 0x235   : > { %v2061_v50 = vsel %vm1973_vm6, %v19122_v55, -inf }
 0x236   : > { %v15169_v40 = vpop.f32.mrb[54].mxu1  ;;  %2050 = vmax.xlane.f32.xlu1 %v2049_v34  ;;  %v2058_v13 = vsel %vm1973_vm6, %v19107_v29, -inf }
 0x237   : > { %v1964_v43 = vpop.f32.mrb[55].mxu1  ;;  %2059 = vmax.xlane.f32.xlu0 %v2058_v13  ;;  %v19129_v56 = vadd.f32 %v15169_v40, %v18975_v20 }
 0x238   : > { %v19117_v44 = vadd.f32 %v1964_v43, %v18979_v22 }
 0x239   : > { %v2067_v61 = vsel %vm1973_vm6, %v19129_v56, -inf }
 0x23a   : > { %2056 = vmax.xlane.f32.xlu1 %v2055_v52  ;;  %v2064_v28 = vsel %vm1973_vm6, %v19117_v44, -inf }
 0x23b   : > { %2065 = vmax.xlane.f32.xlu0 %v2064_v28 }
 0x23e   : > { %2062 = vmax.xlane.f32.xlu1 %v2061_v50 }
 0x242   : > { %2068 = vmax.xlane.f32.xlu1 %v2067_v61 }
 0x273   : > { %v1979_v1 = vpop.xlane.xlu1 %1978 }
 0x274   : > { %v2071_v8 = vsub.f32 %v18970_v18, %v1979_v1  ;;  %v1976_v9 = vpop.xlane.xlu0 %1975 }
 0x275   : > { %v2070_v16 = vsub.f32 %v18973_v19, %v1976_v9 }
 0x276   : > { %v2104_v23 = vmul.f32 1.442695, %v2071_v8 }
 0x277   : > { %v2102_v24 = vmul.f32 1.442695, %v2070_v16 }
 0x278   : > { %17758 = vpow2.f32 %v2104_v23  ;;  %v1985_v26 = vpop.xlane.xlu0 %1984 }
 0x279   : > { %v2073_v34 = vsub.f32 %v18984_v25, %v1985_v26  ;;  %17760 = vpow2.f32 %v2102_v24 }
 0x27b   : > { %v2108_v40 = vmul.f32 1.442695, %v2073_v34 }
 0x27c   : > { %v1982_v13 = vpop.xlane.xlu0 %1981 }
 0x27d   : > { %v2072_v43 = vsub.f32 %v18987_v27, %v1982_v13  ;;  %17762 = vpow2.f32 %v2108_v40 }
 0x27f   : > { %v2106_v52 = vmul.f32 1.442695, %v2072_v43 }
 0x281   : > { %17764 = vpow2.f32 %v2106_v52 }
 0x282   : > { %v19137_v28 = vpop.eup %17758 }
 0x283   : > { %v1991_v18 = vpop.xlane.xlu1 %1990  ;;  %v2169_v19 = vsel %vm1973_vm6, %v19137_v28, 0.0  ;;  %v19141_v50 = vpop.eup %17760 }
 0x284   : > { %v2075_v61 = vsub.f32 %v18994_v32, %v1991_v18  ;;  %v1988_v1 = vpop.xlane.xlu0 %1987  ;;  %2170 = vadd.xlane.f32.xlu0 %v2169_v19  ;;  %v2166_v16 = vsel %vm1973_vm6, %v19141_v50, 0.0 }
 0x285   : > { %v2074_v25 = vsub.f32 %v18997_v33, %v1988_v1 }
 0x286   : > { %v2112_v8 = vmul.f32 1.442695, %v2075_v61 }
 0x287   : > { %v2110_v9 = vmul.f32 1.442695, %v2074_v25  ;;  %v1997_v27 = vpop.xlane.xlu1 %1996  ;;  %v19147_v23 = vpop.eup %17762 }
 0x288   : > { %17766 = vpow2.f32 %v2112_v8  ;;  %v2077_v24 = vsub.f32 %v19004_v38, %v1997_v27  ;;  %2167 = vadd.xlane.f32.xlu0 %v2166_v16  ;;  %v2175_v32 = vsel %vm1973_vm6, %v19147_v23, 0.0 }
 0x289   : > { %17768 = vpow2.f32 %v2110_v9 }
 0x28a   : > { %v2116_v26 = vmul.f32 1.442695, %v2077_v24 }
 0x28b   : > { %v1994_v34 = vpop.xlane.xlu1 %1993  ;;  %v19152_v40 = vpop.eup %17764 }
 0x28c   : > { %v2076_v33 = vsub.f32 %v19007_v41, %v1994_v34  ;;  %2176 = vadd.xlane.f32.xlu0 %v2175_v32  ;;  %17770 = vpow2.f32 %v2116_v26  ;;  %v2172_v43 = vsel %vm1973_vm6, %v19152_v40, 0.0 }
 0x28e   : > { %v2114_v13 = vmul.f32 1.442695, %v2076_v33 }
 0x290   : > { %2173 = vadd.xlane.f32.xlu0 %v2172_v43  ;;  %17772 = vpow2.f32 %v2114_v13 }
 0x292   : > { %v19157_v52 = vpop.eup %17766 }
 0x293   : > { %v2003_v38 = vpop.xlane.xlu0 %2002  ;;  %v2181_v18 = vsel %vm1973_vm6, %v19157_v52, 0.0  ;;  %v19161_v19 = vpop.eup %17768 }
 0x294   : > { %v2079_v61 = vsub.f32 %v19014_v49, %v2003_v38  ;;  %2182 = vadd.xlane.f32.xlu1 %v2181_v18  ;;  %v2178_v25 = vsel %vm1973_vm6, %v19161_v19, 0.0 }
 0x296   : > { %v2120_v41 = vmul.f32 1.442695, %v2079_v61  ;;  %v19166_v8 = vpop.eup %17770 }
 0x297   : > { %v2000_v1 = vpop.xlane.xlu0 %1999  ;;  %v2187_v24 = vsel %vm1973_vm6, %v19166_v8, 0.0 }
 0x298   : > { %17774 = vpow2.f32 %v2120_v41  ;;  %v2078_v9 = vsub.f32 %v19019_v53, %v2000_v1  ;;  %2179 = vadd.xlane.f32.xlu1 %v2178_v25 }
 0x29a   : > { %v2118_v27 = vmul.f32 1.442695, %v2078_v9  ;;  %v19171_v26 = vpop.eup %17772 }
 0x29b   : > { %v2009_v16 = vpop.xlane.xlu0 %2008  ;;  %v2184_v33 = vsel %vm1973_vm6, %v19171_v26, 0.0 }
 0x29c   : > { %17776 = vpow2.f32 %v2118_v27  ;;  %v2081_v49 = vsub.f32 %v19022_v59, %v2009_v16  ;;  %2188 = vadd.xlane.f32.xlu1 %v2187_v24 }
 0x29e   : > { %v2124_v34 = vmul.f32 1.442695, %v2081_v49 }
 0x29f   : > { %v2006_v32 = vpop.xlane.xlu0 %2005 }
 0x2a0   : > { %17778 = vpow2.f32 %v2124_v34  ;;  %v2080_v53 = vsub.f32 %v19029_v3, %v2006_v32  ;;  %2185 = vadd.xlane.f32.xlu1 %v2184_v33 }
 0x2a2   : > { %v19177_v13 = vpop.eup %17774  ;;  %v2122_v43 = vmul.f32 1.442695, %v2080_v53 }
 0x2a3   : > { %v2015_v38 = vpop.xlane.xlu1 %2014  ;;  %v2024_v18 = vpop.xlane.xlu0 %2023  ;;  %v2193_v61 = vsel %vm1973_vm6, %v19177_v13, 0.0 }
 0x2a4   : > { %17780 = vpow2.f32 %v2122_v43  ;;  %v2083_v59 = vsub.f32 %v19037_v10, %v2015_v38  ;;  %v2086_v41 = vsub.f32 %v19032_v4, %v2024_v18  ;;  %2194 = vadd.xlane.f32.xlu0 %v2193_v61 }
 0x2a6   : > { %v19183_v1 = vpop.eup %17776  ;;  %v2128_v25 = vmul.f32 1.442695, %v2083_v59  ;;  %v2134_v9 = vmul.f32 1.442695, %v2086_v41 }
 0x2a7   : > { %v2012_v3 = vpop.xlane.xlu1 %2011  ;;  %v2030_v27 = vpop.xlane.xlu0 %2029  ;;  %v2190_v16 = vsel %vm1973_vm6, %v19183_v1, 0.0 }
 0x2a8   : > { %17782 = vpow2.f32 %v2128_v25  ;;  %v2082_v24 = vsub.f32 %v19047_v17, %v2012_v3  ;;  %v2088_v49 = vsub.f32 %v19040_v11, %v2030_v27  ;;  %2191 = vadd.xlane.f32.xlu0 %v2190_v16 }
 0x2a9   : > { %17784 = vpow2.f32 %v2134_v9 }
 0x2aa   : > { %v19189_v10 = vpop.eup %17778  ;;  %v2126_v4 = vmul.f32 1.442695, %v2082_v24  ;;  %v2138_v34 = vmul.f32 1.442695, %v2088_v49 }
 0x2ab   : > { %v2018_v32 = vpop.xlane.xlu1 %2017  ;;  %v2199_v33 = vsel %vm1973_vm6, %v19189_v10, 0.0 }
 0x2ac   : > { %17786 = vpow2.f32 %v2126_v4  ;;  %v2084_v53 = vsub.f32 %v19054_v30, %v2018_v32  ;;  %2200 = vadd.xlane.f32.xlu0 %v2199_v33 }
 0x2ad   : > { %17788 = vpow2.f32 %v2138_v34 }
 0x2ae   : > { %v19194_v43 = vpop.eup %17780  ;;  %v2130_v17 = vmul.f32 1.442695, %v2084_v53 }
 0x2af   : > { %v2021_v38 = vpop.xlane.xlu1 %2020  ;;  %v2196_v11 = vsel %vm1973_vm6, %v19194_v43, 0.0 }
 0x2b0   : > { %17790 = vpow2.f32 %v2130_v17  ;;  %v2085_v18 = vsub.f32 %v19059_v35, %v2021_v38  ;;  %2197 = vadd.xlane.f32.xlu0 %v2196_v11 }
 0x2b2   : > { %v19199_v61 = vpop.eup %17782  ;;  %v2132_v59 = vmul.f32 1.442695, %v2085_v18 }
 0x2b3   : > { %v19201_v41 = vpop.eup %17784  ;;  %v2027_v25 = vpop.xlane.xlu1 %2026  ;;  %v2205_v30 = vsel %vm1973_vm6, %v19199_v61, 0.0 }
 0x2b4   : > { %17792 = vpow2.f32 %v2132_v59  ;;  %v2087_v9 = vsub.f32 %v19062_v37, %v2027_v25  ;;  %2206 = vadd.xlane.f32.xlu1 %v2205_v30  ;;  %v2214_v3 = vsel %vm1973_vm6, %v19201_v41, 0.0  ;;  %v2036_v27 = vpop.xlane.xlu0 %2035 }
 0x2b5   : > { %2215 = vadd.xlane.f32.xlu0 %v2214_v3  ;;  %v2090_v35 = vsub.f32 %v19067_v46, %v2036_v27 }
 0x2b6   : > { %v19209_v16 = vpop.eup %17786  ;;  %v2136_v24 = vmul.f32 1.442695, %v2087_v9 }
 0x2b7   : > { %v19211_v49 = vpop.eup %17788  ;;  %v2142_v4 = vmul.f32 1.442695, %v2090_v35  ;;  %v2033_v34 = vpop.xlane.xlu1 %2032  ;;  %v2202_v32 = vsel %vm1973_vm6, %v19209_v16, 0.0 }
 0x2b8   : > { %17794 = vpow2.f32 %v2136_v24  ;;  %v2089_v37 = vsub.f32 %v19070_v47, %v2033_v34  ;;  %2203 = vadd.xlane.f32.xlu1 %v2202_v32  ;;  %v2220_v33 = vsel %vm1973_vm6, %v19211_v49, 0.0  ;;  %v2042_v53 = vpop.xlane.xlu0 %2041 }
 0x2b9   : > { %17796 = vpow2.f32 %v2142_v4  ;;  %2221 = vadd.xlane.f32.xlu0 %v2220_v33  ;;  %v2092_v46 = vsub.f32 %v19080_v62, %v2042_v53 }
 0x2ba   : > { %v19219_v17 = vpop.eup %17790  ;;  %v2140_v38 = vmul.f32 1.442695, %v2089_v37 }
 0x2bb   : > { %v2146_v11 = vmul.f32 1.442695, %v2092_v46  ;;  %v2039_v18 = vpop.xlane.xlu1 %2038  ;;  %v2208_v59 = vsel %vm1973_vm6, %v19219_v17, 0.0 }
 0x2bc   : > { %17798 = vpow2.f32 %v2140_v38  ;;  %v2091_v47 = vsub.f32 %v19085_v0, %v2039_v18  ;;  %2209 = vadd.xlane.f32.xlu1 %v2208_v59  ;;  %v2048_v25 = vpop.xlane.xlu0 %2047 }
 0x2bd   : > { %17800 = vpow2.f32 %v2146_v11  ;;  %v2094_v30 = vsub.f32 %v19077_v58, %v2048_v25 }
 0x2be   : > { %v19225_v9 = vpop.eup %17792  ;;  %v2144_v3 = vmul.f32 1.442695, %v2091_v47 }
 0x2bf   : > { %v2150_v62 = vmul.f32 1.442695, %v2094_v30  ;;  %v2045_v27 = vpop.xlane.xlu1 %2044  ;;  %v2211_v35 = vsel %vm1973_vm6, %v19225_v9, 0.0 }
 0x2c0   : > { %17802 = vpow2.f32 %v2144_v3  ;;  %v2093_v24 = vsub.f32 %v19097_v12, %v2045_v27  ;;  %2212 = vadd.xlane.f32.xlu1 %v2211_v35  ;;  %v2054_v4 = vpop.xlane.xlu0 %2053 }
 0x2c1   : > { %17804 = vpow2.f32 %v2150_v62  ;;  %v2096_v0 = vsub.f32 %v19090_v7, %v2054_v4 }
 0x2c2   : > { %v19231_v34 = vpop.eup %17794  ;;  %v2148_v32 = vmul.f32 1.442695, %v2093_v24 }
 0x2c3   : > { %v19233_v58 = vpop.eup %17796  ;;  %v2154_v37 = vmul.f32 1.442695, %v2096_v0  ;;  %v2051_v33 = vpop.xlane.xlu1 %2050  ;;  %v2217_v53 = vsel %vm1973_vm6, %v19231_v34, 0.0 }
 0x2c4   : > { %17806 = vpow2.f32 %v2148_v32  ;;  %v2095_v46 = vsub.f32 %v19102_v21, %v2051_v33  ;;  %2218 = vadd.xlane.f32.xlu1 %v2217_v53  ;;  %v2060_v12 = vpop.xlane.xlu0 %2059  ;;  %v2226_v38 = vsel %vm1973_vm6, %v19233_v58, 0.0 }
 0x2c5   : > { %17808 = vpow2.f32 %v2154_v37  ;;  %v2098_v7 = vsub.f32 %v19107_v29, %v2060_v12  ;;  %2227 = vadd.xlane.f32.xlu0 %v2226_v38 }
 0x2c6   : > { %v19241_v11 = vpop.eup %17798  ;;  %v2152_v18 = vmul.f32 1.442695, %v2095_v46 }
 0x2c7   : > { %v19243_v59 = vpop.eup %17800  ;;  %v2158_v47 = vmul.f32 1.442695, %v2098_v7  ;;  %v2057_v25 = vpop.xlane.xlu1 %2056  ;;  %v2223_v30 = vsel %vm1973_vm6, %v19241_v11, 0.0 }
 0x2c8   : > { %17810 = vpow2.f32 %v2152_v18  ;;  %v2097_v21 = vsub.f32 %v19110_v31, %v2057_v25  ;;  %2224 = vadd.xlane.f32.xlu1 %v2223_v30  ;;  %v2066_v3 = vpop.xlane.xlu0 %2065  ;;  %v2232_v62 = vsel %vm1973_vm6, %v19243_v59, 0.0 }
 0x2c9   : > { %17812 = vpow2.f32 %v2158_v47  ;;  %v2100_v29 = vsub.f32 %v19117_v44, %v2066_v3  ;;  %2233 = vadd.xlane.f32.xlu0 %v2232_v62 }
 0x2ca   : > { %v19251_v27 = vpop.eup %17802  ;;  %v2156_v35 = vmul.f32 1.442695, %v2097_v21 }
 0x2cb   : > { %v19253_v24 = vpop.eup %17804  ;;  %v2162_v4 = vmul.f32 1.442695, %v2100_v29  ;;  %v2063_v0 = vpop.xlane.xlu1 %2062  ;;  %v2229_v32 = vsel %vm1973_vm6, %v19251_v27, 0.0 }
 0x2cc   : > { %17814 = vpow2.f32 %v2156_v35  ;;  %v2099_v31 = vsub.f32 %v19122_v55, %v2063_v0  ;;  %2230 = vadd.xlane.f32.xlu1 %v2229_v32  ;;  %v2238_v37 = vsel %vm1973_vm6, %v19253_v24, 0.0 }
 0x2cd   : > { %17816 = vpow2.f32 %v2162_v4  ;;  %2239 = vadd.xlane.f32.xlu0 %v2238_v37 }
 0x2ce   : > { %v19260_v44 = vpop.eup %17806  ;;  %v2160_v33 = vmul.f32 1.442695, %v2099_v31 }
 0x2cf   : > { %v19262_v53 = vpop.eup %17808  ;;  %v2069_v46 = vpop.xlane.xlu1 %2068  ;;  %v2235_v12 = vsel %vm1973_vm6, %v19260_v44, 0.0 }
 0x2d0   : > { %17818 = vpow2.f32 %v2160_v33  ;;  %v2101_v38 = vsub.f32 %v19129_v56, %v2069_v46  ;;  %2236 = vadd.xlane.f32.xlu1 %v2235_v12  ;;  %v2244_v55 = vsel %vm1973_vm6, %v19262_v53, 0.0 }
 0x2d1   : > { %2245 = vadd.xlane.f32.xlu0 %v2244_v55 }
 0x2d2   : > { %v19269_v7 = vpop.eup %17810  ;;  %v2164_v18 = vmul.f32 1.442695, %v2101_v38 }
 0x2d3   : > { %v19271_v47 = vpop.eup %17812  ;;  %v2241_v25 = vsel %vm1973_vm6, %v19269_v7, 0.0 }
 0x2d4   : > { %17820 = vpow2.f32 %v2164_v18  ;;  %2242 = vadd.xlane.f32.xlu1 %v2241_v25  ;;  %v2250_v30 = vsel %vm1973_vm6, %v19271_v47, 0.0 }
 0x2d5   : > { %2251 = vadd.xlane.f32.xlu0 %v2250_v30 }
 0x2d6   : > { %v19277_v56 = vpop.eup %17814 }
 0x2d7   : > { %v19279_v21 = vpop.eup %17816  ;;  %v2247_v3 = vsel %vm1973_vm6, %v19277_v56, 0.0 }
 0x2d8   : > { %2248 = vadd.xlane.f32.xlu1 %v2247_v3  ;;  %v2256_v62 = vsel %vm1973_vm6, %v19279_v21, 0.0 }
 0x2d9   : > { %2257 = vadd.xlane.f32.xlu0 %v2256_v62 }
 0x2da   : > { %v19285_v29 = vpop.eup %17818 }
 0x2db   : > { %v2253_v35 = vsel %vm1973_vm6, %v19285_v29, 0.0 }
 0x2dc   : > { %2254 = vadd.xlane.f32.xlu1 %v2253_v35 }
 0x2de   : > { %v19289_v4 = vpop.eup %17820 }
 0x2df   : > { %v2259_v0 = vsel %vm1973_vm6, %v19289_v4, 0.0 }
 0x2e0   : > { %2260 = vadd.xlane.f32.xlu1 %v2259_v0 }
 0x311   : > { %v2171_v32 = vpop.xlane.xlu0 %2170 }
 0x312   : > { %17822 = vrcp.f32 %v2171_v32 }
 0x315   : > { %v2168_v31 = vpop.xlane.xlu0 %2167 }
 0x316   : > { %17824 = vrcp.f32 %v2168_v31 }
 0x319   : > { %v2177_v37 = vpop.xlane.xlu0 %2176 }
 0x31a   : > { %17826 = vrcp.f32 %v2177_v37 }
 0x31c   : > { %v17823_v46 = vpop.eup %17822 }
 0x31d   : > { %v2174_v33 = vpop.xlane.xlu0 %2173  ;;  %v2295_v18 = vmul.f32 %v17823_v46, %v19137_v28 }
 0x31e   : > { %17828 = vrcp.f32 %v2174_v33 }
 0x320   : > { %v17825_v12 = vpop.eup %17824 }
 0x321   : > { %v2183_v38 = vpop.xlane.xlu1 %2182  ;;  %v2294_v55 = vmul.f32 %v17825_v12, %v19141_v50 }
 0x322   : > { %17830 = vrcp.f32 %v2183_v38 }
 0x323   : > { %15178 = vmatprep.mubr.msk.f32.mxu0 %vm1973_vm6, %v2294_v55 }
 0x324   : > { %15179 = vmatmul.mubr.msk.f32.vlgmr.msra.gmra.mrb[72].mxu0 %vm1973_vm6, %v2295_v18  ;;  %v17827_v30 = vpop.eup %17826 }
 0x325   : > { %16901 = vmatpush3.bf16.msra.mxu0 %v18939_v36  ;;  %v2180_v25 = vpop.xlane.xlu1 %2179  ;;  %v2297_v28 = vmul.f32 %v17827_v30, %v19147_v23 }
 0x326   : > { %17832 = vrcp.f32 %v2180_v25  ;;  %16903 = vmatprep.subr.bf16.mxu0 %v18942_v39 }
 0x328   : > { %v17829_v3 = vpop.eup %17828 }
 0x329   : > { %16905 = vmatpush3.bf16.msra.mxu0 %v18942_v39  ;;  %v2189_v62 = vpop.xlane.xlu1 %2188  ;;  %v2296_v50 = vmul.f32 %v17829_v3, %v19152_v40 }
 0x32a   : > { %16915 = vmatprep.subr.bf16.mxu0 %v18949_v48  ;;  %17834 = vrcp.f32 %v2189_v62 }
 0x32b   : > { %15181 = vmatprep.mubr.msk.f32.mxu0 %vm1973_vm6, %v2296_v50 }
 0x32c   : > { %15182 = vmatmul.mubr.msk.f32.gmra.mrb[74].mxu0 %vm1973_vm6, %v2297_v28  ;;  %v17831_v35 = vpop.eup %17830 }
 0x32d   : > { %v2186_v36 = vpop.xlane.xlu1 %2185  ;;  %v2299_v39 = vmul.f32 %v17831_v35, %v19157_v52 }
 0x32e   : > { %17836 = vrcp.f32 %v2186_v36 }
 0x330   : > { %v17833_v0 = vpop.eup %17832 }
 0x331   : > { %v2195_v32 = vpop.xlane.xlu0 %2194  ;;  %v2298_v31 = vmul.f32 %v17833_v0, %v19161_v19 }
 0x332   : > { %17838 = vrcp.f32 %v2195_v32 }
 0x333   : > { %15192 = vmatprep.mubr.msk.f32.mxu1 %vm1973_vm6, %v2298_v31 }
 0x334   : > { %15193 = vmatmul.mubr.msk.f32.vlgmr.msra.gmra.mrb[56].mxu1 %vm1973_vm6, %v2299_v39  ;;  %v17835_v40 = vpop.eup %17834 }
 0x335   : > { %16909 = vmatpush3.bf16.msra.mxu1 %v18944_v42  ;;  %v2192_v23 = vpop.xlane.xlu0 %2191  ;;  %v2301_v52 = vmul.f32 %v17835_v40, %v19166_v8 }
 0x336   : > { %16911 = vmatprep.subr.bf16.mxu1 %v18947_v45  ;;  %17840 = vrcp.f32 %v2192_v23 }
 0x338   : > { %v17837_v37 = vpop.eup %17836 }
 0x339   : > { %16913 = vmatpush3.bf16.msra.mxu1 %v18947_v45  ;;  %v2201_v33 = vpop.xlane.xlu0 %2200  ;;  %v2300_v19 = vmul.f32 %v17837_v37, %v19171_v26 }
 0x33a   : > { %16923 = vmatprep.subr.bf16.mxu1 %v18953_v54  ;;  %17842 = vrcp.f32 %v2201_v33 }
 0x33b   : > { %15195 = vmatprep.mubr.msk.f32.mxu1 %vm1973_vm6, %v2300_v19 }
 0x33c   : > { %15196 = vmatmul.mubr.msk.f32.gmra.mrb[58].mxu1 %vm1973_vm6, %v2301_v52  ;;  %v17839_v46 = vpop.eup %17838 }
 0x33d   : > { %v2198_v42 = vpop.xlane.xlu0 %2197  ;;  %v2303_v45 = vmul.f32 %v17839_v46, %v19177_v13 }
 0x33e   : > { %17844 = vrcp.f32 %v2198_v42  ;;  %v3103_v42 = vld [vmem:[%s22638_s4 + $0x8] sm:$0xff] }
 0x340   : > { %v17841_v12 = vpop.eup %17840 }
 0x341   : > { %v2207_v38 = vpop.xlane.xlu1 %2206  ;;  %v2302_v55 = vmul.f32 %v17841_v12, %v19183_v1 }
 0x342   : > { %v2216_v18 = vpop.xlane.xlu0 %2215 }
 0x343   : > { %17846 = vrcp.f32 %v2216_v18  ;;  %15206 = vmatprep.mubr.msk.f32.mxu0 %vm1973_vm6, %v2302_v55 }
 0x344   : > { %15207 = vmatmul.mubr.msk.f32.vlgmr.msra.gmra.mrb[76].mxu0 %vm1973_vm6, %v2303_v45  ;;  %17848 = vrcp.f32 %v2207_v38  ;;  %v17843_v26 = vpop.eup %17842 }
 0x345   : > { %16917 = vmatpush3.bf16.msra.mxu0 %v18949_v48  ;;  %v2204_v8 = vpop.xlane.xlu1 %2203  ;;  %v2305_v30 = vmul.f32 %v17843_v26, %v19189_v10 }
 0x346   : > { %17850 = vrcp.f32 %v2204_v8  ;;  %16919 = vmatprep.subr.bf16.mxu0 %v18951_v51  ;;  %v2222_v62 = vpop.xlane.xlu0 %2221 }
 0x348   : > { %v17845_v25 = vpop.eup %17844 }
 0x349   : > { %16921 = vmatpush3.bf16.msra.mxu0 %v18951_v51  ;;  %v2210_v1 = vpop.xlane.xlu1 %2209  ;;  %v2304_v13 = vmul.f32 %v17845_v25, %v19194_v43 }
 0x34a   : > { %17852 = vrcp.f32 %v2210_v1  ;;  %16931 = vmatprep.subr.bf16.mxu0 %v18957_v60 }
 0x34b   : > { %15209 = vmatprep.mubr.msk.f32.mxu0 %vm1973_vm6, %v2304_v13 }
 0x34c   : > { %15210 = vmatmul.mubr.msk.f32.gmra.mrb[78].mxu0 %vm1973_vm6, %v2305_v30 }
 0x34d   : > { %v17847_v48 = vpop.eup %17846  ;;  %v2213_v3 = vpop.xlane.xlu1 %2212 }
 0x34e   : > { %17854 = vrcp.f32 %v2213_v3  ;;  %v2310_v50 = vmul.f32 %v17847_v48, %v19201_v41  ;;  %v17849_v28 = vpop.eup %17848 }
 0x34f   : > { %17856 = vrcp.f32 %v2222_v62  ;;  %v2307_v10 = vmul.f32 %v17849_v28, %v19199_v61 }
 0x350   : > { %v17851_v51 = vpop.eup %17850  ;;  %15234 = vmatprep.mubr.msk.f32.mxu0 %vm1973_vm6, %v2310_v50 }
 0x351   : > { %v2219_v43 = vpop.xlane.xlu1 %2218  ;;  %v2306_v36 = vmul.f32 %v17851_v51, %v19209_v16 }
 0x352   : > { %17858 = vrcp.f32 %v2219_v43  ;;  %v2228_v35 = vpop.xlane.xlu0 %2227  ;;  %v13021_v43 = vld [vmem:[%s22636_s2 + $0x50] sm:$0xff] }
 0x353   : > { %17860 = vrcp.f32 %v2228_v35  ;;  %15220 = vmatprep.mubr.msk.f32.mxu1 %vm1973_vm6, %v2306_v36  ;;  %v13022_v36 = vld [vmem:[%s22636_s2 + $0x58] sm:$0xff] }
 0x354   : > { %v17853_v0 = vpop.eup %17852  ;;  %15221 = vmatmul.mubr.msk.f32.vlgmr.msra.gmra.mrb[60].mxu1 %vm1973_vm6, %v2307_v10 }
 0x355   : > { %16925 = vmatpush3.bf16.msra.mxu1 %v18953_v54  ;;  %v2225_v41 = vpop.xlane.xlu1 %2224  ;;  %v2308_v32 = vmul.f32 %v17853_v0, %v19219_v17  ;;  %v16970_v0 = vpack.c.bf16 %v13022_v36, %v13021_v43  ;;  %v19535_v43 = vld [vmem:[%s18563_s11 + $0x70] sm:$0xff] }
 0x356   : > { %16927 = vmatprep.subr.bf16.mxu1 %v18955_v57  ;;  %17862 = vrcp.f32 %v2225_v41  ;;  %v2234_v31 = vpop.xlane.xlu0 %2233  ;;  %v13023_v41 = vld [vmem:[%s22636_s2 + $0x60] sm:$0xff] }
 0x357   : > { %15223 = vmatprep.mubr.msk.f32.mxu1 %vm1973_vm6, %v2308_v32  ;;  %17864 = vrcp.f32 %v2234_v31  ;;  %v13024_v32 = vld [vmem:[%s22636_s2 + $0x68] sm:$0xff] }
 0x358   : > { %v17855_v61 = vpop.eup %17854  ;;  %v16974_v31 = vpack.c.bf16 %v13024_v32, %v13023_v41  ;;  %v19554_v32 = vld [vmem:[%s18563_s11 + $0x88] sm:$0xff] }
 0x359   : > { %16929 = vmatpush3.bf16.msra.mxu1 %v18955_v57  ;;  %v2231_v16 = vpop.xlane.xlu1 %2230  ;;  %v2309_v39 = vmul.f32 %v17855_v61, %v19225_v9  ;;  %v17857_v23 = vpop.eup %17856  ;;  %v3102_v9 = vld [vmem:[%s22638_s4] sm:$0xff]  ;;  %v13025_v61 = vld [vmem:[%s22636_s2 + $0x70] sm:$0xff] }
 0x35a   : > { %16939 = vmatprep.subr.bf16.mxu1 %v18961_v2  ;;  %17866 = vrcp.f32 %v2231_v16  ;;  %v2240_v54 = vpop.xlane.xlu0 %2239  ;;  %v2312_v57 = vmul.f32 %v17857_v23, %v19211_v49  ;;  %v13026_v16 = vld [vmem:[%s22636_s2 + $0x78] sm:$0xff] }
 0x35b   : > { %17868 = vrcp.f32 %v2240_v54  ;;  %15224 = vmatmul.mubr.msk.f32.gmra.mrb[62].mxu1 %vm1973_vm6, %v2309_v39  ;;  %v16978_v23 = vpack.c.bf16 %v13026_v16, %v13025_v61  ;;  %v19559_v61 = vld [vmem:[%s18563_s11 + $0x90] sm:$0xff] }
 0x35c   : > { %v17859_v17 = vpop.eup %17858 }
 0x35d   : > { %v17861_v40 = vpop.eup %17860  ;;  %v2311_v37 = vmul.f32 %v17859_v17, %v19231_v34  ;;  %v2237_v33 = vpop.xlane.xlu1 %2236 }
 0x35e   : > { %17870 = vrcp.f32 %v2237_v33  ;;  %v2246_v19 = vpop.xlane.xlu0 %2245  ;;  %v2314_v52 = vmul.f32 %v17861_v40, %v19233_v58  ;;  %v16946_v58 = vpack.c.bf16 %v3103_v42, %v3102_v9  ;;  %v19428_v42 = vld [vmem:[%s18563_s11] sm:$0xff] }
 0x35f   : > { %15235 = vmatmul.mubr.msk.f32.vlgmr.msra.gmra.mrb[80].mxu0 %vm1973_vm6, %v2311_v37  ;;  %17872 = vrcp.f32 %v2246_v19 }
 0x360   : > { %v17863_v46 = vpop.eup %17862  ;;  %16933 = vmatpush3.bf16.msra.mxu0 %v18957_v60  ;;  %15237 = vmatprep.mubr.msk.f32.mxu0 %vm1973_vm6, %v2312_v57 }
 0x361   : > { %15248 = vmatprep.mubr.msk.f32.mxu1 %vm1973_vm6, %v2314_v52  ;;  %16935 = vmatprep.subr.bf16.mxu0 %v18959_v63  ;;  %v2243_v49 = vpop.xlane.xlu1 %2242  ;;  %v2313_v34 = vmul.f32 %v17863_v46, %v19241_v11  ;;  %v17865_v38 = vpop.eup %17864  ;;  %v12981_v46 = vld [vmem:[%s22635_s1 + $0x50] sm:$0xff] }
 0x362   : > { %17874 = vrcp.f32 %v2243_v49  ;;  %v2252_v12 = vpop.xlane.xlu0 %2251  ;;  %v2316_v26 = vmul.f32 %v17865_v38, %v19243_v59  ;;  %v12982_v49 = vld [vmem:[%s22635_s1 + $0x58] sm:$0xff] }
 0x363   : > { %17876 = vrcp.f32 %v2252_v12  ;;  %15238 = vmatmul.mubr.msk.f32.gmra.mrb[82].mxu0 %vm1973_vm6, %v2313_v34  ;;  %v19439_v34 = vld [vmem:[%s18563_s11 + $0x8] sm:$0xff]  ;;  %v19444_v12 = vld [vmem:[%s18563_s11 + $0x10] sm:$0xff] }
 0x364   : > { %v17867_v55 = vpop.eup %17866  ;;  %16937 = vmatpush3.bf16.msra.mxu0 %v18959_v63 }
 0x365   : > { %v17869_v60 = vpop.eup %17868  ;;  %v2315_v45 = vmul.f32 %v17867_v55, %v19251_v27  ;;  %v2249_v18 = vpop.xlane.xlu1 %2248  ;;  %16947 = vmatprep.subr.bf16.mxu0 %v16946_v58  ;;  %v16954_v55 = vpack.c.bf16 %v12982_v49, %v12981_v46  ;;  %v13063_v49 = vld [vmem:[%s22637_s3 + $0x60] sm:$0xff] }
 0x366   : > { %17878 = vrcp.f32 %v2249_v18  ;;  %v2258_v8 = vpop.xlane.xlu0 %2257  ;;  %v2318_v11 = vmul.f32 %v17869_v60, %v19253_v24  ;;  %v12983_v60 = vld [vmem:[%s22635_s1 + $0x60] sm:$0xff]  ;;  %v19457_v18 = vld [vmem:[%s18563_s11 + $0x18] sm:$0xff] }
 0x367   : > { %15249 = vmatmul.mubr.msk.f32.vlgmr.msra.gmra.mrb[64].mxu1 %vm1973_vm6, %v2315_v45  ;;  %17880 = vrcp.f32 %v2258_v8  ;;  %v12984_v45 = vld [vmem:[%s22635_s1 + $0x68] sm:$0xff]  ;;  %v19462_v8 = vld [vmem:[%s18563_s11 + $0x20] sm:$0xff] }
 0x368   : > { %v17871_v25 = vpop.eup %17870  ;;  %16941 = vmatpush3.bf16.msra.mxu1 %v18961_v2  ;;  %15251 = vmatprep.mubr.msk.f32.mxu1 %vm1973_vm6, %v2316_v26  ;;  %v16958_v26 = vpack.c.bf16 %v12984_v45, %v12983_v60  ;;  %v13065_v45 = vld [vmem:[%s22637_s3 + $0x70] sm:$0xff] }
 0x369   : > { %15262 = vmatprep.mubr.msk.f32.mxu0 %vm1973_vm6, %v2318_v11  ;;  %16943 = vmatprep.subr.bf16.mxu1 %v18963_v5  ;;  %v2255_v63 = vpop.xlane.xlu1 %2254  ;;  %v2317_v27 = vmul.f32 %v17871_v25, %v19260_v44  ;;  %v17873_v1 = vpop.eup %17872  ;;  %v12985_v11 = vld [vmem:[%s22635_s1 + $0x70] sm:$0xff]  ;;  %v12986_v25 = vld [vmem:[%s22635_s1 + $0x78] sm:$0xff] }
 0x36a   : > { %17882 = vrcp.f32 %v2255_v63  ;;  %v2320_v30 = vmul.f32 %v17873_v1, %v19262_v53 }
 0x36b   : > { %15252 = vmatmul.mubr.msk.f32.gmra.mrb[66].mxu1 %vm1973_vm6, %v2317_v27  ;;  %v19473_v27 = vld [vmem:[%s18563_s11 + $0x28] sm:$0xff] }
 0x36c   : > { %v17875_v59 = vpop.eup %17874  ;;  %16945 = vmatpush3.bf16.msra.mxu1 %v18963_v5 }
 0x36d   : > { %v17877_v24 = vpop.eup %17876  ;;  %v2319_v2 = vmul.f32 %v17875_v59, %v19269_v7  ;;  %v2261_v13 = vpop.xlane.xlu1 %2260  ;;  %17586 = vmatprep.subr.bf16.mxu1 %v16946_v58  ;;  %v19478_v59 = vld [vmem:[%s18563_s11 + $0x30] sm:$0xff] }
 0x36e   : > { %17884 = vrcp.f32 %v2261_v13  ;;  %v2322_v48 = vmul.f32 %v17877_v24, %v19271_v47  ;;  %v16962_v24 = vpack.c.bf16 %v12986_v25, %v12985_v11  ;;  %v13060_v13 = vld [vmem:[%s22637_s3 + $0x48] sm:$0xff]  ;;  %v19639_v11 = vld [vmem:[%s18563_s11 + $0xd8] sm:$0xff]  ;;  %v19644_v25 = vld [vmem:[%s18563_s11 + $0xe0] sm:$0xff] }
 0x36f   : > { %15263 = vmatmul.mubr.msk.f32.vlgmr.msra.gmra.mrb[84].mxu0 %vm1973_vm6, %v2319_v2  ;;  %v13059_v2 = vld [vmem:[%s22637_s3 + $0x40] sm:$0xff] }
 0x370   : > { %v17879_v44 = vpop.eup %17878  ;;  %15265 = vmatprep.mubr.msk.f32.mxu0 %vm1973_vm6, %v2320_v30  ;;  %15276 = vmatprep.mubr.msk.f32.mxu1 %vm1973_vm6, %v2322_v48  ;;  %v19491_v48 = vld [vmem:[%s18563_s11 + $0x38] sm:$0xff] }
 0x371   : > { %v2321_v3 = vmul.f32 %v17879_v44, %v19277_v56  ;;  %16949 = vmatpush3.bf16.msra.mxu0 %v16946_v58  ;;  %v17881_v5 = vpop.eup %17880  ;;  %v13019_v56 = vld [vmem:[%s22636_s2 + $0x40] sm:$0xff] }
 0x372   : > { %v2324_v53 = vmul.f32 %v17881_v5, %v19279_v21  ;;  %v12979_v21 = vld [vmem:[%s22635_s1 + $0x40] sm:$0xff]  ;;  %v19501_v5 = vpack.c.bf16 %v13060_v13, %v13059_v2  ;;  %v18301_v2 = vld [vmem:[%s18563_s11 + $0xf8] sm:$0xff] }
 0x373   : > { %15266 = vmatmul.mubr.msk.f32.gmra.mrb[86].mxu0 %vm1973_vm6, %v2321_v3  ;;  %v19496_v3 = vld [vmem:[%s18563_s11 + $0x40] sm:$0xff] }
 0x374   : > { %v17883_v7 = vpop.eup %17882 }
 0x375   : > { %v2323_v62 = vmul.f32 %v17883_v7, %v19285_v29  ;;  %v13020_v29 = vld [vmem:[%s22636_s2 + $0x48] sm:$0xff] }
 0x376   : > { %v16966_v28 = vpack.c.bf16 %v13020_v29, %v13019_v56  ;;  %v19518_v56 = vld [vmem:[%s18563_s11 + $0x58] sm:$0xff] }
 0x377   : > { %15277 = vmatmul.mubr.msk.f32.vlgmr.msra.gmra.mrb[68].mxu1 %vm1973_vm6, %v2323_v62  ;;  %v19505_v62 = vld [vmem:[%s18563_s11 + $0x48] sm:$0xff] }
 0x378   : > { %v17885_v47 = vpop.eup %17884  ;;  %15279 = vmatprep.mubr.msk.f32.mxu1 %vm1973_vm6, %v2324_v53  ;;  %17587 = vmatpush3.bf16.msra.mxu1 %v16946_v58 }
 0x379   : > { %v2325_v50 = vmul.f32 %v17885_v47, %v19289_v4  ;;  %16967 = vmatprep.subr.bf16.mxu0 %v16966_v28  ;;  %v12980_v4 = vld [vmem:[%s22635_s1 + $0x48] sm:$0xff]  ;;  %v19510_v47 = vld [vmem:[%s18563_s11 + $0x50] sm:$0xff] }
 0x37a   : > { %v16950_v51 = vpack.c.bf16 %v12980_v4, %v12979_v21  ;;  %v19530_v4 = vld [vmem:[%s18563_s11 + $0x68] sm:$0xff] }
 0x37b   : > { %15280 = vmatmul.mubr.msk.f32.gmra.mrb[70].mxu1 %vm1973_vm6, %v2325_v50 }
 0x37c   : > { %16951 = vmatprep.subr.bf16.mxu1 %v16950_v51 }
 0x3f7   : > { %v15180_v10 = vpop.f32.mrb[72].mxu0 }
 0x3f8   : > { %v2404_v35 = vpop.f32.mrb[73].mxu0 }
 0x3f9   : > { %15286 = vmatprep.mubr.msk.f32.mxu0 %vm1100_vm1, %v2404_v35 }
 0x3fa   : > { %15287 = vmatmul.mubr.msk.f32.vlgmr.msra.gmra.mrb[88].mxu0 %vm1100_vm1, %v15180_v10  ;;  %v19542_v10 = vld [vmem:[%s18563_s11 + $0x78] sm:$0xff] }
 0x3fb   : > { %16969 = vmatpush3.bf16.msra.mxu0 %v16966_v28  ;;  %v19523_v28 = vld [vmem:[%s18563_s11 + $0x60] sm:$0xff] }
 0x3fc   : > { %16971 = vmatprep.subr.bf16.mxu0 %v16970_v0 }
 0x3ff   : > { %v15183_v39 = vpop.f32.mrb[74].mxu0  ;;  %16973 = vmatpush3.bf16.msra.mxu0 %v16970_v0  ;;  %v19547_v0 = vld [vmem:[%s18563_s11 + $0x80] sm:$0xff] }
 0x400   : > { %v2414_v54 = vpop.f32.mrb[75].mxu0  ;;  %16975 = vmatprep.subr.bf16.mxu0 %v16974_v31 }
 0x401   : > { %15289 = vmatprep.mubr.msk.f32.mxu0 %vm1100_vm1, %v2414_v54 }
 0x402   : > { %15290 = vmatmul.mubr.msk.f32.gmra.mrb[90].mxu0 %vm1100_vm1, %v15183_v39  ;;  %v19566_v39 = vld [vmem:[%s18563_s11 + $0x98] sm:$0xff] }
 0x403   : > { %16977 = vmatpush3.bf16.msra.mxu0 %v16974_v31 }
 0x404   : > { %16979 = vmatprep.subr.bf16.mxu0 %v16978_v23 }
 0x407   : > { %v15194_v17 = vpop.f32.mrb[56].mxu1  ;;  %16981 = vmatpush3.bf16.msra.mxu0 %v16978_v23  ;;  %v19571_v23 = vld [vmem:[%s18563_s11 + $0xa0] sm:$0xff] }
 0x408   : > { %v2501_v40 = vpop.f32.mrb[57].mxu1 }
 0x409   : > { %15292 = vmatprep.mubr.msk.f32.mxu0 %vm1100_vm1, %v2501_v40  ;;  %v19578_v40 = vld [vmem:[%s18563_s11 + $0xa8] sm:$0xff] }
 0x40a   : > { %15293 = vmatmul.mubr.msk.f32.gmra.mrb[92].mxu0 %vm1100_vm1, %v15194_v17 }
 0x40f   : > { %v15197_v37 = vpop.f32.mrb[58].mxu1 }
 0x410   : > { %v2511_v33 = vpop.f32.mrb[59].mxu1 }
 0x411   : > { %15295 = vmatprep.mubr.msk.f32.mxu0 %vm1100_vm1, %v2511_v33  ;;  %v19583_v33 = vld [vmem:[%s18563_s11 + $0xb0] sm:$0xff] }
 0x412   : > { %15296 = vmatmul.mubr.msk.f32.gmra.mrb[94].mxu0 %vm1100_vm1, %v15197_v37 }
 0x417   : > { %v15208_v19 = vpop.f32.mrb[76].mxu0 }
 0x418   : > { %v2598_v57 = vpop.f32.mrb[77].mxu0 }
 0x419   : > { %15298 = vmatprep.mubr.msk.f32.mxu0 %vm1100_vm1, %v2598_v57  ;;  %v13062_v57 = vld [vmem:[%s22637_s3 + $0x58] sm:$0xff] }
 0x41a   : > { %15299 = vmatmul.mubr.msk.f32.gmra.mrb[96].mxu0 %vm1100_vm1, %v15208_v19  ;;  %v13061_v19 = vld [vmem:[%s22637_s3 + $0x50] sm:$0xff] }
 0x41b   : > { %v16986_v46 = vpack.c.bf16 %v13062_v57, %v13061_v19 }
 0x41f   : > { %v15211_v52 = vpop.f32.mrb[78].mxu0 }
 0x420   : > { %v2608_v9 = vpop.f32.mrb[79].mxu0 }
 0x421   : > { %15301 = vmatprep.mubr.msk.f32.mxu0 %vm1100_vm1, %v2608_v9  ;;  %v19603_v9 = vld [vmem:[%s18563_s11 + $0xc0] sm:$0xff] }
 0x422   : > { %15302 = vmatmul.mubr.msk.f32.gmra.mrb[98].mxu0 %vm1100_vm1, %v15211_v52  ;;  %v19598_v52 = vld [vmem:[%s18563_s11 + $0xb8] sm:$0xff] }
 0x423   : > { %15414 = vmatprep.mubr.msk.f32.mxu0 %vm312_vm0, %v19428_v42 }
 0x426   : > { %15415 = vmatmul.mubr.msk.f32.vlgmr.msra.gmra.mrb[100].mxu0 %vm312_vm0, %v19439_v34 }
 0x427   : > { %v15222_v58 = vpop.f32.mrb[60].mxu1  ;;  %15417 = vmatprep.mubr.msk.f32.mxu0 %vm312_vm0, %v19444_v12 }
 0x428   : > { %v2695_v38 = vpop.f32.mrb[61].mxu1 }
 0x429   : > { %15304 = vmatprep.mubr.msk.f32.mxu1 %vm1100_vm1, %v2695_v38  ;;  %v19618_v38 = vld [vmem:[%s18563_s11 + $0xc8] sm:$0xff] }
 0x42a   : > { %15305 = vmatmul.mubr.msk.f32.vlgmr.msra.gmra.mrb[72].mxu1 %vm1100_vm1, %v15222_v58  ;;  %15418 = vmatmul.mubr.msk.f32.gmra.mrb[102].mxu0 %vm312_vm0, %v19457_v18  ;;  %v13064_v58 = vld [vmem:[%s22637_s3 + $0x68] sm:$0xff] }
 0x42b   : > { %15420 = vmatprep.mubr.msk.f32.mxu0 %vm312_vm0, %v19462_v8  ;;  %16953 = vmatpush3.bf16.msra.mxu1 %v16950_v51  ;;  %v16990_v60 = vpack.c.bf16 %v13064_v58, %v13063_v49 }
 0x42c   : > { %16955 = vmatprep.subr.bf16.mxu1 %v16954_v55 }
 0x42e   : > { %v15225_v63 = vpop.f32.mrb[62].mxu1  ;;  %15421 = vmatmul.mubr.msk.f32.gmra.mrb[104].mxu0 %vm312_vm0, %v19473_v27 }
 0x42f   : > { %v2705_v1 = vpop.f32.mrb[63].mxu1  ;;  %16957 = vmatpush3.bf16.msra.mxu1 %v16954_v55  ;;  %15423 = vmatprep.mubr.msk.f32.mxu0 %vm312_vm0, %v19478_v59  ;;  %v19623_v55 = vld [vmem:[%s18563_s11 + $0xd0] sm:$0xff] }
 0x430   : > { %15307 = vmatprep.mubr.msk.f32.mxu1 %vm1100_vm1, %v2705_v1  ;;  %16959 = vmatprep.subr.bf16.mxu1 %v16958_v26  ;;  %v19653_v1 = vld [vmem:[%s18563_s11 + $0xe8] sm:$0xff] }
 0x431   : > { %15308 = vmatmul.mubr.msk.f32.gmra.mrb[74].mxu1 %vm1100_vm1, %v15225_v63 }
 0x432   : > { %v15236_v30 = vpop.f32.mrb[80].mxu0  ;;  %15424 = vmatmul.mubr.msk.f32.gmra.mrb[106].mxu0 %vm312_vm0, %v19491_v48 }
 0x433   : > { %v2792_v44 = vpop.f32.mrb[81].mxu0  ;;  %16961 = vmatpush3.bf16.msra.mxu1 %v16958_v26  ;;  %15426 = vmatprep.mubr.msk.f32.mxu0 %vm312_vm0, %v19496_v3  ;;  %v13066_v26 = vld [vmem:[%s22637_s3 + $0x78] sm:$0xff] }
 0x434   : > { %15310 = vmatprep.mubr.msk.f32.mxu1 %vm1100_vm1, %v2792_v44  ;;  %16963 = vmatprep.subr.bf16.mxu1 %v16962_v24  ;;  %v16994_v63 = vpack.c.bf16 %v13066_v26, %v13065_v45 }
 0x435   : > { %15311 = vmatmul.mubr.msk.f32.gmra.mrb[76].mxu1 %vm1100_vm1, %v15236_v30 }
 0x436   : > { %v15239_v7 = vpop.f32.mrb[82].mxu0  ;;  %15427 = vmatmul.mubr.msk.f32.gmra.mrb[108].mxu0 %vm312_vm0, %v19505_v62 }
 0x437   : > { %v2802_v53 = vpop.f32.mrb[83].mxu0  ;;  %16965 = vmatpush3.bf16.msra.mxu1 %v16962_v24  ;;  %15429 = vmatprep.mubr.msk.f32.mxu0 %vm312_vm0, %v19510_v47  ;;  %v18300_v24 = vld [vmem:[%s18563_s11 + $0xf0] sm:$0xff] }
 0x438   : > { %15313 = vmatprep.mubr.msk.f32.mxu1 %vm1100_vm1, %v2802_v53  ;;  %16983 = vmatprep.subr.bf16.mxu1 %v19501_v5 }
 0x439   : > { %15314 = vmatmul.mubr.msk.f32.gmra.mrb[78].mxu1 %vm1100_vm1, %v15239_v7 }
 0x43a   : > { %v15250_v50 = vpop.f32.mrb[64].mxu1  ;;  %15430 = vmatmul.mubr.msk.f32.gmra.mrb[110].mxu0 %vm312_vm0, %v19518_v56 }
 0x43b   : > { %v2889_v29 = vpop.f32.mrb[65].mxu1  ;;  %15432 = vmatprep.mubr.msk.f32.mxu0 %vm312_vm0, %v19523_v28 }
 0x43c   : > { %15316 = vmatprep.mubr.msk.f32.mxu1 %vm1100_vm1, %v2889_v29 }
 0x43d   : > { %15317 = vmatmul.mubr.msk.f32.gmra.mrb[80].mxu1 %vm1100_vm1, %v15250_v50 }
 0x43e   : > { %v15253_v21 = vpop.f32.mrb[66].mxu1  ;;  %15433 = vmatmul.mubr.msk.f32.gmra.mrb[112].mxu0 %vm312_vm0, %v19530_v4 }
 0x43f   : > { %v2899_v51 = vpop.f32.mrb[67].mxu1  ;;  %15435 = vmatprep.mubr.msk.f32.mxu0 %vm312_vm0, %v19535_v43 }
 0x440   : > { %15319 = vmatprep.mubr.msk.f32.mxu1 %vm1100_vm1, %v2899_v51 }
 0x441   : > { %15320 = vmatmul.mubr.msk.f32.gmra.mrb[82].mxu1 %vm1100_vm1, %v15253_v21 }
 0x442   : > { %v15264_v36 = vpop.f32.mrb[84].mxu0  ;;  %15436 = vmatmul.mubr.msk.f32.gmra.mrb[114].mxu0 %vm312_vm0, %v19542_v10 }
 0x443   : > { %v2986_v35 = vpop.f32.mrb[85].mxu0  ;;  %15438 = vmatprep.mubr.msk.f32.mxu0 %vm312_vm0, %v19547_v0 }
 0x444   : > { %15322 = vmatprep.mubr.msk.f32.mxu1 %vm1100_vm1, %v2986_v35 }
 0x445   : > { %15323 = vmatmul.mubr.msk.f32.gmra.mrb[84].mxu1 %vm1100_vm1, %v15264_v36 }
 0x446   : > { %v15267_v41 = vpop.f32.mrb[86].mxu0  ;;  %15439 = vmatmul.mubr.msk.f32.gmra.mrb[116].mxu0 %vm312_vm0, %v19554_v32 }
 0x447   : > { %v2996_v31 = vpop.f32.mrb[87].mxu0  ;;  %15441 = vmatprep.mubr.msk.f32.mxu0 %vm312_vm0, %v19559_v61 }
 0x448   : > { %15325 = vmatprep.mubr.msk.f32.mxu1 %vm1100_vm1, %v2996_v31 }
 0x449   : > { %15326 = vmatmul.mubr.msk.f32.gmra.mrb[86].mxu1 %vm1100_vm1, %v15267_v41 }
 0x44a   : > { %v15278_v16 = vpop.f32.mrb[68].mxu1  ;;  %15442 = vmatmul.mubr.msk.f32.gmra.mrb[118].mxu0 %vm312_vm0, %v19566_v39 }
 0x44b   : > { %v3083_v54 = vpop.f32.mrb[69].mxu1  ;;  %15444 = vmatprep.mubr.msk.f32.mxu0 %vm312_vm0, %v19571_v23 }
 0x44c   : > { %15328 = vmatprep.mubr.msk.f32.mxu1 %vm1100_vm1, %v3083_v54 }
 0x44d   : > { %15329 = vmatmul.mubr.msk.f32.gmra.mrb[88].mxu1 %vm1100_vm1, %v15278_v16 }
 0x44e   : > { %v15281_v17 = vpop.f32.mrb[70].mxu1  ;;  %15445 = vmatmul.mubr.msk.f32.gmra.mrb[120].mxu0 %vm312_vm0, %v19578_v40 }
 0x44f   : > { %v3093_v37 = vpop.f32.mrb[71].mxu1  ;;  %15447 = vmatprep.mubr.msk.f32.mxu0 %vm312_vm0, %v19583_v33 }
 0x450   : > { %15331 = vmatprep.mubr.msk.f32.mxu1 %vm1100_vm1, %v3093_v37 }
 0x451   : > { %15332 = vmatmul.mubr.msk.f32.gmra.mrb[90].mxu1 %vm1100_vm1, %v15281_v17 }
 0x452   : > { %15350 = vmatprep.mubr.msk.f32.mxu1 %vm312_vm0, %v19428_v42  ;;  %15448 = vmatmul.mubr.msk.f32.gmra.mrb[122].mxu0 %vm312_vm0, %v19598_v52 }
 0x453   : > { %15450 = vmatprep.mubr.msk.f32.mxu0 %vm312_vm0, %v19603_v9 }
 0x455   : > { %15351 = vmatmul.mubr.msk.f32.vlgmr.msra.gmra.mrb[92].mxu1 %vm312_vm0, %v19439_v34 }
 0x456   : > { %15353 = vmatprep.mubr.msk.f32.mxu1 %vm312_vm0, %v19444_v12  ;;  %15451 = vmatmul.mubr.msk.f32.gmra.mrb[124].mxu0 %vm312_vm0, %v19618_v38 }
 0x457   : > { %15453 = vmatprep.mubr.msk.f32.mxu0 %vm312_vm0, %v19623_v55  ;;  %16985 = vmatpush3.bf16.msra.mxu1 %v19501_v5 }
 0x458   : > { %16987 = vmatprep.subr.bf16.mxu1 %v16986_v46 }
 0x459   : > { %15354 = vmatmul.mubr.msk.f32.gmra.mrb[94].mxu1 %vm312_vm0, %v19457_v18 }
 0x45a   : > { %15356 = vmatprep.mubr.msk.f32.mxu1 %vm312_vm0, %v19462_v8  ;;  %15454 = vmatmul.mubr.msk.f32.gmra.mrb[126].mxu0 %vm312_vm0, %v19639_v11 }
 0x45b   : > { %15456 = vmatprep.mubr.msk.f32.mxu0 %vm312_vm0, %v19644_v25  ;;  %16989 = vmatpush3.bf16.msra.mxu1 %v16986_v46 }
 0x45c   : > { %16991 = vmatprep.subr.bf16.mxu1 %v16990_v60 }
 0x45d   : > { %15357 = vmatmul.mubr.msk.f32.gmra.mrb[96].mxu1 %vm312_vm0, %v19473_v27 }
 0x45e   : > { %15359 = vmatprep.mubr.msk.f32.mxu1 %vm312_vm0, %v19478_v59  ;;  %15457 = vmatmul.mubr.msk.f32.gmra.mrb[128].mxu0 %vm312_vm0, %v19653_v1 }
 0x45f   : > { %15459 = vmatprep.mubr.msk.f32.mxu0 %vm312_vm0, %v18300_v24  ;;  %16993 = vmatpush3.bf16.msra.mxu1 %v16990_v60 }
 0x460   : > { %16995 = vmatprep.subr.bf16.mxu1 %v16994_v63 }
 0x461   : > { %15360 = vmatmul.mubr.msk.f32.gmra.mrb[98].mxu1 %vm312_vm0, %v19491_v48 }
 0x462   : > { %15362 = vmatprep.mubr.msk.f32.mxu1 %vm312_vm0, %v19496_v3  ;;  %15460 = vmatmul.mubr.msk.f32.gmra.mrb[130].mxu0 %vm312_vm0, %v18301_v2 }
 0x463   : > { %16997 = vmatpush3.bf16.msra.mxu1 %v16994_v63 }
 0x465   : > { %15363 = vmatmul.mubr.msk.f32.gmra.mrb[100].mxu1 %vm312_vm0, %v19505_v62 }
 0x466   : > { %15365 = vmatprep.mubr.msk.f32.mxu1 %vm312_vm0, %v19510_v47 }
 0x469   : > { %15366 = vmatmul.mubr.msk.f32.gmra.mrb[102].mxu1 %vm312_vm0, %v19518_v56 }
 0x46a   : > { %15368 = vmatprep.mubr.msk.f32.mxu1 %vm312_vm0, %v19523_v28 }
 0x46d   : > { %15369 = vmatmul.mubr.msk.f32.gmra.mrb[104].mxu1 %vm312_vm0, %v19530_v4 }
 0x46e   : > { %15371 = vmatprep.mubr.msk.f32.mxu1 %vm312_vm0, %v19535_v43 }
 0x471   : > { %15372 = vmatmul.mubr.msk.f32.gmra.mrb[106].mxu1 %vm312_vm0, %v19542_v10 }
 0x472   : > { %15374 = vmatprep.mubr.msk.f32.mxu1 %vm312_vm0, %v19547_v0 }
 0x475   : > { %15375 = vmatmul.mubr.msk.f32.gmra.mrb[108].mxu1 %vm312_vm0, %v19554_v32 }
 0x476   : > { %15377 = vmatprep.mubr.msk.f32.mxu1 %vm312_vm0, %v19559_v61 }
 0x479   : > { %15378 = vmatmul.mubr.msk.f32.gmra.mrb[110].mxu1 %vm312_vm0, %v19566_v39 }
 0x47a   : > { %15380 = vmatprep.mubr.msk.f32.mxu1 %vm312_vm0, %v19571_v23 }
 0x47d   : > { %15381 = vmatmul.mubr.msk.f32.gmra.mrb[112].mxu1 %vm312_vm0, %v19578_v40 }
 0x47e   : > { %15383 = vmatprep.mubr.msk.f32.mxu1 %vm312_vm0, %v19583_v33 }
 0x481   : > { %15384 = vmatmul.mubr.msk.f32.gmra.mrb[114].mxu1 %vm312_vm0, %v19598_v52 }
 0x482   : > { %15386 = vmatprep.mubr.msk.f32.mxu1 %vm312_vm0, %v19603_v9 }
 0x485   : > { %15387 = vmatmul.mubr.msk.f32.gmra.mrb[116].mxu1 %vm312_vm0, %v19618_v38 }
 0x486   : > { %15389 = vmatprep.mubr.msk.f32.mxu1 %vm312_vm0, %v19623_v55 }
 0x489   : > { %15390 = vmatmul.mubr.msk.f32.gmra.mrb[118].mxu1 %vm312_vm0, %v19639_v11 }
 0x48a   : > { %15392 = vmatprep.mubr.msk.f32.mxu1 %vm312_vm0, %v19644_v25 }
 0x48d   : > { %15393 = vmatmul.mubr.msk.f32.gmra.mrb[120].mxu1 %vm312_vm0, %v19653_v1 }
 0x48e   : > { %15395 = vmatprep.mubr.msk.f32.mxu1 %vm312_vm0, %v18300_v24 }
 0x491   : > { %15396 = vmatmul.mubr.msk.f32.gmra.mrb[122].mxu1 %vm312_vm0, %v18301_v2 }
 0x492   : > { %15478 = vmatprep.mubr.msk.f32.mxu1 %vm312_vm0, %v19428_v42 }
 0x495   : > { %15479 = vmatmul.mubr.msk.f32.vlgmr.msra.gmra.mrb[124].mxu1 %vm312_vm0, %v19439_v34 }
 0x496   : > { %15481 = vmatprep.mubr.msk.f32.mxu1 %vm312_vm0, %v19444_v12 }
 0x499   : > { %15482 = vmatmul.mubr.msk.f32.gmra.mrb[126].mxu1 %vm312_vm0, %v19457_v18 }
 0x49a   : > { %15484 = vmatprep.mubr.msk.f32.mxu1 %vm312_vm0, %v19462_v8 }
 0x49d   : > { %15485 = vmatmul.mubr.msk.f32.gmra.mrb[128].mxu1 %vm312_vm0, %v19473_v27 }
 0x49e   : > { %15487 = vmatprep.mubr.msk.f32.mxu1 %vm312_vm0, %v19478_v59 }
 0x4a1   : > { %15488 = vmatmul.mubr.msk.f32.gmra.mrb[130].mxu1 %vm312_vm0, %v19491_v48 }
 0x4a2   : > { %15490 = vmatprep.mubr.msk.f32.mxu1 %vm312_vm0, %v19496_v3 }
 0x4a5   : > { %15491 = vmatmul.mubr.msk.f32.gmra.mrb[132].mxu1 %vm312_vm0, %v19505_v62 }
 0x4a6   : > { %15493 = vmatprep.mubr.msk.f32.mxu1 %vm312_vm0, %v19510_v47 }
 0x4a9   : > { %15494 = vmatmul.mubr.msk.f32.gmra.mrb[134].mxu1 %vm312_vm0, %v19518_v56 }
 0x4aa   : > { %15496 = vmatprep.mubr.msk.f32.mxu1 %vm312_vm0, %v19523_v28 }
 0x4ad   : > { %15497 = vmatmul.mubr.msk.f32.gmra.mrb[136].mxu1 %vm312_vm0, %v19530_v4 }
 0x4ae   : > { %15499 = vmatprep.mubr.msk.f32.mxu1 %vm312_vm0, %v19535_v43 }
 0x4b1   : > { %15500 = vmatmul.mubr.msk.f32.gmra.mrb[138].mxu1 %vm312_vm0, %v19542_v10 }
 0x4b2   : > { %15502 = vmatprep.mubr.msk.f32.mxu1 %vm312_vm0, %v19547_v0 }
 0x4b5   : > { %15503 = vmatmul.mubr.msk.f32.gmra.mrb[140].mxu1 %vm312_vm0, %v19554_v32 }
 0x4b6   : > { %15505 = vmatprep.mubr.msk.f32.mxu1 %vm312_vm0, %v19559_v61 }
 0x4b9   : > { %15506 = vmatmul.mubr.msk.f32.gmra.mrb[142].mxu1 %vm312_vm0, %v19566_v39 }
 0x4ba   : > { %15508 = vmatprep.mubr.msk.f32.mxu1 %vm312_vm0, %v19571_v23 }
 0x4bd   : > { %15509 = vmatmul.mubr.msk.f32.gmra.mrb[144].mxu1 %vm312_vm0, %v19578_v40 }
 0x4be   : > { %15511 = vmatprep.mubr.msk.f32.mxu1 %vm312_vm0, %v19583_v33 }
 0x4c1   : > { %15512 = vmatmul.mubr.msk.f32.gmra.mrb[146].mxu1 %vm312_vm0, %v19598_v52 }
 0x4c2   : > { %15514 = vmatprep.mubr.msk.f32.mxu1 %vm312_vm0, %v19603_v9 }
 0x4c5   : > { %15515 = vmatmul.mubr.msk.f32.gmra.mrb[148].mxu1 %vm312_vm0, %v19618_v38 }
 0x4c6   : > { %15517 = vmatprep.mubr.msk.f32.mxu1 %vm312_vm0, %v19623_v55 }
 0x4c9   : > { %15518 = vmatmul.mubr.msk.f32.gmra.mrb[150].mxu1 %vm312_vm0, %v19639_v11 }
 0x4ca   : > { %15520 = vmatprep.mubr.msk.f32.mxu1 %vm312_vm0, %v19644_v25 }
 0x4cd   : > { %15521 = vmatmul.mubr.msk.f32.gmra.mrb[152].mxu1 %vm312_vm0, %v19653_v1 }
 0x4ce   : > { %15523 = vmatprep.mubr.msk.f32.mxu1 %vm312_vm0, %v18300_v24 }
 0x4d1   : > { %15524 = vmatmul.mubr.msk.f32.gmra.mrb[154].mxu1 %vm312_vm0, %v18301_v2 }
 0x4f9   : > { %v15416_v42 = vpop.f32.mrb[100].mxu0 }
 0x4fa   : > { %v3772_v34 = vpop.f32.mrb[101].mxu0 }
 0x4fb   : > { %v16998_v12 = vpack.c.bf16 %v15416_v42, %v3772_v34 }
 0x4fd   : > { %v19771_v18 = vpop.f32.mrb[72].mxu1  ;;  %17000 = vmatprep.subr.msk.bf16.mxu0 %vm18820_vm2, %v16998_v12  ;;  %v15419_v8 = vpop.f32.mrb[102].mxu0 }
 0x4fe   : > { %v19775_v27 = vpop.f32.mrb[73].mxu1  ;;  %17003 = vmatpush3.bf16.xpose.msk.msra.mxu0 %vm18820_vm2, %v16998_v12  ;;  %v3782_v59 = vpop.f32.mrb[103].mxu0 }
 0x4ff   : > { %22645 = vst [vmem:[#allocation5_spill] sm:$0xff] %v19775_v27  ;;  %v17004_v13 = vpack.c.bf16 %v15419_v8, %v3782_v59 }
 0x501   : > { %v15422_v30 = vpop.f32.mrb[104].mxu0  ;;  %17006 = vmatprep.subr.msk.bf16.mxu0 %vm18820_vm2, %v17004_v13 }
 0x502   : > { %v3792_v48 = vpop.f32.mrb[105].mxu0 }
 0x503   : > { %v17010_v44 = vpack.c.bf16 %v15422_v30, %v3792_v48 }
 0x504   : > { %v19781_v3 = vpop.f32.mrb[74].mxu1 }
 0x505   : > { %22646 = vst [vmem:[#allocation6_spill] sm:$0xff] %v19781_v3  ;;  %v19783_v5 = vpop.f32.mrb[75].mxu1  ;;  %17012 = vmatprep.subr.msk.bf16.mxu1 %vm18820_vm2, %v17010_v44  ;;  %v15425_v7 = vpop.f32.mrb[106].mxu0 }
 0x506   : > { %22647 = vst [vmem:[#allocation7_spill] sm:$0xff] %v19783_v5  ;;  %17009 = vmatpush3.bf16.xpose.msk.msra.mxu0 %vm18820_vm2, %v17004_v13  ;;  %17015 = vmatpush3.bf16.xpose.msk.msra.mxu1 %vm18820_vm2, %v17010_v44  ;;  %v3802_v62 = vpop.f32.mrb[107].mxu0 }
 0x507   : > { %v17016_v53 = vpack.c.bf16 %v15425_v7, %v3802_v62 }
 0x508   : > { %v19791_v47 = vpop.f32.mrb[76].mxu1 }
 0x509   : > { %22648 = vst [vmem:[#allocation8_spill] sm:$0xff] %v19791_v47  ;;  %v19793_v50 = vpop.f32.mrb[77].mxu1  ;;  %17018 = vmatprep.subr.msk.bf16.mxu1 %vm18820_vm2, %v17016_v53  ;;  %v15428_v56 = vpop.f32.mrb[108].mxu0 }
 0x50a   : > { %22649 = vst [vmem:[#allocation9_spill] sm:$0xff] %v19793_v50  ;;  %v3812_v29 = vpop.f32.mrb[109].mxu0 }
 0x50b   : > { %v17022_v28 = vpack.c.bf16 %v15428_v56, %v3812_v29 }
 0x50c   : > { %v19797_v21 = vpop.f32.mrb[78].mxu1 }
 0x50d   : > { %22650 = vst [vmem:[#allocation10_spill] sm:$0xff] %v19797_v21  ;;  %v19799_v4 = vpop.f32.mrb[79].mxu1  ;;  %v15431_v51 = vpop.f32.mrb[110].mxu0  ;;  %17024 = vmatprep.subr.msk.bf16.mxu0 %vm18820_vm2, %v17022_v28 }
 0x50e   : > { %22651 = vst [vmem:[#allocation11_spill] sm:$0xff] %v19799_v4  ;;  %17021 = vmatpush3.bf16.xpose.msk.msra.mxu1 %vm18820_vm2, %v17016_v53  ;;  %v3822_v43 = vpop.f32.mrb[111].mxu0 }
 0x50f   : > { %v17028_v36 = vpack.c.bf16 %v15431_v51, %v3822_v43 }
 0x510   : > { %v19805_v10 = vpop.f32.mrb[80].mxu1 }
 0x511   : > { %22652 = vst [vmem:[#allocation12_spill] sm:$0xff] %v19805_v10  ;;  %v19807_v35 = vpop.f32.mrb[81].mxu1  ;;  %v15434_v0 = vpop.f32.mrb[112].mxu0 }
 0x512   : > { %22653 = vst [vmem:[#allocation13_spill] sm:$0xff] %v19807_v35  ;;  %v3832_v41 = vpop.f32.mrb[113].mxu0 }
 0x513   : > { %v17034_v32 = vpack.c.bf16 %v15434_v0, %v3832_v41 }
 0x514   : > { %v19809_v31 = vpop.f32.mrb[82].mxu1 }
 0x515   : > { %22654 = vst [vmem:[#allocation14_spill] sm:$0xff] %v19809_v31  ;;  %v19811_v61 = vpop.f32.mrb[83].mxu1  ;;  %v15437_v16 = vpop.f32.mrb[114].mxu0  ;;  %17036 = vmatprep.subr.msk.bf16.mxu1 %vm18820_vm2, %v17034_v32 }
 0x516   : > { %22655 = vst [vmem:[#allocation15_spill] sm:$0xff] %v19811_v61  ;;  %v3842_v39 = vpop.f32.mrb[115].mxu0 }
 0x517   : > { %v17040_v54 = vpack.c.bf16 %v15437_v16, %v3842_v39 }
 0x518   : > { %v19815_v23 = vpop.f32.mrb[84].mxu1 }
 0x519   : > { %22656 = vst [vmem:[#allocation16_spill] sm:$0xff] %v19815_v23  ;;  %v19817_v17 = vpop.f32.mrb[85].mxu1  ;;  %v15440_v40 = vpop.f32.mrb[116].mxu0 }
 0x51a   : > { %22657 = vst [vmem:[#allocation17_spill] sm:$0xff] %v19817_v17  ;;  %v3852_v37 = vpop.f32.mrb[117].mxu0 }
 0x51b   : > { %v17046_v33 = vpack.c.bf16 %v15440_v40, %v3852_v37 }
 0x51c   : > { %v19819_v19 = vpop.f32.mrb[86].mxu1 }
 0x51d   : > { %22658 = vst [vmem:[#allocation18_spill] sm:$0xff] %v19819_v19  ;;  %v19821_v57 = vpop.f32.mrb[87].mxu1  ;;  %v15443_v52 = vpop.f32.mrb[118].mxu0 }
 0x51e   : > { %22659 = vst [vmem:[#allocation19_spill] sm:$0xff] %v19821_v57  ;;  %v3862_v9 = vpop.f32.mrb[119].mxu0 }
 0x51f   : > { %v17052_v46 = vpack.c.bf16 %v15443_v52, %v3862_v9 }
 0x520   : > { %v19823_v49 = vpop.f32.mrb[88].mxu1 }
 0x521   : > { %22660 = vst [vmem:[#allocation20_spill] sm:$0xff] %v19823_v49  ;;  %v19825_v58 = vpop.f32.mrb[89].mxu1  ;;  %v15446_v38 = vpop.f32.mrb[120].mxu0 }
 0x522   : > { %22661 = vst [vmem:[#allocation21_spill] sm:$0xff] %v19825_v58  ;;  %v3872_v55 = vpop.f32.mrb[121].mxu0 }
 0x523   : > { %v17058_v60 = vpack.c.bf16 %v15446_v38, %v3872_v55 }
 0x524   : > { %v19827_v45 = vpop.f32.mrb[90].mxu1 }
 0x525   : > { %22662 = vst [vmem:[#allocation22_spill] sm:$0xff] %v19827_v45  ;;  %v19829_v26 = vpop.f32.mrb[91].mxu1  ;;  %v15449_v11 = vpop.f32.mrb[122].mxu0 }
 0x526   : > { %22663 = vst [vmem:[#allocation23_spill] sm:$0xff] %v19829_v26  ;;  %v3882_v25 = vpop.f32.mrb[123].mxu0 }
 0x527   : > { %v19831_v63 = vpack.c.bf16 %v15449_v11, %v3882_v25 }
 0x528   : > { %v15352_v1 = vpop.f32.mrb[92].mxu1 }
 0x529   : > { %v3538_v24 = vpop.f32.mrb[93].mxu1  ;;  %v15452_v2 = vpop.f32.mrb[124].mxu0 }
 0x52a   : > { %15534 = vmatprep.mubr.msk.f32.mxu0 %vm1100_vm1, %v3538_v24  ;;  %v3892_v42 = vpop.f32.mrb[125].mxu0 }
 0x52b   : > { %15535 = vmatmul.mubr.msk.f32.vlgmr.msra.gmra.mrb[132].mxu0 %vm1100_vm1, %v15352_v1  ;;  %v17070_v34 = vpack.c.bf16 %v15452_v2, %v3892_v42 }
 0x52c   : > { %17027 = vmatpush3.bf16.xpose.msk.msra.mxu0 %vm18820_vm2, %v17022_v28  ;;  %v15355_v12 = vpop.f32.mrb[94].mxu1 }
 0x52d   : > { %v3548_v8 = vpop.f32.mrb[95].mxu1  ;;  %17030 = vmatprep.subr.msk.bf16.mxu0 %vm18820_vm2, %v17028_v36  ;;  %v15455_v59 = vpop.f32.mrb[126].mxu0 }
 0x52e   : > { %15537 = vmatprep.mubr.msk.f32.mxu0 %vm1100_vm1, %v3548_v8  ;;  %v3902_v13 = vpop.f32.mrb[127].mxu0 }
 0x52f   : > { %15538 = vmatmul.mubr.msk.f32.gmra.mrb[134].mxu0 %vm1100_vm1, %v15355_v12  ;;  %v17076_v30 = vpack.c.bf16 %v15455_v59, %v3902_v13 }
 0x530   : > { %v15358_v48 = vpop.f32.mrb[96].mxu1 }
 0x531   : > { %v3558_v44 = vpop.f32.mrb[97].mxu1  ;;  %v15458_v7 = vpop.f32.mrb[128].mxu0 }
 0x532   : > { %15548 = vmatprep.mubr.msk.f32.mxu1 %vm1100_vm1, %v3558_v44  ;;  %v3912_v62 = vpop.f32.mrb[129].mxu0 }
 0x533   : > { %15549 = vmatmul.mubr.msk.f32.vlgmr.msra.gmra.mrb[156].mxu1 %vm1100_vm1, %v15358_v48  ;;  %v17082_v53 = vpack.c.bf16 %v15458_v7, %v3912_v62 }
 0x534   : > { %17033 = vmatpush3.bf16.xpose.msk.msra.mxu0 %vm18820_vm2, %v17028_v36  ;;  %17039 = vmatpush3.bf16.xpose.msk.msra.mxu1 %vm18820_vm2, %v17034_v32  ;;  %v15361_v56 = vpop.f32.mrb[98].mxu1 }
 0x535   : > { %v3568_v29 = vpop.f32.mrb[99].mxu1  ;;  %17042 = vmatprep.subr.msk.bf16.mxu1 %vm18820_vm2, %v17040_v54  ;;  %17048 = vmatprep.subr.msk.bf16.mxu0 %vm18820_vm2, %v17046_v33  ;;  %v15461_v28 = vpop.f32.mrb[130].mxu0 }
 0x536   : > { %15551 = vmatprep.mubr.msk.f32.mxu1 %vm1100_vm1, %v3568_v29  ;;  %v3922_v51 = vpop.f32.mrb[131].mxu0 }
 0x537   : > { %15552 = vmatmul.mubr.msk.f32.gmra.mrb[158].mxu1 %vm1100_vm1, %v15361_v56  ;;  %v17088_v43 = vpack.c.bf16 %v15461_v28, %v3922_v51 }
 0x538   : > { %v15364_v0 = vpop.f32.mrb[100].mxu1 }
 0x539   : > { %v3578_v36 = vpop.f32.mrb[101].mxu1 }
 0x53a   : > { %15562 = vmatprep.mubr.msk.f32.mxu0 %vm1100_vm1, %v3578_v36 }
 0x53b   : > { %15563 = vmatmul.mubr.msk.f32.vlgmr.msra.gmra.mrb[136].mxu0 %vm1100_vm1, %v15364_v0 }
 0x53c   : > { %17045 = vmatpush3.bf16.xpose.msk.msra.mxu1 %vm18820_vm2, %v17040_v54  ;;  %17051 = vmatpush3.bf16.xpose.msk.msra.mxu0 %vm18820_vm2, %v17046_v33  ;;  %v15367_v41 = vpop.f32.mrb[102].mxu1 }
 0x53d   : > { %v3588_v32 = vpop.f32.mrb[103].mxu1  ;;  %17054 = vmatprep.subr.msk.bf16.mxu0 %vm18820_vm2, %v17052_v46  ;;  %17060 = vmatprep.subr.msk.bf16.mxu1 %vm18820_vm2, %v17058_v60 }
 0x53e   : > { %15565 = vmatprep.mubr.msk.f32.mxu0 %vm1100_vm1, %v3588_v32 }
 0x53f   : > { %15566 = vmatmul.mubr.msk.f32.gmra.mrb[138].mxu0 %vm1100_vm1, %v15367_v41 }
 0x540   : > { %v15370_v16 = vpop.f32.mrb[104].mxu1 }
 0x541   : > { %v3598_v39 = vpop.f32.mrb[105].mxu1 }
 0x542   : > { %15576 = vmatprep.mubr.msk.f32.mxu1 %vm1100_vm1, %v3598_v39 }
 0x543   : > { %15577 = vmatmul.mubr.msk.f32.vlgmr.msra.gmra.mrb[160].mxu1 %vm1100_vm1, %v15370_v16 }
 0x544   : > { %17057 = vmatpush3.bf16.xpose.msk.msra.mxu0 %vm18820_vm2, %v17052_v46  ;;  %17063 = vmatpush3.bf16.xpose.msk.msra.mxu1 %vm18820_vm2, %v17058_v60  ;;  %v15373_v54 = vpop.f32.mrb[106].mxu1 }
 0x545   : > { %v3608_v40 = vpop.f32.mrb[107].mxu1  ;;  %17066 = vmatprep.subr.msk.bf16.mxu1 %vm18820_vm2, %v19831_v63  ;;  %17072 = vmatprep.subr.msk.bf16.mxu0 %vm18820_vm2, %v17070_v34 }
 0x546   : > { %15579 = vmatprep.mubr.msk.f32.mxu1 %vm1100_vm1, %v3608_v40 }
 0x547   : > { %15580 = vmatmul.mubr.msk.f32.gmra.mrb[162].mxu1 %vm1100_vm1, %v15373_v54 }
 0x548   : > { %v15376_v37 = vpop.f32.mrb[108].mxu1 }
 0x549   : > { %v3618_v33 = vpop.f32.mrb[109].mxu1 }
 0x54a   : > { %15590 = vmatprep.mubr.msk.f32.mxu0 %vm1100_vm1, %v3618_v33 }
 0x54b   : > { %15591 = vmatmul.mubr.msk.f32.vlgmr.msra.gmra.mrb[140].mxu0 %vm1100_vm1, %v15376_v37 }
 0x54c   : > { %17069 = vmatpush3.bf16.xpose.msk.msra.mxu1 %vm18820_vm2, %v19831_v63  ;;  %17075 = vmatpush3.bf16.xpose.msk.msra.mxu0 %vm18820_vm2, %v17070_v34  ;;  %v15379_v52 = vpop.f32.mrb[110].mxu1 }
 0x54d   : > { %v3628_v9 = vpop.f32.mrb[111].mxu1  ;;  %17078 = vmatprep.subr.msk.bf16.mxu0 %vm18820_vm2, %v17076_v30  ;;  %17084 = vmatprep.subr.msk.bf16.mxu1 %vm18820_vm2, %v17082_v53 }
 0x54e   : > { %15593 = vmatprep.mubr.msk.f32.mxu0 %vm1100_vm1, %v3628_v9 }
 0x54f   : > { %15594 = vmatmul.mubr.msk.f32.gmra.mrb[142].mxu0 %vm1100_vm1, %v15379_v52 }
 0x550   : > { %v15382_v46 = vpop.f32.mrb[112].mxu1 }
 0x551   : > { %v3638_v38 = vpop.f32.mrb[113].mxu1 }
 0x552   : > { %15604 = vmatprep.mubr.msk.f32.mxu1 %vm1100_vm1, %v3638_v38 }
 0x553   : > { %15605 = vmatmul.mubr.msk.f32.vlgmr.msra.gmra.mrb[164].mxu1 %vm1100_vm1, %v15382_v46 }
 0x554   : > { %17081 = vmatpush3.bf16.xpose.msk.msra.mxu0 %vm18820_vm2, %v17076_v30  ;;  %17087 = vmatpush3.bf16.xpose.msk.msra.mxu1 %vm18820_vm2, %v17082_v53  ;;  %v15385_v55 = vpop.f32.mrb[114].mxu1 }
 0x555   : > { %v3648_v60 = vpop.f32.mrb[115].mxu1  ;;  %17090 = vmatprep.subr.msk.bf16.mxu1 %vm18820_vm2, %v17088_v43 }
 0x556   : > { %15607 = vmatprep.mubr.msk.f32.mxu1 %vm1100_vm1, %v3648_v60 }
 0x557   : > { %15608 = vmatmul.mubr.msk.f32.gmra.mrb[166].mxu1 %vm1100_vm1, %v15385_v55 }
 0x558   : > { %v15388_v11 = vpop.f32.mrb[116].mxu1 }
 0x559   : > { %v3658_v25 = vpop.f32.mrb[117].mxu1 }
 0x55a   : > { %15618 = vmatprep.mubr.msk.f32.mxu0 %vm1100_vm1, %v3658_v25 }
 0x55b   : > { %15619 = vmatmul.mubr.msk.f32.vlgmr.msra.gmra.mrb[144].mxu0 %vm1100_vm1, %v15388_v11 }
 0x55c   : > { %17093 = vmatpush3.bf16.xpose.msk.msra.mxu1 %vm18820_vm2, %v17088_v43  ;;  %v15391_v63 = vpop.f32.mrb[118].mxu1 }
 0x55d   : > { %v3668_v1 = vpop.f32.mrb[119].mxu1 }
 0x55e   : > { %15621 = vmatprep.mubr.msk.f32.mxu0 %vm1100_vm1, %v3668_v1 }
 0x55f   : > { %15622 = vmatmul.mubr.msk.f32.gmra.mrb[146].mxu0 %vm1100_vm1, %v15391_v63 }
 0x560   : > { %v15394_v24 = vpop.f32.mrb[120].mxu1 }
 0x561   : > { %v3678_v2 = vpop.f32.mrb[121].mxu1 }
 0x562   : > { %15632 = vmatprep.mubr.msk.f32.mxu1 %vm1100_vm1, %v3678_v2 }
 0x563   : > { %15633 = vmatmul.mubr.msk.f32.vlgmr.msra.gmra.mrb[168].mxu1 %vm1100_vm1, %v15394_v24 }
 0x564   : > { %v15397_v42 = vpop.f32.mrb[122].mxu1 }
 0x565   : > { %v3688_v34 = vpop.f32.mrb[123].mxu1 }
 0x566   : > { %15635 = vmatprep.mubr.msk.f32.mxu1 %vm1100_vm1, %v3688_v34 }
 0x567   : > { %15636 = vmatmul.mubr.msk.f32.gmra.mrb[170].mxu1 %vm1100_vm1, %v15397_v42 }
 0x568   : > { %v15480_v12 = vpop.f32.mrb[124].mxu1 }
 0x569   : > { %v4006_v8 = vpop.f32.mrb[125].mxu1 }
 0x56a   : > { %v17094_v59 = vpack.c.bf16 %v15480_v12, %v4006_v8 }
 0x56c   : > { %v15483_v13 = vpop.f32.mrb[126].mxu1  ;;  %17095 = vmatprep.subr.bf16.mxu0 %v17094_v59 }
 0x56d   : > { %v4016_v30 = vpop.f32.mrb[127].mxu1  ;;  %17097 = vmatpush3.bf16.msra.mxu0 %v17094_v59 }
 0x56e   : > { %v17098_v48 = vpack.c.bf16 %v15483_v13, %v4016_v30 }
 0x570   : > { %17099 = vmatprep.subr.bf16.mxu0 %v17098_v48  ;;  %v15486_v44 = vpop.f32.mrb[128].mxu1 }
 0x571   : > { %17101 = vmatpush3.bf16.msra.mxu0 %v17098_v48  ;;  %v4026_v7 = vpop.f32.mrb[129].mxu1 }
 0x572   : > { %v19911_v62 = vpack.c.bf16 %v15486_v44, %v4026_v7 }
 0x574   : > { %v15489_v53 = vpop.f32.mrb[130].mxu1  ;;  %17103 = vmatprep.subr.bf16.mxu0 %v19911_v62 }
 0x575   : > { %v4036_v56 = vpop.f32.mrb[131].mxu1 }
 0x576   : > { %v19914_v29 = vpack.c.bf16 %v15489_v53, %v4036_v56 }
 0x578   : > { %v15492_v28 = vpop.f32.mrb[132].mxu1 }
 0x579   : > { %v4046_v51 = vpop.f32.mrb[133].mxu1 }
 0x57a   : > { %v17110_v43 = vpack.c.bf16 %v15492_v28, %v4046_v51 }
 0x57c   : > { %v15495_v0 = vpop.f32.mrb[134].mxu1  ;;  %17111 = vmatprep.subr.bf16.mxu1 %v17110_v43 }
 0x57d   : > { %v4056_v36 = vpop.f32.mrb[135].mxu1  ;;  %17113 = vmatpush3.bf16.msra.mxu1 %v17110_v43 }
 0x57e   : > { %v17114_v41 = vpack.c.bf16 %v15495_v0, %v4056_v36 }
 0x580   : > { %17115 = vmatprep.subr.bf16.mxu1 %v17114_v41  ;;  %v15498_v32 = vpop.f32.mrb[136].mxu1 }
 0x581   : > { %17117 = vmatpush3.bf16.msra.mxu1 %v17114_v41  ;;  %v4066_v16 = vpop.f32.mrb[137].mxu1 }
 0x582   : > { %v19916_v39 = vpack.c.bf16 %v15498_v32, %v4066_v16 }
 0x584   : > { %v15501_v54 = vpop.f32.mrb[138].mxu1 }
 0x585   : > { %v4076_v40 = vpop.f32.mrb[139].mxu1 }
 0x586   : > { %v19918_v37 = vpack.c.bf16 %v15501_v54, %v4076_v40 }
 0x588   : > { %v15504_v33 = vpop.f32.mrb[140].mxu1 }
 0x589   : > { %v4086_v52 = vpop.f32.mrb[141].mxu1 }
 0x58a   : > { %v19920_v9 = vpack.c.bf16 %v15504_v33, %v4086_v52 }
 0x58c   : > { %v15507_v46 = vpop.f32.mrb[142].mxu1  ;;  %17127 = vmatprep.subr.bf16.mxu1 %v19920_v9 }
 0x58d   : > { %v4096_v38 = vpop.f32.mrb[143].mxu1 }
 0x58e   : > { %v19923_v55 = vpack.c.bf16 %v15507_v46, %v4096_v38 }
 0x590   : > { %v15510_v60 = vpop.f32.mrb[144].mxu1 }
 0x591   : > { %v4106_v11 = vpop.f32.mrb[145].mxu1 }
 0x592   : > { %v19925_v25 = vpack.c.bf16 %v15510_v60, %v4106_v11 }
 0x594   : > { %v15513_v63 = vpop.f32.mrb[146].mxu1 }
 0x595   : > { %v4116_v1 = vpop.f32.mrb[147].mxu1 }
 0x596   : > { %v19927_v24 = vpack.c.bf16 %v15513_v63, %v4116_v1 }
 0x598   : > { %v15516_v2 = vpop.f32.mrb[148].mxu1 }
 0x599   : > { %v4126_v42 = vpop.f32.mrb[149].mxu1 }
 0x59a   : > { %v19929_v34 = vpack.c.bf16 %v15516_v2, %v4126_v42 }
 0x59c   : > { %v15519_v12 = vpop.f32.mrb[150].mxu1 }
 0x59d   : > { %v4136_v8 = vpop.f32.mrb[151].mxu1 }
 0x59e   : > { %v19931_v59 = vpack.c.bf16 %v15519_v12, %v4136_v8 }
 0x5a0   : > { %v15522_v13 = vpop.f32.mrb[152].mxu1 }
 0x5a1   : > { %v4146_v30 = vpop.f32.mrb[153].mxu1 }
 0x5a2   : > { %v19933_v48 = vpack.c.bf16 %v15522_v13, %v4146_v30 }
 0x5a4   : > { %v15525_v44 = vpop.f32.mrb[154].mxu1 }
 0x5a5   : > { %v4156_v7 = vpop.f32.mrb[155].mxu1 }
 0x5a6   : > { %v19935_v53 = vpack.c.bf16 %v15525_v44, %v4156_v7 }
 0x5fe   : > { %v15536_v56 = vpop.f32.mrb[132].mxu0 }
 0x5ff   : > { %v19938_v28 = vadd.f32 %v15536_v56, %v18965_v14  ;;  %v4255_v51 = vpop.f32.mrb[133].mxu0 }
 0x600   : > { %v19941_v43 = vadd.f32 %v4255_v51, %v18967_v15 }
 0x601   : > { %v5040_v0 = vsel %vm1973_vm6, %v19938_v28, -inf }
 0x602   : > { %5041 = vmax.xlane.f32.xlu1 %v5040_v0  ;;  %v15539_v36 = vpop.f32.mrb[134].mxu0  ;;  %v5037_v41 = vsel %vm1973_vm6, %v19941_v43, -inf }
 0x603   : > { %v19948_v32 = vadd.f32 %v15539_v36, %v18975_v20  ;;  %5038 = vmax.xlane.f32.xlu0 %v5037_v41  ;;  %v4265_v16 = vpop.f32.mrb[135].mxu0 }
 0x604   : > { %v19951_v54 = vadd.f32 %v4265_v16, %v18979_v22 }
 0x605   : > { %v5046_v40 = vsel %vm1973_vm6, %v19948_v32, -inf }
 0x606   : > { %5047 = vmax.xlane.f32.xlu1 %v5046_v40  ;;  %v15550_v33 = vpop.f32.mrb[156].mxu1  ;;  %v5043_v52 = vsel %vm1973_vm6, %v19951_v54, -inf }
 0x607   : > { %v19958_v46 = vadd.f32 %v15550_v33, %v18965_v14  ;;  %5044 = vmax.xlane.f32.xlu0 %v5043_v52  ;;  %v4364_v38 = vpop.f32.mrb[157].mxu1 }
 0x608   : > { %v19961_v60 = vadd.f32 %v4364_v38, %v18967_v15 }
 0x609   : > { %v5052_v11 = vsel %vm1973_vm6, %v19958_v46, -inf }
 0x60a   : > { %5053 = vmax.xlane.f32.xlu1 %v5052_v11  ;;  %v15553_v63 = vpop.f32.mrb[158].mxu1  ;;  %v5049_v1 = vsel %vm1973_vm6, %v19961_v60, -inf }
 0x60b   : > { %v19968_v2 = vadd.f32 %v15553_v63, %v18975_v20  ;;  %v4374_v42 = vpop.f32.mrb[159].mxu1  ;;  %5050 = vmax.xlane.f32.xlu0 %v5049_v1 }
 0x60c   : > { %v19971_v12 = vadd.f32 %v4374_v42, %v18979_v22 }
 0x60d   : > { %v5058_v8 = vsel %vm1973_vm6, %v19968_v2, -inf }
 0x60e   : > { %v15564_v13 = vpop.f32.mrb[136].mxu0  ;;  %5059 = vmax.xlane.f32.xlu1 %v5058_v8  ;;  %v5055_v30 = vsel %vm1973_vm6, %v19971_v12, -inf }
 0x60f   : > { %v19978_v44 = vadd.f32 %v15564_v13, %v18965_v14  ;;  %v4473_v7 = vpop.f32.mrb[137].mxu0  ;;  %5056 = vmax.xlane.f32.xlu0 %v5055_v30 }
 0x610   : > { %v19981_v56 = vadd.f32 %v4473_v7, %v18967_v15 }
 0x611   : > { %v5064_v51 = vsel %vm1973_vm6, %v19978_v44, -inf }
 0x612   : > { %v15567_v0 = vpop.f32.mrb[138].mxu0  ;;  %5065 = vmax.xlane.f32.xlu1 %v5064_v51  ;;  %v5061_v36 = vsel %vm1973_vm6, %v19981_v56, -inf }
 0x613   : > { %v19988_v41 = vadd.f32 %v15567_v0, %v18975_v20  ;;  %v4483_v16 = vpop.f32.mrb[139].mxu0  ;;  %5062 = vmax.xlane.f32.xlu0 %v5061_v36 }
 0x614   : > { %v19991_v40 = vadd.f32 %v4483_v16, %v18979_v22 }
 0x615   : > { %v5070_v33 = vsel %vm1973_vm6, %v19988_v41, -inf }
 0x616   : > { %5071 = vmax.xlane.f32.xlu1 %v5070_v33  ;;  %v15578_v52 = vpop.f32.mrb[160].mxu1  ;;  %v5067_v38 = vsel %vm1973_vm6, %v19991_v40, -inf }
 0x617   : > { %v19998_v11 = vadd.f32 %v15578_v52, %v18965_v14  ;;  %v4582_v63 = vpop.f32.mrb[161].mxu1  ;;  %5068 = vmax.xlane.f32.xlu0 %v5067_v38 }
 0x618   : > { %v20001_v1 = vadd.f32 %v4582_v63, %v18967_v15 }
 0x619   : > { %v5076_v42 = vsel %vm1973_vm6, %v19998_v11, -inf }
 0x61a   : > { %5077 = vmax.xlane.f32.xlu1 %v5076_v42  ;;  %v15581_v8 = vpop.f32.mrb[162].mxu1  ;;  %v5073_v13 = vsel %vm1973_vm6, %v20001_v1, -inf }
 0x61b   : > { %v20008_v30 = vadd.f32 %v15581_v8, %v18975_v20  ;;  %v4592_v7 = vpop.f32.mrb[163].mxu1  ;;  %5074 = vmax.xlane.f32.xlu0 %v5073_v13 }
 0x61c   : > { %v20011_v51 = vadd.f32 %v4592_v7, %v18979_v22 }
 0x61d   : > { %v5082_v0 = vsel %vm1973_vm6, %v20008_v30, -inf }
 0x61e   : > { %v15592_v36 = vpop.f32.mrb[140].mxu0  ;;  %5083 = vmax.xlane.f32.xlu1 %v5082_v0  ;;  %v5079_v16 = vsel %vm1973_vm6, %v20011_v51, -inf }
 0x61f   : > { %v20018_v33 = vadd.f32 %v15592_v36, %v18965_v14  ;;  %v4691_v52 = vpop.f32.mrb[141].mxu0  ;;  %5080 = vmax.xlane.f32.xlu0 %v5079_v16 }
 0x620   : > { %v20021_v38 = vadd.f32 %v4691_v52, %v18967_v15 }
 0x621   : > { %v5088_v63 = vsel %vm1973_vm6, %v20018_v33, -inf }
 0x622   : > { %v15595_v42 = vpop.f32.mrb[142].mxu0  ;;  %5089 = vmax.xlane.f32.xlu1 %v5088_v63  ;;  %v5085_v8 = vsel %vm1973_vm6, %v20021_v38, -inf }
 0x623   : > { %v20028_v13 = vadd.f32 %v15595_v42, %v18975_v20  ;;  %v4701_v7 = vpop.f32.mrb[143].mxu0  ;;  %5086 = vmax.xlane.f32.xlu0 %v5085_v8 }
 0x624   : > { %v20031_v0 = vadd.f32 %v4701_v7, %v18979_v22 }
 0x625   : > { %v5094_v36 = vsel %vm1973_vm6, %v20028_v13, -inf }
 0x626   : > { %5095 = vmax.xlane.f32.xlu1 %v5094_v36  ;;  %v15606_v16 = vpop.f32.mrb[164].mxu1  ;;  %v5091_v52 = vsel %vm1973_vm6, %v20031_v0, -inf }
 0x627   : > { %v20038_v63 = vadd.f32 %v15606_v16, %v18965_v14  ;;  %v4800_v26 = vpop.f32.mrb[165].mxu1  ;;  %5092 = vmax.xlane.f32.xlu0 %v5091_v52 }
 0x628   : > { %v20041_v42 = vadd.f32 %v4800_v26, %v18967_v15 }
 0x629   : > { %v5100_v8 = vsel %vm1973_vm6, %v20038_v63, -inf }
 0x62a   : > { %5101 = vmax.xlane.f32.xlu1 %v5100_v8  ;;  %v15609_v7 = vpop.f32.mrb[166].mxu1  ;;  %v5097_v36 = vsel %vm1973_vm6, %v20041_v42, -inf }
 0x62b   : > { %v20048_v45 = vadd.f32 %v15609_v7, %v18975_v20  ;;  %v4810_v58 = vpop.f32.mrb[167].mxu1  ;;  %5098 = vmax.xlane.f32.xlu0 %v5097_v36 }
 0x62c   : > { %v20051_v16 = vadd.f32 %v4810_v58, %v18979_v22 }
 0x62d   : > { %v5106_v26 = vsel %vm1973_vm6, %v20048_v45, -inf }
 0x62e   : > { %v15620_v52 = vpop.f32.mrb[144].mxu0  ;;  %5107 = vmax.xlane.f32.xlu1 %v5106_v26  ;;  %v5103_v8 = vsel %vm1973_vm6, %v20051_v16, -inf }
 0x62f   : > { %v20058_v49 = vadd.f32 %v15620_v52, %v18965_v14  ;;  %v4909_v57 = vpop.f32.mrb[145].mxu0  ;;  %5104 = vmax.xlane.f32.xlu0 %v5103_v8 }
 0x630   : > { %v20061_v7 = vadd.f32 %v4909_v57, %v18967_v15 }
 0x631   : > { %v5112_v58 = vsel %vm1973_vm6, %v20058_v49, -inf }
 0x632   : > { %v15623_v36 = vpop.f32.mrb[146].mxu0  ;;  %5113 = vmax.xlane.f32.xlu1 %v5112_v58  ;;  %v5109_v19 = vsel %vm1973_vm6, %v20061_v7, -inf }
 0x633   : > { %v20068_v26 = vadd.f32 %v15623_v36, %v18975_v20  ;;  %v4919_v17 = vpop.f32.mrb[147].mxu0  ;;  %5110 = vmax.xlane.f32.xlu0 %v5109_v19 }
 0x634   : > { %v20071_v52 = vadd.f32 %v4919_v17, %v18979_v22 }
 0x635   : > { %v5118_v57 = vsel %vm1973_vm6, %v20068_v26, -inf }
 0x636   : > { %5119 = vmax.xlane.f32.xlu1 %v5118_v57  ;;  %v15634_v8 = vpop.f32.mrb[168].mxu1  ;;  %v5115_v23 = vsel %vm1973_vm6, %v20071_v52, -inf }
 0x637   : > { %v20078_v58 = vadd.f32 %v15634_v8, %v18965_v14  ;;  %v5018_v61 = vpop.f32.mrb[169].mxu1  ;;  %5116 = vmax.xlane.f32.xlu0 %v5115_v23 }
 0x638   : > { %v20081_v36 = vadd.f32 %v5018_v61, %v18967_v15 }
 0x639   : > { %v5124_v17 = vsel %vm1973_vm6, %v20078_v58, -inf }
 0x63a   : > { %5125 = vmax.xlane.f32.xlu1 %v5124_v17  ;;  %v15637_v19 = vpop.f32.mrb[170].mxu1  ;;  %v5121_v57 = vsel %vm1973_vm6, %v20081_v36, -inf }
 0x63b   : > { %v20088_v31 = vadd.f32 %v15637_v19, %v18975_v20  ;;  %v5028_v35 = vpop.f32.mrb[171].mxu1  ;;  %5122 = vmax.xlane.f32.xlu0 %v5121_v57 }
 0x63c   : > { %v20091_v8 = vadd.f32 %v5028_v35, %v18979_v22 }
 0x63d   : > { %v5130_v61 = vsel %vm1973_vm6, %v20088_v31, -inf }
 0x63e   : > { %5131 = vmax.xlane.f32.xlu1 %v5130_v61  ;;  %v5127_v23 = vsel %vm1973_vm6, %v20091_v8, -inf }
 0x63f   : > { %5128 = vmax.xlane.f32.xlu0 %v5127_v23 }
 0x68f   : > { %v5042_v17 = vpop.xlane.xlu1 %5041 }
 0x690   : > { %v5134_v10 = vsub.f32 %v19938_v28, %v5042_v17  ;;  %v5039_v4 = vpop.xlane.xlu0 %5038 }
 0x691   : > { %v5133_v19 = vsub.f32 %v19941_v43, %v5039_v4 }
 0x692   : > { %v5167_v21 = vmul.f32 1.442695, %v5134_v10 }
 0x693   : > { %v5165_v50 = vmul.f32 1.442695, %v5133_v19  ;;  %v5048_v57 = vpop.xlane.xlu1 %5047 }
 0x694   : > { %17886 = vpow2.f32 %v5167_v21  ;;  %v5136_v35 = vsub.f32 %v19948_v32, %v5048_v57  ;;  %v5045_v47 = vpop.xlane.xlu0 %5044 }
 0x695   : > { %17888 = vpow2.f32 %v5165_v50  ;;  %v5135_v61 = vsub.f32 %v19951_v54, %v5045_v47 }
 0x696   : > { %v5171_v5 = vmul.f32 1.442695, %v5136_v35 }
 0x697   : > { %v5169_v3 = vmul.f32 1.442695, %v5135_v61  ;;  %v5054_v27 = vpop.xlane.xlu1 %5053 }
 0x698   : > { %17890 = vpow2.f32 %v5171_v5  ;;  %v5138_v23 = vsub.f32 %v19958_v46, %v5054_v27  ;;  %v5051_v28 = vpop.xlane.xlu0 %5050 }
 0x699   : > { %17892 = vpow2.f32 %v5169_v3  ;;  %v5137_v4 = vsub.f32 %v19961_v60, %v5051_v28 }
 0x69a   : > { %v5175_v10 = vmul.f32 1.442695, %v5138_v23 }
 0x69b   : > { %v5173_v43 = vmul.f32 1.442695, %v5137_v4  ;;  %v5060_v17 = vpop.xlane.xlu1 %5059 }
 0x69c   : > { %17894 = vpow2.f32 %v5175_v10  ;;  %v5140_v21 = vsub.f32 %v19968_v2, %v5060_v17  ;;  %v5057_v32 = vpop.xlane.xlu0 %5056 }
 0x69d   : > { %17896 = vpow2.f32 %v5173_v43  ;;  %v5139_v47 = vsub.f32 %v19971_v12, %v5057_v32 }
 0x69e   : > { %v20105_v50 = vpop.eup %17886  ;;  %v5179_v54 = vmul.f32 1.442695, %v5140_v21 }
 0x69f   : > { %v20107_v5 = vpop.eup %17888  ;;  %v5177_v27 = vmul.f32 1.442695, %v5139_v47  ;;  %v5066_v46 = vpop.xlane.xlu1 %5065  ;;  %v5232_v3 = vsel %vm1973_vm6, %v20105_v50, 0.0 }
 0x6a0   : > { %17898 = vpow2.f32 %v5179_v54  ;;  %v5142_v60 = vsub.f32 %v19978_v44, %v5066_v46  ;;  %5233 = vadd.xlane.f32.xlu1 %v5232_v3  ;;  %v5063_v19 = vpop.xlane.xlu0 %5062  ;;  %v5229_v2 = vsel %vm1973_vm6, %v20107_v5, 0.0 }
 0x6a1   : > { %17900 = vpow2.f32 %v5177_v27  ;;  %v5141_v12 = vsub.f32 %v19981_v56, %v5063_v19  ;;  %5230 = vadd.xlane.f32.xlu0 %v5229_v2 }
 0x6a2   : > { %v20115_v57 = vpop.eup %17890  ;;  %v5183_v35 = vmul.f32 1.442695, %v5142_v60 }
 0x6a3   : > { %v20117_v61 = vpop.eup %17892  ;;  %v5181_v23 = vmul.f32 1.442695, %v5141_v12  ;;  %v5072_v28 = vpop.xlane.xlu1 %5071  ;;  %v5238_v4 = vsel %vm1973_vm6, %v20115_v57, 0.0 }
 0x6a4   : > { %17902 = vpow2.f32 %v5183_v35  ;;  %v5144_v44 = vsub.f32 %v19988_v41, %v5072_v28  ;;  %5239 = vadd.xlane.f32.xlu1 %v5238_v4  ;;  %v5069_v10 = vpop.xlane.xlu0 %5068  ;;  %v5235_v43 = vsel %vm1973_vm6, %v20117_v61, 0.0 }
 0x6a5   : > { %17904 = vpow2.f32 %v5181_v23  ;;  %v5143_v56 = vsub.f32 %v19991_v40, %v5069_v10  ;;  %5236 = vadd.xlane.f32.xlu0 %v5235_v43 }
 0x6a6   : > { %v20125_v17 = vpop.eup %17894  ;;  %v5187_v21 = vmul.f32 1.442695, %v5144_v44 }
 0x6a7   : > { %v20127_v32 = vpop.eup %17896  ;;  %v5185_v47 = vmul.f32 1.442695, %v5143_v56  ;;  %v5078_v54 = vpop.xlane.xlu1 %5077  ;;  %v5244_v27 = vsel %vm1973_vm6, %v20125_v17, 0.0 }
 0x6a8   : > { %17906 = vpow2.f32 %v5187_v21  ;;  %v5146_v41 = vsub.f32 %v19998_v11, %v5078_v54  ;;  %5245 = vadd.xlane.f32.xlu1 %v5244_v27  ;;  %v5075_v46 = vpop.xlane.xlu0 %5074  ;;  %v5241_v3 = vsel %vm1973_vm6, %v20127_v32, 0.0 }
 0x6a9   : > { %17908 = vpow2.f32 %v5185_v47  ;;  %v5145_v40 = vsub.f32 %v20001_v1, %v5075_v46  ;;  %5242 = vadd.xlane.f32.xlu0 %v5241_v3 }
 0x6aa   : > { %v20135_v60 = vpop.eup %17898  ;;  %v5191_v19 = vmul.f32 1.442695, %v5146_v41 }
 0x6ab   : > { %v20137_v2 = vpop.eup %17900  ;;  %v5189_v12 = vmul.f32 1.442695, %v5145_v40  ;;  %v5084_v35 = vpop.xlane.xlu1 %5083  ;;  %v5250_v23 = vsel %vm1973_vm6, %v20135_v60, 0.0 }
 0x6ac   : > { %17910 = vpow2.f32 %v5191_v19  ;;  %v5148_v11 = vsub.f32 %v20008_v30, %v5084_v35  ;;  %5251 = vadd.xlane.f32.xlu1 %v5250_v23  ;;  %v5081_v28 = vpop.xlane.xlu0 %5080  ;;  %v5247_v4 = vsel %vm1973_vm6, %v20137_v2, 0.0 }
 0x6ad   : > { %17912 = vpow2.f32 %v5189_v12  ;;  %v5147_v1 = vsub.f32 %v20011_v51, %v5081_v28  ;;  %5248 = vadd.xlane.f32.xlu0 %v5247_v4 }
 0x6ae   : > { %v20145_v44 = vpop.eup %17902  ;;  %v5195_v10 = vmul.f32 1.442695, %v5148_v11 }
 0x6af   : > { %v20147_v43 = vpop.eup %17904  ;;  %v5193_v56 = vmul.f32 1.442695, %v5147_v1  ;;  %v5090_v21 = vpop.xlane.xlu1 %5089  ;;  %v5256_v47 = vsel %vm1973_vm6, %v20145_v44, 0.0 }
 0x6b0   : > { %17914 = vpow2.f32 %v5195_v10  ;;  %v5150_v30 = vsub.f32 %v20018_v33, %v5090_v21  ;;  %5257 = vadd.xlane.f32.xlu1 %v5256_v47  ;;  %v5087_v54 = vpop.xlane.xlu0 %5086  ;;  %v5253_v27 = vsel %vm1973_vm6, %v20147_v43, 0.0 }
 0x6b1   : > { %17916 = vpow2.f32 %v5193_v56  ;;  %v5149_v51 = vsub.f32 %v20021_v38, %v5087_v54  ;;  %5254 = vadd.xlane.f32.xlu0 %v5253_v27 }
 0x6b2   : > { %v20155_v41 = vpop.eup %17906  ;;  %v5199_v46 = vmul.f32 1.442695, %v5150_v30 }
 0x6b3   : > { %v20157_v3 = vpop.eup %17908  ;;  %v5197_v40 = vmul.f32 1.442695, %v5149_v51  ;;  %v5096_v19 = vpop.xlane.xlu1 %5095  ;;  %v5262_v12 = vsel %vm1973_vm6, %v20155_v41, 0.0 }
 0x6b4   : > { %17918 = vpow2.f32 %v5199_v46  ;;  %v5152_v33 = vsub.f32 %v20028_v13, %v5096_v19  ;;  %5263 = vadd.xlane.f32.xlu1 %v5262_v12  ;;  %v5093_v35 = vpop.xlane.xlu0 %5092  ;;  %v5259_v23 = vsel %vm1973_vm6, %v20157_v3, 0.0 }
 0x6b5   : > { %17920 = vpow2.f32 %v5197_v40  ;;  %v5151_v38 = vsub.f32 %v20031_v0, %v5093_v35  ;;  %5260 = vadd.xlane.f32.xlu0 %v5259_v23 }
 0x6b6   : > { %v20165_v11 = vpop.eup %17910  ;;  %v5203_v28 = vmul.f32 1.442695, %v5152_v33 }
 0x6b7   : > { %v20167_v4 = vpop.eup %17912  ;;  %v5201_v1 = vmul.f32 1.442695, %v5151_v38  ;;  %v5102_v10 = vpop.xlane.xlu1 %5101  ;;  %v5268_v56 = vsel %vm1973_vm6, %v20165_v11, 0.0 }
 0x6b8   : > { %17922 = vpow2.f32 %v5203_v28  ;;  %v5154_v13 = vsub.f32 %v20038_v63, %v5102_v10  ;;  %5269 = vadd.xlane.f32.xlu1 %v5268_v56  ;;  %v5099_v21 = vpop.xlane.xlu0 %5098  ;;  %v5265_v47 = vsel %vm1973_vm6, %v20167_v4, 0.0 }
 0x6b9   : > { %17924 = vpow2.f32 %v5201_v1  ;;  %v5153_v0 = vsub.f32 %v20041_v42, %v5099_v21  ;;  %5266 = vadd.xlane.f32.xlu0 %v5265_v47 }
 0x6ba   : > { %v20175_v30 = vpop.eup %17914  ;;  %v5207_v54 = vmul.f32 1.442695, %v5154_v13 }
 0x6bb   : > { %v20177_v27 = vpop.eup %17916  ;;  %v5205_v51 = vmul.f32 1.442695, %v5153_v0  ;;  %v5108_v46 = vpop.xlane.xlu1 %5107  ;;  %v5274_v40 = vsel %vm1973_vm6, %v20175_v30, 0.0 }
 0x6bc   : > { %17926 = vpow2.f32 %v5207_v54  ;;  %v5156_v63 = vsub.f32 %v20048_v45, %v5108_v46  ;;  %5275 = vadd.xlane.f32.xlu1 %v5274_v40  ;;  %v5105_v19 = vpop.xlane.xlu0 %5104  ;;  %v5271_v12 = vsel %vm1973_vm6, %v20177_v27, 0.0 }
 0x6bd   : > { %17928 = vpow2.f32 %v5205_v51  ;;  %v5155_v42 = vsub.f32 %v20051_v16, %v5105_v19  ;;  %5272 = vadd.xlane.f32.xlu0 %v5271_v12 }
 0x6be   : > { %v20185_v33 = vpop.eup %17918  ;;  %v5211_v35 = vmul.f32 1.442695, %v5156_v63 }
 0x6bf   : > { %v20187_v23 = vpop.eup %17920  ;;  %v5209_v38 = vmul.f32 1.442695, %v5155_v42  ;;  %v5114_v28 = vpop.xlane.xlu1 %5113  ;;  %v5280_v1 = vsel %vm1973_vm6, %v20185_v33, 0.0 }
 0x6c0   : > { %17930 = vpow2.f32 %v5211_v35  ;;  %v5158_v45 = vsub.f32 %v20058_v49, %v5114_v28  ;;  %5281 = vadd.xlane.f32.xlu1 %v5280_v1  ;;  %v5111_v10 = vpop.xlane.xlu0 %5110  ;;  %v5277_v56 = vsel %vm1973_vm6, %v20187_v23, 0.0 }
 0x6c1   : > { %17932 = vpow2.f32 %v5209_v38  ;;  %v5157_v16 = vsub.f32 %v20061_v7, %v5111_v10  ;;  %5278 = vadd.xlane.f32.xlu0 %v5277_v56 }
 0x6c2   : > { %v20195_v13 = vpop.eup %17922  ;;  %v5215_v21 = vmul.f32 1.442695, %v5158_v45 }
 0x6c3   : > { %v20197_v47 = vpop.eup %17924  ;;  %v5213_v0 = vmul.f32 1.442695, %v5157_v16  ;;  %v5120_v54 = vpop.xlane.xlu1 %5119  ;;  %v5286_v51 = vsel %vm1973_vm6, %v20195_v13, 0.0 }
 0x6c4   : > { %17934 = vpow2.f32 %v5215_v21  ;;  %v5160_v49 = vsub.f32 %v20068_v26, %v5120_v54  ;;  %5287 = vadd.xlane.f32.xlu1 %v5286_v51  ;;  %v5117_v46 = vpop.xlane.xlu0 %5116  ;;  %v5283_v40 = vsel %vm1973_vm6, %v20197_v47, 0.0 }
 0x6c5   : > { %17936 = vpow2.f32 %v5213_v0  ;;  %v5159_v7 = vsub.f32 %v20071_v52, %v5117_v46  ;;  %5284 = vadd.xlane.f32.xlu0 %v5283_v40 }
 0x6c6   : > { %v20205_v63 = vpop.eup %17926  ;;  %v5219_v19 = vmul.f32 1.442695, %v5160_v49 }
 0x6c7   : > { %v20207_v12 = vpop.eup %17928  ;;  %v5217_v42 = vmul.f32 1.442695, %v5159_v7  ;;  %v5126_v35 = vpop.xlane.xlu1 %5125  ;;  %v5292_v38 = vsel %vm1973_vm6, %v20205_v63, 0.0 }
 0x6c8   : > { %17938 = vpow2.f32 %v5219_v19  ;;  %v5162_v26 = vsub.f32 %v20078_v58, %v5126_v35  ;;  %5293 = vadd.xlane.f32.xlu1 %v5292_v38  ;;  %v5123_v28 = vpop.xlane.xlu0 %5122  ;;  %v5289_v1 = vsel %vm1973_vm6, %v20207_v12, 0.0 }
 0x6c9   : > { %17940 = vpow2.f32 %v5217_v42  ;;  %v5161_v52 = vsub.f32 %v20081_v36, %v5123_v28  ;;  %5290 = vadd.xlane.f32.xlu0 %v5289_v1 }
 0x6ca   : > { %v20215_v45 = vpop.eup %17930  ;;  %v5223_v10 = vmul.f32 1.442695, %v5162_v26 }
 0x6cb   : > { %v20217_v56 = vpop.eup %17932  ;;  %v5221_v16 = vmul.f32 1.442695, %v5161_v52  ;;  %v5132_v21 = vpop.xlane.xlu1 %5131  ;;  %v5298_v0 = vsel %vm1973_vm6, %v20215_v45, 0.0 }
 0x6cc   : > { %17942 = vpow2.f32 %v5223_v10  ;;  %v5164_v58 = vsub.f32 %v20088_v31, %v5132_v21  ;;  %5299 = vadd.xlane.f32.xlu1 %v5298_v0  ;;  %v5129_v54 = vpop.xlane.xlu0 %5128  ;;  %v5295_v51 = vsel %vm1973_vm6, %v20217_v56, 0.0 }
 0x6cd   : > { %17944 = vpow2.f32 %v5221_v16  ;;  %v5163_v36 = vsub.f32 %v20091_v8, %v5129_v54  ;;  %5296 = vadd.xlane.f32.xlu0 %v5295_v51 }
 0x6ce   : > { %v20225_v49 = vpop.eup %17934  ;;  %v5227_v46 = vmul.f32 1.442695, %v5164_v58 }
 0x6cf   : > { %v20227_v40 = vpop.eup %17936  ;;  %v5225_v7 = vmul.f32 1.442695, %v5163_v36  ;;  %v5304_v19 = vsel %vm1973_vm6, %v20225_v49, 0.0 }
 0x6d0   : > { %17946 = vpow2.f32 %v5227_v46  ;;  %5305 = vadd.xlane.f32.xlu1 %v5304_v19  ;;  %v5301_v31 = vsel %vm1973_vm6, %v20227_v40, 0.0 }
 0x6d1   : > { %17948 = vpow2.f32 %v5225_v7  ;;  %5302 = vadd.xlane.f32.xlu0 %v5301_v31 }
 0x6d2   : > { %v20233_v42 = vpop.eup %17938 }
 0x6d3   : > { %v20235_v8 = vpop.eup %17940  ;;  %v5310_v35 = vsel %vm1973_vm6, %v20233_v42, 0.0 }
 0x6d4   : > { %5311 = vadd.xlane.f32.xlu1 %v5310_v35  ;;  %v5307_v38 = vsel %vm1973_vm6, %v20235_v8, 0.0 }
 0x6d5   : > { %5308 = vadd.xlane.f32.xlu0 %v5307_v38 }
 0x6d6   : > { %v20241_v26 = vpop.eup %17942 }
 0x6d7   : > { %v20243_v28 = vpop.eup %17944  ;;  %v5316_v1 = vsel %vm1973_vm6, %v20241_v26, 0.0 }
 0x6d8   : > { %5317 = vadd.xlane.f32.xlu1 %v5316_v1  ;;  %v5313_v52 = vsel %vm1973_vm6, %v20243_v28, 0.0 }
 0x6d9   : > { %5314 = vadd.xlane.f32.xlu0 %v5313_v52 }
 0x6da   : > { %v20249_v10 = vpop.eup %17946 }
 0x6db   : > { %v20251_v16 = vpop.eup %17948  ;;  %v5322_v21 = vsel %vm1973_vm6, %v20249_v10, 0.0 }
 0x6dc   : > { %5323 = vadd.xlane.f32.xlu1 %v5322_v21  ;;  %v5319_v0 = vsel %vm1973_vm6, %v20251_v16, 0.0 }
 0x6dd   : > { %5320 = vadd.xlane.f32.xlu0 %v5319_v0 }
 0x72d   : > { %v5234_v58 = vpop.xlane.xlu1 %5233 }
 0x72e   : > { %17950 = vrcp.f32 %v5234_v58  ;;  %v5231_v54 = vpop.xlane.xlu0 %5230 }
 0x72f   : > { %17952 = vrcp.f32 %v5231_v54 }
 0x731   : > { %v5240_v51 = vpop.xlane.xlu1 %5239 }
 0x732   : > { %17954 = vrcp.f32 %v5240_v51  ;;  %v5237_v36 = vpop.xlane.xlu0 %5236 }
 0x733   : > { %17956 = vrcp.f32 %v5237_v36 }
 0x735   : > { %v5246_v46 = vpop.xlane.xlu1 %5245 }
 0x736   : > { %17958 = vrcp.f32 %v5246_v46  ;;  %v5243_v7 = vpop.xlane.xlu0 %5242 }
 0x737   : > { %17960 = vrcp.f32 %v5243_v7 }
 0x738   : > { %v17951_v19 = vpop.eup %17950 }
 0x739   : > { %v17953_v31 = vpop.eup %17952  ;;  %v5252_v35 = vpop.xlane.xlu1 %5251  ;;  %v5358_v52 = vmul.f32 %v17951_v19, %v20105_v50 }
 0x73a   : > { %17962 = vrcp.f32 %v5252_v35  ;;  %v5249_v38 = vpop.xlane.xlu0 %5248  ;;  %v5357_v1 = vmul.f32 %v17953_v31, %v20107_v5 }
 0x73b   : > { %17964 = vrcp.f32 %v5249_v38 }
 0x73c   : > { %v17955_v21 = vpop.eup %17954  ;;  %15646 = vmatprep.mubr.msk.f32.mxu0 %vm1973_vm6, %v5357_v1 }
 0x73d   : > { %v17957_v0 = vpop.eup %17956  ;;  %v5258_v58 = vpop.xlane.xlu1 %5257  ;;  %15647 = vmatmul.mubr.msk.f32.vlgmr.msra.gmra.mrb[148].mxu0 %vm1973_vm6, %v5358_v52  ;;  %v5360_v5 = vmul.f32 %v17955_v21, %v20115_v57 }
 0x73e   : > { %17966 = vrcp.f32 %v5258_v58  ;;  %17105 = vmatpush3.bf16.msra.mxu0 %v19911_v62  ;;  %v5255_v54 = vpop.xlane.xlu0 %5254  ;;  %v5359_v51 = vmul.f32 %v17957_v0, %v20117_v61 }
 0x73f   : > { %17107 = vmatprep.subr.bf16.mxu0 %v19914_v29  ;;  %17968 = vrcp.f32 %v5255_v54 }
 0x740   : > { %v17959_v50 = vpop.eup %17958  ;;  %15649 = vmatprep.mubr.msk.f32.mxu0 %vm1973_vm6, %v5359_v51 }
 0x741   : > { %v17961_v36 = vpop.eup %17960  ;;  %v5264_v46 = vpop.xlane.xlu1 %5263  ;;  %15650 = vmatmul.mubr.msk.f32.gmra.mrb[150].mxu0 %vm1973_vm6, %v5360_v5  ;;  %v5362_v61 = vmul.f32 %v17959_v50, %v20125_v17 }
 0x742   : > { %17970 = vrcp.f32 %v5264_v46  ;;  %17109 = vmatpush3.bf16.msra.mxu0 %v19914_v29  ;;  %v5261_v7 = vpop.xlane.xlu0 %5260  ;;  %v5361_v62 = vmul.f32 %v17961_v36, %v20127_v32 }
 0x743   : > { %17119 = vmatprep.subr.bf16.mxu0 %v19916_v39  ;;  %17972 = vrcp.f32 %v5261_v7 }
 0x744   : > { %v17963_v19 = vpop.eup %17962  ;;  %15660 = vmatprep.mubr.msk.f32.mxu0 %vm1973_vm6, %v5361_v62 }
 0x745   : > { %v17965_v57 = vpop.eup %17964  ;;  %v5270_v31 = vpop.xlane.xlu1 %5269  ;;  %15661 = vmatmul.mubr.msk.f32.vlgmr.msra.gmra.mrb[152].mxu0 %vm1973_vm6, %v5362_v61  ;;  %v5364_v17 = vmul.f32 %v17963_v19, %v20135_v60 }
 0x746   : > { %17974 = vrcp.f32 %v5270_v31  ;;  %17121 = vmatpush3.bf16.msra.mxu0 %v19916_v39  ;;  %v5267_v35 = vpop.xlane.xlu0 %5266  ;;  %v5363_v29 = vmul.f32 %v17965_v57, %v20137_v2 }
 0x747   : > { %17123 = vmatprep.subr.bf16.mxu0 %v19918_v37  ;;  %17976 = vrcp.f32 %v5267_v35 }
 0x748   : > { %v17967_v32 = vpop.eup %17966  ;;  %15663 = vmatprep.mubr.msk.f32.mxu0 %vm1973_vm6, %v5363_v29 }
 0x749   : > { %v17969_v38 = vpop.eup %17968  ;;  %v5276_v1 = vpop.xlane.xlu1 %5275  ;;  %15664 = vmatmul.mubr.msk.f32.gmra.mrb[154].mxu0 %vm1973_vm6, %v5364_v17  ;;  %v5366_v2 = vmul.f32 %v17967_v32, %v20145_v44 }
 0x74a   : > { %17978 = vrcp.f32 %v5276_v1  ;;  %17125 = vmatpush3.bf16.msra.mxu0 %v19918_v37  ;;  %v5273_v52 = vpop.xlane.xlu0 %5272  ;;  %v5365_v39 = vmul.f32 %v17969_v38, %v20147_v43  ;;  %v13196_v38 = vld [vmem:[%s22638_s4 + $0x18] sm:$0xff] }
 0x74b   : > { %17135 = vmatprep.subr.bf16.mxu0 %v19925_v25  ;;  %17980 = vrcp.f32 %v5273_v52 }
 0x74c   : > { %v17971_v21 = vpop.eup %17970  ;;  %15674 = vmatprep.mubr.msk.f32.mxu1 %vm1973_vm6, %v5365_v39 }
 0x74d   : > { %v17973_v60 = vpop.eup %17972  ;;  %v5282_v0 = vpop.xlane.xlu1 %5281  ;;  %15675 = vmatmul.mubr.msk.f32.vlgmr.msra.gmra.mrb[172].mxu1 %vm1973_vm6, %v5366_v2  ;;  %v5368_v44 = vmul.f32 %v17971_v21, %v20155_v41 }
 0x74e   : > { %17982 = vrcp.f32 %v5282_v0  ;;  %17129 = vmatpush3.bf16.msra.mxu1 %v19920_v9  ;;  %v5279_v58 = vpop.xlane.xlu0 %5278  ;;  %v5367_v37 = vmul.f32 %v17973_v60, %v20157_v3 }
 0x74f   : > { %17131 = vmatprep.subr.bf16.mxu1 %v19923_v55  ;;  %17984 = vrcp.f32 %v5279_v58 }
 0x750   : > { %v17975_v43 = vpop.eup %17974  ;;  %15677 = vmatprep.mubr.msk.f32.mxu1 %vm1973_vm6, %v5367_v37 }
 0x751   : > { %v17977_v54 = vpop.eup %17976  ;;  %v5288_v51 = vpop.xlane.xlu1 %5287  ;;  %15678 = vmatmul.mubr.msk.f32.gmra.mrb[174].mxu1 %vm1973_vm6, %v5368_v44  ;;  %v5370_v3 = vmul.f32 %v17975_v43, %v20165_v11 }
 0x752   : > { %17986 = vrcp.f32 %v5288_v51  ;;  %17133 = vmatpush3.bf16.msra.mxu1 %v19923_v55  ;;  %v5285_v5 = vpop.xlane.xlu0 %5284  ;;  %v5369_v9 = vmul.f32 %v17977_v54, %v20167_v4 }
 0x753   : > { %17143 = vmatprep.subr.bf16.mxu1 %v19929_v34  ;;  %17988 = vrcp.f32 %v5285_v5 }
 0x754   : > { %v17979_v50 = vpop.eup %17978  ;;  %15688 = vmatprep.mubr.msk.f32.mxu0 %vm1973_vm6, %v5369_v9 }
 0x755   : > { %v17981_v41 = vpop.eup %17980  ;;  %v5294_v36 = vpop.xlane.xlu1 %5293  ;;  %15689 = vmatmul.mubr.msk.f32.vlgmr.msra.gmra.mrb[156].mxu0 %vm1973_vm6, %v5370_v3  ;;  %v5372_v11 = vmul.f32 %v17979_v50, %v20175_v30  ;;  %v13231_v50 = vld [vmem:[%s22635_s1 + $0x90] sm:$0xff] }
 0x756   : > { %17990 = vrcp.f32 %v5294_v36  ;;  %17137 = vmatpush3.bf16.msra.mxu0 %v19925_v25  ;;  %v5291_v46 = vpop.xlane.xlu0 %5290  ;;  %v5371_v55 = vmul.f32 %v17981_v41, %v20177_v27  ;;  %v13232_v41 = vld [vmem:[%s22635_s1 + $0x98] sm:$0xff] }
 0x757   : > { %17139 = vmatprep.subr.bf16.mxu0 %v19927_v24  ;;  %17992 = vrcp.f32 %v5291_v46  ;;  %v17166_v36 = vpack.c.bf16 %v13232_v41, %v13231_v50  ;;  %v13233_v46 = vld [vmem:[%s22635_s1 + $0xa0] sm:$0xff]  ;;  %v13315_v50 = vld [vmem:[%s22637_s3 + $0xb0] sm:$0xff]  ;;  %v13316_v41 = vld [vmem:[%s22637_s3 + $0xb8] sm:$0xff] }
 0x758   : > { %v17983_v4 = vpop.eup %17982  ;;  %15691 = vmatprep.mubr.msk.f32.mxu0 %vm1973_vm6, %v5371_v55  ;;  %v13234_v55 = vld [vmem:[%s22635_s1 + $0xa8] sm:$0xff] }
 0x759   : > { %v17985_v7 = vpop.eup %17984  ;;  %v5300_v62 = vpop.xlane.xlu1 %5299  ;;  %15692 = vmatmul.mubr.msk.f32.gmra.mrb[158].mxu0 %vm1973_vm6, %v5372_v11  ;;  %v5374_v27 = vmul.f32 %v17983_v4, %v20185_v33  ;;  %v17170_v11 = vpack.c.bf16 %v13234_v55, %v13233_v46  ;;  %v13235_v4 = vld [vmem:[%s22635_s1 + $0xb0] sm:$0xff]  ;;  %v20570_v46 = vld [vmem:[%s18563_s11 + $0xe0] sm:$0xff] }
 0x75a   : > { %17994 = vrcp.f32 %v5300_v62  ;;  %17141 = vmatpush3.bf16.msra.mxu0 %v19927_v24  ;;  %v5297_v61 = vpop.xlane.xlu0 %5296  ;;  %v5373_v25 = vmul.f32 %v17985_v7, %v20187_v23  ;;  %v13236_v7 = vld [vmem:[%s22635_s1 + $0xb8] sm:$0xff] }
 0x75b   : > { %17151 = vmatprep.subr.bf16.mxu0 %v19933_v48  ;;  %17996 = vrcp.f32 %v5297_v61  ;;  %v17174_v62 = vpack.c.bf16 %v13236_v7, %v13235_v4  ;;  %v20388_v61 = vld [vmem:[%s18563_s11 + $0x8] sm:$0xff]  ;;  %v17206_v4 = vpack.c.bf16 %v13316_v41, %v13315_v50 }
 0x75c   : > { %v17987_v19 = vpop.eup %17986  ;;  %15702 = vmatprep.mubr.msk.f32.mxu1 %vm1973_vm6, %v5373_v25  ;;  %v20393_v25 = vld [vmem:[%s18563_s11 + $0x10] sm:$0xff]  ;;  %v20577_v7 = vld [vmem:[%s18563_s11 + $0xe8] sm:$0xff] }
 0x75d   : > { %v17989_v30 = vpop.eup %17988  ;;  %v5306_v57 = vpop.xlane.xlu1 %5305  ;;  %15703 = vmatmul.mubr.msk.f32.vlgmr.msra.gmra.mrb[176].mxu1 %vm1973_vm6, %v5374_v27  ;;  %v5376_v33 = vmul.f32 %v17987_v19, %v20195_v13  ;;  %v13195_v13 = vld [vmem:[%s22638_s4 + $0x10] sm:$0xff]  ;;  %v20398_v27 = vld [vmem:[%s18563_s11 + $0x18] sm:$0xff]  ;;  %v20403_v19 = vld [vmem:[%s18563_s11 + $0x20] sm:$0xff] }
 0x75e   : > { %17998 = vrcp.f32 %v5306_v57  ;;  %17145 = vmatpush3.bf16.msra.mxu1 %v19929_v34  ;;  %v5303_v31 = vpop.xlane.xlu0 %5302  ;;  %v5375_v24 = vmul.f32 %v17989_v30, %v20197_v47  ;;  %v17158_v39 = vpack.c.bf16 %v13196_v38, %v13195_v13  ;;  %v20408_v30 = vld [vmem:[%s18563_s11 + $0x28] sm:$0xff]  ;;  %v20413_v57 = vld [vmem:[%s18563_s11 + $0x30] sm:$0xff] }
 0x75f   : > { %17147 = vmatprep.subr.bf16.mxu1 %v19931_v59  ;;  %18000 = vrcp.f32 %v5303_v31  ;;  %v20418_v31 = vld [vmem:[%s18563_s11 + $0x38] sm:$0xff]  ;;  %v20468_v13 = vld [vmem:[%s18563_s11 + $0x88] sm:$0xff]  ;;  %v20473_v38 = vld [vmem:[%s18563_s11 + $0x90] sm:$0xff] }
 0x760   : > { %v17991_v23 = vpop.eup %17990  ;;  %15705 = vmatprep.mubr.msk.f32.mxu1 %vm1973_vm6, %v5375_v24  ;;  %v20423_v24 = vld [vmem:[%s18563_s11 + $0x40] sm:$0xff] }
 0x761   : > { %v17993_v35 = vpop.eup %17992  ;;  %v5312_v29 = vpop.xlane.xlu1 %5311  ;;  %15706 = vmatmul.mubr.msk.f32.gmra.mrb[178].mxu1 %vm1973_vm6, %v5376_v33  ;;  %v5378_v47 = vmul.f32 %v17991_v23, %v20205_v63  ;;  %v20428_v33 = vld [vmem:[%s18563_s11 + $0x48] sm:$0xff]  ;;  %v20433_v23 = vld [vmem:[%s18563_s11 + $0x50] sm:$0xff] }
 0x762   : > { %18002 = vrcp.f32 %v5312_v29  ;;  %17149 = vmatpush3.bf16.msra.mxu1 %v19931_v59  ;;  %v5309_v17 = vpop.xlane.xlu0 %5308  ;;  %v5377_v34 = vmul.f32 %v17993_v35, %v20207_v12  ;;  %v20438_v35 = vld [vmem:[%s18563_s11 + $0x58] sm:$0xff]  ;;  %v20443_v29 = vld [vmem:[%s18563_s11 + $0x60] sm:$0xff] }
 0x763   : > { %18004 = vrcp.f32 %v5309_v17  ;;  %v20448_v17 = vld [vmem:[%s18563_s11 + $0x68] sm:$0xff] }
 0x764   : > { %v17995_v32 = vpop.eup %17994  ;;  %15716 = vmatprep.mubr.msk.f32.mxu0 %vm1973_vm6, %v5377_v34  ;;  %v20453_v34 = vld [vmem:[%s18563_s11 + $0x70] sm:$0xff] }
 0x765   : > { %v17997_v1 = vpop.eup %17996  ;;  %v5318_v52 = vpop.xlane.xlu1 %5317  ;;  %15717 = vmatmul.mubr.msk.f32.vlgmr.msra.gmra.mrb[160].mxu0 %vm1973_vm6, %v5378_v47  ;;  %v5380_v12 = vmul.f32 %v17995_v32, %v20215_v45  ;;  %v20458_v47 = vld [vmem:[%s18563_s11 + $0x78] sm:$0xff]  ;;  %v20463_v32 = vld [vmem:[%s18563_s11 + $0x80] sm:$0xff] }
 0x766   : > { %18006 = vrcp.f32 %v5318_v52  ;;  %17153 = vmatpush3.bf16.msra.mxu0 %v19933_v48  ;;  %v5315_v59 = vpop.xlane.xlu0 %5314  ;;  %v5379_v63 = vmul.f32 %v17997_v1, %v20217_v56  ;;  %v20478_v1 = vld [vmem:[%s18563_s11 + $0x98] sm:$0xff]  ;;  %v20483_v52 = vld [vmem:[%s18563_s11 + $0xa0] sm:$0xff] }
 0x767   : > { %17155 = vmatprep.subr.bf16.mxu0 %v19935_v53  ;;  %18008 = vrcp.f32 %v5315_v59  ;;  %v20488_v59 = vld [vmem:[%s18563_s11 + $0xa8] sm:$0xff] }
 0x768   : > { %v17999_v2 = vpop.eup %17998  ;;  %15719 = vmatprep.mubr.msk.f32.mxu0 %vm1973_vm6, %v5379_v63  ;;  %v20493_v63 = vld [vmem:[%s18563_s11 + $0xb0] sm:$0xff] }
 0x769   : > { %v18001_v21 = vpop.eup %18000  ;;  %v5324_v60 = vpop.xlane.xlu1 %5323  ;;  %15720 = vmatmul.mubr.msk.f32.gmra.mrb[162].mxu0 %vm1973_vm6, %v5380_v12  ;;  %v5382_v0 = vmul.f32 %v17999_v2, %v20225_v49  ;;  %v13271_v12 = vld [vmem:[%s22636_s2 + $0x90] sm:$0xff]  ;;  %v20504_v2 = vld [vmem:[%s18563_s11 + $0xb8] sm:$0xff] }
 0x76a   : > { %18010 = vrcp.f32 %v5324_v60  ;;  %17157 = vmatpush3.bf16.msra.mxu0 %v19935_v53  ;;  %v5321_v48 = vpop.xlane.xlu0 %5320  ;;  %v5381_v56 = vmul.f32 %v18001_v21, %v20227_v40  ;;  %v20343_v40 = vld [vmem:[%s18563_s11] sm:$0xff]  ;;  %v13310_v60 = vld [vmem:[%s22637_s3 + $0x88] sm:$0xff] }
 0x76b   : > { %18012 = vrcp.f32 %v5321_v48  ;;  %17159 = vmatprep.subr.bf16.mxu0 %v17158_v39  ;;  %v13309_v21 = vld [vmem:[%s22637_s3 + $0x80] sm:$0xff]  ;;  %v13311_v48 = vld [vmem:[%s22637_s3 + $0x90] sm:$0xff] }
 0x76c   : > { %v18003_v45 = vpop.eup %18002  ;;  %15730 = vmatprep.mubr.msk.f32.mxu1 %vm1973_vm6, %v5381_v56 }
 0x76d   : > { %v18005_v58 = vpop.eup %18004  ;;  %15731 = vmatmul.mubr.msk.f32.vlgmr.msra.gmra.mrb[180].mxu1 %vm1973_vm6, %v5382_v0  ;;  %v5384_v44 = vmul.f32 %v18003_v45, %v20233_v42  ;;  %v20518_v0 = vld [vmem:[%s18563_s11 + $0xc0] sm:$0xff]  ;;  %v17194_v45 = vpack.c.bf16 %v13310_v60, %v13309_v21  ;;  %v20589_v21 = vld [vmem:[%s18563_s11 + $0xf8] sm:$0xff] }
 0x76e   : > { %v5383_v37 = vmul.f32 %v18005_v58, %v20235_v8  ;;  %v13312_v58 = vld [vmem:[%s22637_s3 + $0x98] sm:$0xff] }
 0x770   : > { %v18007_v43 = vpop.eup %18006  ;;  %15733 = vmatprep.mubr.msk.f32.mxu1 %vm1973_vm6, %v5383_v37 }
 0x771   : > { %v18009_v53 = vpop.eup %18008  ;;  %15734 = vmatmul.mubr.msk.f32.gmra.mrb[182].mxu1 %vm1973_vm6, %v5384_v44  ;;  %v5386_v54 = vmul.f32 %v18007_v43, %v20241_v26  ;;  %v13270_v26 = vld [vmem:[%s22636_s2 + $0x88] sm:$0xff]  ;;  %v13273_v43 = vld [vmem:[%s22636_s2 + $0xa0] sm:$0xff] }
 0x772   : > { %v5385_v49 = vmul.f32 %v18009_v53, %v20243_v28  ;;  %15818 = vmatprep.mubr.msk.f32.mxu1 %vm312_vm0, %v20343_v40  ;;  %v13269_v28 = vld [vmem:[%s22636_s2 + $0x80] sm:$0xff]  ;;  %v13274_v53 = vld [vmem:[%s22636_s2 + $0xa8] sm:$0xff] }
 0x773   : > { %v20360_v9 = vpack.c.bf16 %v13270_v26, %v13269_v28  ;;  %v17186_v26 = vpack.c.bf16 %v13274_v53, %v13273_v43 }
 0x774   : > { %v18011_v51 = vpop.eup %18010  ;;  %15744 = vmatprep.mubr.msk.f32.mxu0 %vm1973_vm6, %v5385_v49  ;;  %v17198_v49 = vpack.c.bf16 %v13312_v58, %v13311_v48 }
 0x775   : > { %v18013_v8 = vpop.eup %18012  ;;  %15745 = vmatmul.mubr.msk.f32.vlgmr.msra.gmra.mrb[164].mxu0 %vm1973_vm6, %v5386_v54  ;;  %v5388_v5 = vmul.f32 %v18011_v51, %v20249_v10  ;;  %v13229_v10 = vld [vmem:[%s22635_s1 + $0x80] sm:$0xff]  ;;  %v20534_v54 = vld [vmem:[%s18563_s11 + $0xc8] sm:$0xff] }
 0x776   : > { %v5387_v42 = vmul.f32 %v18013_v8, %v20251_v16  ;;  %17161 = vmatpush3.bf16.msra.mxu0 %v17158_v39  ;;  %v13230_v16 = vld [vmem:[%s22635_s1 + $0x88] sm:$0xff]  ;;  %v13272_v39 = vld [vmem:[%s22636_s2 + $0x98] sm:$0xff]  ;;  %v13313_v51 = vld [vmem:[%s22637_s3 + $0xa0] sm:$0xff] }
 0x777   : > { %17179 = vmatprep.subr.bf16.mxu0 %v20360_v9  ;;  %v17162_v3 = vpack.c.bf16 %v13230_v16, %v13229_v10  ;;  %v17182_v44 = vpack.c.bf16 %v13272_v39, %v13271_v12  ;;  %v13314_v8 = vld [vmem:[%s22637_s3 + $0xa8] sm:$0xff]  ;;  %v13275_v10 = vld [vmem:[%s22636_s2 + $0xb0] sm:$0xff] }
 0x778   : > { %15747 = vmatprep.mubr.msk.f32.mxu0 %vm1973_vm6, %v5387_v42  ;;  %v17202_v16 = vpack.c.bf16 %v13314_v8, %v13313_v51  ;;  %v20582_v12 = vld [vmem:[%s18563_s11 + $0xf0] sm:$0xff] }
 0x779   : > { %15748 = vmatmul.mubr.msk.f32.gmra.mrb[166].mxu0 %vm1973_vm6, %v5388_v5  ;;  %17163 = vmatprep.subr.bf16.mxu1 %v17162_v3  ;;  %v20546_v5 = vld [vmem:[%s18563_s11 + $0xd0] sm:$0xff] }
 0x77a   : > { %17165 = vmatpush3.bf16.msra.mxu1 %v17162_v3  ;;  %v20559_v3 = vld [vmem:[%s18563_s11 + $0xd8] sm:$0xff] }
 0x77b   : > { %17167 = vmatprep.subr.bf16.mxu1 %v17166_v36 }
 0x77e   : > { %17169 = vmatpush3.bf16.msra.mxu1 %v17166_v36 }
 0x77f   : > { %17171 = vmatprep.subr.bf16.mxu1 %v17170_v11 }
 0x782   : > { %17173 = vmatpush3.bf16.msra.mxu1 %v17170_v11 }
 0x783   : > { %17175 = vmatprep.subr.bf16.mxu1 %v17174_v62 }
 0x786   : > { %17177 = vmatpush3.bf16.msra.mxu1 %v17174_v62 }
 0x787   : > { %17195 = vmatprep.subr.bf16.mxu1 %v17194_v45 }
 0x789   : > { %15819 = vmatmul.mubr.msk.f32.vlgmr.msra.gmra.mrb[184].mxu1 %vm312_vm0, %v20388_v61 }
 0x78a   : > { %15821 = vmatprep.mubr.msk.f32.mxu1 %vm312_vm0, %v20393_v25  ;;  %17197 = vmatpush3.bf16.msra.mxu1 %v17194_v45 }
 0x78b   : > { %17199 = vmatprep.subr.bf16.mxu1 %v17198_v49 }
 0x78d   : > { %15822 = vmatmul.mubr.msk.f32.gmra.mrb[186].mxu1 %vm312_vm0, %v20398_v27 }
 0x78e   : > { %15824 = vmatprep.mubr.msk.f32.mxu1 %vm312_vm0, %v20403_v19  ;;  %17201 = vmatpush3.bf16.msra.mxu1 %v17198_v49 }
 0x78f   : > { %17203 = vmatprep.subr.bf16.mxu1 %v17202_v16 }
 0x791   : > { %15825 = vmatmul.mubr.msk.f32.gmra.mrb[188].mxu1 %vm312_vm0, %v20408_v30 }
 0x792   : > { %15827 = vmatprep.mubr.msk.f32.mxu1 %vm312_vm0, %v20413_v57  ;;  %17205 = vmatpush3.bf16.msra.mxu1 %v17202_v16 }
 0x793   : > { %17207 = vmatprep.subr.bf16.mxu1 %v17206_v4 }
 0x795   : > { %15828 = vmatmul.mubr.msk.f32.gmra.mrb[190].mxu1 %vm312_vm0, %v20418_v31 }
 0x796   : > { %15830 = vmatprep.mubr.msk.f32.mxu1 %vm312_vm0, %v20423_v24  ;;  %17209 = vmatpush3.bf16.msra.mxu1 %v17206_v4 }
 0x799   : > { %15831 = vmatmul.mubr.msk.f32.gmra.mrb[192].mxu1 %vm312_vm0, %v20428_v33 }
 0x79a   : > { %15833 = vmatprep.mubr.msk.f32.mxu1 %vm312_vm0, %v20433_v23 }
 0x79d   : > { %15834 = vmatmul.mubr.msk.f32.gmra.mrb[194].mxu1 %vm312_vm0, %v20438_v35 }
 0x79e   : > { %15836 = vmatprep.mubr.msk.f32.mxu1 %vm312_vm0, %v20443_v29 }
 0x7a1   : > { %15837 = vmatmul.mubr.msk.f32.gmra.mrb[196].mxu1 %vm312_vm0, %v20448_v17 }
 0x7a2   : > { %15839 = vmatprep.mubr.msk.f32.mxu1 %vm312_vm0, %v20453_v34 }
 0x7a5   : > { %15840 = vmatmul.mubr.msk.f32.gmra.mrb[198].mxu1 %vm312_vm0, %v20458_v47 }
 0x7a6   : > { %15842 = vmatprep.mubr.msk.f32.mxu1 %vm312_vm0, %v20463_v32 }
 0x7a9   : > { %15843 = vmatmul.mubr.msk.f32.gmra.mrb[200].mxu1 %vm312_vm0, %v20468_v13 }
 0x7aa   : > { %15845 = vmatprep.mubr.msk.f32.mxu1 %vm312_vm0, %v20473_v38 }
 0x7ad   : > { %15846 = vmatmul.mubr.msk.f32.gmra.mrb[202].mxu1 %vm312_vm0, %v20478_v1 }
 0x7ae   : > { %15848 = vmatprep.mubr.msk.f32.mxu1 %vm312_vm0, %v20483_v52 }
 0x7b1   : > { %15849 = vmatmul.mubr.msk.f32.gmra.mrb[204].mxu1 %vm312_vm0, %v20488_v59 }
 0x7b2   : > { %15851 = vmatprep.mubr.msk.f32.mxu1 %vm312_vm0, %v20493_v63 }
 0x7b5   : > { %15852 = vmatmul.mubr.msk.f32.gmra.mrb[206].mxu1 %vm312_vm0, %v20504_v2 }
 0x7b6   : > { %15854 = vmatprep.mubr.msk.f32.mxu1 %vm312_vm0, %v20518_v0 }
 0x7b9   : > { %15855 = vmatmul.mubr.msk.f32.gmra.mrb[208].mxu1 %vm312_vm0, %v20534_v54 }
 0x7ba   : > { %15857 = vmatprep.mubr.msk.f32.mxu1 %vm312_vm0, %v20546_v5 }
 0x7bd   : > { %15858 = vmatmul.mubr.msk.f32.gmra.mrb[210].mxu1 %vm312_vm0, %v20559_v3 }
 0x7be   : > { %15860 = vmatprep.mubr.msk.f32.mxu1 %vm312_vm0, %v20570_v46 }
 0x7c1   : > { %15861 = vmatmul.mubr.msk.f32.gmra.mrb[212].mxu1 %vm312_vm0, %v20577_v7 }
 0x7c2   : > { %15863 = vmatprep.mubr.msk.f32.mxu1 %vm312_vm0, %v20582_v12 }
 0x7c5   : > { %15864 = vmatmul.mubr.msk.f32.gmra.mrb[214].mxu1 %vm312_vm0, %v20589_v21 }
 0x7c6   : > { %15946 = vmatprep.mubr.msk.f32.mxu1 %vm312_vm0, %v20343_v40 }
 0x7c9   : > { %15947 = vmatmul.mubr.msk.f32.vlgmr.msra.gmra.mrb[216].mxu1 %vm312_vm0, %v20388_v61 }
 0x7ca   : > { %15949 = vmatprep.mubr.msk.f32.mxu1 %vm312_vm0, %v20393_v25 }
 0x7cd   : > { %15950 = vmatmul.mubr.msk.f32.gmra.mrb[218].mxu1 %vm312_vm0, %v20398_v27 }
 0x7ce   : > { %15952 = vmatprep.mubr.msk.f32.mxu1 %vm312_vm0, %v20403_v19 }
 0x7d1   : > { %15953 = vmatmul.mubr.msk.f32.gmra.mrb[220].mxu1 %vm312_vm0, %v20408_v30 }
 0x7d2   : > { %15955 = vmatprep.mubr.msk.f32.mxu1 %vm312_vm0, %v20413_v57 }
 0x7d5   : > { %15956 = vmatmul.mubr.msk.f32.gmra.mrb[222].mxu1 %vm312_vm0, %v20418_v31 }
 0x7d6   : > { %15958 = vmatprep.mubr.msk.f32.mxu1 %vm312_vm0, %v20423_v24 }
 0x7d9   : > { %15959 = vmatmul.mubr.msk.f32.gmra.mrb[224].mxu1 %vm312_vm0, %v20428_v33 }
 0x7da   : > { %15961 = vmatprep.mubr.msk.f32.mxu1 %vm312_vm0, %v20433_v23 }
 0x7dd   : > { %15962 = vmatmul.mubr.msk.f32.gmra.mrb[226].mxu1 %vm312_vm0, %v20438_v35 }
 0x7de   : > { %15964 = vmatprep.mubr.msk.f32.mxu1 %vm312_vm0, %v20443_v29 }
 0x7e1   : > { %15965 = vmatmul.mubr.msk.f32.gmra.mrb[228].mxu1 %vm312_vm0, %v20448_v17 }
 0x7e2   : > { %15967 = vmatprep.mubr.msk.f32.mxu1 %vm312_vm0, %v20453_v34 }
 0x7e5   : > { %15968 = vmatmul.mubr.msk.f32.gmra.mrb[230].mxu1 %vm312_vm0, %v20458_v47 }
 0x7e6   : > { %15970 = vmatprep.mubr.msk.f32.mxu1 %vm312_vm0, %v20463_v32 }
 0x7e9   : > { %15971 = vmatmul.mubr.msk.f32.gmra.mrb[232].mxu1 %vm312_vm0, %v20468_v13 }
 0x7ea   : > { %15973 = vmatprep.mubr.msk.f32.mxu1 %vm312_vm0, %v20473_v38 }
 0x7ed   : > { %15974 = vmatmul.mubr.msk.f32.gmra.mrb[234].mxu1 %vm312_vm0, %v20478_v1 }
 0x7ee   : > { %15976 = vmatprep.mubr.msk.f32.mxu1 %vm312_vm0, %v20483_v52 }
 0x7f1   : > { %15977 = vmatmul.mubr.msk.f32.gmra.mrb[236].mxu1 %vm312_vm0, %v20488_v59 }
 0x7f2   : > { %15979 = vmatprep.mubr.msk.f32.mxu1 %vm312_vm0, %v20493_v63 }
 0x7f5   : > { %15980 = vmatmul.mubr.msk.f32.gmra.mrb[238].mxu1 %vm312_vm0, %v20504_v2 }
 0x7f6   : > { %15982 = vmatprep.mubr.msk.f32.mxu1 %vm312_vm0, %v20518_v0 }
 0x7f9   : > { %15983 = vmatmul.mubr.msk.f32.gmra.mrb[240].mxu1 %vm312_vm0, %v20534_v54 }
 0x7fa   : > { %15985 = vmatprep.mubr.msk.f32.mxu1 %vm312_vm0, %v20546_v5 }
 0x7fd   : > { %15986 = vmatmul.mubr.msk.f32.gmra.mrb[242].mxu1 %vm312_vm0, %v20559_v3 }
 0x7fe   : > { %15988 = vmatprep.mubr.msk.f32.mxu1 %vm312_vm0, %v20570_v46 }
 0x801   : > { %15989 = vmatmul.mubr.msk.f32.gmra.mrb[244].mxu1 %vm312_vm0, %v20577_v7 }
 0x802   : > { %15991 = vmatprep.mubr.msk.f32.mxu1 %vm312_vm0, %v20582_v12 }
 0x805   : > { %15992 = vmatmul.mubr.msk.f32.gmra.mrb[246].mxu1 %vm312_vm0, %v20589_v21 }
 0x810   : > { %v15648_v56 = vpop.f32.mrb[148].mxu0 }
 0x811   : > { %v5467_v37 = vpop.f32.mrb[149].mxu0 }
 0x812   : > { %15754 = vmatprep.mubr.msk.f32.mxu0 %vm1100_vm1, %v5467_v37 }
 0x813   : > { %15755 = vmatmul.mubr.msk.f32.vlgmr.msra.gmra.mrb[88].mxu0 %vm1100_vm1, %v15648_v56 }
 0x814   : > { %v15651_v42 = vpop.f32.mrb[150].mxu0  ;;  %17181 = vmatpush3.bf16.msra.mxu0 %v20360_v9  ;;  %v13276_v9 = vld [vmem:[%s22636_s2 + $0xb8] sm:$0xff] }
 0x815   : > { %v5477_v28 = vpop.f32.mrb[151].mxu0  ;;  %17183 = vmatprep.subr.bf16.mxu0 %v17182_v44  ;;  %v17190_v11 = vpack.c.bf16 %v13276_v9, %v13275_v10 }
 0x816   : > { %15757 = vmatprep.mubr.msk.f32.mxu0 %vm1100_vm1, %v5477_v28 }
 0x817   : > { %15758 = vmatmul.mubr.msk.f32.gmra.mrb[90].mxu0 %vm1100_vm1, %v15651_v42 }
 0x818   : > { %v15662_v36 = vpop.f32.mrb[152].mxu0  ;;  %17185 = vmatpush3.bf16.msra.mxu0 %v17182_v44 }
 0x819   : > { %v5564_v55 = vpop.f32.mrb[153].mxu0  ;;  %17187 = vmatprep.subr.bf16.mxu0 %v17186_v26 }
 0x81a   : > { %15760 = vmatprep.mubr.msk.f32.mxu0 %vm1100_vm1, %v5564_v55 }
 0x81b   : > { %15761 = vmatmul.mubr.msk.f32.gmra.mrb[92].mxu0 %vm1100_vm1, %v15662_v36 }
 0x81c   : > { %v15665_v62 = vpop.f32.mrb[154].mxu0  ;;  %17189 = vmatpush3.bf16.msra.mxu0 %v17186_v26 }
 0x81d   : > { %v5574_v39 = vpop.f32.mrb[155].mxu0  ;;  %17191 = vmatprep.subr.bf16.mxu0 %v17190_v11 }
 0x81e   : > { %15763 = vmatprep.mubr.msk.f32.mxu0 %vm1100_vm1, %v5574_v39 }
 0x81f   : > { %15764 = vmatmul.mubr.msk.f32.gmra.mrb[94].mxu0 %vm1100_vm1, %v15665_v62 }
 0x820   : > { %v15676_v60 = vpop.f32.mrb[172].mxu1  ;;  %17193 = vmatpush3.bf16.msra.mxu0 %v17190_v11 }
 0x821   : > { %v5661_v48 = vpop.f32.mrb[173].mxu1 }
 0x822   : > { %15766 = vmatprep.mubr.msk.f32.mxu0 %vm1100_vm1, %v5661_v48 }
 0x823   : > { %15767 = vmatmul.mubr.msk.f32.gmra.mrb[96].mxu0 %vm1100_vm1, %v15676_v60 }
 0x824   : > { %v15679_v56 = vpop.f32.mrb[174].mxu1 }
 0x825   : > { %v5671_v45 = vpop.f32.mrb[175].mxu1 }
 0x826   : > { %15769 = vmatprep.mubr.msk.f32.mxu0 %vm1100_vm1, %v5671_v45 }
 0x827   : > { %15770 = vmatmul.mubr.msk.f32.gmra.mrb[98].mxu0 %vm1100_vm1, %v15679_v56 }
 0x828   : > { %v15690_v58 = vpop.f32.mrb[156].mxu0 }
 0x829   : > { %v5758_v37 = vpop.f32.mrb[157].mxu0 }
 0x82a   : > { %15772 = vmatprep.mubr.msk.f32.mxu0 %vm1100_vm1, %v5758_v37 }
 0x82b   : > { %15773 = vmatmul.mubr.msk.f32.gmra.mrb[168].mxu0 %vm1100_vm1, %v15690_v58 }
 0x82c   : > { %v15693_v44 = vpop.f32.mrb[158].mxu0 }
 0x82d   : > { %v5768_v43 = vpop.f32.mrb[159].mxu0 }
 0x82e   : > { %15775 = vmatprep.mubr.msk.f32.mxu0 %vm1100_vm1, %v5768_v43 }
 0x82f   : > { %15776 = vmatmul.mubr.msk.f32.gmra.mrb[170].mxu0 %vm1100_vm1, %v15693_v44 }
 0x830   : > { %v15704_v53 = vpop.f32.mrb[176].mxu1 }
 0x831   : > { %v5855_v49 = vpop.f32.mrb[177].mxu1 }
 0x832   : > { %15778 = vmatprep.mubr.msk.f32.mxu0 %vm1100_vm1, %v5855_v49 }
 0x833   : > { %15779 = vmatmul.mubr.msk.f32.gmra.mrb[172].mxu0 %vm1100_vm1, %v15704_v53 }
 0x834   : > { %v15707_v51 = vpop.f32.mrb[178].mxu1 }
 0x835   : > { %v5865_v8 = vpop.f32.mrb[179].mxu1 }
 0x836   : > { %15781 = vmatprep.mubr.msk.f32.mxu0 %vm1100_vm1, %v5865_v8 }
 0x837   : > { %15782 = vmatmul.mubr.msk.f32.gmra.mrb[174].mxu0 %vm1100_vm1, %v15707_v51 }
 0x838   : > { %v15718_v42 = vpop.f32.mrb[160].mxu0 }
 0x839   : > { %v5952_v28 = vpop.f32.mrb[161].mxu0 }
 0x83a   : > { %15784 = vmatprep.mubr.msk.f32.mxu0 %vm1100_vm1, %v5952_v28 }
 0x83b   : > { %15785 = vmatmul.mubr.msk.f32.gmra.mrb[176].mxu0 %vm1100_vm1, %v15718_v42 }
 0x83c   : > { %v15721_v26 = vpop.f32.mrb[162].mxu0 }
 0x83d   : > { %v5962_v10 = vpop.f32.mrb[163].mxu0 }
 0x83e   : > { %15787 = vmatprep.mubr.msk.f32.mxu0 %vm1100_vm1, %v5962_v10 }
 0x83f   : > { %15788 = vmatmul.mubr.msk.f32.gmra.mrb[178].mxu0 %vm1100_vm1, %v15721_v26 }
 0x840   : > { %v15732_v9 = vpop.f32.mrb[180].mxu1 }
 0x841   : > { %v6049_v16 = vpop.f32.mrb[181].mxu1 }
 0x842   : > { %15790 = vmatprep.mubr.msk.f32.mxu0 %vm1100_vm1, %v6049_v16 }
 0x843   : > { %15791 = vmatmul.mubr.msk.f32.gmra.mrb[180].mxu0 %vm1100_vm1, %v15732_v9 }
 0x844   : > { %v15735_v50 = vpop.f32.mrb[182].mxu1 }
 0x845   : > { %v6059_v41 = vpop.f32.mrb[183].mxu1 }
 0x846   : > { %15793 = vmatprep.mubr.msk.f32.mxu0 %vm1100_vm1, %v6059_v41 }
 0x847   : > { %15794 = vmatmul.mubr.msk.f32.gmra.mrb[182].mxu0 %vm1100_vm1, %v15735_v50 }
 0x848   : > { %v15746_v36 = vpop.f32.mrb[164].mxu0 }
 0x849   : > { %v6146_v55 = vpop.f32.mrb[165].mxu0 }
 0x84a   : > { %15796 = vmatprep.mubr.msk.f32.mxu0 %vm1100_vm1, %v6146_v55 }
 0x84b   : > { %15797 = vmatmul.mubr.msk.f32.gmra.mrb[184].mxu0 %vm1100_vm1, %v15746_v36 }
 0x84c   : > { %v15749_v11 = vpop.f32.mrb[166].mxu0 }
 0x84d   : > { %v6156_v4 = vpop.f32.mrb[167].mxu0 }
 0x84e   : > { %15799 = vmatprep.mubr.msk.f32.mxu0 %vm1100_vm1, %v6156_v4 }
 0x84f   : > { %15800 = vmatmul.mubr.msk.f32.gmra.mrb[186].mxu0 %vm1100_vm1, %v15749_v11 }
 0x850   : > { %15882 = vmatprep.mubr.msk.f32.mxu0 %vm312_vm0, %v20343_v40 }
 0x853   : > { %15883 = vmatmul.mubr.msk.f32.vlgmr.msra.gmra.mrb[188].mxu0 %vm312_vm0, %v20388_v61 }
 0x854   : > { %15885 = vmatprep.mubr.msk.f32.mxu0 %vm312_vm0, %v20393_v25 }
 0x857   : > { %15886 = vmatmul.mubr.msk.f32.gmra.mrb[190].mxu0 %vm312_vm0, %v20398_v27 }
 0x858   : > { %15888 = vmatprep.mubr.msk.f32.mxu0 %vm312_vm0, %v20403_v19 }
 0x85b   : > { %15889 = vmatmul.mubr.msk.f32.gmra.mrb[192].mxu0 %vm312_vm0, %v20408_v30 }
 0x85c   : > { %15891 = vmatprep.mubr.msk.f32.mxu0 %vm312_vm0, %v20413_v57  ;;  %v20745_v40 = vpop.f32.mrb[184].mxu1 }
 0x85d   : > { %v6596_v61 = vpop.f32.mrb[185].mxu1 }
 0x85f   : > { %15892 = vmatmul.mubr.msk.f32.gmra.mrb[194].mxu0 %vm312_vm0, %v20418_v31 }
 0x860   : > { %15894 = vmatprep.mubr.msk.f32.mxu0 %vm312_vm0, %v20423_v24  ;;  %v20748_v25 = vpop.f32.mrb[186].mxu1 }
 0x861   : > { %v20750_v27 = vpop.f32.mrb[187].mxu1 }
 0x863   : > { %15895 = vmatmul.mubr.msk.f32.gmra.mrb[196].mxu0 %vm312_vm0, %v20428_v33 }
 0x864   : > { %15897 = vmatprep.mubr.msk.f32.mxu0 %vm312_vm0, %v20433_v23  ;;  %v20752_v19 = vpop.f32.mrb[188].mxu1 }
 0x865   : > { %v6616_v30 = vpop.f32.mrb[189].mxu1 }
 0x866   : > { %16016 = vmatprep.mubr.msk.f32.mxu1 %vm1100_vm1, %v6616_v30 }
 0x867   : > { %15898 = vmatmul.mubr.msk.f32.gmra.mrb[198].mxu0 %vm312_vm0, %v20438_v35 }
 0x868   : > { %15900 = vmatprep.mubr.msk.f32.mxu0 %vm312_vm0, %v20443_v29  ;;  %v20755_v57 = vpop.f32.mrb[190].mxu1 }
 0x869   : > { %v20757_v31 = vpop.f32.mrb[191].mxu1 }
 0x86b   : > { %15901 = vmatmul.mubr.msk.f32.gmra.mrb[200].mxu0 %vm312_vm0, %v20448_v17 }
 0x86c   : > { %15903 = vmatprep.mubr.msk.f32.mxu0 %vm312_vm0, %v20453_v34  ;;  %v20759_v24 = vpop.f32.mrb[192].mxu1 }
 0x86d   : > { %v20761_v33 = vpop.f32.mrb[193].mxu1 }
 0x86f   : > { %15904 = vmatmul.mubr.msk.f32.gmra.mrb[202].mxu0 %vm312_vm0, %v20458_v47 }
 0x870   : > { %15906 = vmatprep.mubr.msk.f32.mxu0 %vm312_vm0, %v20463_v32  ;;  %v20763_v23 = vpop.f32.mrb[194].mxu1 }
 0x871   : > { %v20765_v35 = vpop.f32.mrb[195].mxu1 }
 0x873   : > { %15907 = vmatmul.mubr.msk.f32.gmra.mrb[204].mxu0 %vm312_vm0, %v20468_v13 }
 0x874   : > { %15909 = vmatprep.mubr.msk.f32.mxu0 %vm312_vm0, %v20473_v38  ;;  %v20767_v29 = vpop.f32.mrb[196].mxu1 }
 0x875   : > { %v20769_v17 = vpop.f32.mrb[197].mxu1 }
 0x877   : > { %15910 = vmatmul.mubr.msk.f32.gmra.mrb[206].mxu0 %vm312_vm0, %v20478_v1 }
 0x878   : > { %15912 = vmatprep.mubr.msk.f32.mxu0 %vm312_vm0, %v20483_v52  ;;  %v20771_v34 = vpop.f32.mrb[198].mxu1 }
 0x879   : > { %v20773_v47 = vpop.f32.mrb[199].mxu1 }
 0x87b   : > { %15913 = vmatmul.mubr.msk.f32.gmra.mrb[208].mxu0 %vm312_vm0, %v20488_v59 }
 0x87c   : > { %15915 = vmatprep.mubr.msk.f32.mxu0 %vm312_vm0, %v20493_v63  ;;  %v20775_v32 = vpop.f32.mrb[200].mxu1 }
 0x87d   : > { %v20777_v13 = vpop.f32.mrb[201].mxu1 }
 0x87f   : > { %15916 = vmatmul.mubr.msk.f32.gmra.mrb[210].mxu0 %vm312_vm0, %v20504_v2 }
 0x880   : > { %15918 = vmatprep.mubr.msk.f32.mxu0 %vm312_vm0, %v20518_v0  ;;  %v20779_v38 = vpop.f32.mrb[202].mxu1 }
 0x881   : > { %v20781_v1 = vpop.f32.mrb[203].mxu1 }
 0x883   : > { %15919 = vmatmul.mubr.msk.f32.gmra.mrb[212].mxu0 %vm312_vm0, %v20534_v54 }
 0x884   : > { %15921 = vmatprep.mubr.msk.f32.mxu0 %vm312_vm0, %v20546_v5  ;;  %v20783_v52 = vpop.f32.mrb[204].mxu1 }
 0x885   : > { %v20785_v59 = vpop.f32.mrb[205].mxu1 }
 0x887   : > { %15922 = vmatmul.mubr.msk.f32.gmra.mrb[214].mxu0 %vm312_vm0, %v20559_v3 }
 0x888   : > { %15924 = vmatprep.mubr.msk.f32.mxu0 %vm312_vm0, %v20570_v46  ;;  %v20787_v63 = vpop.f32.mrb[206].mxu1 }
 0x889   : > { %v20789_v2 = vpop.f32.mrb[207].mxu1 }
 0x88b   : > { %15925 = vmatmul.mubr.msk.f32.gmra.mrb[216].mxu0 %vm312_vm0, %v20577_v7 }
 0x88c   : > { %15927 = vmatprep.mubr.msk.f32.mxu0 %vm312_vm0, %v20582_v12  ;;  %v20791_v0 = vpop.f32.mrb[208].mxu1 }
 0x88d   : > { %v20793_v54 = vpop.f32.mrb[209].mxu1 }
 0x88f   : > { %15928 = vmatmul.mubr.msk.f32.gmra.mrb[218].mxu0 %vm312_vm0, %v20589_v21 }
 0x890   : > { %16002 = vmatprep.mubr.msk.f32.mxu0 %vm1100_vm1, %v6596_v61  ;;  %v20795_v5 = vpop.f32.mrb[210].mxu1 }
 0x891   : > { %v20797_v3 = vpop.f32.mrb[211].mxu1 }
 0x894   : > { %v20799_v46 = vpop.f32.mrb[212].mxu1 }
 0x895   : > { %v20801_v7 = vpop.f32.mrb[213].mxu1 }
 0x898   : > { %v20803_v62 = vpop.f32.mrb[214].mxu1 }
 0x899   : > { %v20805_v12 = vpop.f32.mrb[215].mxu1 }
 0x89c   : > { %v15948_v39 = vpop.f32.mrb[216].mxu1 }
 0x89d   : > { %v7064_v21 = vpop.f32.mrb[217].mxu1 }
 0x89e   : > { %v20807_v60 = vpack.c.bf16 %v15948_v39, %v7064_v21 }
 0x8a0   : > { %v15951_v48 = vpop.f32.mrb[218].mxu1 }
 0x8a1   : > { %v7074_v56 = vpop.f32.mrb[219].mxu1 }
 0x8a2   : > { %v20809_v45 = vpack.c.bf16 %v15951_v48, %v7074_v56 }
 0x8a4   : > { %v15954_v58 = vpop.f32.mrb[220].mxu1 }
 0x8a5   : > { %v7084_v37 = vpop.f32.mrb[221].mxu1 }
 0x8a6   : > { %v20811_v44 = vpack.c.bf16 %v15954_v58, %v7084_v37 }
 0x8a8   : > { %v15957_v43 = vpop.f32.mrb[222].mxu1 }
 0x8a9   : > { %v7094_v53 = vpop.f32.mrb[223].mxu1 }
 0x8aa   : > { %v20813_v49 = vpack.c.bf16 %v15957_v43, %v7094_v53 }
 0x8ac   : > { %v15960_v51 = vpop.f32.mrb[224].mxu1 }
 0x8ad   : > { %v7104_v8 = vpop.f32.mrb[225].mxu1 }
 0x8ae   : > { %v20815_v42 = vpack.c.bf16 %v15960_v51, %v7104_v8 }
 0x8b0   : > { %v15963_v28 = vpop.f32.mrb[226].mxu1 }
 0x8b1   : > { %v7114_v26 = vpop.f32.mrb[227].mxu1 }
 0x8b2   : > { %v20817_v10 = vpack.c.bf16 %v15963_v28, %v7114_v26 }
 0x8b4   : > { %v15966_v9 = vpop.f32.mrb[228].mxu1 }
 0x8b5   : > { %v7124_v16 = vpop.f32.mrb[229].mxu1 }
 0x8b6   : > { %v20819_v50 = vpack.c.bf16 %v15966_v9, %v7124_v16 }
 0x8b8   : > { %v15969_v41 = vpop.f32.mrb[230].mxu1 }
 0x8b9   : > { %v7134_v36 = vpop.f32.mrb[231].mxu1 }
 0x8ba   : > { %v20821_v55 = vpack.c.bf16 %v15969_v41, %v7134_v36 }
 0x8bc   : > { %v15972_v11 = vpop.f32.mrb[232].mxu1 }
 0x8bd   : > { %v7144_v4 = vpop.f32.mrb[233].mxu1 }
 0x8be   : > { %v20823_v61 = vpack.c.bf16 %v15972_v11, %v7144_v4 }
 0x8c0   : > { %v15975_v30 = vpop.f32.mrb[234].mxu1 }
 0x8c1   : > { %v7154_v39 = vpop.f32.mrb[235].mxu1 }
 0x8c2   : > { %v20825_v21 = vpack.c.bf16 %v15975_v30, %v7154_v39 }
 0x8c4   : > { %v15978_v48 = vpop.f32.mrb[236].mxu1 }
 0x8c5   : > { %v7164_v56 = vpop.f32.mrb[237].mxu1 }
 0x8c6   : > { %v20827_v58 = vpack.c.bf16 %v15978_v48, %v7164_v56 }
 0x8c8   : > { %v15981_v37 = vpop.f32.mrb[238].mxu1 }
 0x8c9   : > { %v7174_v43 = vpop.f32.mrb[239].mxu1 }
 0x8ca   : > { %v20829_v53 = vpack.c.bf16 %v15981_v37, %v7174_v43 }
 0x8cc   : > { %v15984_v28 = vpop.f32.mrb[240].mxu1 }
 0x8cd   : > { %v7184_v9 = vpop.f32.mrb[241].mxu1 }
 0x8ce   : > { %v20831_v16 = vpack.c.bf16 %v15984_v28, %v7184_v9 }
 0x8d0   : > { %v15987_v11 = vpop.f32.mrb[242].mxu1 }
 0x8d1   : > { %v7194_v30 = vpop.f32.mrb[243].mxu1 }
 0x8d2   : > { %v20837_v39 = vpack.c.bf16 %v15987_v11, %v7194_v30 }
 0x8d4   : > { %v15990_v37 = vpop.f32.mrb[244].mxu1 }
 0x926   : > { %v15884_v51 = vpop.f32.mrb[188].mxu0 }
 0x927   : > { %v6830_v8 = vpop.f32.mrb[189].mxu0 }
 0x928   : > { %v17210_v26 = vpack.c.bf16 %v15884_v51, %v6830_v8  ;;  %v7204_v51 = vpop.f32.mrb[245].mxu1 }
 0x929   : > { %v20841_v8 = vpack.c.bf16 %v15990_v37, %v7204_v51 }
 0x92a   : > { %v15887_v41 = vpop.f32.mrb[190].mxu0  ;;  %17212 = vmatprep.subr.msk.bf16.mxu0 %vm18820_vm2, %v17210_v26 }
 0x92b   : > { %v6840_v36 = vpop.f32.mrb[191].mxu0  ;;  %17215 = vmatpush3.bf16.xpose.msk.msra.mxu0 %vm18820_vm2, %v17210_v26 }
 0x92c   : > { %v17216_v4 = vpack.c.bf16 %v15887_v41, %v6840_v36 }
 0x92e   : > { %v15890_v48 = vpop.f32.mrb[192].mxu0  ;;  %17218 = vmatprep.subr.msk.bf16.mxu0 %vm18820_vm2, %v17216_v4 }
 0x92f   : > { %v6850_v56 = vpop.f32.mrb[193].mxu0 }
 0x930   : > { %v17222_v43 = vpack.c.bf16 %v15890_v48, %v6850_v56 }
 0x932   : > { %v15893_v28 = vpop.f32.mrb[194].mxu0  ;;  %17224 = vmatprep.subr.msk.bf16.mxu1 %vm18820_vm2, %v17222_v43 }
 0x933   : > { %v6860_v26 = vpop.f32.mrb[195].mxu0  ;;  %17221 = vmatpush3.bf16.xpose.msk.msra.mxu0 %vm18820_vm2, %v17216_v4  ;;  %17227 = vmatpush3.bf16.xpose.msk.msra.mxu1 %vm18820_vm2, %v17222_v43 }
 0x934   : > { %v17228_v9 = vpack.c.bf16 %v15893_v28, %v6860_v26 }
 0x936   : > { %v15896_v41 = vpop.f32.mrb[196].mxu0  ;;  %17230 = vmatprep.subr.msk.bf16.mxu1 %vm18820_vm2, %v17228_v9 }
 0x937   : > { %v6870_v36 = vpop.f32.mrb[197].mxu0 }
 0x938   : > { %v17234_v11 = vpack.c.bf16 %v15896_v41, %v6870_v36 }
 0x93a   : > { %v15899_v30 = vpop.f32.mrb[198].mxu0  ;;  %16003 = vmatmul.mubr.msk.f32.vlgmr.msra.gmra.mrb[220].mxu0 %vm1100_vm1, %v20745_v40  ;;  %17236 = vmatprep.subr.msk.bf16.mxu0 %vm18820_vm2, %v17234_v11 }
 0x93b   : > { %v6880_v48 = vpop.f32.mrb[199].mxu0  ;;  %17233 = vmatpush3.bf16.xpose.msk.msra.mxu1 %vm18820_vm2, %v17228_v9  ;;  %17239 = vmatpush3.bf16.xpose.msk.msra.mxu0 %vm18820_vm2, %v17234_v11 }
 0x93c   : > { %v17240_v4 = vpack.c.bf16 %v15899_v30, %v6880_v48  ;;  %16005 = vmatprep.mubr.msk.f32.mxu0 %vm1100_vm1, %v20750_v27 }
 0x93e   : > { %v15902_v56 = vpop.f32.mrb[200].mxu0  ;;  %16006 = vmatmul.mubr.msk.f32.gmra.mrb[222].mxu0 %vm1100_vm1, %v20748_v25  ;;  %17242 = vmatprep.subr.msk.bf16.mxu0 %vm18820_vm2, %v17240_v4 }
 0x93f   : > { %v6890_v40 = vpop.f32.mrb[201].mxu0  ;;  %16030 = vmatprep.mubr.msk.f32.mxu0 %vm1100_vm1, %v20761_v33 }
 0x940   : > { %v17246_v37 = vpack.c.bf16 %v15902_v56, %v6890_v40 }
 0x942   : > { %v15905_v43 = vpop.f32.mrb[202].mxu0  ;;  %16017 = vmatmul.mubr.msk.f32.vlgmr.msra.gmra.mrb[248].mxu1 %vm1100_vm1, %v20752_v19  ;;  %17248 = vmatprep.subr.msk.bf16.mxu1 %vm18820_vm2, %v17246_v37 }
 0x943   : > { %v6900_v27 = vpop.f32.mrb[203].mxu0  ;;  %17245 = vmatpush3.bf16.xpose.msk.msra.mxu0 %vm18820_vm2, %v17240_v4  ;;  %17251 = vmatpush3.bf16.xpose.msk.msra.mxu1 %vm18820_vm2, %v17246_v37 }
 0x944   : > { %v17252_v25 = vpack.c.bf16 %v15905_v43, %v6900_v27  ;;  %16019 = vmatprep.mubr.msk.f32.mxu1 %vm1100_vm1, %v20757_v31 }
 0x946   : > { %v15908_v33 = vpop.f32.mrb[204].mxu0  ;;  %16020 = vmatmul.mubr.msk.f32.gmra.mrb[250].mxu1 %vm1100_vm1, %v20755_v57  ;;  %17254 = vmatprep.subr.msk.bf16.mxu1 %vm18820_vm2, %v17252_v25 }
 0x947   : > { %v6910_v19 = vpop.f32.mrb[205].mxu0  ;;  %16044 = vmatprep.mubr.msk.f32.mxu1 %vm1100_vm1, %v20769_v17 }
 0x948   : > { %v17258_v51 = vpack.c.bf16 %v15908_v33, %v6910_v19 }
 0x94a   : > { %v15911_v28 = vpop.f32.mrb[206].mxu0  ;;  %16031 = vmatmul.mubr.msk.f32.vlgmr.msra.gmra.mrb[224].mxu0 %vm1100_vm1, %v20759_v24  ;;  %17260 = vmatprep.subr.msk.bf16.mxu0 %vm18820_vm2, %v17258_v51 }
 0x94b   : > { %v6920_v31 = vpop.f32.mrb[207].mxu0  ;;  %17257 = vmatpush3.bf16.xpose.msk.msra.mxu1 %vm18820_vm2, %v17252_v25  ;;  %17263 = vmatpush3.bf16.xpose.msk.msra.mxu0 %vm18820_vm2, %v17258_v51 }
 0x94c   : > { %v17264_v57 = vpack.c.bf16 %v15911_v28, %v6920_v31  ;;  %16033 = vmatprep.mubr.msk.f32.mxu0 %vm1100_vm1, %v20765_v35 }
 0x94e   : > { %v15914_v17 = vpop.f32.mrb[208].mxu0  ;;  %16034 = vmatmul.mubr.msk.f32.gmra.mrb[226].mxu0 %vm1100_vm1, %v20763_v23  ;;  %17266 = vmatprep.subr.msk.bf16.mxu0 %vm18820_vm2, %v17264_v57 }
 0x94f   : > { %v6930_v24 = vpop.f32.mrb[209].mxu0  ;;  %16058 = vmatprep.mubr.msk.f32.mxu0 %vm1100_vm1, %v20777_v13 }
 0x950   : > { %v17270_v26 = vpack.c.bf16 %v15914_v17, %v6930_v24 }
 0x952   : > { %v15917_v9 = vpop.f32.mrb[210].mxu0  ;;  %16045 = vmatmul.mubr.msk.f32.vlgmr.msra.gmra.mrb[252].mxu1 %vm1100_vm1, %v20767_v29  ;;  %17272 = vmatprep.subr.msk.bf16.mxu1 %vm18820_vm2, %v17270_v26 }
 0x953   : > { %v6940_v35 = vpop.f32.mrb[211].mxu0  ;;  %17269 = vmatpush3.bf16.xpose.msk.msra.mxu0 %vm18820_vm2, %v17264_v57  ;;  %17275 = vmatpush3.bf16.xpose.msk.msra.mxu1 %vm18820_vm2, %v17270_v26 }
 0x954   : > { %v17276_v23 = vpack.c.bf16 %v15917_v9, %v6940_v35  ;;  %16047 = vmatprep.mubr.msk.f32.mxu1 %vm1100_vm1, %v20773_v47 }
 0x956   : > { %v15920_v13 = vpop.f32.mrb[212].mxu0  ;;  %16048 = vmatmul.mubr.msk.f32.gmra.mrb[254].mxu1 %vm1100_vm1, %v20771_v34  ;;  %17278 = vmatprep.subr.msk.bf16.mxu1 %vm18820_vm2, %v17276_v23 }
 0x957   : > { %v6950_v29 = vpop.f32.mrb[213].mxu0  ;;  %16072 = vmatprep.mubr.msk.f32.mxu1 %vm1100_vm1, %v20785_v59 }
 0x958   : > { %v17282_v41 = vpack.c.bf16 %v15920_v13, %v6950_v29 }
 0x95a   : > { %v15923_v36 = vpop.f32.mrb[214].mxu0  ;;  %16059 = vmatmul.mubr.msk.f32.vlgmr.msra.gmra.mrb[228].mxu0 %vm1100_vm1, %v20775_v32  ;;  %17284 = vmatprep.subr.msk.bf16.mxu0 %vm18820_vm2, %v17282_v41 }
 0x95b   : > { %v6960_v47 = vpop.f32.mrb[215].mxu0  ;;  %17281 = vmatpush3.bf16.xpose.msk.msra.mxu1 %vm18820_vm2, %v17276_v23  ;;  %17287 = vmatpush3.bf16.xpose.msk.msra.mxu0 %vm18820_vm2, %v17282_v41 }
 0x95c   : > { %v17288_v34 = vpack.c.bf16 %v15923_v36, %v6960_v47  ;;  %16061 = vmatprep.mubr.msk.f32.mxu0 %vm1100_vm1, %v20781_v1 }
 0x95e   : > { %v15926_v59 = vpop.f32.mrb[216].mxu0  ;;  %16062 = vmatmul.mubr.msk.f32.gmra.mrb[230].mxu0 %vm1100_vm1, %v20779_v38  ;;  %17290 = vmatprep.subr.msk.bf16.mxu0 %vm18820_vm2, %v17288_v34 }
 0x95f   : > { %v6970_v32 = vpop.f32.mrb[217].mxu0  ;;  %16086 = vmatprep.mubr.msk.f32.mxu0 %vm1100_vm1, %v20793_v54 }
 0x960   : > { %v17294_v11 = vpack.c.bf16 %v15926_v59, %v6970_v32 }
 0x962   : > { %16073 = vmatmul.mubr.msk.f32.vlgmr.msra.gmra.mrb[0].mxu1 %vm1100_vm1, %v20783_v52  ;;  %17296 = vmatprep.subr.msk.bf16.mxu1 %vm18820_vm2, %v17294_v11  ;;  %v15929_v30 = vpop.f32.mrb[218].mxu0  ;;  %v15993_v52 = vpop.f32.mrb[246].mxu1 }
 0x963   : > { %17293 = vmatpush3.bf16.xpose.msk.msra.mxu0 %vm18820_vm2, %v17288_v34  ;;  %17299 = vmatpush3.bf16.xpose.msk.msra.mxu1 %vm18820_vm2, %v17294_v11  ;;  %v6980_v38 = vpop.f32.mrb[219].mxu0 }
 0x964   : > { %16075 = vmatprep.mubr.msk.f32.mxu1 %vm1100_vm1, %v20789_v2  ;;  %v17300_v1 = vpack.c.bf16 %v15929_v30, %v6980_v38  ;;  %17307 = vmatprep.subr.bf16.mxu0 %v20807_v60 }
 0x966   : > { %16076 = vmatmul.mubr.msk.f32.gmra.mrb[2].mxu1 %vm1100_vm1, %v20787_v63  ;;  %17302 = vmatprep.subr.msk.bf16.mxu1 %vm18820_vm2, %v17300_v1  ;;  %v7214_v63 = vpop.f32.mrb[247].mxu1 }
 0x967   : > { %16100 = vmatprep.mubr.msk.f32.mxu1 %vm1100_vm1, %v20801_v7  ;;  %v20971_v2 = vpack.c.bf16 %v15993_v52, %v7214_v63 }
 0x96a   : > { %16087 = vmatmul.mubr.msk.f32.vlgmr.msra.gmra.mrb[232].mxu0 %vm1100_vm1, %v20791_v0 }
 0x96b   : > { %17305 = vmatpush3.bf16.xpose.msk.msra.mxu1 %vm18820_vm2, %v17300_v1  ;;  %16089 = vmatprep.mubr.msk.f32.mxu0 %vm1100_vm1, %v20797_v3 }
 0x96c   : > { %17309 = vmatpush3.bf16.msra.mxu0 %v20807_v60  ;;  %17315 = vmatprep.subr.bf16.mxu1 %v20811_v44 }
 0x96d   : > { %17311 = vmatprep.subr.bf16.mxu0 %v20809_v45 }
 0x96e   : > { %16090 = vmatmul.mubr.msk.f32.gmra.mrb[234].mxu0 %vm1100_vm1, %v20795_v5 }
 0x970   : > { %17313 = vmatpush3.bf16.msra.mxu0 %v20809_v45 }
 0x971   : > { %17323 = vmatprep.subr.bf16.mxu0 %v20815_v42 }
 0x972   : > { %16101 = vmatmul.mubr.msk.f32.vlgmr.msra.gmra.mrb[4].mxu1 %vm1100_vm1, %v20799_v46 }
 0x973   : > { %16103 = vmatprep.mubr.msk.f32.mxu1 %vm1100_vm1, %v20805_v12  ;;  %17317 = vmatpush3.bf16.msra.mxu1 %v20811_v44 }
 0x974   : > { %17319 = vmatprep.subr.bf16.mxu1 %v20813_v49 }
 0x976   : > { %16104 = vmatmul.mubr.msk.f32.gmra.mrb[6].mxu1 %vm1100_vm1, %v20803_v62 }
 0x977   : > { %17321 = vmatpush3.bf16.msra.mxu1 %v20813_v49 }
 0x978   : > { %17331 = vmatprep.subr.bf16.mxu1 %v20819_v50 }
 0xa0d   : > { %v16004_v0 = vpop.f32.mrb[220].mxu0 }
 0xa0e   : > { %v20974_v54 = vadd.f32 %v16004_v0, %v18965_v14  ;;  %v7313_v5 = vpop.f32.mrb[221].mxu0 }
 0xa0f   : > { %v20977_v3 = vadd.f32 %v7313_v5, %v18967_v15 }
 0xa10   : > { %v8098_v46 = vsel %vm1973_vm6, %v20974_v54, -inf }
 0xa11   : > { %8099 = vmax.xlane.f32.xlu1 %v8098_v46  ;;  %v16007_v7 = vpop.f32.mrb[222].mxu0  ;;  %v8095_v62 = vsel %vm1973_vm6, %v20977_v3, -inf }
 0xa12   : > { %v20984_v12 = vadd.f32 %v16007_v7, %v18975_v20  ;;  %v7323_v60 = vpop.f32.mrb[223].mxu0  ;;  %8096 = vmax.xlane.f32.xlu0 %v8095_v62 }
 0xa13   : > { %v20987_v45 = vadd.f32 %v7323_v60, %v18979_v22 }
 0xa14   : > { %v8104_v44 = vsel %vm1973_vm6, %v20984_v12, -inf }
 0xa15   : > { %v16018_v49 = vpop.f32.mrb[248].mxu1  ;;  %8105 = vmax.xlane.f32.xlu1 %v8104_v44  ;;  %v8101_v48 = vsel %vm1973_vm6, %v20987_v45, -inf }
 0xa16   : > { %v20994_v4 = vadd.f32 %v16018_v49, %v18965_v14  ;;  %v7422_v56 = vpop.f32.mrb[249].mxu1  ;;  %8102 = vmax.xlane.f32.xlu0 %v8101_v48 }
 0xa17   : > { %v20997_v40 = vadd.f32 %v7422_v56, %v18967_v15 }
 0xa18   : > { %v8110_v37 = vsel %vm1973_vm6, %v20994_v4, -inf }
 0xa19   : > { %v16021_v43 = vpop.f32.mrb[250].mxu1  ;;  %8111 = vmax.xlane.f32.xlu1 %v8110_v37  ;;  %v8107_v27 = vsel %vm1973_vm6, %v20997_v40, -inf }
 0xa1a   : > { %v21004_v25 = vadd.f32 %v16021_v43, %v18975_v20  ;;  %v7432_v33 = vpop.f32.mrb[251].mxu1  ;;  %8108 = vmax.xlane.f32.xlu0 %v8107_v27 }
 0xa1b   : > { %v21007_v19 = vadd.f32 %v7432_v33, %v18979_v22 }
 0xa1c   : > { %v8116_v51 = vsel %vm1973_vm6, %v21004_v25, -inf }
 0xa1d   : > { %8117 = vmax.xlane.f32.xlu1 %v8116_v51  ;;  %v16032_v28 = vpop.f32.mrb[224].mxu0  ;;  %v8113_v31 = vsel %vm1973_vm6, %v21007_v19, -inf }
 0xa1e   : > { %v21014_v57 = vadd.f32 %v16032_v28, %v18965_v14  ;;  %v7531_v17 = vpop.f32.mrb[225].mxu0  ;;  %8114 = vmax.xlane.f32.xlu0 %v8113_v31 }
 0xa1f   : > { %v21017_v24 = vadd.f32 %v7531_v17, %v18967_v15 }
 0xa20   : > { %v8122_v26 = vsel %vm1973_vm6, %v21014_v57, -inf }
 0xa21   : > { %8123 = vmax.xlane.f32.xlu1 %v8122_v26  ;;  %v16035_v9 = vpop.f32.mrb[226].mxu0  ;;  %v8119_v35 = vsel %vm1973_vm6, %v21017_v24, -inf }
 0xa22   : > { %v21024_v23 = vadd.f32 %v16035_v9, %v18975_v20  ;;  %v7541_v13 = vpop.f32.mrb[227].mxu0  ;;  %8120 = vmax.xlane.f32.xlu0 %v8119_v35 }
 0xa23   : > { %v21027_v29 = vadd.f32 %v7541_v13, %v18979_v22 }
 0xa24   : > { %v8128_v41 = vsel %vm1973_vm6, %v21024_v23, -inf }
 0xa25   : > { %v16046_v36 = vpop.f32.mrb[252].mxu1  ;;  %8129 = vmax.xlane.f32.xlu1 %v8128_v41  ;;  %v8125_v47 = vsel %vm1973_vm6, %v21027_v29, -inf }
 0xa26   : > { %v21034_v34 = vadd.f32 %v16046_v36, %v18965_v14  ;;  %v7640_v59 = vpop.f32.mrb[253].mxu1  ;;  %8126 = vmax.xlane.f32.xlu0 %v8125_v47 }
 0xa27   : > { %v21037_v32 = vadd.f32 %v7640_v59, %v18967_v15 }
 0xa28   : > { %v8134_v11 = vsel %vm1973_vm6, %v21034_v34, -inf }
 0xa29   : > { %v16049_v30 = vpop.f32.mrb[254].mxu1  ;;  %8135 = vmax.xlane.f32.xlu1 %v8134_v11  ;;  %v8131_v38 = vsel %vm1973_vm6, %v21037_v32, -inf }
 0xa2a   : > { %v21044_v1 = vadd.f32 %v16049_v30, %v18975_v20  ;;  %v7650_v52 = vpop.f32.mrb[255].mxu1  ;;  %8132 = vmax.xlane.f32.xlu0 %v8131_v38 }
 0xa2b   : > { %v21047_v63 = vadd.f32 %v7650_v52, %v18979_v22 }
 0xa2c   : > { %v8140_v0 = vsel %vm1973_vm6, %v21044_v1, -inf }
 0xa2d   : > { %8141 = vmax.xlane.f32.xlu1 %v8140_v0  ;;  %v16060_v5 = vpop.f32.mrb[228].mxu0  ;;  %v8137_v46 = vsel %vm1973_vm6, %v21047_v63, -inf }
 0xa2e   : > { %v21054_v7 = vadd.f32 %v16060_v5, %v18965_v14  ;;  %v7749_v62 = vpop.f32.mrb[229].mxu0  ;;  %8138 = vmax.xlane.f32.xlu0 %v8137_v46 }
 0xa2f   : > { %v21057_v60 = vadd.f32 %v7749_v62, %v18967_v15 }
 0xa30   : > { %v8146_v44 = vsel %vm1973_vm6, %v21054_v7, -inf }
 0xa31   : > { %8147 = vmax.xlane.f32.xlu1 %v8146_v44  ;;  %v16063_v49 = vpop.f32.mrb[230].mxu0  ;;  %v8143_v48 = vsel %vm1973_vm6, %v21057_v60, -inf }
 0xa32   : > { %v21064_v56 = vadd.f32 %v16063_v49, %v18975_v20  ;;  %v7759_v37 = vpop.f32.mrb[231].mxu0  ;;  %8144 = vmax.xlane.f32.xlu0 %v8143_v48 }
 0xa33   : > { %v21067_v43 = vadd.f32 %v7759_v37, %v18979_v22 }
 0xa34   : > { %v8152_v27 = vsel %vm1973_vm6, %v21064_v56, -inf }
 0xa35   : > { %v16074_v33 = vpop.f32.mrb[0].mxu1  ;;  %8153 = vmax.xlane.f32.xlu1 %v8152_v27  ;;  %v8149_v51 = vsel %vm1973_vm6, %v21067_v43, -inf }
 0xa36   : > { %v21074_v28 = vadd.f32 %v16074_v33, %v18965_v14  ;;  %v7858_v31 = vpop.f32.mrb[1].mxu1  ;;  %8150 = vmax.xlane.f32.xlu0 %v8149_v51 }
 0xa37   : > { %v21077_v17 = vadd.f32 %v7858_v31, %v18967_v15 }
 0xa38   : > { %v8158_v26 = vsel %vm1973_vm6, %v21074_v28, -inf }
 0xa39   : > { %v16077_v9 = vpop.f32.mrb[2].mxu1  ;;  %8159 = vmax.xlane.f32.xlu1 %v8158_v26  ;;  %v8155_v35 = vsel %vm1973_vm6, %v21077_v17, -inf }
 0xa3a   : > { %v21084_v13 = vadd.f32 %v16077_v9, %v18975_v20  ;;  %v7868_v41 = vpop.f32.mrb[3].mxu1  ;;  %8156 = vmax.xlane.f32.xlu0 %v8155_v35 }
 0xa3b   : > { %v21087_v36 = vadd.f32 %v7868_v41, %v18979_v22 }
 0xa3c   : > { %v8164_v47 = vsel %vm1973_vm6, %v21084_v13, -inf }
 0xa3d   : > { %8165 = vmax.xlane.f32.xlu1 %v8164_v47  ;;  %v16088_v59 = vpop.f32.mrb[232].mxu0  ;;  %v8161_v11 = vsel %vm1973_vm6, %v21087_v36, -inf }
 0xa3e   : > { %v21094_v30 = vadd.f32 %v16088_v59, %v18965_v14  ;;  %v7967_v38 = vpop.f32.mrb[233].mxu0  ;;  %8162 = vmax.xlane.f32.xlu0 %v8161_v11 }
 0xa3f   : > { %v21097_v52 = vadd.f32 %v7967_v38, %v18967_v15 }
 0xa40   : > { %v8170_v0 = vsel %vm1973_vm6, %v21094_v30, -inf }
 0xa41   : > { %8171 = vmax.xlane.f32.xlu1 %v8170_v0  ;;  %v16091_v5 = vpop.f32.mrb[234].mxu0  ;;  %v8167_v46 = vsel %vm1973_vm6, %v21097_v52, -inf }
 0xa42   : > { %v21104_v62 = vadd.f32 %v16091_v5, %v18975_v20  ;;  %v7977_v44 = vpop.f32.mrb[235].mxu0  ;;  %8168 = vmax.xlane.f32.xlu0 %v8167_v46 }
 0xa43   : > { %v21107_v49 = vadd.f32 %v7977_v44, %v18979_v22 }
 0xa44   : > { %v8176_v48 = vsel %vm1973_vm6, %v21104_v62, -inf }
 0xa45   : > { %v16102_v37 = vpop.f32.mrb[4].mxu1  ;;  %8177 = vmax.xlane.f32.xlu1 %v8176_v48  ;;  %v8173_v27 = vsel %vm1973_vm6, %v21107_v49, -inf }
 0xa46   : > { %v21114_v33 = vadd.f32 %v16102_v37, %v18965_v14  ;;  %v8076_v51 = vpop.f32.mrb[5].mxu1  ;;  %8174 = vmax.xlane.f32.xlu0 %v8173_v27 }
 0xa47   : > { %v21117_v31 = vadd.f32 %v8076_v51, %v18967_v15 }
 0xa48   : > { %v8182_v26 = vsel %vm1973_vm6, %v21114_v33, -inf }
 0xa49   : > { %v16105_v9 = vpop.f32.mrb[6].mxu1  ;;  %8183 = vmax.xlane.f32.xlu1 %v8182_v26  ;;  %v8179_v35 = vsel %vm1973_vm6, %v21117_v31, -inf }
 0xa4a   : > { %v21124_v41 = vadd.f32 %v16105_v9, %v18975_v20  ;;  %v8086_v47 = vpop.f32.mrb[7].mxu1  ;;  %8180 = vmax.xlane.f32.xlu0 %v8179_v35 }
 0xa4b   : > { %v21127_v59 = vadd.f32 %v8086_v47, %v18979_v22 }
 0xa4c   : > { %v8188_v11 = vsel %vm1973_vm6, %v21124_v41, -inf }
 0xa4d   : > { %8189 = vmax.xlane.f32.xlu1 %v8188_v11  ;;  %v8185_v38 = vsel %vm1973_vm6, %v21127_v59, -inf }
 0xa4e   : > { %8186 = vmax.xlane.f32.xlu0 %v8185_v38 }
 0xa9e   : > { %v8100_v0 = vpop.xlane.xlu1 %8099 }
 0xa9f   : > { %v8192_v5 = vsub.f32 %v20974_v54, %v8100_v0  ;;  %v8097_v46 = vpop.xlane.xlu0 %8096 }
 0xaa0   : > { %v8191_v44 = vsub.f32 %v20977_v3, %v8097_v46 }
 0xaa1   : > { %v8225_v48 = vmul.f32 1.442695, %v8192_v5 }
 0xaa2   : > { %v8223_v37 = vmul.f32 1.442695, %v8191_v44  ;;  %v8106_v27 = vpop.xlane.xlu1 %8105 }
 0xaa3   : > { %18014 = vpow2.f32 %v8225_v48  ;;  %v8194_v51 = vsub.f32 %v20984_v12, %v8106_v27  ;;  %v8103_v26 = vpop.xlane.xlu0 %8102 }
 0xaa4   : > { %18016 = vpow2.f32 %v8223_v37  ;;  %v8193_v9 = vsub.f32 %v20987_v45, %v8103_v26 }
 0xaa5   : > { %v8229_v35 = vmul.f32 1.442695, %v8194_v51 }
 0xaa6   : > { %v8227_v47 = vmul.f32 1.442695, %v8193_v9  ;;  %v8112_v11 = vpop.xlane.xlu1 %8111 }
 0xaa7   : > { %18018 = vpow2.f32 %v8229_v35  ;;  %v8196_v38 = vsub.f32 %v20994_v4, %v8112_v11  ;;  %v8109_v54 = vpop.xlane.xlu0 %8108 }
 0xaa8   : > { %18020 = vpow2.f32 %v8227_v47  ;;  %v8195_v3 = vsub.f32 %v20997_v40, %v8109_v54 }
 0xaa9   : > { %v8233_v0 = vmul.f32 1.442695, %v8196_v38 }
 0xaaa   : > { %v8231_v5 = vmul.f32 1.442695, %v8195_v3  ;;  %v8118_v46 = vpop.xlane.xlu1 %8117 }
 0xaab   : > { %18022 = vpow2.f32 %v8233_v0  ;;  %v8198_v12 = vsub.f32 %v21004_v25, %v8118_v46  ;;  %v8115_v44 = vpop.xlane.xlu0 %8114 }
 0xaac   : > { %18024 = vpow2.f32 %v8231_v5  ;;  %v8197_v45 = vsub.f32 %v21007_v19, %v8115_v44 }
 0xaad   : > { %v21141_v48 = vpop.eup %18014  ;;  %v8237_v37 = vmul.f32 1.442695, %v8198_v12 }
 0xaae   : > { %v21143_v27 = vpop.eup %18016  ;;  %v8235_v4 = vmul.f32 1.442695, %v8197_v45  ;;  %v8124_v51 = vpop.xlane.xlu1 %8123  ;;  %v8290_v40 = vsel %vm1973_vm6, %v21141_v48, 0.0 }
 0xaaf   : > { %18026 = vpow2.f32 %v8237_v37  ;;  %v8200_v26 = vsub.f32 %v21014_v57, %v8124_v51  ;;  %8291 = vadd.xlane.f32.xlu1 %v8290_v40  ;;  %v8121_v9 = vpop.xlane.xlu0 %8120  ;;  %v8287_v25 = vsel %vm1973_vm6, %v21143_v27, 0.0 }
 0xab0   : > { %18028 = vpow2.f32 %v8235_v4  ;;  %v8199_v19 = vsub.f32 %v21017_v24, %v8121_v9  ;;  %8288 = vadd.xlane.f32.xlu0 %v8287_v25 }
 0xab1   : > { %v21151_v35 = vpop.eup %18018  ;;  %v8241_v47 = vmul.f32 1.442695, %v8200_v26 }
 0xab2   : > { %v21153_v11 = vpop.eup %18020  ;;  %v8239_v38 = vmul.f32 1.442695, %v8199_v19  ;;  %v8130_v54 = vpop.xlane.xlu1 %8129  ;;  %v8296_v3 = vsel %vm1973_vm6, %v21151_v35, 0.0 }
 0xab3   : > { %18030 = vpow2.f32 %v8241_v47  ;;  %v8202_v57 = vsub.f32 %v21024_v23, %v8130_v54  ;;  %8297 = vadd.xlane.f32.xlu1 %v8296_v3  ;;  %v8127_v0 = vpop.xlane.xlu0 %8126  ;;  %v8293_v5 = vsel %vm1973_vm6, %v21153_v11, 0.0 }
 0xab4   : > { %18032 = vpow2.f32 %v8239_v38  ;;  %v8201_v24 = vsub.f32 %v21027_v29, %v8127_v0  ;;  %8294 = vadd.xlane.f32.xlu0 %v8293_v5 }
 0xab5   : > { %v21161_v46 = vpop.eup %18022  ;;  %v8245_v12 = vmul.f32 1.442695, %v8202_v57 }
 0xab6   : > { %v21163_v44 = vpop.eup %18024  ;;  %v8243_v45 = vmul.f32 1.442695, %v8201_v24  ;;  %v8136_v37 = vpop.xlane.xlu1 %8135  ;;  %v8302_v4 = vsel %vm1973_vm6, %v21161_v46, 0.0 }
 0xab7   : > { %18034 = vpow2.f32 %v8245_v12  ;;  %v8204_v23 = vsub.f32 %v21034_v34, %v8136_v37  ;;  %8303 = vadd.xlane.f32.xlu1 %v8302_v4  ;;  %v8133_v51 = vpop.xlane.xlu0 %8132  ;;  %v8299_v40 = vsel %vm1973_vm6, %v21163_v44, 0.0 }
 0xab8   : > { %18036 = vpow2.f32 %v8243_v45  ;;  %v8203_v29 = vsub.f32 %v21037_v32, %v8133_v51  ;;  %8300 = vadd.xlane.f32.xlu0 %v8299_v40 }
 0xab9   : > { %v21171_v26 = vpop.eup %18026  ;;  %v8249_v9 = vmul.f32 1.442695, %v8204_v23 }
 0xaba   : > { %v21173_v25 = vpop.eup %18028  ;;  %v8247_v19 = vmul.f32 1.442695, %v8203_v29  ;;  %v8142_v47 = vpop.xlane.xlu1 %8141  ;;  %v8308_v38 = vsel %vm1973_vm6, %v21171_v26, 0.0 }
 0xabb   : > { %18038 = vpow2.f32 %v8249_v9  ;;  %v8206_v34 = vsub.f32 %v21044_v1, %v8142_v47  ;;  %8309 = vadd.xlane.f32.xlu1 %v8308_v38  ;;  %v8139_v54 = vpop.xlane.xlu0 %8138  ;;  %v8305_v3 = vsel %vm1973_vm6, %v21173_v25, 0.0 }
 0xabc   : > { %18040 = vpow2.f32 %v8247_v19  ;;  %v8205_v32 = vsub.f32 %v21047_v63, %v8139_v54  ;;  %8306 = vadd.xlane.f32.xlu0 %v8305_v3 }
 0xabd   : > { %v21181_v57 = vpop.eup %18030  ;;  %v8253_v0 = vmul.f32 1.442695, %v8206_v34 }
 0xabe   : > { %v21183_v5 = vpop.eup %18032  ;;  %v8251_v24 = vmul.f32 1.442695, %v8205_v32  ;;  %v8148_v12 = vpop.xlane.xlu1 %8147  ;;  %v8314_v45 = vsel %vm1973_vm6, %v21181_v57, 0.0 }
 0xabf   : > { %18042 = vpow2.f32 %v8253_v0  ;;  %v8208_v1 = vsub.f32 %v21054_v7, %v8148_v12  ;;  %8315 = vadd.xlane.f32.xlu1 %v8314_v45  ;;  %v8145_v37 = vpop.xlane.xlu0 %8144  ;;  %v8311_v4 = vsel %vm1973_vm6, %v21183_v5, 0.0 }
 0xac0   : > { %18044 = vpow2.f32 %v8251_v24  ;;  %v8207_v63 = vsub.f32 %v21057_v60, %v8145_v37  ;;  %8312 = vadd.xlane.f32.xlu0 %v8311_v4 }
 0xac1   : > { %v21191_v23 = vpop.eup %18034  ;;  %v8257_v51 = vmul.f32 1.442695, %v8208_v1 }
 0xac2   : > { %v21193_v40 = vpop.eup %18036  ;;  %v8255_v29 = vmul.f32 1.442695, %v8207_v63  ;;  %v8154_v9 = vpop.xlane.xlu1 %8153  ;;  %v8320_v19 = vsel %vm1973_vm6, %v21191_v23, 0.0 }
 0xac3   : > { %18046 = vpow2.f32 %v8257_v51  ;;  %v8210_v7 = vsub.f32 %v21064_v56, %v8154_v9  ;;  %8321 = vadd.xlane.f32.xlu1 %v8320_v19  ;;  %v8151_v47 = vpop.xlane.xlu0 %8150  ;;  %v8317_v38 = vsel %vm1973_vm6, %v21193_v40, 0.0 }
 0xac4   : > { %18048 = vpow2.f32 %v8255_v29  ;;  %v8209_v60 = vsub.f32 %v21067_v43, %v8151_v47  ;;  %8318 = vadd.xlane.f32.xlu0 %v8317_v38 }
 0xac5   : > { %v21201_v34 = vpop.eup %18038  ;;  %v8261_v54 = vmul.f32 1.442695, %v8210_v7 }
 0xac6   : > { %v21203_v3 = vpop.eup %18040  ;;  %v8259_v32 = vmul.f32 1.442695, %v8209_v60  ;;  %v8160_v0 = vpop.xlane.xlu1 %8159  ;;  %v8326_v24 = vsel %vm1973_vm6, %v21201_v34, 0.0 }
 0xac7   : > { %18050 = vpow2.f32 %v8261_v54  ;;  %v8212_v56 = vsub.f32 %v21074_v28, %v8160_v0  ;;  %8327 = vadd.xlane.f32.xlu1 %v8326_v24  ;;  %v8157_v12 = vpop.xlane.xlu0 %8156  ;;  %v8323_v45 = vsel %vm1973_vm6, %v21203_v3, 0.0 }
 0xac8   : > { %18052 = vpow2.f32 %v8259_v32  ;;  %v8211_v43 = vsub.f32 %v21077_v17, %v8157_v12  ;;  %8324 = vadd.xlane.f32.xlu0 %v8323_v45 }
 0xac9   : > { %v21211_v1 = vpop.eup %18042  ;;  %v8265_v37 = vmul.f32 1.442695, %v8212_v56 }
 0xaca   : > { %v21213_v4 = vpop.eup %18044  ;;  %v8263_v63 = vmul.f32 1.442695, %v8211_v43  ;;  %v8166_v51 = vpop.xlane.xlu1 %8165  ;;  %v8332_v29 = vsel %vm1973_vm6, %v21211_v1, 0.0 }
 0xacb   : > { %18054 = vpow2.f32 %v8265_v37  ;;  %v8214_v28 = vsub.f32 %v21084_v13, %v8166_v51  ;;  %8333 = vadd.xlane.f32.xlu1 %v8332_v29  ;;  %v8163_v9 = vpop.xlane.xlu0 %8162  ;;  %v8329_v19 = vsel %vm1973_vm6, %v21213_v4, 0.0 }
 0xacc   : > { %18056 = vpow2.f32 %v8263_v63  ;;  %v8213_v17 = vsub.f32 %v21087_v36, %v8163_v9  ;;  %8330 = vadd.xlane.f32.xlu0 %v8329_v19 }
 0xacd   : > { %v21221_v7 = vpop.eup %18046  ;;  %v8269_v47 = vmul.f32 1.442695, %v8214_v28 }
 0xace   : > { %v21223_v38 = vpop.eup %18048  ;;  %v8267_v60 = vmul.f32 1.442695, %v8213_v17  ;;  %v8172_v54 = vpop.xlane.xlu1 %8171  ;;  %v8338_v32 = vsel %vm1973_vm6, %v21221_v7, 0.0 }
 0xacf   : > { %18058 = vpow2.f32 %v8269_v47  ;;  %v8216_v13 = vsub.f32 %v21094_v30, %v8172_v54  ;;  %8339 = vadd.xlane.f32.xlu1 %v8338_v32  ;;  %v8169_v0 = vpop.xlane.xlu0 %8168  ;;  %v8335_v24 = vsel %vm1973_vm6, %v21223_v38, 0.0 }
 0xad0   : > { %18060 = vpow2.f32 %v8267_v60  ;;  %v8215_v36 = vsub.f32 %v21097_v52, %v8169_v0  ;;  %8336 = vadd.xlane.f32.xlu0 %v8335_v24 }
 0xad1   : > { %v21231_v56 = vpop.eup %18050  ;;  %v8273_v12 = vmul.f32 1.442695, %v8216_v13 }
 0xad2   : > { %v21233_v45 = vpop.eup %18052  ;;  %v8271_v43 = vmul.f32 1.442695, %v8215_v36  ;;  %v8178_v37 = vpop.xlane.xlu1 %8177  ;;  %v8344_v63 = vsel %vm1973_vm6, %v21231_v56, 0.0 }
 0xad3   : > { %18062 = vpow2.f32 %v8273_v12  ;;  %v8218_v30 = vsub.f32 %v21104_v62, %v8178_v37  ;;  %8345 = vadd.xlane.f32.xlu1 %v8344_v63  ;;  %v8175_v51 = vpop.xlane.xlu0 %8174  ;;  %v8341_v29 = vsel %vm1973_vm6, %v21233_v45, 0.0 }
 0xad4   : > { %18064 = vpow2.f32 %v8271_v43  ;;  %v8217_v52 = vsub.f32 %v21107_v49, %v8175_v51  ;;  %8342 = vadd.xlane.f32.xlu0 %v8341_v29 }
 0xad5   : > { %v21241_v28 = vpop.eup %18054  ;;  %v8277_v9 = vmul.f32 1.442695, %v8218_v30 }
 0xad6   : > { %v21243_v19 = vpop.eup %18056  ;;  %v8275_v17 = vmul.f32 1.442695, %v8217_v52  ;;  %v8184_v47 = vpop.xlane.xlu1 %8183  ;;  %v8350_v60 = vsel %vm1973_vm6, %v21241_v28, 0.0 }
 0xad7   : > { %18066 = vpow2.f32 %v8277_v9  ;;  %v8220_v62 = vsub.f32 %v21114_v33, %v8184_v47  ;;  %8351 = vadd.xlane.f32.xlu1 %v8350_v60  ;;  %v8181_v54 = vpop.xlane.xlu0 %8180  ;;  %v8347_v32 = vsel %vm1973_vm6, %v21243_v19, 0.0 }
 0xad8   : > { %18068 = vpow2.f32 %v8275_v17  ;;  %v8219_v49 = vsub.f32 %v21117_v31, %v8181_v54  ;;  %8348 = vadd.xlane.f32.xlu0 %v8347_v32 }
 0xad9   : > { %v21251_v13 = vpop.eup %18058  ;;  %v8281_v0 = vmul.f32 1.442695, %v8220_v62 }
 0xada   : > { %v21253_v24 = vpop.eup %18060  ;;  %v8279_v36 = vmul.f32 1.442695, %v8219_v49  ;;  %v8190_v12 = vpop.xlane.xlu1 %8189  ;;  %v8356_v43 = vsel %vm1973_vm6, %v21251_v13, 0.0 }
 0xadb   : > { %18070 = vpow2.f32 %v8281_v0  ;;  %v8222_v33 = vsub.f32 %v21124_v41, %v8190_v12  ;;  %8357 = vadd.xlane.f32.xlu1 %v8356_v43  ;;  %v8187_v37 = vpop.xlane.xlu0 %8186  ;;  %v8353_v63 = vsel %vm1973_vm6, %v21253_v24, 0.0 }
 0xadc   : > { %18072 = vpow2.f32 %v8279_v36  ;;  %v8221_v31 = vsub.f32 %v21127_v59, %v8187_v37  ;;  %8354 = vadd.xlane.f32.xlu0 %v8353_v63 }
 0xadd   : > { %v21261_v30 = vpop.eup %18062  ;;  %v8285_v51 = vmul.f32 1.442695, %v8222_v33 }
 0xade   : > { %v21263_v29 = vpop.eup %18064  ;;  %v8283_v52 = vmul.f32 1.442695, %v8221_v31  ;;  %v8362_v9 = vsel %vm1973_vm6, %v21261_v30, 0.0 }
 0xadf   : > { %18074 = vpow2.f32 %v8285_v51  ;;  %8363 = vadd.xlane.f32.xlu1 %v8362_v9  ;;  %v8359_v41 = vsel %vm1973_vm6, %v21263_v29, 0.0 }
 0xae0   : > { %18076 = vpow2.f32 %v8283_v52  ;;  %8360 = vadd.xlane.f32.xlu0 %v8359_v41 }
 0xae1   : > { %v21269_v17 = vpop.eup %18066 }
 0xae2   : > { %v21271_v59 = vpop.eup %18068  ;;  %v8368_v47 = vsel %vm1973_vm6, %v21269_v17, 0.0 }
 0xae3   : > { %8369 = vadd.xlane.f32.xlu1 %v8368_v47  ;;  %v8365_v60 = vsel %vm1973_vm6, %v21271_v59, 0.0 }
 0xae4   : > { %8366 = vadd.xlane.f32.xlu0 %v8365_v60 }
 0xae5   : > { %v21277_v62 = vpop.eup %18070 }
 0xae6   : > { %v21279_v54 = vpop.eup %18072  ;;  %v8374_v32 = vsel %vm1973_vm6, %v21277_v62, 0.0 }
 0xae7   : > { %8375 = vadd.xlane.f32.xlu1 %v8374_v32  ;;  %v8371_v49 = vsel %vm1973_vm6, %v21279_v54, 0.0 }
 0xae8   : > { %8372 = vadd.xlane.f32.xlu0 %v8371_v49 }
 0xae9   : > { %v21285_v0 = vpop.eup %18074 }
 0xaea   : > { %v21287_v36 = vpop.eup %18076  ;;  %v8380_v12 = vsel %vm1973_vm6, %v21285_v0, 0.0 }
 0xaeb   : > { %8381 = vadd.xlane.f32.xlu1 %v8380_v12  ;;  %v8377_v43 = vsel %vm1973_vm6, %v21287_v36, 0.0 }
 0xaec   : > { %8378 = vadd.xlane.f32.xlu0 %v8377_v43 }
 0xb3c   : > { %v8292_v33 = vpop.xlane.xlu1 %8291 }
 0xb3d   : > { %18078 = vrcp.f32 %v8292_v33  ;;  %v8289_v37 = vpop.xlane.xlu0 %8288 }
 0xb3e   : > { %18080 = vrcp.f32 %v8289_v37 }
 0xb40   : > { %v8298_v63 = vpop.xlane.xlu1 %8297 }
 0xb41   : > { %18082 = vrcp.f32 %v8298_v63  ;;  %v8295_v31 = vpop.xlane.xlu0 %8294 }
 0xb42   : > { %18084 = vrcp.f32 %v8295_v31 }
 0xb44   : > { %v8304_v51 = vpop.xlane.xlu1 %8303 }
 0xb45   : > { %18086 = vrcp.f32 %v8304_v51  ;;  %v8301_v52 = vpop.xlane.xlu0 %8300 }
 0xb46   : > { %18088 = vrcp.f32 %v8301_v52 }
 0xb47   : > { %v18079_v9 = vpop.eup %18078 }
 0xb48   : > { %v18081_v41 = vpop.eup %18080  ;;  %v8310_v47 = vpop.xlane.xlu1 %8309  ;;  %v8416_v49 = vmul.f32 %v18079_v9, %v21141_v48 }
 0xb49   : > { %18090 = vrcp.f32 %v8310_v47  ;;  %v8307_v60 = vpop.xlane.xlu0 %8306  ;;  %v8415_v32 = vmul.f32 %v18081_v41, %v21143_v27 }
 0xb4a   : > { %18092 = vrcp.f32 %v8307_v60 }
 0xb4b   : > { %v18083_v12 = vpop.eup %18082  ;;  %16114 = vmatprep.mubr.msk.f32.mxu0 %vm1973_vm6, %v8415_v32 }
 0xb4c   : > { %v18085_v43 = vpop.eup %18084  ;;  %v8316_v33 = vpop.xlane.xlu1 %8315  ;;  %16115 = vmatmul.mubr.msk.f32.vlgmr.msra.gmra.mrb[236].mxu0 %vm1973_vm6, %v8416_v49  ;;  %v8418_v27 = vmul.f32 %v18083_v12, %v21151_v35 }
 0xb4d   : > { %18094 = vrcp.f32 %v8316_v33  ;;  %17325 = vmatpush3.bf16.msra.mxu0 %v20815_v42  ;;  %v8313_v37 = vpop.xlane.xlu0 %8312  ;;  %v8417_v63 = vmul.f32 %v18085_v43, %v21153_v11 }
 0xb4e   : > { %17327 = vmatprep.subr.bf16.mxu0 %v20817_v10  ;;  %18096 = vrcp.f32 %v8313_v37 }
 0xb4f   : > { %v18087_v48 = vpop.eup %18086  ;;  %16117 = vmatprep.mubr.msk.f32.mxu0 %vm1973_vm6, %v8417_v63 }
 0xb50   : > { %v18089_v31 = vpop.eup %18088  ;;  %v8322_v51 = vpop.xlane.xlu1 %8321  ;;  %16118 = vmatmul.mubr.msk.f32.gmra.mrb[238].mxu0 %vm1973_vm6, %v8418_v27  ;;  %v8420_v11 = vmul.f32 %v18087_v48, %v21161_v46 }
 0xb51   : > { %18098 = vrcp.f32 %v8322_v51  ;;  %17329 = vmatpush3.bf16.msra.mxu0 %v20817_v10  ;;  %v8319_v52 = vpop.xlane.xlu0 %8318  ;;  %v8419_v42 = vmul.f32 %v18089_v31, %v21163_v44 }
 0xb52   : > { %17339 = vmatprep.subr.bf16.mxu0 %v20823_v61  ;;  %18100 = vrcp.f32 %v8319_v52 }
 0xb53   : > { %v18091_v9 = vpop.eup %18090  ;;  %16128 = vmatprep.mubr.msk.f32.mxu1 %vm1973_vm6, %v8419_v42 }
 0xb54   : > { %v18093_v35 = vpop.eup %18092  ;;  %v8328_v41 = vpop.xlane.xlu1 %8327  ;;  %16129 = vmatmul.mubr.msk.f32.vlgmr.msra.gmra.mrb[8].mxu1 %vm1973_vm6, %v8420_v11  ;;  %v8422_v44 = vmul.f32 %v18091_v9, %v21171_v26  ;;  %v13445_v9 = vld [vmem:[%s22638_s4 + $0x20] sm:$0xff] }
 0xb55   : > { %18102 = vrcp.f32 %v8328_v41  ;;  %17333 = vmatpush3.bf16.msra.mxu1 %v20819_v50  ;;  %v8325_v47 = vpop.xlane.xlu0 %8324  ;;  %v8421_v10 = vmul.f32 %v18093_v35, %v21173_v25  ;;  %v13446_v35 = vld [vmem:[%s22638_s4 + $0x28] sm:$0xff] }
 0xb56   : > { %17335 = vmatprep.subr.bf16.mxu1 %v20821_v55  ;;  %18104 = vrcp.f32 %v8325_v47 }
 0xb57   : > { %v18095_v46 = vpop.eup %18094  ;;  %16131 = vmatprep.mubr.msk.f32.mxu1 %vm1973_vm6, %v8421_v10  ;;  %v17370_v10 = vpack.c.bf16 %v13446_v35, %v13445_v9  ;;  %v21444_v9 = vld [vmem:[%s18563_s11 + $0x28] sm:$0xff]  ;;  %v21449_v35 = vld [vmem:[%s18563_s11 + $0x30] sm:$0xff] }
 0xb58   : > { %v18097_v60 = vpop.eup %18096  ;;  %v8334_v32 = vpop.xlane.xlu1 %8333  ;;  %16132 = vmatmul.mubr.msk.f32.gmra.mrb[10].mxu1 %vm1973_vm6, %v8422_v44  ;;  %v8424_v25 = vmul.f32 %v18095_v46, %v21181_v57 }
 0xb59   : > { %18106 = vrcp.f32 %v8334_v32  ;;  %17337 = vmatpush3.bf16.msra.mxu1 %v20821_v55  ;;  %v8331_v49 = vpop.xlane.xlu0 %8330  ;;  %v8423_v50 = vmul.f32 %v18097_v60, %v21183_v5 }
 0xb5a   : > { %17347 = vmatprep.subr.bf16.mxu1 %v20827_v58  ;;  %18108 = vrcp.f32 %v8331_v49 }
 0xb5b   : > { %v18099_v26 = vpop.eup %18098  ;;  %16142 = vmatprep.mubr.msk.f32.mxu0 %vm1973_vm6, %v8423_v50 }
 0xb5c   : > { %v18101_v12 = vpop.eup %18100  ;;  %v8340_v43 = vpop.xlane.xlu1 %8339  ;;  %16143 = vmatmul.mubr.msk.f32.vlgmr.msra.gmra.mrb[240].mxu0 %vm1973_vm6, %v8424_v25  ;;  %v8426_v57 = vmul.f32 %v18099_v26, %v21191_v23 }
 0xb5d   : > { %18110 = vrcp.f32 %v8340_v43  ;;  %17341 = vmatpush3.bf16.msra.mxu0 %v20823_v61  ;;  %v8337_v33 = vpop.xlane.xlu0 %8336  ;;  %v8425_v55 = vmul.f32 %v18101_v12, %v21193_v40 }
 0xb5e   : > { %17343 = vmatprep.subr.bf16.mxu0 %v20825_v21  ;;  %18112 = vrcp.f32 %v8337_v33 }
 0xb5f   : > { %v18103_v5 = vpop.eup %18102  ;;  %16145 = vmatprep.mubr.msk.f32.mxu0 %vm1973_vm6, %v8425_v55 }
 0xb60   : > { %v18105_v37 = vpop.eup %18104  ;;  %v8346_v63 = vpop.xlane.xlu1 %8345  ;;  %16146 = vmatmul.mubr.msk.f32.gmra.mrb[242].mxu0 %vm1973_vm6, %v8426_v57  ;;  %v8428_v40 = vmul.f32 %v18103_v5, %v21201_v34 }
 0xb61   : > { %18114 = vrcp.f32 %v8346_v63  ;;  %17345 = vmatpush3.bf16.msra.mxu0 %v20825_v21  ;;  %v8343_v27 = vpop.xlane.xlu0 %8342  ;;  %v8427_v61 = vmul.f32 %v18105_v37, %v21203_v3 }
 0xb62   : > { %17355 = vmatprep.subr.bf16.mxu0 %v20831_v16  ;;  %18116 = vrcp.f32 %v8343_v27  ;;  %v21386_v27 = vld [vmem:[%s18563_s11] sm:$0xff] }
 0xb63   : > { %v18107_v48 = vpop.eup %18106  ;;  %16156 = vmatprep.mubr.msk.f32.mxu1 %vm1973_vm6, %v8427_v61  ;;  %v13480_v61 = vld [vmem:[%s22635_s1 + $0xc8] sm:$0xff] }
 0xb64   : > { %v18109_v23 = vpop.eup %18108  ;;  %v8352_v31 = vpop.xlane.xlu1 %8351  ;;  %16157 = vmatmul.mubr.msk.f32.vlgmr.msra.gmra.mrb[12].mxu1 %vm1973_vm6, %v8428_v40  ;;  %v8430_v3 = vmul.f32 %v18107_v48, %v21211_v1  ;;  %v13481_v48 = vld [vmem:[%s22635_s1 + $0xd0] sm:$0xff] }
 0xb65   : > { %18118 = vrcp.f32 %v8352_v31  ;;  %17349 = vmatpush3.bf16.msra.mxu1 %v20827_v58  ;;  %v8349_v51 = vpop.xlane.xlu0 %8348  ;;  %v8429_v21 = vmul.f32 %v18109_v23, %v21213_v4  ;;  %v13482_v23 = vld [vmem:[%s22635_s1 + $0xd8] sm:$0xff] }
 0xb66   : > { %17351 = vmatprep.subr.bf16.mxu1 %v20829_v53  ;;  %18120 = vrcp.f32 %v8349_v51  ;;  %v17378_v31 = vpack.c.bf16 %v13482_v23, %v13481_v48  ;;  %v13483_v51 = vld [vmem:[%s22635_s1 + $0xe0] sm:$0xff]  ;;  %v13566_v48 = vld [vmem:[%s22637_s3 + $0xf8] sm:$0xff] }
 0xb67   : > { %v18111_v34 = vpop.eup %18110  ;;  %16159 = vmatprep.mubr.msk.f32.mxu1 %vm1973_vm6, %v8429_v21  ;;  %v13484_v21 = vld [vmem:[%s22635_s1 + $0xe8] sm:$0xff] }
 0xb68   : > { %v18113_v52 = vpop.eup %18112  ;;  %v8358_v42 = vpop.xlane.xlu1 %8357  ;;  %16160 = vmatmul.mubr.msk.f32.gmra.mrb[14].mxu1 %vm1973_vm6, %v8430_v3  ;;  %v8432_v4 = vmul.f32 %v18111_v34, %v21221_v7  ;;  %v17382_v3 = vpack.c.bf16 %v13484_v21, %v13483_v51  ;;  %v13485_v34 = vld [vmem:[%s22635_s1 + $0xf0] sm:$0xff] }
 0xb69   : > { %18122 = vrcp.f32 %v8358_v42  ;;  %17353 = vmatpush3.bf16.msra.mxu1 %v20829_v53  ;;  %v8355_v11 = vpop.xlane.xlu0 %8354  ;;  %v8431_v58 = vmul.f32 %v18113_v52, %v21223_v38  ;;  %v13486_v52 = vld [vmem:[%s22635_s1 + $0xf8] sm:$0xff] }
 0xb6a   : > { %17363 = vmatprep.subr.bf16.mxu1 %v20841_v8  ;;  %18124 = vrcp.f32 %v8355_v11  ;;  %v17386_v42 = vpack.c.bf16 %v13486_v52, %v13485_v34  ;;  %v21424_v11 = vld [vmem:[%s18563_s11 + $0x8] sm:$0xff] }
 0xb6b   : > { %v18115_v1 = vpop.eup %18114  ;;  %16170 = vmatprep.mubr.msk.f32.mxu0 %vm1973_vm6, %v8431_v58  ;;  %v21429_v58 = vld [vmem:[%s18563_s11 + $0x10] sm:$0xff] }
 0xb6c   : > { %v18117_v53 = vpop.eup %18116  ;;  %v8364_v41 = vpop.xlane.xlu1 %8363  ;;  %16171 = vmatmul.mubr.msk.f32.vlgmr.msra.gmra.mrb[244].mxu0 %vm1973_vm6, %v8432_v4  ;;  %v8434_v47 = vmul.f32 %v18115_v1, %v21231_v56  ;;  %v21434_v4 = vld [vmem:[%s18563_s11 + $0x18] sm:$0xff]  ;;  %v21439_v1 = vld [vmem:[%s18563_s11 + $0x20] sm:$0xff] }
 0xb6d   : > { %18126 = vrcp.f32 %v8364_v41  ;;  %17357 = vmatpush3.bf16.msra.mxu0 %v20831_v16  ;;  %v8361_v7 = vpop.xlane.xlu0 %8360  ;;  %v8433_v38 = vmul.f32 %v18117_v53, %v21233_v45  ;;  %v21454_v53 = vld [vmem:[%s18563_s11 + $0x38] sm:$0xff]  ;;  %v21459_v41 = vld [vmem:[%s18563_s11 + $0x40] sm:$0xff] }
 0xb6e   : > { %17359 = vmatprep.subr.bf16.mxu0 %v20837_v39  ;;  %18128 = vrcp.f32 %v8361_v7  ;;  %v21464_v7 = vld [vmem:[%s18563_s11 + $0x48] sm:$0xff] }
 0xb6f   : > { %v18119_v44 = vpop.eup %18118  ;;  %16173 = vmatprep.mubr.msk.f32.mxu0 %vm1973_vm6, %v8433_v38  ;;  %v21469_v38 = vld [vmem:[%s18563_s11 + $0x50] sm:$0xff] }
 0xb70   : > { %v18121_v46 = vpop.eup %18120  ;;  %v8370_v60 = vpop.xlane.xlu1 %8369  ;;  %16174 = vmatmul.mubr.msk.f32.gmra.mrb[246].mxu0 %vm1973_vm6, %v8434_v47  ;;  %v8436_v45 = vmul.f32 %v18119_v44, %v21241_v28  ;;  %v21474_v47 = vld [vmem:[%s18563_s11 + $0x58] sm:$0xff]  ;;  %v21484_v44 = vld [vmem:[%s18563_s11 + $0x68] sm:$0xff] }
 0xb71   : > { %18130 = vrcp.f32 %v8370_v60  ;;  %17361 = vmatpush3.bf16.msra.mxu0 %v20837_v39  ;;  %v8367_v16 = vpop.xlane.xlu0 %8366  ;;  %v8435_v32 = vmul.f32 %v18121_v46, %v21243_v19  ;;  %v21489_v46 = vld [vmem:[%s18563_s11 + $0x70] sm:$0xff]  ;;  %v21494_v60 = vld [vmem:[%s18563_s11 + $0x78] sm:$0xff] }
 0xb72   : > { %18132 = vrcp.f32 %v8367_v16  ;;  %17371 = vmatprep.subr.bf16.mxu0 %v17370_v10  ;;  %v21499_v16 = vld [vmem:[%s18563_s11 + $0x80] sm:$0xff] }
 0xb73   : > { %v18123_v49 = vpop.eup %18122  ;;  %16184 = vmatprep.mubr.msk.f32.mxu1 %vm1973_vm6, %v8435_v32  ;;  %v21504_v32 = vld [vmem:[%s18563_s11 + $0x88] sm:$0xff] }
 0xb74   : > { %v18125_v56 = vpop.eup %18124  ;;  %v8376_v50 = vpop.xlane.xlu1 %8375  ;;  %16185 = vmatmul.mubr.msk.f32.vlgmr.msra.gmra.mrb[16].mxu1 %vm1973_vm6, %v8436_v45  ;;  %v8438_v26 = vmul.f32 %v18123_v49, %v21251_v13  ;;  %v21509_v45 = vld [vmem:[%s18563_s11 + $0x90] sm:$0xff]  ;;  %v21514_v49 = vld [vmem:[%s18563_s11 + $0x98] sm:$0xff] }
 0xb75   : > { %18134 = vrcp.f32 %v8376_v50  ;;  %17365 = vmatpush3.bf16.msra.mxu1 %v20841_v8  ;;  %v8373_v25 = vpop.xlane.xlu0 %8372  ;;  %v8437_v39 = vmul.f32 %v18125_v56, %v21253_v24  ;;  %v21519_v56 = vld [vmem:[%s18563_s11 + $0xa0] sm:$0xff]  ;;  %v21524_v50 = vld [vmem:[%s18563_s11 + $0xa8] sm:$0xff] }
 0xb76   : > { %17367 = vmatprep.subr.bf16.mxu1 %v20971_v2  ;;  %18136 = vrcp.f32 %v8373_v25  ;;  %v21529_v25 = vld [vmem:[%s18563_s11 + $0xb0] sm:$0xff] }
 0xb77   : > { %v18127_v28 = vpop.eup %18126  ;;  %16187 = vmatprep.mubr.msk.f32.mxu1 %vm1973_vm6, %v8437_v39  ;;  %v13521_v39 = vld [vmem:[%s22636_s2 + $0xd0] sm:$0xff] }
 0xb78   : > { %v18129_v19 = vpop.eup %18128  ;;  %v8382_v12 = vpop.xlane.xlu1 %8381  ;;  %16188 = vmatmul.mubr.msk.f32.gmra.mrb[18].mxu1 %vm1973_vm6, %v8438_v26  ;;  %v8440_v24 = vmul.f32 %v18127_v28, %v21261_v30  ;;  %v13522_v26 = vld [vmem:[%s22636_s2 + $0xd8] sm:$0xff]  ;;  %v13559_v28 = vld [vmem:[%s22637_s3 + $0xc0] sm:$0xff] }
 0xb79   : > { %18138 = vrcp.f32 %v8382_v12  ;;  %17369 = vmatpush3.bf16.msra.mxu1 %v20971_v2  ;;  %v8379_v43 = vpop.xlane.xlu0 %8378  ;;  %v8439_v8 = vmul.f32 %v18129_v19, %v21263_v29  ;;  %v13560_v19 = vld [vmem:[%s22637_s3 + $0xc8] sm:$0xff]  ;;  %v13561_v12 = vld [vmem:[%s22637_s3 + $0xd0] sm:$0xff] }
 0xb7a   : > { %18140 = vrcp.f32 %v8379_v43 }
 0xb7b   : > { %v18131_v13 = vpop.eup %18130  ;;  %16198 = vmatprep.mubr.msk.f32.mxu0 %vm1973_vm6, %v8439_v8  ;;  %v21549_v8 = vld [vmem:[%s18563_s11 + $0xb8] sm:$0xff] }
 0xb7c   : > { %v18133_v33 = vpop.eup %18132  ;;  %16199 = vmatmul.mubr.msk.f32.vlgmr.msra.gmra.mrb[248].mxu0 %vm1973_vm6, %v8440_v24  ;;  %v8442_v57 = vmul.f32 %v18131_v13, %v21269_v17  ;;  %v17406_v24 = vpack.c.bf16 %v13560_v19, %v13559_v28  ;;  %v13562_v13 = vld [vmem:[%s22637_s3 + $0xd8] sm:$0xff] }
 0xb7d   : > { %v8441_v55 = vmul.f32 %v18133_v33, %v21271_v59  ;;  %17373 = vmatpush3.bf16.msra.mxu0 %v17370_v10  ;;  %v21479_v10 = vld [vmem:[%s18563_s11 + $0x60] sm:$0xff]  ;;  %v21625_v19 = vld [vmem:[%s18563_s11 + $0xf8] sm:$0xff] }
 0xb7f   : > { %v18135_v5 = vpop.eup %18134  ;;  %16201 = vmatprep.mubr.msk.f32.mxu0 %vm1973_vm6, %v8441_v55  ;;  %v17394_v55 = vpack.c.bf16 %v13522_v26, %v13521_v39  ;;  %v21618_v26 = vld [vmem:[%s18563_s11 + $0xf0] sm:$0xff] }
 0xb80   : > { %v18137_v2 = vpop.eup %18136  ;;  %16202 = vmatmul.mubr.msk.f32.gmra.mrb[250].mxu0 %vm1973_vm6, %v8442_v57  ;;  %v8444_v29 = vmul.f32 %v18135_v5, %v21277_v62  ;;  %v13519_v62 = vld [vmem:[%s22636_s2 + $0xc0] sm:$0xff] }
 0xb81   : > { %v8443_v30 = vmul.f32 %v18137_v2, %v21279_v54  ;;  %v13520_v54 = vld [vmem:[%s22636_s2 + $0xc8] sm:$0xff]  ;;  %v21557_v57 = vld [vmem:[%s18563_s11 + $0xc0] sm:$0xff] }
 0xb82   : > { %v13523_v5 = vld [vmem:[%s22636_s2 + $0xe0] sm:$0xff]  ;;  %v13524_v2 = vld [vmem:[%s22636_s2 + $0xe8] sm:$0xff] }
 0xb83   : > { %v18139_v37 = vpop.eup %18138  ;;  %16212 = vmatprep.mubr.msk.f32.mxu1 %vm1973_vm6, %v8443_v30  ;;  %v17410_v30 = vpack.c.bf16 %v13562_v13, %v13561_v12 }
 0xb84   : > { %v18141_v63 = vpop.eup %18140  ;;  %16213 = vmatmul.mubr.msk.f32.vlgmr.msra.gmra.mrb[20].mxu1 %vm1973_vm6, %v8444_v29  ;;  %v8446_v17 = vmul.f32 %v18139_v37, %v21285_v0  ;;  %v13479_v0 = vld [vmem:[%s22635_s1 + $0xc0] sm:$0xff]  ;;  %v13564_v37 = vld [vmem:[%s22637_s3 + $0xe8] sm:$0xff] }
 0xb85   : > { %v8445_v59 = vmul.f32 %v18141_v63, %v21287_v36  ;;  %v21396_v36 = vpack.c.bf16 %v13520_v54, %v13519_v62  ;;  %v17374_v40 = vpack.c.bf16 %v13480_v61, %v13479_v0  ;;  %v13563_v29 = vld [vmem:[%s22637_s3 + $0xe0] sm:$0xff]  ;;  %v17398_v62 = vpack.c.bf16 %v13524_v2, %v13523_v5  ;;  %v21582_v54 = vld [vmem:[%s18563_s11 + $0xd0] sm:$0xff]  ;;  %v13526_v0 = vld [vmem:[%s22636_s2 + $0xf8] sm:$0xff] }
 0xb86   : > { %v17414_v61 = vpack.c.bf16 %v13564_v37, %v13563_v29 }
 0xb87   : > { %16215 = vmatprep.mubr.msk.f32.mxu1 %vm1973_vm6, %v8445_v59  ;;  %17391 = vmatprep.subr.bf16.mxu0 %v21396_v36  ;;  %v21577_v59 = vld [vmem:[%s18563_s11 + $0xc8] sm:$0xff] }
 0xb88   : > { %16216 = vmatmul.mubr.msk.f32.gmra.mrb[22].mxu1 %vm1973_vm6, %v8446_v17  ;;  %17375 = vmatprep.subr.bf16.mxu1 %v17374_v40 }
 0xb89   : > { %16286 = vmatprep.mubr.msk.f32.mxu1 %vm312_vm0, %v21386_v27  ;;  %17377 = vmatpush3.bf16.msra.mxu1 %v17374_v40  ;;  %v13565_v40 = vld [vmem:[%s22637_s3 + $0xf0] sm:$0xff] }
 0xb8a   : > { %17379 = vmatprep.subr.bf16.mxu1 %v17378_v31  ;;  %v17418_v34 = vpack.c.bf16 %v13566_v48, %v13565_v40 }
 0xb8d   : > { %17381 = vmatpush3.bf16.msra.mxu1 %v17378_v31  ;;  %v21601_v31 = vld [vmem:[%s18563_s11 + $0xd8] sm:$0xff] }
 0xb8e   : > { %17383 = vmatprep.subr.bf16.mxu1 %v17382_v3 }
 0xb91   : > { %17385 = vmatpush3.bf16.msra.mxu1 %v17382_v3  ;;  %v21606_v3 = vld [vmem:[%s18563_s11 + $0xe0] sm:$0xff] }
 0xb92   : > { %17387 = vmatprep.subr.bf16.mxu1 %v17386_v42 }
 0xb95   : > { %17389 = vmatpush3.bf16.msra.mxu1 %v17386_v42  ;;  %v21613_v42 = vld [vmem:[%s18563_s11 + $0xe8] sm:$0xff]  ;;  %s18431_s11 = smov [#allocation2]  }
 0xb96   : > { %17407 = vmatprep.subr.bf16.mxu1 %v17406_v24  ;;  %s18370_s26 = sshll.u32 %s18431_s11, 4  ;;  %s18371_s26 = int_to_ptr.vmem [resolvable:$false] %s18370_s26 }
 0xb97   : > { %s18372_s28 = scalar_lea.vmem %s18371_s26, 8192  ;;  %p18373_p0 = scmp.lt.s32.totalorder %s22585_s16, %s18371_s26 }
 0xb98   : > { %16287 = vmatmul.mubr.msk.f32.vlgmr.msra.gmra.mrb[24].mxu1 %vm312_vm0, %v21424_v11  ;;  %p18374_p1 = scmp.lt.s32.totalorder %s18372_s28, %s18366_s20 }
 0xb99   : > { %16289 = vmatprep.mubr.msk.f32.mxu1 %vm312_vm0, %v21429_v58  ;;  %17409 = vmatpush3.bf16.msra.mxu1 %v17406_v24 }
 0xb9a   : > { %17411 = vmatprep.subr.bf16.mxu1 %v17410_v30  ;;  %p18375_p2 = por %p18374_p1, %p18373_p0 }
 0xb9c   : > { %16290 = vmatmul.mubr.msk.f32.gmra.mrb[26].mxu1 %vm312_vm0, %v21434_v4  ;;  %p18376_p3 = pnand %p18375_p2, %p18369_p13 }
 0xb9d   : > { %16292 = vmatprep.mubr.msk.f32.mxu1 %vm312_vm0, %v21439_v1  ;;  %17413 = vmatpush3.bf16.msra.mxu1 %v17410_v30 }
 0xb9e   : > { %17415 = vmatprep.subr.bf16.mxu1 %v17414_v61 }
 0xba0   : > { %16293 = vmatmul.mubr.msk.f32.gmra.mrb[28].mxu1 %vm312_vm0, %v21444_v9 }
 0xba1   : > { %16295 = vmatprep.mubr.msk.f32.mxu1 %vm312_vm0, %v21449_v35  ;;  %17417 = vmatpush3.bf16.msra.mxu1 %v17414_v61 }
 0xba2   : > { %17419 = vmatprep.subr.bf16.mxu1 %v17418_v34 }
 0xba4   : > { %16296 = vmatmul.mubr.msk.f32.gmra.mrb[30].mxu1 %vm312_vm0, %v21454_v53 }
 0xba5   : > { %16298 = vmatprep.mubr.msk.f32.mxu1 %vm312_vm0, %v21459_v41  ;;  %17421 = vmatpush3.bf16.msra.mxu1 %v17418_v34 }
 0xba8   : > { %16299 = vmatmul.mubr.msk.f32.gmra.mrb[32].mxu1 %vm312_vm0, %v21464_v7 }
 0xba9   : > { %16301 = vmatprep.mubr.msk.f32.mxu1 %vm312_vm0, %v21469_v38 }
 0xbac   : > { %16302 = vmatmul.mubr.msk.f32.gmra.mrb[34].mxu1 %vm312_vm0, %v21474_v47 }
 0xbad   : > { %16304 = vmatprep.mubr.msk.f32.mxu1 %vm312_vm0, %v21479_v10 }
 0xbb0   : > { %16305 = vmatmul.mubr.msk.f32.gmra.mrb[36].mxu1 %vm312_vm0, %v21484_v44 }
 0xbb1   : > { %16307 = vmatprep.mubr.msk.f32.mxu1 %vm312_vm0, %v21489_v46 }
 0xbb4   : > { %16308 = vmatmul.mubr.msk.f32.gmra.mrb[38].mxu1 %vm312_vm0, %v21494_v60 }
 0xbb5   : > { %16310 = vmatprep.mubr.msk.f32.mxu1 %vm312_vm0, %v21499_v16 }
 0xbb8   : > { %16311 = vmatmul.mubr.msk.f32.gmra.mrb[40].mxu1 %vm312_vm0, %v21504_v32 }
 0xbb9   : > { %16313 = vmatprep.mubr.msk.f32.mxu1 %vm312_vm0, %v21509_v45 }
 0xbbc   : > { %16314 = vmatmul.mubr.msk.f32.gmra.mrb[42].mxu1 %vm312_vm0, %v21514_v49 }
 0xbbd   : > { %16316 = vmatprep.mubr.msk.f32.mxu1 %vm312_vm0, %v21519_v56 }
 0xbc0   : > { %16317 = vmatmul.mubr.msk.f32.gmra.mrb[44].mxu1 %vm312_vm0, %v21524_v50 }
 0xbc1   : > { %16319 = vmatprep.mubr.msk.f32.mxu1 %vm312_vm0, %v21529_v25 }
 0xbc4   : > { %16320 = vmatmul.mubr.msk.f32.gmra.mrb[46].mxu1 %vm312_vm0, %v21549_v8 }
 0xbc5   : > { %16322 = vmatprep.mubr.msk.f32.mxu1 %vm312_vm0, %v21557_v57 }
 0xbc8   : > { %16323 = vmatmul.mubr.msk.f32.gmra.mrb[48].mxu1 %vm312_vm0, %v21577_v59 }
 0xbc9   : > { %16325 = vmatprep.mubr.msk.f32.mxu1 %vm312_vm0, %v21582_v54 }
 0xbcc   : > { %16326 = vmatmul.mubr.msk.f32.gmra.mrb[50].mxu1 %vm312_vm0, %v21601_v31 }
 0xbcd   : > { %16328 = vmatprep.mubr.msk.f32.mxu1 %vm312_vm0, %v21606_v3 }
 0xbd0   : > { %16329 = vmatmul.mubr.msk.f32.gmra.mrb[52].mxu1 %vm312_vm0, %v21613_v42 }
 0xbd1   : > { %16331 = vmatprep.mubr.msk.f32.mxu1 %vm312_vm0, %v21618_v26 }
 0xbd4   : > { %16332 = vmatmul.mubr.msk.f32.gmra.mrb[54].mxu1 %vm312_vm0, %v21625_v19 }
 0xbd5   : > { %16414 = vmatprep.mubr.msk.f32.mxu1 %vm312_vm0, %v21386_v27 }
 0xbd8   : > { %16415 = vmatmul.mubr.msk.f32.vlgmr.msra.gmra.mrb[56].mxu1 %vm312_vm0, %v21424_v11 }
 0xbd9   : > { %16417 = vmatprep.mubr.msk.f32.mxu1 %vm312_vm0, %v21429_v58 }
 0xbdc   : > { %16418 = vmatmul.mubr.msk.f32.gmra.mrb[58].mxu1 %vm312_vm0, %v21434_v4 }
 0xbdd   : > { %16420 = vmatprep.mubr.msk.f32.mxu1 %vm312_vm0, %v21439_v1 }
 0xbe0   : > { %16421 = vmatmul.mubr.msk.f32.gmra.mrb[60].mxu1 %vm312_vm0, %v21444_v9 }
 0xbe1   : > { %16423 = vmatprep.mubr.msk.f32.mxu1 %vm312_vm0, %v21449_v35 }
 0xbe4   : > { %16424 = vmatmul.mubr.msk.f32.gmra.mrb[62].mxu1 %vm312_vm0, %v21454_v53 }
 0xbe5   : > { %16426 = vmatprep.mubr.msk.f32.mxu1 %vm312_vm0, %v21459_v41 }
 0xbe8   : > { %16427 = vmatmul.mubr.msk.f32.gmra.mrb[64].mxu1 %vm312_vm0, %v21464_v7 }
 0xbe9   : > { %16429 = vmatprep.mubr.msk.f32.mxu1 %vm312_vm0, %v21469_v38 }
 0xbec   : > { %16430 = vmatmul.mubr.msk.f32.gmra.mrb[66].mxu1 %vm312_vm0, %v21474_v47 }
 0xbed   : > { %16432 = vmatprep.mubr.msk.f32.mxu1 %vm312_vm0, %v21479_v10 }
 0xbf0   : > { %16433 = vmatmul.mubr.msk.f32.gmra.mrb[68].mxu1 %vm312_vm0, %v21484_v44 }
 0xbf1   : > { %16435 = vmatprep.mubr.msk.f32.mxu1 %vm312_vm0, %v21489_v46 }
 0xbf4   : > { %16436 = vmatmul.mubr.msk.f32.gmra.mrb[70].mxu1 %vm312_vm0, %v21494_v60 }
 0xbf5   : > { %16438 = vmatprep.mubr.msk.f32.mxu1 %vm312_vm0, %v21499_v16 }
 0xbf8   : > { %16439 = vmatmul.mubr.msk.f32.gmra.mrb[92].mxu1 %vm312_vm0, %v21504_v32 }
 0xbf9   : > { %16441 = vmatprep.mubr.msk.f32.mxu1 %vm312_vm0, %v21509_v45 }
 0xbfc   : > { %16442 = vmatmul.mubr.msk.f32.gmra.mrb[94].mxu1 %vm312_vm0, %v21514_v49 }
 0xbfd   : > { %16444 = vmatprep.mubr.msk.f32.mxu1 %vm312_vm0, %v21519_v56 }
 0xc00   : > { %16445 = vmatmul.mubr.msk.f32.gmra.mrb[96].mxu1 %vm312_vm0, %v21524_v50 }
 0xc01   : > { %16447 = vmatprep.mubr.msk.f32.mxu1 %vm312_vm0, %v21529_v25 }
 0xc04   : > { %16448 = vmatmul.mubr.msk.f32.gmra.mrb[98].mxu1 %vm312_vm0, %v21549_v8 }
 0xc05   : > { %16450 = vmatprep.mubr.msk.f32.mxu1 %vm312_vm0, %v21557_v57 }
 0xc08   : > { %16451 = vmatmul.mubr.msk.f32.gmra.mrb[100].mxu1 %vm312_vm0, %v21577_v59 }
 0xc09   : > { %16453 = vmatprep.mubr.msk.f32.mxu1 %vm312_vm0, %v21582_v54 }
 0xc0c   : > { %16454 = vmatmul.mubr.msk.f32.gmra.mrb[102].mxu1 %vm312_vm0, %v21601_v31 }
 0xc0d   : > { %16456 = vmatprep.mubr.msk.f32.mxu1 %vm312_vm0, %v21606_v3 }
 0xc10   : > { %16457 = vmatmul.mubr.msk.f32.gmra.mrb[104].mxu1 %vm312_vm0, %v21613_v42 }
 0xc11   : > { %16459 = vmatprep.mubr.msk.f32.mxu1 %vm312_vm0, %v21618_v26 }
 0xc14   : > { %16460 = vmatmul.mubr.msk.f32.gmra.mrb[106].mxu1 %vm312_vm0, %v21625_v19 }
 0xc1f   : > { %v16116_v43 = vpop.f32.mrb[236].mxu0 }
 0xc20   : > { %v8525_v33 = vpop.f32.mrb[237].mxu0 }
 0xc21   : > { %16222 = vmatprep.mubr.msk.f32.mxu0 %vm1100_vm1, %v8525_v33 }
 0xc22   : > { %16223 = vmatmul.mubr.msk.f32.vlgmr.msra.gmra.mrb[88].mxu0 %vm1100_vm1, %v16116_v43 }
 0xc23   : > { %v16119_v63 = vpop.f32.mrb[238].mxu0  ;;  %17393 = vmatpush3.bf16.msra.mxu0 %v21396_v36  ;;  %v13525_v36 = vld [vmem:[%s22636_s2 + $0xf0] sm:$0xff] }
 0xc24   : > { %v8535_v17 = vpop.f32.mrb[239].mxu0  ;;  %17395 = vmatprep.subr.bf16.mxu0 %v17394_v55  ;;  %v17402_v21 = vpack.c.bf16 %v13526_v0, %v13525_v36 }
 0xc25   : > { %16225 = vmatprep.mubr.msk.f32.mxu0 %vm1100_vm1, %v8535_v17 }
 0xc26   : > { %16226 = vmatmul.mubr.msk.f32.gmra.mrb[90].mxu0 %vm1100_vm1, %v16119_v63 }
 0xc27   : > { %v16130_v23 = vpop.f32.mrb[8].mxu1  ;;  %17397 = vmatpush3.bf16.msra.mxu0 %v17394_v55 }
 0xc28   : > { %v8622_v51 = vpop.f32.mrb[9].mxu1  ;;  %17399 = vmatprep.subr.bf16.mxu0 %v17398_v62 }
 0xc29   : > { %16228 = vmatprep.mubr.msk.f32.mxu0 %vm1100_vm1, %v8622_v51 }
 0xc2a   : > { %16229 = vmatmul.mubr.msk.f32.gmra.mrb[92].mxu0 %vm1100_vm1, %v16130_v23 }
 0xc2b   : > { %v16133_v52 = vpop.f32.mrb[10].mxu1  ;;  %17401 = vmatpush3.bf16.msra.mxu0 %v17398_v62 }
 0xc2c   : > { %v8632_v39 = vpop.f32.mrb[11].mxu1  ;;  %17403 = vmatprep.subr.bf16.mxu0 %v17402_v21 }
 0xc2d   : > { %16231 = vmatprep.mubr.msk.f32.mxu0 %vm1100_vm1, %v8632_v39 }
 0xc2e   : > { %16232 = vmatmul.mubr.msk.f32.gmra.mrb[94].mxu0 %vm1100_vm1, %v16133_v52 }
 0xc2f   : > { %v16144_v28 = vpop.f32.mrb[240].mxu0  ;;  %17405 = vmatpush3.bf16.msra.mxu0 %v17402_v21 }
 0xc30   : > { %v8719_v12 = vpop.f32.mrb[241].mxu0 }
 0xc31   : > { %16234 = vmatprep.mubr.msk.f32.mxu0 %vm1100_vm1, %v8719_v12 }
 0xc32   : > { %16235 = vmatmul.mubr.msk.f32.gmra.mrb[96].mxu0 %vm1100_vm1, %v16144_v28 }
 0xc33   : > { %v16147_v43 = vpop.f32.mrb[242].mxu0 }
 0xc34   : > { %v8729_v24 = vpop.f32.mrb[243].mxu0 }
 0xc35   : > { %16237 = vmatprep.mubr.msk.f32.mxu0 %vm1100_vm1, %v8729_v24 }
 0xc36   : > { %16238 = vmatmul.mubr.msk.f32.gmra.mrb[98].mxu0 %vm1100_vm1, %v16147_v43 }
 0xc37   : > { %v16158_v13 = vpop.f32.mrb[12].mxu1 }
 0xc38   : > { %v8816_v33 = vpop.f32.mrb[13].mxu1 }
 0xc39   : > { %16240 = vmatprep.mubr.msk.f32.mxu0 %vm1100_vm1, %v8816_v33 }
 0xc3a   : > { %16241 = vmatmul.mubr.msk.f32.gmra.mrb[168].mxu0 %vm1100_vm1, %v16158_v13 }
 0xc3b   : > { %v16161_v55 = vpop.f32.mrb[14].mxu1 }
 0xc3c   : > { %v8826_v5 = vpop.f32.mrb[15].mxu1 }
 0xc3d   : > { %16243 = vmatprep.mubr.msk.f32.mxu0 %vm1100_vm1, %v8826_v5 }
 0xc3e   : > { %16244 = vmatmul.mubr.msk.f32.gmra.mrb[170].mxu0 %vm1100_vm1, %v16161_v55 }
 0xc3f   : > { %v16172_v2 = vpop.f32.mrb[244].mxu0 }
 0xc40   : > { %v8913_v30 = vpop.f32.mrb[245].mxu0 }
 0xc41   : > { %16246 = vmatprep.mubr.msk.f32.mxu0 %vm1100_vm1, %v8913_v30 }
 0xc42   : > { %16247 = vmatmul.mubr.msk.f32.gmra.mrb[172].mxu0 %vm1100_vm1, %v16172_v2 }
 0xc43   : > { %v16175_v29 = vpop.f32.mrb[246].mxu0 }
 0xc44   : > { %v8923_v37 = vpop.f32.mrb[247].mxu0 }
 0xc45   : > { %16249 = vmatprep.mubr.msk.f32.mxu0 %vm1100_vm1, %v8923_v37 }
 0xc46   : > { %16250 = vmatmul.mubr.msk.f32.gmra.mrb[174].mxu0 %vm1100_vm1, %v16175_v29 }
 0xc47   : > { %v16186_v63 = vpop.f32.mrb[16].mxu1 }
 0xc48   : > { %v9010_v17 = vpop.f32.mrb[17].mxu1 }
 0xc49   : > { %16252 = vmatprep.mubr.msk.f32.mxu0 %vm1100_vm1, %v9010_v17 }
 0xc4a   : > { %16253 = vmatmul.mubr.msk.f32.gmra.mrb[176].mxu0 %vm1100_vm1, %v16186_v63 }
 0xc4b   : > { %v16189_v62 = vpop.f32.mrb[18].mxu1 }
 0xc4c   : > { %v9020_v36 = vpop.f32.mrb[19].mxu1 }
 0xc4d   : > { %16255 = vmatprep.mubr.msk.f32.mxu0 %vm1100_vm1, %v9020_v36 }
 0xc4e   : > { %16256 = vmatmul.mubr.msk.f32.gmra.mrb[178].mxu0 %vm1100_vm1, %v16189_v62 }
 0xc4f   : > { %v16200_v0 = vpop.f32.mrb[248].mxu0 }
 0xc50   : > { %v9107_v61 = vpop.f32.mrb[249].mxu0 }
 0xc51   : > { %16258 = vmatprep.mubr.msk.f32.mxu0 %vm1100_vm1, %v9107_v61 }
 0xc52   : > { %16259 = vmatmul.mubr.msk.f32.gmra.mrb[180].mxu0 %vm1100_vm1, %v16200_v0 }
 0xc53   : > { %v16203_v40 = vpop.f32.mrb[250].mxu0 }
 0xc54   : > { %v9117_v48 = vpop.f32.mrb[251].mxu0 }
 0xc55   : > { %16261 = vmatprep.mubr.msk.f32.mxu0 %vm1100_vm1, %v9117_v48 }
 0xc56   : > { %16262 = vmatmul.mubr.msk.f32.gmra.mrb[182].mxu0 %vm1100_vm1, %v16203_v40 }
 0xc57   : > { %v16214_v23 = vpop.f32.mrb[20].mxu1 }
 0xc58   : > { %v9204_v51 = vpop.f32.mrb[21].mxu1 }
 0xc59   : > { %16264 = vmatprep.mubr.msk.f32.mxu0 %vm1100_vm1, %v9204_v51 }
 0xc5a   : > { %16265 = vmatmul.mubr.msk.f32.gmra.mrb[184].mxu0 %vm1100_vm1, %v16214_v23 }
 0xc5b   : > { %v16217_v21 = vpop.f32.mrb[22].mxu1 }
 0xc5c   : > { %v9214_v34 = vpop.f32.mrb[23].mxu1 }
 0xc5d   : > { %16267 = vmatprep.mubr.msk.f32.mxu0 %vm1100_vm1, %v9214_v34 }
 0xc5e   : > { %16268 = vmatmul.mubr.msk.f32.gmra.mrb[186].mxu0 %vm1100_vm1, %v16217_v21 }
 0xc5f   : > { %16350 = vmatprep.mubr.msk.f32.mxu0 %vm312_vm0, %v21386_v27 }
 0xc62   : > { %16351 = vmatmul.mubr.msk.f32.vlgmr.msra.gmra.mrb[252].mxu0 %vm312_vm0, %v21424_v11 }
 0xc63   : > { %16353 = vmatprep.mubr.msk.f32.mxu0 %vm312_vm0, %v21429_v58 }
 0xc66   : > { %16354 = vmatmul.mubr.msk.f32.gmra.mrb[254].mxu0 %vm312_vm0, %v21434_v4 }
 0xc67   : > { %16356 = vmatprep.mubr.msk.f32.mxu0 %vm312_vm0, %v21439_v1 }
 0xc6a   : > { %16357 = vmatmul.mubr.msk.f32.gmra.mrb[0].mxu0 %vm312_vm0, %v21444_v9 }
 0xc6b   : > { %16359 = vmatprep.mubr.msk.f32.mxu0 %vm312_vm0, %v21449_v35  ;;  %v21781_v27 = vpop.f32.mrb[24].mxu1 }
 0xc6c   : > { %v9654_v11 = vpop.f32.mrb[25].mxu1 }
 0xc6e   : > { %16360 = vmatmul.mubr.msk.f32.gmra.mrb[2].mxu0 %vm312_vm0, %v21454_v53 }
 0xc6f   : > { %16362 = vmatprep.mubr.msk.f32.mxu0 %vm312_vm0, %v21459_v41  ;;  %v21784_v58 = vpop.f32.mrb[26].mxu1 }
 0xc70   : > { %v21786_v4 = vpop.f32.mrb[27].mxu1 }
 0xc72   : > { %16363 = vmatmul.mubr.msk.f32.gmra.mrb[4].mxu0 %vm312_vm0, %v21464_v7 }
 0xc73   : > { %16365 = vmatprep.mubr.msk.f32.mxu0 %vm312_vm0, %v21469_v38  ;;  %v21788_v1 = vpop.f32.mrb[28].mxu1 }
 0xc74   : > { %v9674_v9 = vpop.f32.mrb[29].mxu1 }
 0xc75   : > { %16484 = vmatprep.mubr.msk.f32.mxu1 %vm1100_vm1, %v9674_v9 }
 0xc76   : > { %16366 = vmatmul.mubr.msk.f32.gmra.mrb[6].mxu0 %vm312_vm0, %v21474_v47 }
 0xc77   : > { %16368 = vmatprep.mubr.msk.f32.mxu0 %vm312_vm0, %v21479_v10  ;;  %v21791_v35 = vpop.f32.mrb[30].mxu1 }
 0xc78   : > { %v21793_v53 = vpop.f32.mrb[31].mxu1 }
 0xc7a   : > { %16369 = vmatmul.mubr.msk.f32.gmra.mrb[8].mxu0 %vm312_vm0, %v21484_v44 }
 0xc7b   : > { %16371 = vmatprep.mubr.msk.f32.mxu0 %vm312_vm0, %v21489_v46  ;;  %v21795_v41 = vpop.f32.mrb[32].mxu1 }
 0xc7c   : > { %v21797_v7 = vpop.f32.mrb[33].mxu1 }
 0xc7e   : > { %16372 = vmatmul.mubr.msk.f32.gmra.mrb[10].mxu0 %vm312_vm0, %v21494_v60 }
 0xc7f   : > { %16374 = vmatprep.mubr.msk.f32.mxu0 %vm312_vm0, %v21499_v16  ;;  %v21799_v38 = vpop.f32.mrb[34].mxu1 }
 0xc80   : > { %v21801_v47 = vpop.f32.mrb[35].mxu1 }
 0xc82   : > { %16375 = vmatmul.mubr.msk.f32.gmra.mrb[12].mxu0 %vm312_vm0, %v21504_v32 }
 0xc83   : > { %16377 = vmatprep.mubr.msk.f32.mxu0 %vm312_vm0, %v21509_v45  ;;  %v21803_v10 = vpop.f32.mrb[36].mxu1 }
 0xc84   : > { %v21805_v44 = vpop.f32.mrb[37].mxu1 }
 0xc86   : > { %16378 = vmatmul.mubr.msk.f32.gmra.mrb[14].mxu0 %vm312_vm0, %v21514_v49 }
 0xc87   : > { %16380 = vmatprep.mubr.msk.f32.mxu0 %vm312_vm0, %v21519_v56  ;;  %v21807_v46 = vpop.f32.mrb[38].mxu1 }
 0xc88   : > { %v21809_v60 = vpop.f32.mrb[39].mxu1 }
 0xc8a   : > { %16381 = vmatmul.mubr.msk.f32.gmra.mrb[16].mxu0 %vm312_vm0, %v21524_v50 }
 0xc8b   : > { %16383 = vmatprep.mubr.msk.f32.mxu0 %vm312_vm0, %v21529_v25  ;;  %v21811_v16 = vpop.f32.mrb[40].mxu1 }
 0xc8c   : > { %v21813_v32 = vpop.f32.mrb[41].mxu1 }
 0xc8e   : > { %16384 = vmatmul.mubr.msk.f32.gmra.mrb[18].mxu0 %vm312_vm0, %v21549_v8 }
 0xc8f   : > { %16386 = vmatprep.mubr.msk.f32.mxu0 %vm312_vm0, %v21557_v57  ;;  %v21815_v45 = vpop.f32.mrb[42].mxu1 }
 0xc90   : > { %v21817_v49 = vpop.f32.mrb[43].mxu1 }
 0xc92   : > { %16387 = vmatmul.mubr.msk.f32.gmra.mrb[20].mxu0 %vm312_vm0, %v21577_v59 }
 0xc93   : > { %16389 = vmatprep.mubr.msk.f32.mxu0 %vm312_vm0, %v21582_v54  ;;  %v21819_v56 = vpop.f32.mrb[44].mxu1 }
 0xc94   : > { %v21821_v50 = vpop.f32.mrb[45].mxu1 }
 0xc96   : > { %16390 = vmatmul.mubr.msk.f32.gmra.mrb[22].mxu0 %vm312_vm0, %v21601_v31 }
 0xc97   : > { %16392 = vmatprep.mubr.msk.f32.mxu0 %vm312_vm0, %v21606_v3  ;;  %v21823_v25 = vpop.f32.mrb[46].mxu1 }
 0xc98   : > { %v21825_v8 = vpop.f32.mrb[47].mxu1 }
 0xc9a   : > { %16393 = vmatmul.mubr.msk.f32.gmra.mrb[24].mxu0 %vm312_vm0, %v21613_v42 }
 0xc9b   : > { %16395 = vmatprep.mubr.msk.f32.mxu0 %vm312_vm0, %v21618_v26  ;;  %v21827_v57 = vpop.f32.mrb[48].mxu1 }
 0xc9c   : > { %v21829_v59 = vpop.f32.mrb[49].mxu1 }
 0xc9e   : > { %16396 = vmatmul.mubr.msk.f32.gmra.mrb[26].mxu0 %vm312_vm0, %v21625_v19 }
 0xc9f   : > { %16470 = vmatprep.mubr.msk.f32.mxu0 %vm1100_vm1, %v9654_v11  ;;  %v21831_v54 = vpop.f32.mrb[50].mxu1 }
 0xca0   : > { %v21833_v31 = vpop.f32.mrb[51].mxu1 }
 0xca3   : > { %v21835_v3 = vpop.f32.mrb[52].mxu1 }
 0xca4   : > { %v21837_v52 = vpop.f32.mrb[53].mxu1 }
 0xca7   : > { %v21839_v42 = vpop.f32.mrb[54].mxu1 }
 0xca8   : > { %v21841_v39 = vpop.f32.mrb[55].mxu1 }
 0xcab   : > { %v16416_v26 = vpop.f32.mrb[56].mxu1 }
 0xcac   : > { %v10122_v28 = vpop.f32.mrb[57].mxu1 }
 0xcad   : > { %v21843_v19 = vpack.c.bf16 %v16416_v26, %v10122_v28 }
 0xcaf   : > { %v16419_v12 = vpop.f32.mrb[58].mxu1 }
 0xcb0   : > { %v10132_v43 = vpop.f32.mrb[59].mxu1 }
 0xcb1   : > { %v21845_v24 = vpack.c.bf16 %v16419_v12, %v10132_v43 }
 0xcb3   : > { %v16422_v13 = vpop.f32.mrb[60].mxu1 }
 0xcb4   : > { %v10142_v33 = vpop.f32.mrb[61].mxu1 }
 0xcb5   : > { %v21847_v55 = vpack.c.bf16 %v16422_v13, %v10142_v33 }
 0xcb7   : > { %v16425_v5 = vpop.f32.mrb[62].mxu1 }
 0xcb8   : > { %v10152_v2 = vpop.f32.mrb[63].mxu1 }
 0xcb9   : > { %v21849_v30 = vpack.c.bf16 %v16425_v5, %v10152_v2 }
 0xcbb   : > { %v16428_v29 = vpop.f32.mrb[64].mxu1 }
 0xcbc   : > { %v10162_v37 = vpop.f32.mrb[65].mxu1 }
 0xcbd   : > { %v21851_v63 = vpack.c.bf16 %v16428_v29, %v10162_v37 }
 0xcbf   : > { %v16431_v17 = vpop.f32.mrb[66].mxu1 }
 0xcc0   : > { %v10172_v62 = vpop.f32.mrb[67].mxu1 }
 0xcc1   : > { %v21853_v36 = vpack.c.bf16 %v16431_v17, %v10172_v62 }
 0xcc3   : > { %v16434_v0 = vpop.f32.mrb[68].mxu1 }
 0xcc4   : > { %v10182_v61 = vpop.f32.mrb[69].mxu1 }
 0xcc5   : > { %v21855_v40 = vpack.c.bf16 %v16434_v0, %v10182_v61 }
 0xcc7   : > { %v16437_v48 = vpop.f32.mrb[70].mxu1 }
 0xcc8   : > { %v10192_v23 = vpop.f32.mrb[71].mxu1 }
 0xcc9   : > { %v21857_v51 = vpack.c.bf16 %v16437_v48, %v10192_v23 }
 0xccb   : > { %v16440_v21 = vpop.f32.mrb[92].mxu1 }
 0xccc   : > { %v10202_v34 = vpop.f32.mrb[93].mxu1 }
 0xccd   : > { %v21859_v11 = vpack.c.bf16 %v16440_v21, %v10202_v34 }
 0xccf   : > { %v16443_v9 = vpop.f32.mrb[94].mxu1 }
 0xcd0   : > { %v10212_v26 = vpop.f32.mrb[95].mxu1 }
 0xcd1   : > { %v21861_v28 = vpack.c.bf16 %v16443_v9, %v10212_v26 }
 0xcd3   : > { %v16446_v12 = vpop.f32.mrb[96].mxu1 }
 0xcd4   : > { %v10222_v43 = vpop.f32.mrb[97].mxu1 }
 0xcd5   : > { %v21863_v13 = vpack.c.bf16 %v16446_v12, %v10222_v43 }
 0xcd7   : > { %v16449_v33 = vpop.f32.mrb[98].mxu1 }
 0xcd8   : > { %v10232_v5 = vpop.f32.mrb[99].mxu1 }
 0xcd9   : > { %v21865_v2 = vpack.c.bf16 %v16449_v33, %v10232_v5 }
 0xcdb   : > { %v21867_v17 = vpop.f32.mrb[100].mxu1 }
 0xcdc   : > { %v10242_v6 = vpop.f32.mrb[101].mxu1 }
 0xd35   : > { %v16352_v29 = vpop.f32.mrb[252].mxu0 }
 0xd36   : > { %v9888_v37 = vpop.f32.mrb[253].mxu0 }
 0xd37   : > { %v17422_v62 = vpack.c.bf16 %v16352_v29, %v9888_v37 }
 0xd39   : > { %v16355_v0 = vpop.f32.mrb[254].mxu0  ;;  %17424 = vmatprep.subr.msk.bf16.mxu0 %vm18820_vm2, %v17422_v62 }
 0xd3a   : > { %v9898_v61 = vpop.f32.mrb[255].mxu0  ;;  %17427 = vmatpush3.bf16.xpose.msk.msra.mxu0 %vm18820_vm2, %v17422_v62 }
 0xd3b   : > { %v17428_v48 = vpack.c.bf16 %v16355_v0, %v9898_v61 }
 0xd3d   : > { %v16358_v23 = vpop.f32.mrb[0].mxu0  ;;  %17430 = vmatprep.subr.msk.bf16.mxu0 %vm18820_vm2, %v17428_v48 }
 0xd3e   : > { %v9908_v21 = vpop.f32.mrb[1].mxu0 }
 0xd3f   : > { %v17434_v34 = vpack.c.bf16 %v16358_v23, %v9908_v21 }
 0xd41   : > { %17436 = vmatprep.subr.msk.bf16.mxu1 %vm18820_vm2, %v17434_v34  ;;  %v16361_v9 = vpop.f32.mrb[2].mxu0 }
 0xd42   : > { %17433 = vmatpush3.bf16.xpose.msk.msra.mxu0 %vm18820_vm2, %v17428_v48  ;;  %17439 = vmatpush3.bf16.xpose.msk.msra.mxu1 %vm18820_vm2, %v17434_v34  ;;  %v9918_v26 = vpop.f32.mrb[3].mxu0 }
 0xd43   : > { %v17440_v12 = vpack.c.bf16 %v16361_v9, %v9918_v26 }
 0xd45   : > { %v16364_v43 = vpop.f32.mrb[4].mxu0  ;;  %17442 = vmatprep.subr.msk.bf16.mxu1 %vm18820_vm2, %v17440_v12 }
 0xd46   : > { %v9928_v33 = vpop.f32.mrb[5].mxu0 }
 0xd47   : > { %v17446_v5 = vpack.c.bf16 %v16364_v43, %v9928_v33 }
 0xd49   : > { %16471 = vmatmul.mubr.msk.f32.vlgmr.msra.gmra.mrb[28].mxu0 %vm1100_vm1, %v21781_v27  ;;  %17448 = vmatprep.subr.msk.bf16.mxu0 %vm18820_vm2, %v17446_v5  ;;  %v16367_v29 = vpop.f32.mrb[6].mxu0 }
 0xd4a   : > { %17445 = vmatpush3.bf16.xpose.msk.msra.mxu1 %vm18820_vm2, %v17440_v12  ;;  %17451 = vmatpush3.bf16.xpose.msk.msra.mxu0 %vm18820_vm2, %v17446_v5  ;;  %v9938_v37 = vpop.f32.mrb[7].mxu0 }
 0xd4b   : > { %v17452_v62 = vpack.c.bf16 %v16367_v29, %v9938_v37  ;;  %16473 = vmatprep.mubr.msk.f32.mxu0 %vm1100_vm1, %v21786_v4 }
 0xd4d   : > { %v16370_v0 = vpop.f32.mrb[8].mxu0  ;;  %16474 = vmatmul.mubr.msk.f32.gmra.mrb[30].mxu0 %vm1100_vm1, %v21784_v58  ;;  %17454 = vmatprep.subr.msk.bf16.mxu0 %vm18820_vm2, %v17452_v62 }
 0xd4e   : > { %v9948_v27 = vpop.f32.mrb[9].mxu0  ;;  %16498 = vmatprep.mubr.msk.f32.mxu0 %vm1100_vm1, %v21797_v7 }
 0xd4f   : > { %v17458_v61 = vpack.c.bf16 %v16370_v0, %v9948_v27 }
 0xd51   : > { %16485 = vmatmul.mubr.msk.f32.vlgmr.msra.gmra.mrb[108].mxu1 %vm1100_vm1, %v21788_v1  ;;  %17460 = vmatprep.subr.msk.bf16.mxu1 %vm18820_vm2, %v17458_v61  ;;  %v16373_v48 = vpop.f32.mrb[10].mxu0 }
 0xd52   : > { %17457 = vmatpush3.bf16.xpose.msk.msra.mxu0 %vm18820_vm2, %v17452_v62  ;;  %17463 = vmatpush3.bf16.xpose.msk.msra.mxu1 %vm18820_vm2, %v17458_v61  ;;  %v9958_v58 = vpop.f32.mrb[11].mxu0 }
 0xd53   : > { %v17464_v4 = vpack.c.bf16 %v16373_v48, %v9958_v58  ;;  %16487 = vmatprep.mubr.msk.f32.mxu1 %vm1100_vm1, %v21793_v53 }
 0xd55   : > { %v16376_v7 = vpop.f32.mrb[12].mxu0  ;;  %16488 = vmatmul.mubr.msk.f32.gmra.mrb[110].mxu1 %vm1100_vm1, %v21791_v35  ;;  %17466 = vmatprep.subr.msk.bf16.mxu1 %vm18820_vm2, %v17464_v4 }
 0xd56   : > { %v9968_v1 = vpop.f32.mrb[13].mxu0  ;;  %16512 = vmatprep.mubr.msk.f32.mxu1 %vm1100_vm1, %v21805_v44 }
 0xd57   : > { %v17470_v23 = vpack.c.bf16 %v16376_v7, %v9968_v1 }
 0xd59   : > { %16499 = vmatmul.mubr.msk.f32.vlgmr.msra.gmra.mrb[32].mxu0 %vm1100_vm1, %v21795_v41  ;;  %17472 = vmatprep.subr.msk.bf16.mxu0 %vm18820_vm2, %v17470_v23  ;;  %v16379_v21 = vpop.f32.mrb[14].mxu0 }
 0xd5a   : > { %17469 = vmatpush3.bf16.xpose.msk.msra.mxu1 %vm18820_vm2, %v17464_v4  ;;  %17475 = vmatpush3.bf16.xpose.msk.msra.mxu0 %vm18820_vm2, %v17470_v23  ;;  %v9978_v35 = vpop.f32.mrb[15].mxu0 }
 0xd5b   : > { %v17476_v53 = vpack.c.bf16 %v16379_v21, %v9978_v35  ;;  %16501 = vmatprep.mubr.msk.f32.mxu0 %vm1100_vm1, %v21801_v47 }
 0xd5d   : > { %v16382_v44 = vpop.f32.mrb[16].mxu0  ;;  %16502 = vmatmul.mubr.msk.f32.gmra.mrb[34].mxu0 %vm1100_vm1, %v21799_v38  ;;  %17478 = vmatprep.subr.msk.bf16.mxu0 %vm18820_vm2, %v17476_v53 }
 0xd5e   : > { %v9988_v41 = vpop.f32.mrb[17].mxu0  ;;  %16526 = vmatprep.mubr.msk.f32.mxu0 %vm1100_vm1, %v21813_v32 }
 0xd5f   : > { %v17482_v34 = vpack.c.bf16 %v16382_v44, %v9988_v41 }
 0xd61   : > { %16513 = vmatmul.mubr.msk.f32.vlgmr.msra.gmra.mrb[112].mxu1 %vm1100_vm1, %v21803_v10  ;;  %17484 = vmatprep.subr.msk.bf16.mxu1 %vm18820_vm2, %v17482_v34  ;;  %v16385_v9 = vpop.f32.mrb[18].mxu0 }
 0xd62   : > { %17481 = vmatpush3.bf16.xpose.msk.msra.mxu0 %vm18820_vm2, %v17476_v53  ;;  %17487 = vmatpush3.bf16.xpose.msk.msra.mxu1 %vm18820_vm2, %v17482_v34  ;;  %v9998_v38 = vpop.f32.mrb[19].mxu0 }
 0xd63   : > { %v17488_v47 = vpack.c.bf16 %v16385_v9, %v9998_v38  ;;  %16515 = vmatprep.mubr.msk.f32.mxu1 %vm1100_vm1, %v21809_v60 }
 0xd65   : > { %v16388_v32 = vpop.f32.mrb[20].mxu0  ;;  %16516 = vmatmul.mubr.msk.f32.gmra.mrb[114].mxu1 %vm1100_vm1, %v21807_v46  ;;  %17490 = vmatprep.subr.msk.bf16.mxu1 %vm18820_vm2, %v17488_v47 }
 0xd66   : > { %v10008_v10 = vpop.f32.mrb[21].mxu0  ;;  %16540 = vmatprep.mubr.msk.f32.mxu1 %vm1100_vm1, %v21821_v50 }
 0xd67   : > { %v17494_v26 = vpack.c.bf16 %v16388_v32, %v10008_v10 }
 0xd69   : > { %16527 = vmatmul.mubr.msk.f32.vlgmr.msra.gmra.mrb[36].mxu0 %vm1100_vm1, %v21811_v16  ;;  %17496 = vmatprep.subr.msk.bf16.mxu0 %vm18820_vm2, %v17494_v26  ;;  %v16391_v12 = vpop.f32.mrb[22].mxu0 }
 0xd6a   : > { %17493 = vmatpush3.bf16.xpose.msk.msra.mxu1 %vm18820_vm2, %v17488_v47  ;;  %17499 = vmatpush3.bf16.xpose.msk.msra.mxu0 %vm18820_vm2, %v17494_v26  ;;  %v10018_v46 = vpop.f32.mrb[23].mxu0 }
 0xd6b   : > { %v17500_v60 = vpack.c.bf16 %v16391_v12, %v10018_v46  ;;  %16529 = vmatprep.mubr.msk.f32.mxu0 %vm1100_vm1, %v21817_v49 }
 0xd6d   : > { %v16394_v50 = vpop.f32.mrb[24].mxu0  ;;  %16530 = vmatmul.mubr.msk.f32.gmra.mrb[38].mxu0 %vm1100_vm1, %v21815_v45  ;;  %17502 = vmatprep.subr.msk.bf16.mxu0 %vm18820_vm2, %v17500_v60 }
 0xd6e   : > { %v10028_v16 = vpop.f32.mrb[25].mxu0  ;;  %16554 = vmatprep.mubr.msk.f32.mxu0 %vm1100_vm1, %v21829_v59 }
 0xd6f   : > { %v17506_v43 = vpack.c.bf16 %v16394_v50, %v10028_v16 }
 0xd71   : > { %16541 = vmatmul.mubr.msk.f32.vlgmr.msra.gmra.mrb[116].mxu1 %vm1100_vm1, %v21819_v56  ;;  %17508 = vmatprep.subr.msk.bf16.mxu1 %vm18820_vm2, %v17506_v43  ;;  %v16397_v33 = vpop.f32.mrb[26].mxu0  ;;  %v22004_v56 = vpack.c.bf16 %v21867_v17, %v10242_v6 }
 0xd72   : > { %17505 = vmatpush3.bf16.xpose.msk.msra.mxu0 %vm18820_vm2, %v17500_v60  ;;  %17511 = vmatpush3.bf16.xpose.msk.msra.mxu1 %vm18820_vm2, %v17506_v43  ;;  %v10038_v45 = vpop.f32.mrb[27].mxu0 }
 0xd73   : > { %16543 = vmatprep.mubr.msk.f32.mxu1 %vm1100_vm1, %v21825_v8  ;;  %v17512_v49 = vpack.c.bf16 %v16397_v33, %v10038_v45  ;;  %17519 = vmatprep.subr.bf16.mxu0 %v21843_v19 }
 0xd75   : > { %16544 = vmatmul.mubr.msk.f32.gmra.mrb[118].mxu1 %vm1100_vm1, %v21823_v25  ;;  %17514 = vmatprep.subr.msk.bf16.mxu1 %vm18820_vm2, %v17512_v49  ;;  %v16455_v25 = vpop.f32.mrb[102].mxu1 }
 0xd76   : > { %16568 = vmatprep.mubr.msk.f32.mxu1 %vm1100_vm1, %v21837_v52  ;;  %v10252_v8 = vpop.f32.mrb[103].mxu1 }
 0xd77   : > { %v16458_v59 = vpop.f32.mrb[104].mxu1 }
 0xd79   : > { %16555 = vmatmul.mubr.msk.f32.vlgmr.msra.gmra.mrb[40].mxu0 %vm1100_vm1, %v21827_v57  ;;  %v22006_v57 = vpack.c.bf16 %v16455_v25, %v10252_v8 }
 0xd7a   : > { %17517 = vmatpush3.bf16.xpose.msk.msra.mxu1 %vm18820_vm2, %v17512_v49  ;;  %16557 = vmatprep.mubr.msk.f32.mxu0 %vm1100_vm1, %v21833_v31 }
 0xd7b   : > { %17521 = vmatpush3.bf16.msra.mxu0 %v21843_v19  ;;  %17535 = vmatprep.subr.bf16.mxu1 %v21851_v63 }
 0xd7c   : > { %17523 = vmatprep.subr.bf16.mxu0 %v21845_v24 }
 0xd7d   : > { %16558 = vmatmul.mubr.msk.f32.gmra.mrb[42].mxu0 %vm1100_vm1, %v21831_v54  ;;  %v10262_v54 = vpop.f32.mrb[105].mxu1 }
 0xd7e   : > { %v22008_v31 = vpack.c.bf16 %v16458_v59, %v10262_v54 }
 0xd7f   : > { %17525 = vmatpush3.bf16.msra.mxu0 %v21845_v24 }
 0xd80   : > { %17527 = vmatprep.subr.bf16.mxu0 %v21847_v55 }
 0xd81   : > { %16569 = vmatmul.mubr.msk.f32.vlgmr.msra.gmra.mrb[120].mxu1 %vm1100_vm1, %v21835_v3  ;;  %v16461_v3 = vpop.f32.mrb[106].mxu1 }
 0xd82   : > { %16571 = vmatprep.mubr.msk.f32.mxu1 %vm1100_vm1, %v21841_v39  ;;  %17537 = vmatpush3.bf16.msra.mxu1 %v21851_v63  ;;  %v10272_v52 = vpop.f32.mrb[107].mxu1 }
 0xd83   : > { %17539 = vmatprep.subr.bf16.mxu1 %v21853_v36  ;;  %v22010_v39 = vpack.c.bf16 %v16461_v3, %v10272_v52 }
 0xd85   : > { %16572 = vmatmul.mubr.msk.f32.gmra.mrb[122].mxu1 %vm1100_vm1, %v21839_v42 }
 0xd86   : > { %17541 = vmatpush3.bf16.msra.mxu1 %v21853_v36 }
 0xd87   : > { %17551 = vmatprep.subr.bf16.mxu1 %v21859_v11 }
 0xe1c   : > { %v16472_v42 = vpop.f32.mrb[28].mxu0 }
 0xe1d   : > { %v22013_v19 = vadd.f32 %v16472_v42, %v18965_v14  ;;  %v10371_v24 = vpop.f32.mrb[29].mxu0 }
 0xe1e   : > { %v22016_v63 = vadd.f32 %v10371_v24, %v18967_v15 }
 0xe1f   : > { %v11156_v36 = vsel %vm1973_vm6, %v22013_v19, -inf }
 0xe20   : > { %11157 = vmax.xlane.f32.xlu1 %v11156_v36  ;;  %v16475_v17 = vpop.f32.mrb[30].mxu0  ;;  %v11153_v5 = vsel %vm1973_vm6, %v22016_v63, -inf }
 0xe21   : > { %v22023_v29 = vadd.f32 %v16475_v17, %v18975_v20  ;;  %v10381_v37 = vpop.f32.mrb[31].mxu0  ;;  %11154 = vmax.xlane.f32.xlu0 %v11153_v5 }
 0xe22   : > { %v22026_v62 = vadd.f32 %v10381_v37, %v18979_v22 }
 0xe23   : > { %v11162_v0 = vsel %vm1973_vm6, %v22023_v29, -inf }
 0xe24   : > { %v16486_v27 = vpop.f32.mrb[108].mxu1  ;;  %11163 = vmax.xlane.f32.xlu1 %v11162_v0  ;;  %v11159_v61 = vsel %vm1973_vm6, %v22026_v62, -inf }
 0xe25   : > { %v22033_v48 = vadd.f32 %v16486_v27, %v18965_v14  ;;  %v10480_v58 = vpop.f32.mrb[109].mxu1  ;;  %11160 = vmax.xlane.f32.xlu0 %v11159_v61 }
 0xe26   : > { %v22036_v4 = vadd.f32 %v10480_v58, %v18967_v15 }
 0xe27   : > { %v11168_v7 = vsel %vm1973_vm6, %v22033_v48, -inf }
 0xe28   : > { %v16489_v1 = vpop.f32.mrb[110].mxu1  ;;  %11169 = vmax.xlane.f32.xlu1 %v11168_v7  ;;  %v11165_v23 = vsel %vm1973_vm6, %v22036_v4, -inf }
 0xe29   : > { %v22043_v21 = vadd.f32 %v16489_v1, %v18975_v20  ;;  %v10490_v35 = vpop.f32.mrb[111].mxu1  ;;  %11166 = vmax.xlane.f32.xlu0 %v11165_v23 }
 0xe2a   : > { %v22046_v53 = vadd.f32 %v10490_v35, %v18979_v22 }
 0xe2b   : > { %v11174_v44 = vsel %vm1973_vm6, %v22043_v21, -inf }
 0xe2c   : > { %11175 = vmax.xlane.f32.xlu1 %v11174_v44  ;;  %v16500_v41 = vpop.f32.mrb[32].mxu0  ;;  %v11171_v34 = vsel %vm1973_vm6, %v22046_v53, -inf }
 0xe2d   : > { %v22053_v9 = vadd.f32 %v16500_v41, %v18965_v14  ;;  %v10589_v38 = vpop.f32.mrb[33].mxu0  ;;  %11172 = vmax.xlane.f32.xlu0 %v11171_v34 }
 0xe2e   : > { %v22056_v47 = vadd.f32 %v10589_v38, %v18967_v15 }
 0xe2f   : > { %v11180_v32 = vsel %vm1973_vm6, %v22053_v9, -inf }
 0xe30   : > { %11181 = vmax.xlane.f32.xlu1 %v11180_v32  ;;  %v16503_v10 = vpop.f32.mrb[34].mxu0  ;;  %v11177_v26 = vsel %vm1973_vm6, %v22056_v47, -inf }
 0xe31   : > { %v22063_v12 = vadd.f32 %v16503_v10, %v18975_v20  ;;  %v10599_v46 = vpop.f32.mrb[35].mxu0  ;;  %11178 = vmax.xlane.f32.xlu0 %v11177_v26 }
 0xe32   : > { %v22066_v60 = vadd.f32 %v10599_v46, %v18979_v22 }
 0xe33   : > { %v11186_v50 = vsel %vm1973_vm6, %v22063_v12, -inf }
 0xe34   : > { %v16514_v16 = vpop.f32.mrb[112].mxu1  ;;  %11187 = vmax.xlane.f32.xlu1 %v11186_v50  ;;  %v11183_v43 = vsel %vm1973_vm6, %v22066_v60, -inf }
 0xe35   : > { %v22073_v33 = vadd.f32 %v16514_v16, %v18965_v14  ;;  %v10698_v45 = vpop.f32.mrb[113].mxu1  ;;  %11184 = vmax.xlane.f32.xlu0 %v11183_v43 }
 0xe36   : > { %v22076_v49 = vadd.f32 %v10698_v45, %v18967_v15 }
 0xe37   : > { %v11192_v6 = vsel %vm1973_vm6, %v22073_v33, -inf }
 0xe38   : > { %v16517_v25 = vpop.f32.mrb[114].mxu1  ;;  %11193 = vmax.xlane.f32.xlu1 %v11192_v6  ;;  %v11189_v8 = vsel %vm1973_vm6, %v22076_v49, -inf }
 0xe39   : > { %v22083_v59 = vadd.f32 %v16517_v25, %v18975_v20  ;;  %v10708_v54 = vpop.f32.mrb[115].mxu1  ;;  %11190 = vmax.xlane.f32.xlu0 %v11189_v8 }
 0xe3a   : > { %v22086_v3 = vadd.f32 %v10708_v54, %v18979_v22 }
 0xe3b   : > { %v11198_v52 = vsel %vm1973_vm6, %v22083_v59, -inf }
 0xe3c   : > { %11199 = vmax.xlane.f32.xlu1 %v11198_v52  ;;  %v16528_v42 = vpop.f32.mrb[36].mxu0  ;;  %v11195_v24 = vsel %vm1973_vm6, %v22086_v3, -inf }
 0xe3d   : > { %v22093_v36 = vadd.f32 %v16528_v42, %v18965_v14  ;;  %v10807_v17 = vpop.f32.mrb[37].mxu0  ;;  %11196 = vmax.xlane.f32.xlu0 %v11195_v24 }
 0xe3e   : > { %v22096_v5 = vadd.f32 %v10807_v17, %v18967_v15 }
 0xe3f   : > { %v11204_v37 = vsel %vm1973_vm6, %v22093_v36, -inf }
 0xe40   : > { %11205 = vmax.xlane.f32.xlu1 %v11204_v37  ;;  %v16531_v0 = vpop.f32.mrb[38].mxu0  ;;  %v11201_v27 = vsel %vm1973_vm6, %v22096_v5, -inf }
 0xe41   : > { %v22103_v61 = vadd.f32 %v16531_v0, %v18975_v20  ;;  %v10817_v58 = vpop.f32.mrb[39].mxu0  ;;  %11202 = vmax.xlane.f32.xlu0 %v11201_v27 }
 0xe42   : > { %v22106_v7 = vadd.f32 %v10817_v58, %v18979_v22 }
 0xe43   : > { %v11210_v1 = vsel %vm1973_vm6, %v22103_v61, -inf }
 0xe44   : > { %v16542_v23 = vpop.f32.mrb[116].mxu1  ;;  %11211 = vmax.xlane.f32.xlu1 %v11210_v1  ;;  %v11207_v35 = vsel %vm1973_vm6, %v22106_v7, -inf }
 0xe45   : > { %v22113_v44 = vadd.f32 %v16542_v23, %v18965_v14  ;;  %v10916_v41 = vpop.f32.mrb[117].mxu1  ;;  %11208 = vmax.xlane.f32.xlu0 %v11207_v35 }
 0xe46   : > { %v22116_v34 = vadd.f32 %v10916_v41, %v18967_v15 }
 0xe47   : > { %v11216_v38 = vsel %vm1973_vm6, %v22113_v44, -inf }
 0xe48   : > { %v16545_v32 = vpop.f32.mrb[118].mxu1  ;;  %11217 = vmax.xlane.f32.xlu1 %v11216_v38  ;;  %v11213_v10 = vsel %vm1973_vm6, %v22116_v34, -inf }
 0xe49   : > { %v22123_v26 = vadd.f32 %v16545_v32, %v18975_v20  ;;  %v10926_v46 = vpop.f32.mrb[119].mxu1  ;;  %11214 = vmax.xlane.f32.xlu0 %v11213_v10 }
 0xe4a   : > { %v22126_v50 = vadd.f32 %v10926_v46, %v18979_v22 }
 0xe4b   : > { %v11222_v16 = vsel %vm1973_vm6, %v22123_v26, -inf }
 0xe4c   : > { %11223 = vmax.xlane.f32.xlu1 %v11222_v16  ;;  %v16556_v43 = vpop.f32.mrb[40].mxu0  ;;  %v11219_v45 = vsel %vm1973_vm6, %v22126_v50, -inf }
 0xe4d   : > { %v22133_v6 = vadd.f32 %v16556_v43, %v18965_v14  ;;  %v11025_v25 = vpop.f32.mrb[41].mxu0  ;;  %11220 = vmax.xlane.f32.xlu0 %v11219_v45 }
 0xe4e   : > { %v22136_v8 = vadd.f32 %v11025_v25, %v18967_v15 }
 0xe4f   : > { %v11228_v54 = vsel %vm1973_vm6, %v22133_v6, -inf }
 0xe50   : > { %11229 = vmax.xlane.f32.xlu1 %v11228_v54  ;;  %v16559_v52 = vpop.f32.mrb[42].mxu0  ;;  %v11225_v42 = vsel %vm1973_vm6, %v22136_v8, -inf }
 0xe51   : > { %v22143_v24 = vadd.f32 %v16559_v52, %v18975_v20  ;;  %v11035_v17 = vpop.f32.mrb[43].mxu0  ;;  %11226 = vmax.xlane.f32.xlu0 %v11225_v42 }
 0xe52   : > { %v22146_v37 = vadd.f32 %v11035_v17, %v18979_v22 }
 0xe53   : > { %v11234_v0 = vsel %vm1973_vm6, %v22143_v24, -inf }
 0xe54   : > { %v16570_v27 = vpop.f32.mrb[120].mxu1  ;;  %11235 = vmax.xlane.f32.xlu1 %v11234_v0  ;;  %v11231_v58 = vsel %vm1973_vm6, %v22146_v37, -inf }
 0xe55   : > { %v22153_v1 = vadd.f32 %v16570_v27, %v18965_v14  ;;  %v11134_v23 = vpop.f32.mrb[121].mxu1  ;;  %11232 = vmax.xlane.f32.xlu0 %v11231_v58 }
 0xe56   : > { %v22156_v35 = vadd.f32 %v11134_v23, %v18967_v15 }
 0xe57   : > { %v11240_v41 = vsel %vm1973_vm6, %v22153_v1, -inf }
 0xe58   : > { %v16573_v38 = vpop.f32.mrb[122].mxu1  ;;  %11241 = vmax.xlane.f32.xlu1 %v11240_v41  ;;  %v11237_v32 = vsel %vm1973_vm6, %v22156_v35, -inf }
 0xe59   : > { %v22163_v10 = vadd.f32 %v16573_v38, %v18975_v20  ;;  %v11144_v46 = vpop.f32.mrb[123].mxu1  ;;  %11238 = vmax.xlane.f32.xlu0 %v11237_v32 }
 0xe5a   : > { %v22166_v14 = vadd.f32 %v11144_v46, %v18979_v22 }
 0xe5b   : > { %v11246_v15 = vsel %vm1973_vm6, %v22163_v10, -inf }
 0xe5c   : > { %11247 = vmax.xlane.f32.xlu1 %v11246_v15  ;;  %v11243_v16 = vsel %vm1973_vm6, %v22166_v14, -inf }
 0xe5d   : > { %11244 = vmax.xlane.f32.xlu0 %v11243_v16 }
 0xead   : > { %v11158_v43 = vpop.xlane.xlu1 %11157 }
 0xeae   : > { %v11250_v45 = vsub.f32 %v22013_v19, %v11158_v43  ;;  %v11155_v25 = vpop.xlane.xlu0 %11154 }
 0xeaf   : > { %v11249_v20 = vsub.f32 %v22016_v63, %v11155_v25 }
 0xeb0   : > { %v11283_v54 = vmul.f32 1.442695, %v11250_v45 }
 0xeb1   : > { %v11281_v52 = vmul.f32 1.442695, %v11249_v20  ;;  %v11164_v42 = vpop.xlane.xlu1 %11163 }
 0xeb2   : > { %18142 = vpow2.f32 %v11283_v54  ;;  %v11252_v22 = vsub.f32 %v22023_v29, %v11164_v42  ;;  %v11161_v17 = vpop.xlane.xlu0 %11160 }
 0xeb3   : > { %18144 = vpow2.f32 %v11281_v52  ;;  %v11251_v0 = vsub.f32 %v22026_v62, %v11161_v17 }
 0xeb4   : > { %v11287_v27 = vmul.f32 1.442695, %v11252_v22 }
 0xeb5   : > { %v11285_v58 = vmul.f32 1.442695, %v11251_v0  ;;  %v11170_v23 = vpop.xlane.xlu1 %11169 }
 0xeb6   : > { %18146 = vpow2.f32 %v11287_v27  ;;  %v11254_v41 = vsub.f32 %v22033_v48, %v11170_v23  ;;  %v11167_v19 = vpop.xlane.xlu0 %11166 }
 0xeb7   : > { %18148 = vpow2.f32 %v11285_v58  ;;  %v11253_v63 = vsub.f32 %v22036_v4, %v11167_v19 }
 0xeb8   : > { %v11291_v38 = vmul.f32 1.442695, %v11254_v41 }
 0xeb9   : > { %v11289_v32 = vmul.f32 1.442695, %v11253_v63  ;;  %v11176_v46 = vpop.xlane.xlu1 %11175 }
 0xeba   : > { %18150 = vpow2.f32 %v11291_v38  ;;  %v11256_v29 = vsub.f32 %v22043_v21, %v11176_v46  ;;  %v11173_v15 = vpop.xlane.xlu0 %11172 }
 0xebb   : > { %18152 = vpow2.f32 %v11289_v32  ;;  %v11255_v62 = vsub.f32 %v22046_v53, %v11173_v15 }
 0xebc   : > { %v22180_v16 = vpop.eup %18142  ;;  %v11295_v43 = vmul.f32 1.442695, %v11256_v29 }
 0xebd   : > { %v22182_v45 = vpop.eup %18144  ;;  %v11293_v48 = vmul.f32 1.442695, %v11255_v62  ;;  %v11182_v25 = vpop.xlane.xlu1 %11181  ;;  %v11348_v4 = vsel %vm1973_vm6, %v22180_v16, 0.0 }
 0xebe   : > { %18154 = vpow2.f32 %v11295_v43  ;;  %v11258_v20 = vsub.f32 %v22053_v9, %v11182_v25  ;;  %11349 = vadd.xlane.f32.xlu1 %v11348_v4  ;;  %v11179_v54 = vpop.xlane.xlu0 %11178  ;;  %v11345_v21 = vsel %vm1973_vm6, %v22182_v45, 0.0 }
 0xebf   : > { %18156 = vpow2.f32 %v11293_v48  ;;  %v11257_v53 = vsub.f32 %v22056_v47, %v11179_v54  ;;  %11346 = vadd.xlane.f32.xlu0 %v11345_v21 }
 0xec0   : > { %v22190_v52 = vpop.eup %18146  ;;  %v11299_v42 = vmul.f32 1.442695, %v11258_v20 }
 0xec1   : > { %v22192_v22 = vpop.eup %18148  ;;  %v11297_v17 = vmul.f32 1.442695, %v11257_v53  ;;  %v11188_v0 = vpop.xlane.xlu1 %11187  ;;  %v11354_v27 = vsel %vm1973_vm6, %v22190_v52, 0.0 }
 0xec2   : > { %18158 = vpow2.f32 %v11299_v42  ;;  %v11260_v9 = vsub.f32 %v22063_v12, %v11188_v0  ;;  %11355 = vadd.xlane.f32.xlu1 %v11354_v27  ;;  %v11185_v58 = vpop.xlane.xlu0 %11184  ;;  %v11351_v23 = vsel %vm1973_vm6, %v22192_v22, 0.0 }
 0xec3   : > { %18160 = vpow2.f32 %v11297_v17  ;;  %v11259_v47 = vsub.f32 %v22066_v60, %v11185_v58  ;;  %11352 = vadd.xlane.f32.xlu0 %v11351_v23 }
 0xec4   : > { %v22200_v41 = vpop.eup %18150  ;;  %v11303_v19 = vmul.f32 1.442695, %v11260_v9 }
 0xec5   : > { %v22202_v63 = vpop.eup %18152  ;;  %v11301_v38 = vmul.f32 1.442695, %v11259_v47  ;;  %v11194_v32 = vpop.xlane.xlu1 %11193  ;;  %v11360_v46 = vsel %vm1973_vm6, %v22200_v41, 0.0 }
 0xec6   : > { %18162 = vpow2.f32 %v11303_v19  ;;  %v11262_v12 = vsub.f32 %v22073_v33, %v11194_v32  ;;  %11361 = vadd.xlane.f32.xlu1 %v11360_v46  ;;  %v11191_v29 = vpop.xlane.xlu0 %11190  ;;  %v11357_v15 = vsel %vm1973_vm6, %v22202_v63, 0.0 }
 0xec7   : > { %18164 = vpow2.f32 %v11301_v38  ;;  %v11261_v60 = vsub.f32 %v22076_v49, %v11191_v29  ;;  %11358 = vadd.xlane.f32.xlu0 %v11357_v15 }
 0xec8   : > { %v22210_v62 = vpop.eup %18154  ;;  %v11307_v43 = vmul.f32 1.442695, %v11262_v12 }
 0xec9   : > { %v22212_v48 = vpop.eup %18156  ;;  %v11305_v25 = vmul.f32 1.442695, %v11261_v60  ;;  %v11200_v4 = vpop.xlane.xlu1 %11199  ;;  %v11366_v20 = vsel %vm1973_vm6, %v22210_v62, 0.0 }
 0xeca   : > { %18166 = vpow2.f32 %v11307_v43  ;;  %v11264_v33 = vsub.f32 %v22083_v59, %v11200_v4  ;;  %11367 = vadd.xlane.f32.xlu1 %v11366_v20  ;;  %v11197_v54 = vpop.xlane.xlu0 %11196  ;;  %v11363_v21 = vsel %vm1973_vm6, %v22212_v48, 0.0 }
 0xecb   : > { %18168 = vpow2.f32 %v11305_v25  ;;  %v11263_v49 = vsub.f32 %v22086_v3, %v11197_v54  ;;  %11364 = vadd.xlane.f32.xlu0 %v11363_v21 }
 0xecc   : > { %v22220_v53 = vpop.eup %18158  ;;  %v11311_v42 = vmul.f32 1.442695, %v11264_v33 }
 0xecd   : > { %v22222_v17 = vpop.eup %18160  ;;  %v11309_v0 = vmul.f32 1.442695, %v11263_v49  ;;  %v11206_v27 = vpop.xlane.xlu1 %11205  ;;  %v11372_v9 = vsel %vm1973_vm6, %v22220_v53, 0.0 }
 0xece   : > { %18170 = vpow2.f32 %v11311_v42  ;;  %v11266_v59 = vsub.f32 %v22093_v36, %v11206_v27  ;;  %11373 = vadd.xlane.f32.xlu1 %v11372_v9  ;;  %v11203_v58 = vpop.xlane.xlu0 %11202  ;;  %v11369_v23 = vsel %vm1973_vm6, %v22222_v17, 0.0 }
 0xecf   : > { %18172 = vpow2.f32 %v11309_v0  ;;  %v11265_v3 = vsub.f32 %v22096_v5, %v11203_v58  ;;  %11370 = vadd.xlane.f32.xlu0 %v11369_v23 }
 0xed0   : > { %v22230_v47 = vpop.eup %18162  ;;  %v11315_v19 = vmul.f32 1.442695, %v11266_v59 }
 0xed1   : > { %v22232_v38 = vpop.eup %18164  ;;  %v11313_v32 = vmul.f32 1.442695, %v11265_v3  ;;  %v11212_v46 = vpop.xlane.xlu1 %11211  ;;  %v11378_v12 = vsel %vm1973_vm6, %v22230_v47, 0.0 }
 0xed2   : > { %18174 = vpow2.f32 %v11315_v19  ;;  %v11268_v36 = vsub.f32 %v22103_v61, %v11212_v46  ;;  %11379 = vadd.xlane.f32.xlu1 %v11378_v12  ;;  %v11209_v29 = vpop.xlane.xlu0 %11208  ;;  %v11375_v15 = vsel %vm1973_vm6, %v22232_v38, 0.0 }
 0xed3   : > { %18176 = vpow2.f32 %v11313_v32  ;;  %v11267_v5 = vsub.f32 %v22106_v7, %v11209_v29  ;;  %11376 = vadd.xlane.f32.xlu0 %v11375_v15 }
 0xed4   : > { %v22240_v60 = vpop.eup %18166  ;;  %v11319_v43 = vmul.f32 1.442695, %v11268_v36 }
 0xed5   : > { %v22242_v25 = vpop.eup %18168  ;;  %v11317_v4 = vmul.f32 1.442695, %v11267_v5  ;;  %v11218_v20 = vpop.xlane.xlu1 %11217  ;;  %v11384_v33 = vsel %vm1973_vm6, %v22240_v60, 0.0 }
 0xed6   : > { %18178 = vpow2.f32 %v11319_v43  ;;  %v11270_v61 = vsub.f32 %v22113_v44, %v11218_v20  ;;  %11385 = vadd.xlane.f32.xlu1 %v11384_v33  ;;  %v11215_v54 = vpop.xlane.xlu0 %11214  ;;  %v11381_v21 = vsel %vm1973_vm6, %v22242_v25, 0.0 }
 0xed7   : > { %18180 = vpow2.f32 %v11317_v4  ;;  %v11269_v7 = vsub.f32 %v22116_v34, %v11215_v54  ;;  %11382 = vadd.xlane.f32.xlu0 %v11381_v21 }
 0xed8   : > { %v22250_v49 = vpop.eup %18170  ;;  %v11323_v42 = vmul.f32 1.442695, %v11270_v61 }
 0xed9   : > { %v22252_v0 = vpop.eup %18172  ;;  %v11321_v27 = vmul.f32 1.442695, %v11269_v7  ;;  %v11224_v9 = vpop.xlane.xlu1 %11223  ;;  %v11390_v59 = vsel %vm1973_vm6, %v22250_v49, 0.0 }
 0xeda   : > { %18182 = vpow2.f32 %v11323_v42  ;;  %v11272_v44 = vsub.f32 %v22123_v26, %v11224_v9  ;;  %11391 = vadd.xlane.f32.xlu1 %v11390_v59  ;;  %v11221_v58 = vpop.xlane.xlu0 %11220  ;;  %v11387_v23 = vsel %vm1973_vm6, %v22252_v0, 0.0 }
 0xedb   : > { %18184 = vpow2.f32 %v11321_v27  ;;  %v11271_v34 = vsub.f32 %v22126_v50, %v11221_v58  ;;  %11388 = vadd.xlane.f32.xlu0 %v11387_v23 }
 0xedc   : > { %v22260_v3 = vpop.eup %18174  ;;  %v11327_v19 = vmul.f32 1.442695, %v11272_v44 }
 0xedd   : > { %v22262_v32 = vpop.eup %18176  ;;  %v11325_v46 = vmul.f32 1.442695, %v11271_v34  ;;  %v11230_v12 = vpop.xlane.xlu1 %11229  ;;  %v11396_v36 = vsel %vm1973_vm6, %v22260_v3, 0.0 }
 0xede   : > { %18186 = vpow2.f32 %v11327_v19  ;;  %v11274_v26 = vsub.f32 %v22133_v6, %v11230_v12  ;;  %11397 = vadd.xlane.f32.xlu1 %v11396_v36  ;;  %v11227_v29 = vpop.xlane.xlu0 %11226  ;;  %v11393_v15 = vsel %vm1973_vm6, %v22262_v32, 0.0 }
 0xedf   : > { %18188 = vpow2.f32 %v11325_v46  ;;  %v11273_v50 = vsub.f32 %v22136_v8, %v11227_v29  ;;  %11394 = vadd.xlane.f32.xlu0 %v11393_v15 }
 0xee0   : > { %v22270_v5 = vpop.eup %18178  ;;  %v11331_v43 = vmul.f32 1.442695, %v11274_v26 }
 0xee1   : > { %v22272_v4 = vpop.eup %18180  ;;  %v11329_v20 = vmul.f32 1.442695, %v11273_v50  ;;  %v11236_v33 = vpop.xlane.xlu1 %11235  ;;  %v11402_v61 = vsel %vm1973_vm6, %v22270_v5, 0.0 }
 0xee2   : > { %18190 = vpow2.f32 %v11331_v43  ;;  %v11276_v6 = vsub.f32 %v22143_v24, %v11236_v33  ;;  %11403 = vadd.xlane.f32.xlu1 %v11402_v61  ;;  %v11233_v54 = vpop.xlane.xlu0 %11232  ;;  %v11399_v21 = vsel %vm1973_vm6, %v22272_v4, 0.0 }
 0xee3   : > { %18192 = vpow2.f32 %v11329_v20  ;;  %v11275_v8 = vsub.f32 %v22146_v37, %v11233_v54  ;;  %11400 = vadd.xlane.f32.xlu0 %v11399_v21 }
 0xee4   : > { %v22280_v7 = vpop.eup %18182  ;;  %v11335_v42 = vmul.f32 1.442695, %v11276_v6 }
 0xee5   : > { %v22282_v27 = vpop.eup %18184  ;;  %v11333_v9 = vmul.f32 1.442695, %v11275_v8  ;;  %v11242_v59 = vpop.xlane.xlu1 %11241  ;;  %v11408_v44 = vsel %vm1973_vm6, %v22280_v7, 0.0 }
 0xee6   : > { %18194 = vpow2.f32 %v11335_v42  ;;  %v11278_v24 = vsub.f32 %v22153_v1, %v11242_v59  ;;  %11409 = vadd.xlane.f32.xlu1 %v11408_v44  ;;  %v11239_v58 = vpop.xlane.xlu0 %11238  ;;  %v11405_v23 = vsel %vm1973_vm6, %v22282_v27, 0.0 }
 0xee7   : > { %18196 = vpow2.f32 %v11333_v9  ;;  %v11277_v37 = vsub.f32 %v22156_v35, %v11239_v58  ;;  %11406 = vadd.xlane.f32.xlu0 %v11405_v23 }
 0xee8   : > { %v22290_v34 = vpop.eup %18186  ;;  %v11339_v19 = vmul.f32 1.442695, %v11278_v24 }
 0xee9   : > { %v22292_v46 = vpop.eup %18188  ;;  %v11337_v12 = vmul.f32 1.442695, %v11277_v37  ;;  %v11248_v36 = vpop.xlane.xlu1 %11247  ;;  %v11414_v26 = vsel %vm1973_vm6, %v22290_v34, 0.0 }
 0xeea   : > { %18198 = vpow2.f32 %v11339_v19  ;;  %v11280_v1 = vsub.f32 %v22163_v10, %v11248_v36  ;;  %11415 = vadd.xlane.f32.xlu1 %v11414_v26  ;;  %v11245_v29 = vpop.xlane.xlu0 %11244  ;;  %v11411_v15 = vsel %vm1973_vm6, %v22292_v46, 0.0 }
 0xeeb   : > { %18200 = vpow2.f32 %v11337_v12  ;;  %v11279_v35 = vsub.f32 %v22166_v14, %v11245_v29  ;;  %11412 = vadd.xlane.f32.xlu0 %v11411_v15 }
 0xeec   : > { %v22300_v50 = vpop.eup %18190  ;;  %v11343_v43 = vmul.f32 1.442695, %v11280_v1 }
 0xeed   : > { %v22302_v20 = vpop.eup %18192  ;;  %v11341_v33 = vmul.f32 1.442695, %v11279_v35  ;;  %v11420_v61 = vsel %vm1973_vm6, %v22300_v50, 0.0 }
 0xeee   : > { %18202 = vpow2.f32 %v11343_v43  ;;  %11421 = vadd.xlane.f32.xlu1 %v11420_v61  ;;  %v11417_v10 = vsel %vm1973_vm6, %v22302_v20, 0.0 }
 0xeef   : > { %18204 = vpow2.f32 %v11341_v33  ;;  %11418 = vadd.xlane.f32.xlu0 %v11417_v10 }
 0xef0   : > { %v22308_v6 = vpop.eup %18194 }
 0xef1   : > { %v22310_v14 = vpop.eup %18196  ;;  %v11426_v54 = vsel %vm1973_vm6, %v22308_v6, 0.0 }
 0xef2   : > { %11427 = vadd.xlane.f32.xlu1 %v11426_v54  ;;  %v11423_v21 = vsel %vm1973_vm6, %v22310_v14, 0.0 }
 0xef3   : > { %11424 = vadd.xlane.f32.xlu0 %v11423_v21 }
 0xef4   : > { %v22316_v8 = vpop.eup %18198 }
 0xef5   : > { %v22318_v42 = vpop.eup %18200  ;;  %v11432_v9 = vsel %vm1973_vm6, %v22316_v8, 0.0 }
 0xef6   : > { %11433 = vadd.xlane.f32.xlu1 %v11432_v9  ;;  %v11429_v59 = vsel %vm1973_vm6, %v22318_v42, 0.0 }
 0xef7   : > { %11430 = vadd.xlane.f32.xlu0 %v11429_v59 }
 0xef8   : > { %v22324_v44 = vpop.eup %18202 }
 0xef9   : > { %v22326_v24 = vpop.eup %18204  ;;  %v11438_v58 = vsel %vm1973_vm6, %v22324_v44, 0.0 }
 0xefa   : > { %11439 = vadd.xlane.f32.xlu1 %v11438_v58  ;;  %v11435_v23 = vsel %vm1973_vm6, %v22326_v24, 0.0 }
 0xefb   : > { %11436 = vadd.xlane.f32.xlu0 %v11435_v23 }
 0xf4b   : > { %v11350_v37 = vpop.xlane.xlu1 %11349 }
 0xf4c   : > { %18206 = vrcp.f32 %v11350_v37  ;;  %v11347_v19 = vpop.xlane.xlu0 %11346 }
 0xf4d   : > { %18208 = vrcp.f32 %v11347_v19 }
 0xf4f   : > { %v11356_v12 = vpop.xlane.xlu1 %11355 }
 0xf50   : > { %18210 = vrcp.f32 %v11356_v12  ;;  %v11353_v36 = vpop.xlane.xlu0 %11352 }
 0xf51   : > { %18212 = vrcp.f32 %v11353_v36 }
 0xf53   : > { %v11362_v26 = vpop.xlane.xlu1 %11361 }
 0xf54   : > { %18214 = vrcp.f32 %v11362_v26  ;;  %v11359_v1 = vpop.xlane.xlu0 %11358 }
 0xf55   : > { %18216 = vrcp.f32 %v11359_v1 }
 0xf56   : > { %v18207_v29 = vpop.eup %18206 }
 0xf57   : > { %v18209_v15 = vpop.eup %18208  ;;  %v11368_v35 = vpop.xlane.xlu1 %11367  ;;  %v11474_v61 = vmul.f32 %v18207_v29, %v22180_v16 }
 0xf58   : > { %18218 = vrcp.f32 %v11368_v35  ;;  %v11365_v43 = vpop.xlane.xlu0 %11364  ;;  %v11473_v33 = vmul.f32 %v18209_v15, %v22182_v45 }
 0xf59   : > { %18220 = vrcp.f32 %v11365_v43 }
 0xf5a   : > { %v18211_v10 = vpop.eup %18210  ;;  %16582 = vmatprep.mubr.msk.f32.mxu0 %vm1973_vm6, %v11473_v33 }
 0xf5b   : > { %v18213_v54 = vpop.eup %18212  ;;  %v11374_v21 = vpop.xlane.xlu1 %11373  ;;  %16583 = vmatmul.mubr.msk.f32.vlgmr.msra.gmra.mrb[44].mxu0 %vm1973_vm6, %v11474_v61  ;;  %v11476_v58 = vmul.f32 %v18211_v10, %v22190_v52 }
 0xf5c   : > { %18222 = vrcp.f32 %v11374_v21  ;;  %17529 = vmatpush3.bf16.msra.mxu0 %v21847_v55  ;;  %v11371_v9 = vpop.xlane.xlu0 %11370  ;;  %v11475_v59 = vmul.f32 %v18213_v54, %v22192_v22 }
 0xf5d   : > { %17531 = vmatprep.subr.bf16.mxu0 %v21849_v30  ;;  %18224 = vrcp.f32 %v11371_v9 }
 0xf5e   : > { %v18215_v16 = vpop.eup %18214  ;;  %16585 = vmatprep.mubr.msk.f32.mxu0 %vm1973_vm6, %v11475_v59 }
 0xf5f   : > { %v18217_v45 = vpop.eup %18216  ;;  %v11380_v23 = vpop.xlane.xlu1 %11379  ;;  %16586 = vmatmul.mubr.msk.f32.gmra.mrb[46].mxu0 %vm1973_vm6, %v11476_v58  ;;  %v11478_v22 = vmul.f32 %v18215_v16, %v22200_v41 }
 0xf60   : > { %18226 = vrcp.f32 %v11380_v23  ;;  %17533 = vmatpush3.bf16.msra.mxu0 %v21849_v30  ;;  %v11377_v37 = vpop.xlane.xlu0 %11376  ;;  %v11477_v55 = vmul.f32 %v18217_v45, %v22202_v63 }
 0xf61   : > { %17543 = vmatprep.subr.bf16.mxu0 %v21855_v40  ;;  %18228 = vrcp.f32 %v11377_v37 }
 0xf62   : > { %v18219_v52 = vpop.eup %18218  ;;  %16596 = vmatprep.mubr.msk.f32.mxu0 %vm1973_vm6, %v11477_v55 }
 0xf63   : > { %v18221_v19 = vpop.eup %18220  ;;  %v11386_v12 = vpop.xlane.xlu1 %11385  ;;  %16597 = vmatmul.mubr.msk.f32.vlgmr.msra.gmra.mrb[48].mxu0 %vm1973_vm6, %v11478_v22  ;;  %v11480_v63 = vmul.f32 %v18219_v52, %v22210_v62 }
 0xf64   : > { %18230 = vrcp.f32 %v11386_v12  ;;  %17545 = vmatpush3.bf16.msra.mxu0 %v21855_v40  ;;  %v11383_v36 = vpop.xlane.xlu0 %11382  ;;  %v11479_v30 = vmul.f32 %v18221_v19, %v22212_v48  ;;  %v13695_v19 = vld [vmem:[%s22638_s4 + $0x30] sm:$0xff]  ;;  %v13696_v12 = vld [vmem:[%s22638_s4 + $0x38] sm:$0xff] }
 0xf65   : > { %17547 = vmatprep.subr.bf16.mxu0 %v21857_v51  ;;  %18232 = vrcp.f32 %v11383_v36 }
 0xf66   : > { %v18223_v41 = vpop.eup %18222  ;;  %16599 = vmatprep.mubr.msk.f32.mxu0 %vm1973_vm6, %v11479_v30 }
 0xf67   : > { %v18225_v26 = vpop.eup %18224  ;;  %v11392_v1 = vpop.xlane.xlu1 %11391  ;;  %16600 = vmatmul.mubr.msk.f32.gmra.mrb[50].mxu0 %vm1973_vm6, %v11480_v63  ;;  %v11482_v48 = vmul.f32 %v18223_v41, %v22220_v53  ;;  %v17582_v63 = vpack.c.bf16 %v13696_v12, %v13695_v19 }
 0xf68   : > { %18234 = vrcp.f32 %v11392_v1  ;;  %17549 = vmatpush3.bf16.msra.mxu0 %v21857_v51  ;;  %v11389_v29 = vpop.xlane.xlu0 %11388  ;;  %v11481_v40 = vmul.f32 %v18225_v26, %v22222_v17 }
 0xf69   : > { %17559 = vmatprep.subr.bf16.mxu0 %v21863_v13  ;;  %18236 = vrcp.f32 %v11389_v29 }
 0xf6a   : > { %v18227_v62 = vpop.eup %18226  ;;  %16610 = vmatprep.mubr.msk.f32.mxu1 %vm1973_vm6, %v11481_v40 }
 0xf6b   : > { %v18229_v15 = vpop.eup %18228  ;;  %v11398_v35 = vpop.xlane.xlu1 %11397  ;;  %16611 = vmatmul.mubr.msk.f32.vlgmr.msra.gmra.mrb[124].mxu1 %vm1973_vm6, %v11482_v48  ;;  %v11484_v17 = vmul.f32 %v18227_v62, %v22230_v47 }
 0xf6c   : > { %18238 = vrcp.f32 %v11398_v35  ;;  %17553 = vmatpush3.bf16.msra.mxu1 %v21859_v11  ;;  %v11395_v43 = vpop.xlane.xlu0 %11394  ;;  %v11483_v51 = vmul.f32 %v18229_v15, %v22232_v38 }
 0xf6d   : > { %17555 = vmatprep.subr.bf16.mxu1 %v21861_v28  ;;  %18240 = vrcp.f32 %v11395_v43 }
 0xf6e   : > { %v18231_v53 = vpop.eup %18230  ;;  %16613 = vmatprep.mubr.msk.f32.mxu1 %vm1973_vm6, %v11483_v51 }
 0xf6f   : > { %v18233_v33 = vpop.eup %18232  ;;  %v11404_v61 = vpop.xlane.xlu1 %11403  ;;  %16614 = vmatmul.mubr.msk.f32.gmra.mrb[126].mxu1 %vm1973_vm6, %v11484_v17  ;;  %v11486_v38 = vmul.f32 %v18231_v53, %v22240_v60 }
 0xf70   : > { %18242 = vrcp.f32 %v11404_v61  ;;  %17557 = vmatpush3.bf16.msra.mxu1 %v21861_v28  ;;  %v11401_v10 = vpop.xlane.xlu0 %11400  ;;  %v11485_v11 = vmul.f32 %v18233_v33, %v22242_v25 }
 0xf71   : > { %17567 = vmatprep.subr.bf16.mxu1 %v22004_v56  ;;  %18244 = vrcp.f32 %v11401_v10 }
 0xf72   : > { %v18235_v47 = vpop.eup %18234  ;;  %16624 = vmatprep.mubr.msk.f32.mxu0 %vm1973_vm6, %v11485_v11 }
 0xf73   : > { %v18237_v54 = vpop.eup %18236  ;;  %v11410_v21 = vpop.xlane.xlu1 %11409  ;;  %16625 = vmatmul.mubr.msk.f32.vlgmr.msra.gmra.mrb[52].mxu0 %vm1973_vm6, %v11486_v38  ;;  %v11488_v25 = vmul.f32 %v18235_v47, %v22250_v49 }
 0xf74   : > { %18246 = vrcp.f32 %v11410_v21  ;;  %17561 = vmatpush3.bf16.msra.mxu0 %v21863_v13  ;;  %v11407_v9 = vpop.xlane.xlu0 %11406  ;;  %v11487_v28 = vmul.f32 %v18237_v54, %v22252_v0 }
 0xf75   : > { %17563 = vmatprep.subr.bf16.mxu0 %v21865_v2  ;;  %18248 = vrcp.f32 %v11407_v9 }
 0xf76   : > { %v18239_v60 = vpop.eup %18238  ;;  %16627 = vmatprep.mubr.msk.f32.mxu0 %vm1973_vm6, %v11487_v28 }
 0xf77   : > { %v18241_v59 = vpop.eup %18240  ;;  %v11416_v58 = vpop.xlane.xlu1 %11415  ;;  %16628 = vmatmul.mubr.msk.f32.gmra.mrb[54].mxu0 %vm1973_vm6, %v11488_v25  ;;  %v11490_v0 = vmul.f32 %v18239_v60, %v22260_v3 }
 0xf78   : > { %18250 = vrcp.f32 %v11416_v58  ;;  %17565 = vmatpush3.bf16.msra.mxu0 %v21865_v2  ;;  %v11413_v16 = vpop.xlane.xlu0 %11412  ;;  %v11489_v13 = vmul.f32 %v18241_v59, %v22262_v32 }
 0xf79   : > { %17575 = vmatprep.subr.bf16.mxu0 %v22008_v31  ;;  %18252 = vrcp.f32 %v11413_v16 }
 0xf7a   : > { %v18243_v49 = vpop.eup %18242  ;;  %16638 = vmatprep.mubr.msk.f32.mxu1 %vm1973_vm6, %v11489_v13 }
 0xf7b   : > { %v18245_v45 = vpop.eup %18244  ;;  %v11422_v23 = vpop.xlane.xlu1 %11421  ;;  %16639 = vmatmul.mubr.msk.f32.vlgmr.msra.gmra.mrb[128].mxu1 %vm1973_vm6, %v11490_v0  ;;  %v11492_v32 = vmul.f32 %v18243_v49, %v22270_v5 }
 0xf7c   : > { %18254 = vrcp.f32 %v11422_v23  ;;  %17569 = vmatpush3.bf16.msra.mxu1 %v22004_v56  ;;  %v11419_v37 = vpop.xlane.xlu0 %11418  ;;  %v11491_v2 = vmul.f32 %v18245_v45, %v22272_v4 }
 0xf7d   : > { %17571 = vmatprep.subr.bf16.mxu1 %v22006_v57  ;;  %18256 = vrcp.f32 %v11419_v37 }
 0xf7e   : > { %v18247_v3 = vpop.eup %18246  ;;  %16641 = vmatprep.mubr.msk.f32.mxu1 %vm1973_vm6, %v11491_v2 }
 0xf7f   : > { %v18249_v55 = vpop.eup %18248  ;;  %v11428_v22 = vpop.xlane.xlu1 %11427  ;;  %16642 = vmatmul.mubr.msk.f32.gmra.mrb[130].mxu1 %vm1973_vm6, %v11492_v32  ;;  %v11494_v4 = vmul.f32 %v18247_v3, %v22280_v7 }
 0xf80   : > { %18258 = vrcp.f32 %v11428_v22  ;;  %17573 = vmatpush3.bf16.msra.mxu1 %v22006_v57  ;;  %v11425_v52 = vpop.xlane.xlu0 %11424  ;;  %v11493_v56 = vmul.f32 %v18249_v55, %v22282_v27  ;;  %v22462_v22 = vld [vmem:[%s22639_s5] ss:$0 sm:$0xff] }
 0xf81   : > { %18260 = vrcp.f32 %v11425_v52 }
 0xf82   : > { %v18251_v5 = vpop.eup %18250  ;;  %16652 = vmatprep.mubr.msk.f32.mxu0 %vm1973_vm6, %v11493_v56 }
 0xf83   : > { %v18253_v36 = vpop.eup %18252  ;;  %v11434_v30 = vpop.xlane.xlu1 %11433  ;;  %16653 = vmatmul.mubr.msk.f32.vlgmr.msra.gmra.mrb[56].mxu0 %vm1973_vm6, %v11494_v4  ;;  %v11496_v27 = vmul.f32 %v18251_v5, %v22290_v34 }
 0xf84   : > { %18262 = vrcp.f32 %v11434_v30  ;;  %17577 = vmatpush3.bf16.msra.mxu0 %v22008_v31  ;;  %v11431_v57 = vpop.xlane.xlu0 %11430  ;;  %v11495_v7 = vmul.f32 %v18253_v36, %v22292_v46 }
 0xf85   : > { %17579 = vmatprep.subr.bf16.mxu0 %v22010_v39  ;;  %18264 = vrcp.f32 %v11431_v57 }
 0xf86   : > { %v18255_v41 = vpop.eup %18254  ;;  %16655 = vmatprep.mubr.msk.f32.mxu0 %vm1973_vm6, %v11495_v7 }
 0xf87   : > { %v18257_v26 = vpop.eup %18256  ;;  %v11440_v1 = vpop.xlane.xlu1 %11439  ;;  %16656 = vmatmul.mubr.msk.f32.gmra.mrb[58].mxu0 %vm1973_vm6, %v11496_v27  ;;  %v11498_v46 = vmul.f32 %v18255_v41, %v22300_v50 }
 0xf88   : > { %18266 = vrcp.f32 %v11440_v1  ;;  %17581 = vmatpush3.bf16.msra.mxu0 %v22010_v39  ;;  %v11437_v31 = vpop.xlane.xlu0 %11436  ;;  %v11497_v29 = vmul.f32 %v18257_v26, %v22302_v20 }
 0xf89   : > { %18268 = vrcp.f32 %v11437_v31  ;;  %17583 = vmatprep.subr.bf16.mxu0 %v17582_v63 }
 0xf8a   : > { %v18259_v34 = vpop.eup %18258  ;;  %16666 = vmatprep.mubr.msk.f32.mxu1 %vm1973_vm6, %v11497_v29 }
 0xf8b   : > { %v18261_v40 = vpop.eup %18260  ;;  %16667 = vmatmul.mubr.msk.f32.vlgmr.msra.gmra.mrb[132].mxu1 %vm1973_vm6, %v11498_v46  ;;  %v11500_v62 = vmul.f32 %v18259_v34, %v22308_v6 }
 0xf8c   : > { %v11499_v48 = vmul.f32 %v18261_v40, %v22310_v14 }
 0xf8e   : > { %v18263_v15 = vpop.eup %18262  ;;  %16669 = vmatprep.mubr.msk.f32.mxu1 %vm1973_vm6, %v11499_v48 }
 0xf8f   : > { %v18265_v39 = vpop.eup %18264  ;;  %16670 = vmatmul.mubr.msk.f32.gmra.mrb[134].mxu1 %vm1973_vm6, %v11500_v62  ;;  %v11502_v20 = vmul.f32 %v18263_v15, %v22316_v8 }
 0xf90   : > { %v11501_v50 = vmul.f32 %v18265_v39, %v22318_v42 }
 0xf92   : > { %v18267_v35 = vpop.eup %18266  ;;  %16680 = vmatprep.mubr.msk.f32.mxu0 %vm1973_vm6, %v11501_v50  ;;  %v3444_v50 = vadd.f32 %v19771_v18, %v22462_v22 }
 0xf93   : > { %v18269_v43 = vpop.eup %18268  ;;  %16681 = vmatmul.mubr.msk.f32.vlgmr.msra.gmra.mrb[60].mxu0 %vm1973_vm6, %v11502_v20  ;;  %v11504_v6 = vmul.f32 %v18267_v35, %v22324_v44  ;;  %v22664_v20 = vld [vmem:[#allocation5_spill] sm:$0xff] }
 0xf94   : > { %v11503_v14 = vmul.f32 %v18269_v43, %v22326_v24  ;;  %17585 = vmatpush3.bf16.msra.mxu0 %v17582_v63  ;;  %v3443_v35 = vadd.f32 %v22462_v22, %v22664_v20 }
 0xf96   : > { %16683 = vmatprep.mubr.msk.f32.mxu0 %vm1973_vm6, %v11503_v14 }
 0xf97   : > { %16684 = vmatmul.mubr.msk.f32.gmra.mrb[62].mxu0 %vm1973_vm6, %v11504_v6 }
0x102e   : > { %v16584_v51 = vpop.f32.mrb[44].mxu0 }
0x102f   : > { %v11583_v17 = vpop.f32.mrb[45].mxu0 }
0x1030   : > { %16690 = vmatprep.mubr.msk.f32.mxu0 %vm1100_vm1, %v11583_v17  ;;  %v22665_v17 = vld [vmem:[#allocation6_spill] sm:$0xff] }
0x1031   : > { %16691 = vmatmul.mubr.msk.f32.vlgmr.msra.gmra.mrb[88].mxu0 %vm1100_vm1, %v16584_v51 }
0x1032   : > { %v16587_v8 = vpop.f32.mrb[46].mxu0 }
0x1033   : > { %v11593_v42 = vpop.f32.mrb[47].mxu0 }
0x1034   : > { %16693 = vmatprep.mubr.msk.f32.mxu0 %vm1100_vm1, %v11593_v42  ;;  %v22666_v42 = vld [vmem:[#allocation7_spill] sm:$0xff] }
0x1035   : > { %16694 = vmatmul.mubr.msk.f32.gmra.mrb[90].mxu0 %vm1100_vm1, %v16587_v8  ;;  %v3446_v8 = vadd.f32 %v22665_v17, %v22462_v22  ;;  %v3445_v18 = vadd.f32 %v22462_v22, %v22666_v42 }
0x1036   : > { %v16598_v24 = vpop.f32.mrb[48].mxu0 }
0x1037   : > { %v11680_v53 = vpop.f32.mrb[49].mxu0 }
0x1038   : > { %16696 = vmatprep.mubr.msk.f32.mxu0 %vm1100_vm1, %v11680_v53 }
0x1039   : > { %16697 = vmatmul.mubr.msk.f32.gmra.mrb[92].mxu0 %vm1100_vm1, %v16598_v24 }
0x103a   : > { %v16601_v44 = vpop.f32.mrb[50].mxu0 }
0x103b   : > { %v11690_v33 = vpop.f32.mrb[51].mxu0 }
0x103c   : > { %16699 = vmatprep.mubr.msk.f32.mxu0 %vm1100_vm1, %v11690_v33 }
0x103d   : > { %16700 = vmatmul.mubr.msk.f32.gmra.mrb[94].mxu0 %vm1100_vm1, %v16601_v44 }
0x103e   : > { %v16612_v61 = vpop.f32.mrb[124].mxu1 }
0x103f   : > { %v11777_v10 = vpop.f32.mrb[125].mxu1 }
0x1040   : > { %16702 = vmatprep.mubr.msk.f32.mxu0 %vm1100_vm1, %v11777_v10 }
0x1041   : > { %16703 = vmatmul.mubr.msk.f32.gmra.mrb[96].mxu0 %vm1100_vm1, %v16612_v61  ;;  %v22667_v61 = vld [vmem:[#allocation8_spill] sm:$0xff] }
0x1042   : > { %v16615_v11 = vpop.f32.mrb[126].mxu1  ;;  %v3448_v10 = vadd.f32 %v22667_v61, %v22462_v22 }
0x1043   : > { %v11787_v38 = vpop.f32.mrb[127].mxu1 }
0x1044   : > { %16705 = vmatprep.mubr.msk.f32.mxu0 %vm1100_vm1, %v11787_v38 }
0x1045   : > { %16706 = vmatmul.mubr.msk.f32.gmra.mrb[98].mxu0 %vm1100_vm1, %v16615_v11  ;;  %v22668_v11 = vld [vmem:[#allocation9_spill] sm:$0xff] }
0x1046   : > { %v16626_v47 = vpop.f32.mrb[52].mxu0  ;;  %v3447_v38 = vadd.f32 %v22462_v22, %v22668_v11 }
0x1047   : > { %v11874_v54 = vpop.f32.mrb[53].mxu0 }
0x1048   : > { %16708 = vmatprep.mubr.msk.f32.mxu0 %vm1100_vm1, %v11874_v54 }
0x1049   : > { %16709 = vmatmul.mubr.msk.f32.gmra.mrb[168].mxu0 %vm1100_vm1, %v16626_v47 }
0x104a   : > { %v16629_v21 = vpop.f32.mrb[54].mxu0 }
0x104b   : > { %v11884_v9 = vpop.f32.mrb[55].mxu0 }
0x104c   : > { %16711 = vmatprep.mubr.msk.f32.mxu0 %vm1100_vm1, %v11884_v9 }
0x104d   : > { %16712 = vmatmul.mubr.msk.f32.gmra.mrb[170].mxu0 %vm1100_vm1, %v16629_v21 }
0x104e   : > { %v16640_v28 = vpop.f32.mrb[128].mxu1 }
0x104f   : > { %v11971_v25 = vpop.f32.mrb[129].mxu1 }
0x1050   : > { %16714 = vmatprep.mubr.msk.f32.mxu0 %vm1100_vm1, %v11971_v25 }
0x1051   : > { %16715 = vmatmul.mubr.msk.f32.gmra.mrb[172].mxu0 %vm1100_vm1, %v16640_v28  ;;  %v22669_v28 = vld [vmem:[#allocation10_spill] sm:$0xff] }
0x1052   : > { %v16643_v60 = vpop.f32.mrb[130].mxu1  ;;  %v3450_v25 = vadd.f32 %v22669_v28, %v22462_v22 }
0x1053   : > { %v11981_v59 = vpop.f32.mrb[131].mxu1 }
0x1054   : > { %16717 = vmatprep.mubr.msk.f32.mxu0 %vm1100_vm1, %v11981_v59 }
0x1055   : > { %16718 = vmatmul.mubr.msk.f32.gmra.mrb[174].mxu0 %vm1100_vm1, %v16643_v60  ;;  %v22670_v60 = vld [vmem:[#allocation11_spill] sm:$0xff] }
0x1056   : > { %v16654_v58 = vpop.f32.mrb[56].mxu0  ;;  %v3449_v59 = vadd.f32 %v22462_v22, %v22670_v60 }
0x1057   : > { %v12068_v16 = vpop.f32.mrb[57].mxu0 }
0x1058   : > { %16720 = vmatprep.mubr.msk.f32.mxu0 %vm1100_vm1, %v12068_v16 }
0x1059   : > { %16721 = vmatmul.mubr.msk.f32.gmra.mrb[176].mxu0 %vm1100_vm1, %v16654_v58 }
0x105a   : > { %v16657_v13 = vpop.f32.mrb[58].mxu0 }
0x105b   : > { %v12078_v0 = vpop.f32.mrb[59].mxu0 }
0x105c   : > { %16723 = vmatprep.mubr.msk.f32.mxu0 %vm1100_vm1, %v12078_v0 }
0x105d   : > { %16724 = vmatmul.mubr.msk.f32.gmra.mrb[178].mxu0 %vm1100_vm1, %v16657_v13 }
0x105e   : > { %v16668_v49 = vpop.f32.mrb[132].mxu1 }
0x105f   : > { %v12165_v45 = vpop.f32.mrb[133].mxu1 }
0x1060   : > { %16726 = vmatprep.mubr.msk.f32.mxu0 %vm1100_vm1, %v12165_v45 }
0x1061   : > { %16727 = vmatmul.mubr.msk.f32.gmra.mrb[180].mxu0 %vm1100_vm1, %v16668_v49  ;;  %v22671_v49 = vld [vmem:[#allocation12_spill] sm:$0xff] }
0x1062   : > { %v16671_v23 = vpop.f32.mrb[134].mxu1  ;;  %v3452_v45 = vadd.f32 %v22671_v49, %v22462_v22 }
0x1063   : > { %v12175_v37 = vpop.f32.mrb[135].mxu1 }
0x1064   : > { %16729 = vmatprep.mubr.msk.f32.mxu0 %vm1100_vm1, %v12175_v37 }
0x1065   : > { %16730 = vmatmul.mubr.msk.f32.gmra.mrb[182].mxu0 %vm1100_vm1, %v16671_v23  ;;  %v22672_v23 = vld [vmem:[#allocation13_spill] sm:$0xff] }
0x1066   : > { %v16682_v2 = vpop.f32.mrb[60].mxu0  ;;  %v3451_v37 = vadd.f32 %v22462_v22, %v22672_v23 }
0x1067   : > { %v12262_v32 = vpop.f32.mrb[61].mxu0 }
0x1068   : > { %16732 = vmatprep.mubr.msk.f32.mxu0 %vm1100_vm1, %v12262_v32 }
0x1069   : > { %16733 = vmatmul.mubr.msk.f32.gmra.mrb[184].mxu0 %vm1100_vm1, %v16682_v2 }
0x106a   : > { %v16685_v3 = vpop.f32.mrb[62].mxu0 }
0x106b   : > { %v12272_v55 = vpop.f32.mrb[63].mxu0 }
0x106c   : > { %16735 = vmatprep.mubr.msk.f32.mxu0 %vm1100_vm1, %v12272_v55 }
0x106d   : > { %16736 = vmatmul.mubr.msk.f32.gmra.mrb[186].mxu0 %vm1100_vm1, %v16685_v3 }
0x1104   : > { %v16692_v52 = vpop.f32.mrb[88].mxu0 }
0x1105   : > { %v17588_v56 = vadd.f32 %v16692_v52, %v22462_v22  ;;  %v12446_v4 = vpop.f32.mrb[89].mxu0  ;;  %v22673_v52 = vld [vmem:[#allocation14_spill] sm:$0xff] }
0x1106   : > { %v17589_v5 = vadd.f32 %v22462_v22, %v12446_v4  ;;  %v22674_v4 = vld [vmem:[#allocation15_spill] sm:$0xff] }
0x1107   : > { %12638 = vst.msk [vmem:[%s22466_s13 + $0x8] sm:$0xff] %vm312_vm0, %v17588_v56  ;;  %v3454_v56 = vadd.f32 %v22673_v52, %v22462_v22 }
0x1108   : > { %12637 = vst.msk [vmem:[%s22466_s13] sm:$0xff] %vm312_vm0, %v17589_v5  ;;  %v16695_v19 = vpop.f32.mrb[90].mxu0  ;;  %v3453_v5 = vadd.f32 %v22462_v22, %v22674_v4 }
0x1109   : > { %v17590_v12 = vadd.f32 %v16695_v19, %v22462_v22  ;;  %v12456_v36 = vpop.f32.mrb[91].mxu0 }
0x110a   : > { %v17591_v30 = vadd.f32 %v22462_v22, %v12456_v36 }
0x110b   : > { %12640 = vst.msk [vmem:[%s22466_s13 + $0x18] sm:$0xff] %vm312_vm0, %v17590_v12 }
0x110c   : > { %12639 = vst.msk [vmem:[%s22466_s13 + $0x10] sm:$0xff] %vm312_vm0, %v17591_v30  ;;  %v16698_v57 = vpop.f32.mrb[92].mxu0 }
0x110d   : > { %v17592_v7 = vadd.f32 %v16698_v57, %v22462_v22  ;;  %v12466_v27 = vpop.f32.mrb[93].mxu0  ;;  %v22675_v57 = vld [vmem:[#allocation16_spill] sm:$0xff] }
0x110e   : > { %v17593_v63 = vadd.f32 %v22462_v22, %v12466_v27  ;;  %v22676_v27 = vld [vmem:[#allocation17_spill] sm:$0xff] }
0x110f   : > { %12642 = vst.msk [vmem:[%s22466_s13 + $0x28] sm:$0xff] %vm312_vm0, %v17592_v7  ;;  %v3456_v7 = vadd.f32 %v22675_v57, %v22462_v22 }
0x1110   : > { %12641 = vst.msk [vmem:[%s22466_s13 + $0x20] sm:$0xff] %vm312_vm0, %v17593_v63  ;;  %v16701_v41 = vpop.f32.mrb[94].mxu0  ;;  %v3455_v63 = vadd.f32 %v22462_v22, %v22676_v27 }
0x1111   : > { %v17594_v26 = vadd.f32 %v16701_v41, %v22462_v22  ;;  %v12476_v1 = vpop.f32.mrb[95].mxu0 }
0x1112   : > { %v17595_v31 = vadd.f32 %v22462_v22, %v12476_v1 }
0x1113   : > { %12644 = vst.msk [vmem:[%s22466_s13 + $0x38] sm:$0xff] %vm312_vm0, %v17594_v26 }
0x1114   : > { %12643 = vst.msk [vmem:[%s22466_s13 + $0x30] sm:$0xff] %vm312_vm0, %v17595_v31  ;;  %v16704_v29 = vpop.f32.mrb[96].mxu0 }
0x1115   : > { %v17596_v46 = vadd.f32 %v16704_v29, %v22462_v22  ;;  %v12486_v34 = vpop.f32.mrb[97].mxu0  ;;  %v22677_v29 = vld [vmem:[#allocation18_spill] sm:$0xff] }
0x1116   : > { %v17597_v40 = vadd.f32 %v22462_v22, %v12486_v34  ;;  %v22678_v34 = vld [vmem:[#allocation19_spill] sm:$0xff] }
0x1117   : > { %12646 = vst.msk [vmem:[%s22466_s13 + $0x48] sm:$0xff] %vm312_vm0, %v17596_v46  ;;  %v3458_v46 = vadd.f32 %v22677_v29, %v22462_v22 }
0x1118   : > { %12645 = vst.msk [vmem:[%s22466_s13 + $0x40] sm:$0xff] %vm312_vm0, %v17597_v40  ;;  %v16707_v48 = vpop.f32.mrb[98].mxu0  ;;  %v3457_v40 = vadd.f32 %v22462_v22, %v22678_v34 }
0x1119   : > { %v17598_v62 = vadd.f32 %v16707_v48, %v22462_v22  ;;  %v12496_v15 = vpop.f32.mrb[99].mxu0 }
0x111a   : > { %v17599_v39 = vadd.f32 %v22462_v22, %v12496_v15 }
0x111b   : > { %12648 = vst.msk [vmem:[%s22466_s13 + $0x58] sm:$0xff] %vm312_vm0, %v17598_v62 }
0x111c   : > { %12647 = vst.msk [vmem:[%s22466_s13 + $0x50] sm:$0xff] %vm312_vm0, %v17599_v39  ;;  %v16710_v43 = vpop.f32.mrb[168].mxu0 }
0x111d   : > { %v17601_v14 = vadd.f32 %v16710_v43, %v3444_v50  ;;  %v12506_v6 = vpop.f32.mrb[169].mxu0  ;;  %v22679_v50 = vld [vmem:[#allocation20_spill] sm:$0xff] }
0x111e   : > { %v17603_v51 = vadd.f32 %v12506_v6, %v3443_v35  ;;  %v3460_v20 = vadd.f32 %v22679_v50, %v22462_v22  ;;  %v22680_v35 = vld [vmem:[#allocation21_spill] sm:$0xff] }
0x111f   : > { %12650 = vst.msk [vmem:[%s22466_s13 + $0x68] sm:$0xff] %vm312_vm0, %v17601_v14  ;;  %v3459_v43 = vadd.f32 %v22462_v22, %v22680_v35 }
0x1120   : > { %12649 = vst.msk [vmem:[%s22466_s13 + $0x60] sm:$0xff] %vm312_vm0, %v17603_v51  ;;  %v16713_v24 = vpop.f32.mrb[170].mxu0 }
0x1121   : > { %v17605_v53 = vadd.f32 %v16713_v24, %v3446_v8  ;;  %v12516_v44 = vpop.f32.mrb[171].mxu0  ;;  %v22681_v8 = vld [vmem:[#allocation22_spill] sm:$0xff] }
0x1122   : > { %v17607_v33 = vadd.f32 %v12516_v44, %v3445_v18  ;;  %v3462_v42 = vadd.f32 %v22681_v8, %v22462_v22  ;;  %v22682_v18 = vld [vmem:[#allocation23_spill] sm:$0xff] }
0x1123   : > { %12652 = vst.msk [vmem:[%s22466_s13 + $0x78] sm:$0xff] %vm312_vm0, %v17605_v53  ;;  %v3461_v24 = vadd.f32 %v22462_v22, %v22682_v18 }
0x1124   : > { %12651 = vst.msk [vmem:[%s22466_s13 + $0x70] sm:$0xff] %vm312_vm0, %v17607_v33  ;;  %v16716_v47 = vpop.f32.mrb[172].mxu0 }
0x1125   : > { %v17609_v54 = vadd.f32 %v16716_v47, %v3448_v10  ;;  %v12526_v21 = vpop.f32.mrb[173].mxu0 }
0x1126   : > { %v17611_v9 = vadd.f32 %v12526_v21, %v3447_v38 }
0x1127   : > { %12654 = vst.msk [vmem:[%s22466_s13 + $0x88] sm:$0xff] %vm312_vm0, %v17609_v54 }
0x1128   : > { %12653 = vst.msk [vmem:[%s22466_s13 + $0x80] sm:$0xff] %vm312_vm0, %v17611_v9  ;;  %v16719_v58 = vpop.f32.mrb[174].mxu0 }
0x1129   : > { %v17613_v16 = vadd.f32 %v16719_v58, %v3450_v25  ;;  %v12536_v13 = vpop.f32.mrb[175].mxu0 }
0x112a   : > { %v17615_v0 = vadd.f32 %v12536_v13, %v3449_v59 }
0x112b   : > { %12656 = vst.msk [vmem:[%s22466_s13 + $0x98] sm:$0xff] %vm312_vm0, %v17613_v16 }
0x112c   : > { %12655 = vst.msk [vmem:[%s22466_s13 + $0x90] sm:$0xff] %vm312_vm0, %v17615_v0  ;;  %v16722_v2 = vpop.f32.mrb[176].mxu0 }
0x112d   : > { %v17617_v32 = vadd.f32 %v16722_v2, %v3452_v45  ;;  %v12546_v3 = vpop.f32.mrb[177].mxu0 }
0x112e   : > { %v17619_v55 = vadd.f32 %v12546_v3, %v3451_v37 }
0x112f   : > { %12658 = vst.msk [vmem:[%s22466_s13 + $0xa8] sm:$0xff] %vm312_vm0, %v17617_v32 }
0x1130   : > { %12657 = vst.msk [vmem:[%s22466_s13 + $0xa0] sm:$0xff] %vm312_vm0, %v17619_v55  ;;  %v16725_v19 = vpop.f32.mrb[178].mxu0 }
0x1131   : > { %v17621_v12 = vadd.f32 %v16725_v19, %v3454_v56  ;;  %v12556_v36 = vpop.f32.mrb[179].mxu0 }
0x1132   : > { %v17623_v30 = vadd.f32 %v12556_v36, %v3453_v5 }
0x1133   : > { %12660 = vst.msk [vmem:[%s22466_s13 + $0xb8] sm:$0xff] %vm312_vm0, %v17621_v12 }
0x1134   : > { %12659 = vst.msk [vmem:[%s22466_s13 + $0xb0] sm:$0xff] %vm312_vm0, %v17623_v30  ;;  %v16728_v41 = vpop.f32.mrb[180].mxu0 }
0x1135   : > { %v17625_v26 = vadd.f32 %v16728_v41, %v3456_v7  ;;  %v12566_v1 = vpop.f32.mrb[181].mxu0 }
0x1136   : > { %v17627_v31 = vadd.f32 %v12566_v1, %v3455_v63 }
0x1137   : > { %12662 = vst.msk [vmem:[%s22466_s13 + $0xc8] sm:$0xff] %vm312_vm0, %v17625_v26 }
0x1138   : > { %12661 = vst.msk [vmem:[%s22466_s13 + $0xc0] sm:$0xff] %vm312_vm0, %v17627_v31  ;;  %v16731_v48 = vpop.f32.mrb[182].mxu0 }
0x1139   : > { %v17629_v62 = vadd.f32 %v16731_v48, %v3458_v46  ;;  %v12576_v15 = vpop.f32.mrb[183].mxu0 }
0x113a   : > { %v17631_v39 = vadd.f32 %v12576_v15, %v3457_v40 }
0x113b   : > { %12664 = vst.msk [vmem:[%s22466_s13 + $0xd8] sm:$0xff] %vm312_vm0, %v17629_v62 }
0x113c   : > { %12663 = vst.msk [vmem:[%s22466_s13 + $0xd0] sm:$0xff] %vm312_vm0, %v17631_v39  ;;  %v16734_v14 = vpop.f32.mrb[184].mxu0 }
0x113d   : > { %v17633_v6 = vadd.f32 %v16734_v14, %v3460_v20  ;;  %v12586_v51 = vpop.f32.mrb[185].mxu0 }
0x113e   : > { %v17635_v17 = vadd.f32 %v12586_v51, %v3459_v43 }
0x113f   : > { %12666 = vst.msk [vmem:[%s22466_s13 + $0xe8] sm:$0xff] %vm312_vm0, %v17633_v6 }
0x1140   : > { %12665 = vst.msk [vmem:[%s22466_s13 + $0xe0] sm:$0xff] %vm312_vm0, %v17635_v17  ;;  %v16737_v53 = vpop.f32.mrb[186].mxu0 }
0x1141   : > { %v17637_v44 = vadd.f32 %v16737_v53, %v3462_v42  ;;  %v12596_v33 = vpop.f32.mrb[187].mxu0 }
0x1142   : > { %v17639_v61 = vadd.f32 %v12596_v33, %v3461_v24 }
0x1143   : > { %12668 = vst.msk [vmem:[%s22466_s13 + $0xf8] sm:$0xff] %vm312_vm0, %v17637_v44 }
0x1144   : > { %12667 = vst.msk [vmem:[%s22466_s13 + $0xf0] sm:$0xff] %vm312_vm0, %v17639_v61 }
0x1145   : > { %18379 = shalt.err (!%p18376_p3)
}
0x1146   : > { %s18380_s29 = scalar_lea.hbm %s22583_s19, 4096  ;;  %s18384_s15 = scalar_lea.hbm %s22640_s6, 8192 }
0x1147   : > { %p18381_p4 = scmp.ne.s32.totalorder %s22583_s19, %s18380_s29  ;;  %p18385_p9 = scmp.lt.u32.totalorder %s22583_s19, %s22640_s6 }
0x1148   : > { %p18386_p10 = scmp.lt.u32.totalorder %s18384_s15, %s18380_s29  ;;  %p18388_p12 = scmp.lt.u32.totalorder %s18380_s29, %s22583_s19 }
0x1149   : > { %p18382_p7 = pnand %p18381_p4, %p18507_p5 }
0x114a   : > { %p18387_p11 = por %p18386_p10, %p18385_p9 }
0x114b   : > { %p18383_p8 = pneg %p18382_p7 }
0x114c   : > { %p18389_p13 = por %p18388_p12, %p18387_p11 }
0x114e   : > { %p18390_p0 = pnand %p18389_p13, %p18383_p8 }
0x1150   : > { %18393 = shalt.err (!%p18390_p0)
}
0x1151   : > { %s18432_s14 = smov 128   ;;  %s18433_s17 = smov 8  }
0x1152   : > { %17716 = dma.vmem_to_hbm [thread:$0]  (%p18507_p5), %s22585_s16, 4096, %s22583_s19, %s22593_s25, %s18432_s14, %s18432_s14, %s18433_s17  }
0x1153 PF: > { %p17722_p1 = scmp.ge.s32.totalorder %s18428_s24, 2  ;;  %s12699_s18 = sand.u32 1, %s18416_s21  }
0x1154   : > { %s12700_s20 = scalar_lea.sflag [#allocation3], %s12699_s18 }
0x1155   : > { %p17719_p2 = pnand %p17722_p1, %p18511_p6 }
0x1157   : > { %18411 = dma.done.wait (!%p17719_p2), %s12700_s20, 4096  }
0x1158   : > { %18413 = vsyncadd (!%p17719_p2), %s12700_s20, 4294963200  ;;  %p16_p3 = scmp.ge.s32.totalorder %s18494_s27, 4   ;;  %s22683_s21 = smov %s18420_s22 }
0x1159   : > { %s22684_s22 = smov %s18424_s23  ;;  %s22685_s23 = smov %s18505_s30 }
0x115a   : > { %s22686_s24 = smov %s18494_s27  ;;  %18 = sbr.rel (!%p16_p3) target bundleno = 3 (0x3), region = 91 }
0x1161   :  { %12705 = vsyncpa [#allocation3], 1 }
0x1162   :  { %12707 = vsyncpa [#allocation3 + $0x1], 1 }

</bundles_post_ra>
